<compile_context>
chip_gen: v5e
topology: v5e:2x2
jax: 0.10.0
libtpu: 0.0.40
codegen_flags: <defaults>
</compile_context>

<pallas_src>
import functools
import math

import jax
import jax.numpy as jnp
import numpy as np
from jax.experimental import pallas as pl
from jax.experimental.pallas import tpu as pltpu

H, W = 6, 7
HW = H * W
C = 128                        # tower width
C_V, C_P = 3, 32               # value / policy 1x1-conv output channels
N_RES = 19
N_STEPS = 1 + N_RES            # step 0 = conv block, steps 1..19 = one residual block each
BN_EPS = 1e-5
BN_SCALE = 1.0 / math.sqrt(1.0 + BN_EPS)   # inference-mode BN fold (gamma=1, beta=0, mean=0, var=1)

# Flat row shift for each 3x3 tap t (dh = t//3 - 1, dw = t%3 - 1): source row = dest row + shift.
_TAP_SHIFT = tuple((t // 3 - 1) * W + (t % 3 - 1) for t in range(9))


# ------------------------------ Pallas kernels ------------------------------ #

def _tower_kernel(x_ref, mask_ref, shift_ref, whead_ref, bhead_ref, w_ref,
                  o_ref, act_ref, res_ref, slab_ref):
    """One grid step == one residual block (2 convs); step 0 == the initial conv block.

    x_ref     (M, 128)  bf16   network input, rows/channels zero-padded (used at step 0 only)
    mask_ref  (9, M, 128) bf16 per-tap 0/1 boundary masks (also zero on pad rows), resident
    shift_ref (2*N_STEPS, 128) f32  folded BN shift per conv layer, resident
    whead_ref (128, 128) bf16  fused 1x1 head-conv weights (value cols 0..2, policy cols 3..34)
    bhead_ref (1, 128)   f32   fused 1x1 head-conv bias
    w_ref     (2, 1152, 128) bf16  this step's two conv weights (tap-major, cin-minor), streamed
    o_ref     (M, 128)  f32    output: relu(bn(head 1x1 convs)) of the final activation
    act_ref   (M, 128)  f32    VMEM scratch: current activation
    res_ref   (M, 128)  f32    VMEM scratch: residual (kept in f32)
    slab_ref  (M, 1152) bf16   VMEM scratch: im2col slab
    """
    step = pl.program_id(0)
    m_pad = act_ref.shape[0]

    @pl.when(step == 0)
    def _():
        act_ref[...] = x_ref[...].astype(jnp.float32)

    def conv3x3(w, shift):
        """Padded 3x3 conv of act_ref: roll+mask im2col slab, then one long-K matmul."""
        x = act_ref[...]                                           # (M, 128) f32
        for t in range(9):                                         # taps, unrolled
            k = _TAP_SHIFT[t]
            rolled = x if k == 0 else pltpu.roll(x, shift=(-k) % m_pad, axis=0)
            slab_ref[:, t * C:(t + 1) * C] = rolled.astype(jnp.bfloat16) * mask_ref[t]
        acc = jnp.dot(slab_ref[...], w, preferred_element_type=jnp.float32)
        return acc + shift                                         # folded BN shift (f32)

    # Conv A: initial 3x3 conv (step 0) or residual-block conv1 (steps 1..19).
    y1 = conv3x3(w_ref[0], shift_ref[pl.ds(2 * step, 1), :])

    @pl.when(step == 0)
    def _():
        a0 = jnp.maximum(y1, 0.0)
        act_ref[...] = a0
        res_ref[...] = a0

    @pl.when(step > 0)
    def _():
        act_ref[...] = jnp.maximum(y1, 0.0)
        # Conv B: residual-block conv2 + residual add + relu.
        y2 = conv3x3(w_ref[1], shift_ref[pl.ds(2 * step + 1, 1), :]) + res_ref[...]
        out = jnp.maximum(y2, 0.0)
        act_ref[...] = out
        res_ref[...] = out

    # Final step only: fused value/policy 1x1 convs (+ folded BN + relu), single output store.
    @pl.when(step == pl.num_programs(0) - 1)
    def _():
        head = jnp.dot(act_ref[...].astype(jnp.bfloat16), whead_ref[...],
                       preferred_element_type=jnp.float32) + bhead_ref[...]
        o_ref[...] = jnp.maximum(head, 0.0)


def _heads_kernel(vflat_ref, pflat_ref, w1_ref, b1_ref, w2_ref, b2_ref,
                  wp_ref, bp_ref, p_out_ref, v_out_ref):
    """Fused OutputBlock FC heads (f32)."""
    # Value head: relu(fc1(.)) -> tanh(fc2(.)).
    h = jnp.dot(vflat_ref[...], w1_ref[...], preferred_element_type=jnp.float32) + b1_ref[...]
    h = jnp.maximum(h, 0.0)
    val = jnp.dot(h, w2_ref[...], preferred_element_type=jnp.float32) + b2_ref[...]
    v_out_ref[...] = jnp.tanh(val)

    # Policy head: fc -> exp(log_softmax(.)) == softmax.
    logits = jnp.dot(pflat_ref[...], wp_ref[...], preferred_element_type=jnp.float32) + bp_ref[...]
    mx = jnp.max(logits, axis=-1, keepdims=True)
    e = jnp.exp(logits - mx)
    p_out_ref[...] = e / jnp.sum(e, axis=-1, keepdims=True)


# --------------------------- constants / wrappers ---------------------------- #

def _round_up(x, m):
    return ((x + m - 1) // m) * m


@functools.lru_cache(maxsize=None)
def _tap_masks(batch, m_pad):
    """(9, m_pad, C) 0/1 masks: 1 where (h+dh, w+dw) is inside the board, 0 elsewhere/pad rows."""
    mask = np.zeros((9, m_pad, C), np.float32)
    for t in range(9):
        dh, dw = t // 3 - 1, t % 3 - 1
        for b in range(batch):
            for h in range(H):
                for w in range(W):
                    if 0 <= h + dh < H and 0 <= w + dw < W:
                        mask[t, b * HW + h * W + w, :] = 1.0
    return jnp.asarray(mask, jnp.bfloat16)


def _run_tower(x_pad, params, batch):
    m_pad = x_pad.shape[0]
    masks = _tap_masks(batch, m_pad)
    return pl.pallas_call(
        _tower_kernel,
        out_shape=jax.ShapeDtypeStruct((m_pad, C), jnp.float32),
        grid_spec=pltpu.PrefetchScalarGridSpec(
            num_scalar_prefetch=0,
            grid=(N_STEPS,),
            in_specs=[
                pl.BlockSpec((m_pad, C), lambda s: (0, 0)),                 # input: resident
                pl.BlockSpec((9, m_pad, C), lambda s: (0, 0, 0)),           # tap masks: resident
                pl.BlockSpec((2 * N_STEPS, C), lambda s: (0, 0)),           # BN shifts: resident
                pl.BlockSpec((C, C), lambda s: (0, 0)),                     # head-conv W: resident
                pl.BlockSpec((1, C), lambda s: (0, 0)),                     # head-conv b: resident
                pl.BlockSpec((None, 2, 9 * C, C), lambda s: (s, 0, 0, 0)),  # conv W: streamed/step
            ],
            out_specs=pl.BlockSpec((m_pad, C), lambda s: (0, 0)),
            scratch_shapes=[pltpu.VMEM((m_pad, C), jnp.float32),            # activation (f32)
                            pltpu.VMEM((m_pad, C), jnp.float32),            # residual  (f32)
                            pltpu.VMEM((m_pad, 9 * C), jnp.bfloat16)],      # im2col slab
        ),
        # Single sequential axis; at larger batch a leading "parallel" row axis would let v7x's
        # two TensorCores split rows (each re-streams the weights), not worth it at batch=2.
        compiler_params=pltpu.CompilerParams(dimension_semantics=("arbitrary",)),
    )(x_pad, masks, params["shift_all"], params["whead"], params["bhead"], params["w_all"])


def _run_heads(v_flat, p_flat, params):
    batch = v_flat.shape[0]
    return pl.pallas_call(
        _heads_kernel,
        out_shape=(jax.ShapeDtypeStruct((batch, 7), jnp.float32),
                   jax.ShapeDtypeStruct((batch, 1), jnp.float32)),
        in_specs=[pl.BlockSpec(memory_space=pltpu.MemorySpace.VMEM)] * 8,
        out_specs=(pl.BlockSpec(memory_space=pltpu.MemorySpace.VMEM),
                   pl.BlockSpec(memory_space=pltpu.MemorySpace.VMEM)),
    )(v_flat, p_flat, params["fc1_w"], params["fc1_b"], params["fc2_w"],
      params["fc2_b"], params["fcp_w"], params["fcp_b"])


# -------------------------------- parameters --------------------------------- #

def init_params(key):
    keys = jax.random.split(key, 48)
    ki = iter(keys)

    # Step 0: ConvolutionalBlock conv1 (3->128, bias) + bn1; input channels zero-padded to 128.
    # Conv weight rows are (tap-major, cin-minor): row = t*128 + cin, matching the im2col slab.
    # To load PyTorch weights: ours[(kh*3+kw)*128 + cin, cout] = W_torch[cout, cin, kh, kw].
    w0 = jax.random.normal(next(ki), (9, 3, C), jnp.float32) / math.sqrt(9 * 3)
    b0 = 0.01 * jax.random.normal(next(ki), (C,), jnp.float32)
    w0_full = (jnp.zeros((9, C, C), jnp.float32).at[:, :3, :].set(w0) * BN_SCALE).reshape(9 * C, C)

    w_steps = [jnp.stack([w0_full, jnp.zeros((9 * C, C), jnp.float32)])]   # slot 1 unused at step 0
    shift_rows = [b0 * BN_SCALE, jnp.zeros((C,), jnp.float32)]

    # Steps 1..19: 19 residual blocks, two 3x3 convs each (128->128, bias=False) + BN.
    for _ in range(N_RES):
        w1 = jax.random.normal(next(ki), (9 * C, C), jnp.float32) * (BN_SCALE / math.sqrt(9 * C))
        w2 = jax.random.normal(next(ki), (9 * C, C), jnp.float32) * (BN_SCALE / math.sqrt(9 * C))
        w_steps.append(jnp.stack([w1, w2]))
        shift_rows += [jnp.zeros((C,), jnp.float32), jnp.zeros((C,), jnp.float32)]

    w_all = jnp.stack(w_steps).astype(jnp.bfloat16)          # (20, 2, 1152, 128) bf16
    shift_all = jnp.stack(shift_rows)                         # (40, 128) f32

    # Fused OutputBlock 1x1 convs: value (128->3) in cols 0..2, policy (128->32) in cols 3..34.
    wv = jax.random.normal(next(ki), (C, C_V), jnp.float32) / math.sqrt(C)
    bv = 0.01 * jax.random.normal(next(ki), (C_V,), jnp.float32)
    wp = jax.random.normal(next(ki), (C, C_P), jnp.float32) / math.sqrt(C)
    bp = 0.01 * jax.random.normal(next(ki), (C_P,), jnp.float32)
    whead = jnp.zeros((C, C), jnp.float32)
    whead = whead.at[:, :C_V].set(wv * BN_SCALE).at[:, C_V:C_V + C_P].set(wp * BN_SCALE)
    bhead = jnp.zeros((1, C), jnp.float32)
    bhead = bhead.at[0, :C_V].set(bv * BN_SCALE).at[0, C_V:C_V + C_P].set(bp * BN_SCALE)

    # FC heads (f32).  Row layout is (spatial-major, channel-minor): row = (h*7+w)*C_head + c.
    # To load real PyTorch weights, permute rows: W_here[s*C_head + c, :] = W_torch[:, c*42 + s].
    def lin(k, fin, fout):
        k1, k2 = jax.random.split(k)
        bound = 1.0 / math.sqrt(fin)
        return (jax.random.uniform(k1, (fin, fout), jnp.float32, -bound, bound),
                jax.random.uniform(k2, (1, fout), jnp.float32, -bound, bound))

    fc1_w, fc1_b = lin(next(ki), HW * C_V, 32)
    fc2_w, fc2_b = lin(next(ki), 32, 1)
    fcp_w, fcp_b = lin(next(ki), HW * C_P, 7)

    return {"w_all": w_all, "shift_all": shift_all,
            "whead": whead.astype(jnp.bfloat16), "bhead": bhead,
            "fc1_w": fc1_w, "fc1_b": fc1_b,
            "fc2_w": fc2_w, "fc2_b": fc2_b,
            "fcp_w": fcp_w, "fcp_b": fcp_b}


# ---------------------------------- forward ----------------------------------- #

@jax.jit
def connection_network_forward(s_nchw, params):
    """s_nchw: anything reshapable to (B, 3, 6, 7), mirroring torch `s.view(-1, 3, 6, 7)`."""
    s = s_nchw.reshape(-1, 3, H, W)
    batch = s.shape[0]
    m = batch * HW
    m_pad = _round_up(m, 128)   # pad rows so rolls / matmuls are tile-aligned (junk rows masked)

    # NCHW -> NHWC -> (B*H*W, Cin); zero-pad rows to m_pad and channels 3 -> 128.
    x = jnp.transpose(s, (0, 2, 3, 1)).reshape(m, 3)
    x = jnp.pad(x, ((0, m_pad - m), (0, C - 3))).astype(jnp.bfloat16)

    head = _run_tower(x, params, batch)[:m]                    # relu(bn(1x1 convs)), (m, 128) f32

    # Cols 0..2 = value 1x1-conv activations; cols 3..34 = policy.  Flatten per batch in
    # (spatial-major, channel-minor) order to match the FC weight layout.
    v_flat = head[:, :C_V].reshape(batch, HW * C_V)            # (B, 126)
    p_flat = head[:, C_V:C_V + C_P].reshape(batch, HW * C_P)   # (B, 1344)

    p, v = _run_heads(v_flat, p_flat, params)
    return p, v


# ------------------------------------ main ------------------------------------ #

if __name__ == "__main__":
    key = jax.random.PRNGKey(0)
    k_param, k_input = jax.random.split(key)

    params = init_params(k_param)
    x = jax.random.normal(k_input, (2, 3, H, W), jnp.float32)   # batch=2, NCHW like PyTorch

    p, v = connection_network_forward(x, params)
    p, v = jax.block_until_ready((p, v))

    assert p.shape == (2, 7) and v.shape == (2, 1)
    assert bool(jnp.all(jnp.isfinite(p))) and bool(jnp.all(jnp.isfinite(v)))
    assert bool(jnp.allclose(jnp.sum(p, axis=1), 1.0, atol=1e-3))
    print("KERNEL_OK")
</pallas_src>

<mosaic_0001>
module attributes {stable_mosaic.version = 11 : i64} {
  func.func @_tower_kernel(%arg0: i32, %arg1: memref<128x128xbf16, #tpu.memory_space<vmem>>, %arg2: memref<9x128x128xbf16, #tpu.memory_space<vmem>>, %arg3: memref<40x128xf32, #tpu.memory_space<vmem>>, %arg4: memref<128x128xbf16, #tpu.memory_space<vmem>>, %arg5: memref<1x128xf32, #tpu.memory_space<vmem>>, %arg6: memref<1x2x1152x128xbf16, #tpu.memory_space<vmem>>, %arg7: memref<128x128xf32, #tpu.memory_space<vmem>>, %arg8: memref<128x128xf32, #tpu.memory_space<vmem>>, %arg9: memref<128x128xf32, #tpu.memory_space<vmem>>, %arg10: memref<128x1152xbf16, #tpu.memory_space<vmem>>) attributes {dimension_semantics = [#tpu.dimension_semantics<arbitrary>], iteration_bounds = array<i64: 20>, scalar_prefetch = 0 : i64, scratch_operands = 3 : i64, tpu.core_type = #tpu.core_type<tc>, window_params = [{pipeline_mode = #tpu.pipeline_mode<synchronous>, transform_indices = @transform_0, window_bounds = array<i64: 128, 128>}, {pipeline_mode = #tpu.pipeline_mode<synchronous>, transform_indices = @transform_1, window_bounds = array<i64: 9, 128, 128>}, {pipeline_mode = #tpu.pipeline_mode<synchronous>, transform_indices = @transform_2, window_bounds = array<i64: 40, 128>}, {pipeline_mode = #tpu.pipeline_mode<synchronous>, transform_indices = @transform_3, window_bounds = array<i64: 128, 128>}, {pipeline_mode = #tpu.pipeline_mode<synchronous>, transform_indices = @transform_4, window_bounds = array<i64: 1, 128>}, {transform_indices = @transform_5, window_bounds = array<i64: 1, 2, 1152, 128>}, {pipeline_mode = #tpu.pipeline_mode<synchronous>, transform_indices = @transform_6, window_bounds = array<i64: 128, 128>}]} {
    %c0_i32 = arith.constant 0 : i32
    %0 = arith.cmpi eq, %arg0, %c0_i32 : i32
    %1 = arith.extui %0 : i1 to i32
    %c0_i32_0 = arith.constant 0 : i32
    %2 = arith.cmpi ne, %1, %c0_i32_0 : i32
    scf.if %2 {
      %c0_43 = arith.constant 0 : index
      %c0_44 = arith.constant 0 : index
      %75 = vector.load %arg1[%c0_43, %c0_44] : memref<128x128xbf16, #tpu.memory_space<vmem>>, vector<128x128xbf16>
      %76 = arith.extf %75 : vector<128x128xbf16> to vector<128x128xf32>
      %c0_45 = arith.constant 0 : index
      %c0_46 = arith.constant 0 : index
      %77 = vector.load %arg8[%c0_45, %c0_46] : memref<128x128xf32, #tpu.memory_space<vmem>>, vector<128x128xf32>
      tpu.vector_store %arg8[%c0_45, %c0_46], %76 {strides = array<i32>} : memref<128x128xf32, #tpu.memory_space<vmem>>, vector<128x128xf32>,
    } else {
    }
    %c0 = arith.constant 0 : index
    %c0_1 = arith.constant 0 : index
    %c0_2 = arith.constant 0 : index
    %c0_3 = arith.constant 0 : index
    %3 = vector.load %arg6[%c0, %c0_1, %c0_2, %c0_3] : memref<1x2x1152x128xbf16, #tpu.memory_space<vmem>>, vector<1x1x1152x128xbf16>
    %4 = vector.shape_cast %3 : vector<1x1x1152x128xbf16> to vector<1152x128xbf16>
    %c2_i32 = arith.constant 2 : i32
    %5 = arith.muli %c2_i32, %arg0 : i32
    %6 = arith.index_cast %5 : i32 to index
    %c0_4 = arith.constant 0 : index
    %7 = vector.load %arg3[%6, %c0_4] : memref<40x128xf32, #tpu.memory_space<vmem>>, vector<1x128xf32>
    %c0_5 = arith.constant 0 : index
    %c0_6 = arith.constant 0 : index
    %8 = vector.load %arg8[%c0_5, %c0_6] : memref<128x128xf32, #tpu.memory_space<vmem>>, vector<128x128xf32>
    %c8_i32 = arith.constant 8 : i32
    %9 = tpu.dynamic_rotate %8 by %c8_i32 dim 0 : vector<128x128xf32>, i32 -> vector<128x128xf32>
    %10 = arith.truncf %9 : vector<128x128xf32> to vector<128x128xbf16>
    %c0_7 = arith.constant 0 : index
    %c0_8 = arith.constant 0 : index
    %c0_9 = arith.constant 0 : index
    %11 = vector.load %arg2[%c0_7, %c0_8, %c0_9] : memref<9x128x128xbf16, #tpu.memory_space<vmem>>, vector<1x128x128xbf16>
    %12 = vector.shape_cast %11 : vector<1x128x128xbf16> to vector<128x128xbf16>
    %13 = arith.mulf %10, %12 : vector<128x128xbf16>
    %c0_10 = arith.constant 0 : index
    %c0_11 = arith.constant 0 : index
    %14 = vector.load %arg10[%c0_10, %c0_11] : memref<128x1152xbf16, #tpu.memory_space<vmem>>, vector<128x128xbf16>
    tpu.vector_store %arg10[%c0_10, %c0_11], %13 {strides = array<i32>} : memref<128x1152xbf16, #tpu.memory_space<vmem>>, vector<128x128xbf16>,
    %c7_i32 = arith.constant 7 : i32
    %15 = tpu.dynamic_rotate %8 by %c7_i32 dim 0 : vector<128x128xf32>, i32 -> vector<128x128xf32>
    %16 = arith.truncf %15 : vector<128x128xf32> to vector<128x128xbf16>
    %c1 = arith.constant 1 : index
    %c0_12 = arith.constant 0 : index
    %c0_13 = arith.constant 0 : index
    %17 = vector.load %arg2[%c1, %c0_12, %c0_13] : memref<9x128x128xbf16, #tpu.memory_space<vmem>>, vector<1x128x128xbf16>
    %18 = vector.shape_cast %17 : vector<1x128x128xbf16> to vector<128x128xbf16>
    %19 = arith.mulf %16, %18 : vector<128x128xbf16>
    %c0_14 = arith.constant 0 : index
    %c128 = arith.constant 128 : index
    %20 = vector.load %arg10[%c0_14, %c128] : memref<128x1152xbf16, #tpu.memory_space<vmem>>, vector<128x128xbf16>
    tpu.vector_store %arg10[%c0_14, %c128], %19 {strides = array<i32>} : memref<128x1152xbf16, #tpu.memory_space<vmem>>, vector<128x128xbf16>,
    %c6_i32 = arith.constant 6 : i32
    %21 = tpu.dynamic_rotate %8 by %c6_i32 dim 0 : vector<128x128xf32>, i32 -> vector<128x128xf32>
    %22 = arith.truncf %21 : vector<128x128xf32> to vector<128x128xbf16>
    %c2 = arith.constant 2 : index
    %c0_15 = arith.constant 0 : index
    %c0_16 = arith.constant 0 : index
    %23 = vector.load %arg2[%c2, %c0_15, %c0_16] : memref<9x128x128xbf16, #tpu.memory_space<vmem>>, vector<1x128x128xbf16>
    %24 = vector.shape_cast %23 : vector<1x128x128xbf16> to vector<128x128xbf16>
    %25 = arith.mulf %22, %24 : vector<128x128xbf16>
    %c0_17 = arith.constant 0 : index
    %c256 = arith.constant 256 : index
    %26 = vector.load %arg10[%c0_17, %c256] : memref<128x1152xbf16, #tpu.memory_space<vmem>>, vector<128x128xbf16>
    tpu.vector_store %arg10[%c0_17, %c256], %25 {strides = array<i32>} : memref<128x1152xbf16, #tpu.memory_space<vmem>>, vector<128x128xbf16>,
    %c1_i32 = arith.constant 1 : i32
    %27 = tpu.dynamic_rotate %8 by %c1_i32 dim 0 : vector<128x128xf32>, i32 -> vector<128x128xf32>
    %28 = arith.truncf %27 : vector<128x128xf32> to vector<128x128xbf16>
    %c3 = arith.constant 3 : index
    %c0_18 = arith.constant 0 : index
    %c0_19 = arith.constant 0 : index
    %29 = vector.load %arg2[%c3, %c0_18, %c0_19] : memref<9x128x128xbf16, #tpu.memory_space<vmem>>, vector<1x128x128xbf16>
    %30 = vector.shape_cast %29 : vector<1x128x128xbf16> to vector<128x128xbf16>
    %31 = arith.mulf %28, %30 : vector<128x128xbf16>
    %c0_20 = arith.constant 0 : index
    %c384 = arith.constant 384 : index
    %32 = vector.load %arg10[%c0_20, %c384] : memref<128x1152xbf16, #tpu.memory_space<vmem>>, vector<128x128xbf16>
    tpu.vector_store %arg10[%c0_20, %c384], %31 {strides = array<i32>} : memref<128x1152xbf16, #tpu.memory_space<vmem>>, vector<128x128xbf16>,
    %33 = arith.truncf %8 : vector<128x128xf32> to vector<128x128xbf16>
    %c4 = arith.constant 4 : index
    %c0_21 = arith.constant 0 : index
    %c0_22 = arith.constant 0 : index
    %34 = vector.load %arg2[%c4, %c0_21, %c0_22] : memref<9x128x128xbf16, #tpu.memory_space<vmem>>, vector<1x128x128xbf16>
    %35 = vector.shape_cast %34 : vector<1x128x128xbf16> to vector<128x128xbf16>
    %36 = arith.mulf %33, %35 : vector<128x128xbf16>
    %c0_23 = arith.constant 0 : index
    %c512 = arith.constant 512 : index
    %37 = vector.load %arg10[%c0_23, %c512] : memref<128x1152xbf16, #tpu.memory_space<vmem>>, vector<128x128xbf16>
    tpu.vector_store %arg10[%c0_23, %c512], %36 {strides = array<i32>} : memref<128x1152xbf16, #tpu.memory_space<vmem>>, vector<128x128xbf16>,
    %c127_i32 = arith.constant 127 : i32
    %38 = tpu.dynamic_rotate %8 by %c127_i32 dim 0 : vector<128x128xf32>, i32 -> vector<128x128xf32>
    %39 = arith.truncf %38 : vector<128x128xf32> to vector<128x128xbf16>
    %c5 = arith.constant 5 : index
    %c0_24 = arith.constant 0 : index
    %c0_25 = arith.constant 0 : index
    %40 = vector.load %arg2[%c5, %c0_24, %c0_25] : memref<9x128x128xbf16, #tpu.memory_space<vmem>>, vector<1x128x128xbf16>
    %41 = vector.shape_cast %40 : vector<1x128x128xbf16> to vector<128x128xbf16>
    %42 = arith.mulf %39, %41 : vector<128x128xbf16>
    %c0_26 = arith.constant 0 : index
    %c640 = arith.constant 640 : index
    %43 = vector.load %arg10[%c0_26, %c640] : memref<128x1152xbf16, #tpu.memory_space<vmem>>, vector<128x128xbf16>
    tpu.vector_store %arg10[%c0_26, %c640], %42 {strides = array<i32>} : memref<128x1152xbf16, #tpu.memory_space<vmem>>, vector<128x128xbf16>,
    %c122_i32 = arith.constant 122 : i32
    %44 = tpu.dynamic_rotate %8 by %c122_i32 dim 0 : vector<128x128xf32>, i32 -> vector<128x128xf32>
    %45 = arith.truncf %44 : vector<128x128xf32> to vector<128x128xbf16>
    %c6 = arith.constant 6 : index
    %c0_27 = arith.constant 0 : index
    %c0_28 = arith.constant 0 : index
    %46 = vector.load %arg2[%c6, %c0_27, %c0_28] : memref<9x128x128xbf16, #tpu.memory_space<vmem>>, vector<1x128x128xbf16>
    %47 = vector.shape_cast %46 : vector<1x128x128xbf16> to vector<128x128xbf16>
    %48 = arith.mulf %45, %47 : vector<128x128xbf16>
    %c0_29 = arith.constant 0 : index
    %c768 = arith.constant 768 : index
    %49 = vector.load %arg10[%c0_29, %c768] : memref<128x1152xbf16, #tpu.memory_space<vmem>>, vector<128x128xbf16>
    tpu.vector_store %arg10[%c0_29, %c768], %48 {strides = array<i32>} : memref<128x1152xbf16, #tpu.memory_space<vmem>>, vector<128x128xbf16>,
    %c121_i32 = arith.constant 121 : i32
    %50 = tpu.dynamic_rotate %8 by %c121_i32 dim 0 : vector<128x128xf32>, i32 -> vector<128x128xf32>
    %51 = arith.truncf %50 : vector<128x128xf32> to vector<128x128xbf16>
    %c7 = arith.constant 7 : index
    %c0_30 = arith.constant 0 : index
    %c0_31 = arith.constant 0 : index
    %52 = vector.load %arg2[%c7, %c0_30, %c0_31] : memref<9x128x128xbf16, #tpu.memory_space<vmem>>, vector<1x128x128xbf16>
    %53 = vector.shape_cast %52 : vector<1x128x128xbf16> to vector<128x128xbf16>
    %54 = arith.mulf %51, %53 : vector<128x128xbf16>
    %c0_32 = arith.constant 0 : index
    %c896 = arith.constant 896 : index
    %55 = vector.load %arg10[%c0_32, %c896] : memref<128x1152xbf16, #tpu.memory_space<vmem>>, vector<128x128xbf16>
    tpu.vector_store %arg10[%c0_32, %c896], %54 {strides = array<i32>} : memref<128x1152xbf16, #tpu.memory_space<vmem>>, vector<128x128xbf16>,
    %c120_i32 = arith.constant 120 : i32
    %56 = tpu.dynamic_rotate %8 by %c120_i32 dim 0 : vector<128x128xf32>, i32 -> vector<128x128xf32>
    %57 = arith.truncf %56 : vector<128x128xf32> to vector<128x128xbf16>
    %c8 = arith.constant 8 : index
    %c0_33 = arith.constant 0 : index
    %c0_34 = arith.constant 0 : index
    %58 = vector.load %arg2[%c8, %c0_33, %c0_34] : memref<9x128x128xbf16, #tpu.memory_space<vmem>>, vector<1x128x128xbf16>
    %59 = vector.shape_cast %58 : vector<1x128x128xbf16> to vector<128x128xbf16>
    %60 = arith.mulf %57, %59 : vector<128x128xbf16>
    %c0_35 = arith.constant 0 : index
    %c1024 = arith.constant 1024 : index
    %61 = vector.load %arg10[%c0_35, %c1024] : memref<128x1152xbf16, #tpu.memory_space<vmem>>, vector<128x128xbf16>
    tpu.vector_store %arg10[%c0_35, %c1024], %60 {strides = array<i32>} : memref<128x1152xbf16, #tpu.memory_space<vmem>>, vector<128x128xbf16>,
    %c0_36 = arith.constant 0 : index
    %c0_37 = arith.constant 0 : index
    %62 = vector.load %arg10[%c0_36, %c0_37] : memref<128x1152xbf16, #tpu.memory_space<vmem>>, vector<128x1152xbf16>
    %cst = arith.constant dense<0.000000e+00> : vector<128x128xf32>
    %63 = tpu.matmul %62, %4, %cst {dimension_numbers = #tpu.dot_dimension_numbers<[1], [0], [0], [1], [0, 0, 1, 1], [], []>} : vector<128x1152xbf16>, vector<1152x128xbf16>, vector<128x128xf32> -> vector<128x128xf32>
    %64 = vector.broadcast %7 : vector<1x128xf32> to vector<128x128xf32>
    %65 = arith.addf %63, %64 : vector<128x128xf32>
    %c0_i32_38 = arith.constant 0 : i32
    %66 = arith.cmpi eq, %arg0, %c0_i32_38 : i32
    %67 = arith.extui %66 : i1 to i32
    %c0_i32_39 = arith.constant 0 : i32
    %68 = arith.cmpi ne, %67, %c0_i32_39 : i32
    scf.if %68 {
      %cst_43 = arith.constant 0.000000e+00 : f32
      %75 = vector.broadcast %cst_43 : f32 to vector<128x128xf32>
      %76 = arith.maximumf %65, %75 : vector<128x128xf32>
      %c0_44 = arith.constant 0 : index
      %c0_45 = arith.constant 0 : index
      %77 = vector.load %arg8[%c0_44, %c0_45] : memref<128x128xf32, #tpu.memory_space<vmem>>, vector<128x128xf32>
      tpu.vector_store %arg8[%c0_44, %c0_45], %76 {strides = array<i32>} : memref<128x128xf32, #tpu.memory_space<vmem>>, vector<128x128xf32>,
      %c0_46 = arith.constant 0 : index
      %c0_47 = arith.constant 0 : index
      %78 = vector.load %arg9[%c0_46, %c0_47] : memref<128x128xf32, #tpu.memory_space<vmem>>, vector<128x128xf32>
      tpu.vector_store %arg9[%c0_46, %c0_47], %76 {strides = array<i32>} : memref<128x128xf32, #tpu.memory_space<vmem>>, vector<128x128xf32>,
    } else {
    }
    %c0_i32_40 = arith.constant 0 : i32
    %69 = arith.cmpi sgt, %arg0, %c0_i32_40 : i32
    %70 = arith.extui %69 : i1 to i32
    %c0_i32_41 = arith.constant 0 : i32
    %71 = arith.cmpi ne, %70, %c0_i32_41 : i32
    scf.if %71 {
      %cst_43 = arith.constant 0.000000e+00 : f32
      %75 = vector.broadcast %cst_43 : f32 to vector<128x128xf32>
      %76 = arith.maximumf %65, %75 : vector<128x128xf32>
      %c0_44 = arith.constant 0 : index
      %c0_45 = arith.constant 0 : index
      %77 = vector.load %arg8[%c0_44, %c0_45] : memref<128x128xf32, #tpu.memory_space<vmem>>, vector<128x128xf32>
      tpu.vector_store %arg8[%c0_44, %c0_45], %76 {strides = array<i32>} : memref<128x128xf32, #tpu.memory_space<vmem>>, vector<128x128xf32>,
      %c0_46 = arith.constant 0 : index
      %c1_47 = arith.constant 1 : index
      %c0_48 = arith.constant 0 : index
      %c0_49 = arith.constant 0 : index
      %78 = vector.load %arg6[%c0_46, %c1_47, %c0_48, %c0_49] : memref<1x2x1152x128xbf16, #tpu.memory_space<vmem>>, vector<1x1x1152x128xbf16>
      %79 = vector.shape_cast %78 : vector<1x1x1152x128xbf16> to vector<1152x128xbf16>
      %c2_i32_50 = arith.constant 2 : i32
      %80 = arith.muli %c2_i32_50, %arg0 : i32
      %c1_i32_51 = arith.constant 1 : i32
      %81 = arith.addi %80, %c1_i32_51 : i32
      %82 = arith.index_cast %81 : i32 to index
      %c0_52 = arith.constant 0 : index
      %83 = vector.load %arg3[%82, %c0_52] : memref<40x128xf32, #tpu.memory_space<vmem>>, vector<1x128xf32>
      %c0_53 = arith.constant 0 : index
      %c0_54 = arith.constant 0 : index
      %84 = vector.load %arg8[%c0_53, %c0_54] : memref<128x128xf32, #tpu.memory_space<vmem>>, vector<128x128xf32>
      %c8_i32_55 = arith.constant 8 : i32
      %85 = tpu.dynamic_rotate %84 by %c8_i32_55 dim 0 : vector<128x128xf32>, i32 -> vector<128x128xf32>
      %86 = arith.truncf %85 : vector<128x128xf32> to vector<128x128xbf16>
      %c0_56 = arith.constant 0 : index
      %c0_57 = arith.constant 0 : index
      %c0_58 = arith.constant 0 : index
      %87 = vector.load %arg2[%c0_56, %c0_57, %c0_58] : memref<9x128x128xbf16, #tpu.memory_space<vmem>>, vector<1x128x128xbf16>
      %88 = vector.shape_cast %87 : vector<1x128x128xbf16> to vector<128x128xbf16>
      %89 = arith.mulf %86, %88 : vector<128x128xbf16>
      %c0_59 = arith.constant 0 : index
      %c0_60 = arith.constant 0 : index
      %90 = vector.load %arg10[%c0_59, %c0_60] : memref<128x1152xbf16, #tpu.memory_space<vmem>>, vector<128x128xbf16>
      tpu.vector_store %arg10[%c0_59, %c0_60], %89 {strides = array<i32>} : memref<128x1152xbf16, #tpu.memory_space<vmem>>, vector<128x128xbf16>,
      %c7_i32_61 = arith.constant 7 : i32
      %91 = tpu.dynamic_rotate %84 by %c7_i32_61 dim 0 : vector<128x128xf32>, i32 -> vector<128x128xf32>
      %92 = arith.truncf %91 : vector<128x128xf32> to vector<128x128xbf16>
      %c1_62 = arith.constant 1 : index
      %c0_63 = arith.constant 0 : index
      %c0_64 = arith.constant 0 : index
      %93 = vector.load %arg2[%c1_62, %c0_63, %c0_64] : memref<9x128x128xbf16, #tpu.memory_space<vmem>>, vector<1x128x128xbf16>
      %94 = vector.shape_cast %93 : vector<1x128x128xbf16> to vector<128x128xbf16>
      %95 = arith.mulf %92, %94 : vector<128x128xbf16>
      %c0_65 = arith.constant 0 : index
      %c128_66 = arith.constant 128 : index
      %96 = vector.load %arg10[%c0_65, %c128_66] : memref<128x1152xbf16, #tpu.memory_space<vmem>>, vector<128x128xbf16>
      tpu.vector_store %arg10[%c0_65, %c128_66], %95 {strides = array<i32>} : memref<128x1152xbf16, #tpu.memory_space<vmem>>, vector<128x128xbf16>,
      %c6_i32_67 = arith.constant 6 : i32
      %97 = tpu.dynamic_rotate %84 by %c6_i32_67 dim 0 : vector<128x128xf32>, i32 -> vector<128x128xf32>
      %98 = arith.truncf %97 : vector<128x128xf32> to vector<128x128xbf16>
      %c2_68 = arith.constant 2 : index
      %c0_69 = arith.constant 0 : index
      %c0_70 = arith.constant 0 : index
      %99 = vector.load %arg2[%c2_68, %c0_69, %c0_70] : memref<9x128x128xbf16, #tpu.memory_space<vmem>>, vector<1x128x128xbf16>
      %100 = vector.shape_cast %99 : vector<1x128x128xbf16> to vector<128x128xbf16>
      %101 = arith.mulf %98, %100 : vector<128x128xbf16>
      %c0_71 = arith.constant 0 : index
      %c256_72 = arith.constant 256 : index
      %102 = vector.load %arg10[%c0_71, %c256_72] : memref<128x1152xbf16, #tpu.memory_space<vmem>>, vector<128x128xbf16>
      tpu.vector_store %arg10[%c0_71, %c256_72], %101 {strides = array<i32>} : memref<128x1152xbf16, #tpu.memory_space<vmem>>, vector<128x128xbf16>,
      %c1_i32_73 = arith.constant 1 : i32
      %103 = tpu.dynamic_rotate %84 by %c1_i32_73 dim 0 : vector<128x128xf32>, i32 -> vector<128x128xf32>
      %104 = arith.truncf %103 : vector<128x128xf32> to vector<128x128xbf16>
      %c3_74 = arith.constant 3 : index
      %c0_75 = arith.constant 0 : index
      %c0_76 = arith.constant 0 : index
      %105 = vector.load %arg2[%c3_74, %c0_75, %c0_76] : memref<9x128x128xbf16, #tpu.memory_space<vmem>>, vector<1x128x128xbf16>
      %106 = vector.shape_cast %105 : vector<1x128x128xbf16> to vector<128x128xbf16>
      %107 = arith.mulf %104, %106 : vector<128x128xbf16>
      %c0_77 = arith.constant 0 : index
      %c384_78 = arith.constant 384 : index
      %108 = vector.load %arg10[%c0_77, %c384_78] : memref<128x1152xbf16, #tpu.memory_space<vmem>>, vector<128x128xbf16>
      tpu.vector_store %arg10[%c0_77, %c384_78], %107 {strides = array<i32>} : memref<128x1152xbf16, #tpu.memory_space<vmem>>, vector<128x128xbf16>,
      %109 = arith.truncf %84 : vector<128x128xf32> to vector<128x128xbf16>
      %c4_79 = arith.constant 4 : index
      %c0_80 = arith.constant 0 : index
      %c0_81 = arith.constant 0 : index
      %110 = vector.load %arg2[%c4_79, %c0_80, %c0_81] : memref<9x128x128xbf16, #tpu.memory_space<vmem>>, vector<1x128x128xbf16>
      %111 = vector.shape_cast %110 : vector<1x128x128xbf16> to vector<128x128xbf16>
      %112 = arith.mulf %109, %111 : vector<128x128xbf16>
      %c0_82 = arith.constant 0 : index
      %c512_83 = arith.constant 512 : index
      %113 = vector.load %arg10[%c0_82, %c512_83] : memref<128x1152xbf16, #tpu.memory_space<vmem>>, vector<128x128xbf16>
      tpu.vector_store %arg10[%c0_82, %c512_83], %112 {strides = array<i32>} : memref<128x1152xbf16, #tpu.memory_space<vmem>>, vector<128x128xbf16>,
      %c127_i32_84 = arith.constant 127 : i32
      %114 = tpu.dynamic_rotate %84 by %c127_i32_84 dim 0 : vector<128x128xf32>, i32 -> vector<128x128xf32>
      %115 = arith.truncf %114 : vector<128x128xf32> to vector<128x128xbf16>
      %c5_85 = arith.constant 5 : index
      %c0_86 = arith.constant 0 : index
      %c0_87 = arith.constant 0 : index
      %116 = vector.load %arg2[%c5_85, %c0_86, %c0_87] : memref<9x128x128xbf16, #tpu.memory_space<vmem>>, vector<1x128x128xbf16>
      %117 = vector.shape_cast %116 : vector<1x128x128xbf16> to vector<128x128xbf16>
      %118 = arith.mulf %115, %117 : vector<128x128xbf16>
      %c0_88 = arith.constant 0 : index
      %c640_89 = arith.constant 640 : index
      %119 = vector.load %arg10[%c0_88, %c640_89] : memref<128x1152xbf16, #tpu.memory_space<vmem>>, vector<128x128xbf16>
      tpu.vector_store %arg10[%c0_88, %c640_89], %118 {strides = array<i32>} : memref<128x1152xbf16, #tpu.memory_space<vmem>>, vector<128x128xbf16>,
      %c122_i32_90 = arith.constant 122 : i32
      %120 = tpu.dynamic_rotate %84 by %c122_i32_90 dim 0 : vector<128x128xf32>, i32 -> vector<128x128xf32>
      %121 = arith.truncf %120 : vector<128x128xf32> to vector<128x128xbf16>
      %c6_91 = arith.constant 6 : index
      %c0_92 = arith.constant 0 : index
      %c0_93 = arith.constant 0 : index
      %122 = vector.load %arg2[%c6_91, %c0_92, %c0_93] : memref<9x128x128xbf16, #tpu.memory_space<vmem>>, vector<1x128x128xbf16>
      %123 = vector.shape_cast %122 : vector<1x128x128xbf16> to vector<128x128xbf16>
      %124 = arith.mulf %121, %123 : vector<128x128xbf16>
      %c0_94 = arith.constant 0 : index
      %c768_95 = arith.constant 768 : index
      %125 = vector.load %arg10[%c0_94, %c768_95] : memref<128x1152xbf16, #tpu.memory_space<vmem>>, vector<128x128xbf16>
      tpu.vector_store %arg10[%c0_94, %c768_95], %124 {strides = array<i32>} : memref<128x1152xbf16, #tpu.memory_space<vmem>>, vector<128x128xbf16>,
      %c121_i32_96 = arith.constant 121 : i32
      %126 = tpu.dynamic_rotate %84 by %c121_i32_96 dim 0 : vector<128x128xf32>, i32 -> vector<128x128xf32>
      %127 = arith.truncf %126 : vector<128x128xf32> to vector<128x128xbf16>
      %c7_97 = arith.constant 7 : index
      %c0_98 = arith.constant 0 : index
      %c0_99 = arith.constant 0 : index
      %128 = vector.load %arg2[%c7_97, %c0_98, %c0_99] : memref<9x128x128xbf16, #tpu.memory_space<vmem>>, vector<1x128x128xbf16>
      %129 = vector.shape_cast %128 : vector<1x128x128xbf16> to vector<128x128xbf16>
      %130 = arith.mulf %127, %129 : vector<128x128xbf16>
      %c0_100 = arith.constant 0 : index
      %c896_101 = arith.constant 896 : index
      %131 = vector.load %arg10[%c0_100, %c896_101] : memref<128x1152xbf16, #tpu.memory_space<vmem>>, vector<128x128xbf16>
      tpu.vector_store %arg10[%c0_100, %c896_101], %130 {strides = array<i32>} : memref<128x1152xbf16, #tpu.memory_space<vmem>>, vector<128x128xbf16>,
      %c120_i32_102 = arith.constant 120 : i32
      %132 = tpu.dynamic_rotate %84 by %c120_i32_102 dim 0 : vector<128x128xf32>, i32 -> vector<128x128xf32>
      %133 = arith.truncf %132 : vector<128x128xf32> to vector<128x128xbf16>
      %c8_103 = arith.constant 8 : index
      %c0_104 = arith.constant 0 : index
      %c0_105 = arith.constant 0 : index
      %134 = vector.load %arg2[%c8_103, %c0_104, %c0_105] : memref<9x128x128xbf16, #tpu.memory_space<vmem>>, vector<1x128x128xbf16>
      %135 = vector.shape_cast %134 : vector<1x128x128xbf16> to vector<128x128xbf16>
      %136 = arith.mulf %133, %135 : vector<128x128xbf16>
      %c0_106 = arith.constant 0 : index
      %c1024_107 = arith.constant 1024 : index
      %137 = vector.load %arg10[%c0_106, %c1024_107] : memref<128x1152xbf16, #tpu.memory_space<vmem>>, vector<128x128xbf16>
      tpu.vector_store %arg10[%c0_106, %c1024_107], %136 {strides = array<i32>} : memref<128x1152xbf16, #tpu.memory_space<vmem>>, vector<128x128xbf16>,
      %c0_108 = arith.constant 0 : index
      %c0_109 = arith.constant 0 : index
      %138 = vector.load %arg10[%c0_108, %c0_109] : memref<128x1152xbf16, #tpu.memory_space<vmem>>, vector<128x1152xbf16>
      %cst_110 = arith.constant dense<0.000000e+00> : vector<128x128xf32>
      %139 = tpu.matmul %138, %79, %cst_110 {dimension_numbers = #tpu.dot_dimension_numbers<[1], [0], [0], [1], [0, 0, 1, 1], [], []>} : vector<128x1152xbf16>, vector<1152x128xbf16>, vector<128x128xf32> -> vector<128x128xf32>
      %140 = vector.broadcast %83 : vector<1x128xf32> to vector<128x128xf32>
      %141 = arith.addf %139, %140 : vector<128x128xf32>
      %c0_111 = arith.constant 0 : index
      %c0_112 = arith.constant 0 : index
      %142 = vector.load %arg9[%c0_111, %c0_112] : memref<128x128xf32, #tpu.memory_space<vmem>>, vector<128x128xf32>
      %143 = arith.addf %141, %142 : vector<128x128xf32>
      %cst_113 = arith.constant 0.000000e+00 : f32
      %144 = vector.broadcast %cst_113 : f32 to vector<128x128xf32>
      %145 = arith.maximumf %143, %144 : vector<128x128xf32>
      %c0_114 = arith.constant 0 : index
      %c0_115 = arith.constant 0 : index
      %146 = vector.load %arg8[%c0_114, %c0_115] : memref<128x128xf32, #tpu.memory_space<vmem>>, vector<128x128xf32>
      tpu.vector_store %arg8[%c0_114, %c0_115], %145 {strides = array<i32>} : memref<128x128xf32, #tpu.memory_space<vmem>>, vector<128x128xf32>,
      %c0_116 = arith.constant 0 : index
      %c0_117 = arith.constant 0 : index
      %147 = vector.load %arg9[%c0_116, %c0_117] : memref<128x128xf32, #tpu.memory_space<vmem>>, vector<128x128xf32>
      tpu.vector_store %arg9[%c0_116, %c0_117], %145 {strides = array<i32>} : memref<128x128xf32, #tpu.memory_space<vmem>>, vector<128x128xf32>,
    } else {
    }
    %c19_i32 = arith.constant 19 : i32
    %72 = arith.cmpi eq, %arg0, %c19_i32 : i32
    %73 = arith.extui %72 : i1 to i32
    %c0_i32_42 = arith.constant 0 : i32
    %74 = arith.cmpi ne, %73, %c0_i32_42 : i32
    scf.if %74 {
      %c0_43 = arith.constant 0 : index
      %c0_44 = arith.constant 0 : index
      %75 = vector.load %arg8[%c0_43, %c0_44] : memref<128x128xf32, #tpu.memory_space<vmem>>, vector<128x128xf32>
      %76 = arith.truncf %75 : vector<128x128xf32> to vector<128x128xbf16>
      %c0_45 = arith.constant 0 : index
      %c0_46 = arith.constant 0 : index
      %77 = vector.load %arg4[%c0_45, %c0_46] : memref<128x128xbf16, #tpu.memory_space<vmem>>, vector<128x128xbf16>
      %cst_47 = arith.constant dense<0.000000e+00> : vector<128x128xf32>
      %78 = tpu.matmul %76, %77, %cst_47 {dimension_numbers = #tpu.dot_dimension_numbers<[1], [0], [0], [1], [0, 0, 1, 1], [], []>} : vector<128x128xbf16>, vector<128x128xbf16>, vector<128x128xf32> -> vector<128x128xf32>
      %c0_48 = arith.constant 0 : index
      %c0_49 = arith.constant 0 : index
      %79 = vector.load %arg5[%c0_48, %c0_49] : memref<1x128xf32, #tpu.memory_space<vmem>>, vector<1x128xf32>
      %80 = vector.broadcast %79 : vector<1x128xf32> to vector<128x128xf32>
      %81 = arith.addf %78, %80 : vector<128x128xf32>
      %cst_50 = arith.constant 0.000000e+00 : f32
      %82 = vector.broadcast %cst_50 : f32 to vector<128x128xf32>
      %83 = arith.maximumf %81, %82 : vector<128x128xf32>
      %c0_51 = arith.constant 0 : index
      %c0_52 = arith.constant 0 : index
      %84 = vector.load %arg7[%c0_51, %c0_52] : memref<128x128xf32, #tpu.memory_space<vmem>>, vector<128x128xf32>
      tpu.vector_store %arg7[%c0_51, %c0_52], %83 {strides = array<i32>} : memref<128x128xf32, #tpu.memory_space<vmem>>, vector<128x128xf32>,
    } else {
    }
    return
  }
  func.func @transform_0(%arg0: i32) -> (i32, i32) {
    %c0_i32 = arith.constant 0 : i32
    %c0_i32_0 = arith.constant 0 : i32
    %c0_i32_1 = arith.constant 0 : i32
    return %c0_i32, %c0_i32_0 : i32, i32
  }
  func.func @transform_1(%arg0: i32) -> (i32, i32, i32) {
    %c0_i32 = arith.constant 0 : i32
    %c0_i32_0 = arith.constant 0 : i32
    %c0_i32_1 = arith.constant 0 : i32
    %c0_i32_2 = arith.constant 0 : i32
    return %c0_i32, %c0_i32_0, %c0_i32_1 : i32, i32, i32
  }
  func.func @transform_2(%arg0: i32) -> (i32, i32) {
    %c0_i32 = arith.constant 0 : i32
    %c0_i32_0 = arith.constant 0 : i32
    %c0_i32_1 = arith.constant 0 : i32
    return %c0_i32, %c0_i32_0 : i32, i32
  }
  func.func @transform_3(%arg0: i32) -> (i32, i32) {
    %c0_i32 = arith.constant 0 : i32
    %c0_i32_0 = arith.constant 0 : i32
    %c0_i32_1 = arith.constant 0 : i32
    return %c0_i32, %c0_i32_0 : i32, i32
  }
  func.func @transform_4(%arg0: i32) -> (i32, i32) {
    %c0_i32 = arith.constant 0 : i32
    %c0_i32_0 = arith.constant 0 : i32
    %c0_i32_1 = arith.constant 0 : i32
    return %c0_i32, %c0_i32_0 : i32, i32
  }
  func.func @transform_5(%arg0: i32) -> (i32, i32, i32, i32) {
    %c0_i32 = arith.constant 0 : i32
    %c0_i32_0 = arith.constant 0 : i32
    %c0_i32_1 = arith.constant 0 : i32
    %c0_i32_2 = arith.constant 0 : i32
    return %arg0, %c0_i32, %c0_i32_0, %c0_i32_1 : i32, i32, i32, i32
  }
  func.func @transform_6(%arg0: i32) -> (i32, i32) {
    %c0_i32 = arith.constant 0 : i32
    %c0_i32_0 = arith.constant 0 : i32
    %c0_i32_1 = arith.constant 0 : i32
    return %c0_i32, %c0_i32_0 : i32, i32
  }
}

module attributes {stable_mosaic.version = 11 : i64} {
  func.func @_heads_kernel(%arg0: memref<2x126xf32, #tpu.memory_space<vmem>>, %arg1: memref<2x1344xf32, #tpu.memory_space<vmem>>, %arg2: memref<126x32xf32, #tpu.memory_space<vmem>>, %arg3: memref<1x32xf32, #tpu.memory_space<vmem>>, %arg4: memref<32x1xf32, #tpu.memory_space<vmem>>, %arg5: memref<1x1xf32, #tpu.memory_space<vmem>>, %arg6: memref<1344x7xf32, #tpu.memory_space<vmem>>, %arg7: memref<1x7xf32, #tpu.memory_space<vmem>>, %arg8: memref<2x7xf32, #tpu.memory_space<vmem>>, %arg9: memref<2x1xf32, #tpu.memory_space<vmem>>) attributes {dimension_semantics = [], scalar_prefetch = 0 : i64, scratch_operands = 0 : i64, tpu.core_type = #tpu.core_type<tc>} {
    %c0 = arith.constant 0 : index
    %c0_0 = arith.constant 0 : index
    %0 = vector.load %arg0[%c0, %c0_0] : memref<2x126xf32, #tpu.memory_space<vmem>>, vector<2x126xf32>
    %c0_1 = arith.constant 0 : index
    %c0_2 = arith.constant 0 : index
    %1 = vector.load %arg2[%c0_1, %c0_2] : memref<126x32xf32, #tpu.memory_space<vmem>>, vector<126x32xf32>
    %cst = arith.constant dense<0.000000e+00> : vector<2x32xf32>
    %2 = tpu.matmul %0, %1, %cst {dimension_numbers = #tpu.dot_dimension_numbers<[1], [0], [0], [1], [0, 0, 1, 1], [], []>} : vector<2x126xf32>, vector<126x32xf32>, vector<2x32xf32> -> vector<2x32xf32>
    %c0_3 = arith.constant 0 : index
    %c0_4 = arith.constant 0 : index
    %3 = vector.load %arg3[%c0_3, %c0_4] : memref<1x32xf32, #tpu.memory_space<vmem>>, vector<1x32xf32>
    %4 = vector.broadcast %3 : vector<1x32xf32> to vector<2x32xf32>
    %5 = arith.addf %2, %4 : vector<2x32xf32>
    %cst_5 = arith.constant 0.000000e+00 : f32
    %6 = vector.broadcast %cst_5 : f32 to vector<2x32xf32>
    %7 = arith.maximumf %5, %6 : vector<2x32xf32>
    %c0_6 = arith.constant 0 : index
    %c0_7 = arith.constant 0 : index
    %8 = vector.load %arg4[%c0_6, %c0_7] : memref<32x1xf32, #tpu.memory_space<vmem>>, vector<32x1xf32>
    %cst_8 = arith.constant dense<0.000000e+00> : vector<2x1xf32>
    %9 = tpu.matmul %7, %8, %cst_8 {dimension_numbers = #tpu.dot_dimension_numbers<[1], [0], [0], [1], [0, 0, 1, 1], [], []>} : vector<2x32xf32>, vector<32x1xf32>, vector<2x1xf32> -> vector<2x1xf32>
    %c0_9 = arith.constant 0 : index
    %c0_10 = arith.constant 0 : index
    %10 = vector.load %arg5[%c0_9, %c0_10] : memref<1x1xf32, #tpu.memory_space<vmem>>, vector<1x1xf32>
    %11 = vector.broadcast %10 : vector<1x1xf32> to vector<2x1xf32>
    %12 = arith.addf %9, %11 : vector<2x1xf32>
    %13 = math.tanh %12 : vector<2x1xf32>
    %c0_11 = arith.constant 0 : index
    %c0_12 = arith.constant 0 : index
    %14 = vector.load %arg9[%c0_11, %c0_12] : memref<2x1xf32, #tpu.memory_space<vmem>>, vector<2x1xf32>
    tpu.vector_store %arg9[%c0_11, %c0_12], %13 {strides = array<i32>} : memref<2x1xf32, #tpu.memory_space<vmem>>, vector<2x1xf32>,
    %c0_13 = arith.constant 0 : index
    %c0_14 = arith.constant 0 : index
    %15 = vector.load %arg1[%c0_13, %c0_14] : memref<2x1344xf32, #tpu.memory_space<vmem>>, vector<2x1344xf32>
    %c0_15 = arith.constant 0 : index
    %c0_16 = arith.constant 0 : index
    %16 = vector.load %arg6[%c0_15, %c0_16] : memref<1344x7xf32, #tpu.memory_space<vmem>>, vector<1344x7xf32>
    %cst_17 = arith.constant dense<0.000000e+00> : vector<2x7xf32>
    %17 = tpu.matmul %15, %16, %cst_17 {dimension_numbers = #tpu.dot_dimension_numbers<[1], [0], [0], [1], [0, 0, 1, 1], [], []>} : vector<2x1344xf32>, vector<1344x7xf32>, vector<2x7xf32> -> vector<2x7xf32>
    %c0_18 = arith.constant 0 : index
    %c0_19 = arith.constant 0 : index
    %18 = vector.load %arg7[%c0_18, %c0_19] : memref<1x7xf32, #tpu.memory_space<vmem>>, vector<1x7xf32>
    %19 = vector.broadcast %18 : vector<1x7xf32> to vector<2x7xf32>
    %20 = arith.addf %17, %19 : vector<2x7xf32>
    %cst_20 = arith.constant dense<0xFF800000> : vector<2xf32>
    %21 = vector.multi_reduction <maximumf>, %20, %cst_20 [1] : vector<2x7xf32> to vector<2xf32>
    %22 = vector.shape_cast %21 : vector<2xf32> to vector<2x1xf32>
    %23 = vector.broadcast %22 : vector<2x1xf32> to vector<2x7xf32>
    %24 = arith.subf %20, %23 : vector<2x7xf32>
    %25 = math.exp %24 : vector<2x7xf32>
    %cst_21 = arith.constant dense<0.000000e+00> : vector<2xf32>
    %26 = vector.multi_reduction <add>, %25, %cst_21 [1] : vector<2x7xf32> to vector<2xf32>
    %27 = vector.shape_cast %26 : vector<2xf32> to vector<2x1xf32>
    %28 = vector.broadcast %27 : vector<2x1xf32> to vector<2x7xf32>
    %29 = arith.divf %25, %28 : vector<2x7xf32>
    %c0_22 = arith.constant 0 : index
    %c0_23 = arith.constant 0 : index
    %30 = vector.load %arg8[%c0_22, %c0_23] : memref<2x7xf32, #tpu.memory_space<vmem>>, vector<2x7xf32>
    tpu.vector_store %arg8[%c0_22, %c0_23], %29 {strides = array<i32>} : memref<2x7xf32, #tpu.memory_space<vmem>>, vector<2x7xf32>,
    return
  }
}

</mosaic_0001>

<bundles_post_ra>
// kernel: connection_network_forward.3
= control target key start
LH: loop header
LB: loop body
LE: loop exit
PB: predicated region body
PF: predicated region fallthrough
CT: control target
= control target key end

     0   :  { %s1365_s0 = inlined_call_operand.vmem [shape: f32[2,126], index: 0, kind: input, shape index: {}]   ;;  %s1366_s1 = inlined_call_operand.vmem [shape: f32[2,1344], index: 1, kind: input, shape index: {}]   ;;  %s1367_s2 = inlined_call_operand.vmem [shape: f32[126,32], index: 2, kind: input, shape index: {}]   ;;  %s1368_s3 = inlined_call_operand.hbm [shape: f32[1,32], index: 3, kind: input, shape index: {}]   ;;  %s1369_s4 = inlined_call_operand.vmem [shape: f32[32,1], index: 4, kind: input, shape index: {}]   ;;  %s1370_s5 = inlined_call_operand.<no memory space> [shape: f32[1,1], index: 5, kind: input, shape index: {}]   ;;  %s1371_s6 = inlined_call_operand.vmem [shape: f32[1344,7], index: 6, kind: input, shape index: {}]   ;;  %s1372_s7 = inlined_call_operand.hbm [shape: f32[1,7], index: 7, kind: input, shape index: {}]   ;;  %s1373_s8 = inlined_call_operand.hbm [shape: f32[2,7], index: 8, kind: output, shape index: {0}]   ;;  %s1374_s9 = inlined_call_operand.vmem [shape: f32[2,1], index: 9, kind: output, shape index: {1}]  }
   0x1   :  { %v15_v0 = vstv %s1370_s5 }
   0x2   :  { %16 = vst [vmem:[#allocation2] sm:$0x1] %v15_v0 }
   0x3   :  { %17 = vsyncpa [#allocation4], 0 }
   0x4   :  { %18 = vsyncpa [#allocation7], 0 }
   0x5   :  { %19 = vsyncpa [#allocation5], 0  ;;  %s31_s13 = sshll.u32 %s1368_s3, 4  ;;  %s715_s14 = smov [#allocation3]   ;;  %s32_s13 = int_to_ptr.hbm [resolvable:$true] %s31_s13 }
   0x6   :  { %s33_s15 = sshll.u32 %s715_s14, 4  ;;  %s48_s18 = sshll.u32 %s1372_s7, 4  ;;  %s34_s15 = int_to_ptr.vmem [resolvable:$true] %s33_s15  ;;  %s49_s18 = int_to_ptr.hbm [resolvable:$true] %s48_s18 }
   0x7   :  { %36 = dma.hbm_to_vmem [thread:$0]  %s32_s13, 16, %s34_s15, [#allocation4]  }
   0x8   :  { %s716_s19 = smov [#allocation6]  }
   0x9   :  { %s50_s5 = sshll.u32 %s716_s19, 4  ;;  %s51_s5 = int_to_ptr.vmem [resolvable:$true] %s50_s5 }
   0xa   :  { %53 = dma.hbm_to_vmem [thread:$0]  %s49_s18, 16, %s51_s5, [#allocation7]  }
   0xb   :  { %709 = dma.done.wait [#allocation4], 16  }
   0xc   :  { %710 = vsyncadd [#allocation4], 4294967280 }
   0xd   :  { %711 = dma.done.wait [#allocation7], 16  }
   0xe   :  { %712 = vsyncadd [#allocation7], 4294967280  ;;  %vm87_vm0 = vcmask 1045504   ;;  %v78_v1 = vld [vmem:[%s1367_s2 + $0x78] sm:$0x3f]  ;;  %v77_v2 = vld [vmem:[%s1367_s2 + $0x70] sm:$0xff] }
   0xf   :  { %621 = vmatpush.msk.msra.mxu0 %vm87_vm0, %v78_v1  ;;  %v76_v3 = vld [vmem:[%s1367_s2 + $0x68] sm:$0xff]  ;;  %v75_v4 = vld [vmem:[%s1367_s2 + $0x60] sm:$0xff]  ;;  %v165_v5 = vld [vmem:[%s1371_s6 + $0x78] sm:$0xff]  ;;  %vm83_vm1 = vcmask 1031168   ;;  %vm120_vm2 = vcmask 261120   ;;  %vm350_vm3 = vcmask 523264  }
  0x10   :  { %v74_v6 = vld [vmem:[%s1367_s2 + $0x58] sm:$0xff]  ;;  %353 = vmatpush.msra.mxu2 %v165_v5  ;;  %v164_v7 = vld [vmem:[%s1371_s6 + $0x70] sm:$0xff]  ;;  %v163_v9 = vld [vmem:[%s1371_s6 + $0x68] sm:$0xff]  ;;  %vm145_vm4 = vcmask 1024   ;;  %vm573_vm5 = vcmask 50176   ;;  %s606_s11 = sshll.u32 %s1373_s8, 4  ;;  %s607_s11 = int_to_ptr.hbm [resolvable:$true] %s606_s11 }
  0x11   :  { %92 = vmatpush.msra.mxu0 %v77_v2  ;;  %v181_v8 = vld [vmem:[%s1371_s6 + $0xf8] sm:$0xff]  ;;  %v180_v10 = vld [vmem:[%s1371_s6 + $0xf0] sm:$0xff]  ;;  %v179_v12 = vld [vmem:[%s1371_s6 + $0xe8] sm:$0xff] }
  0x12   :  { %373 = vmatpush.msra.mxu3 %v181_v8  ;;  %v73_v11 = vld [vmem:[%s1367_s2 + $0x50] sm:$0xff]  ;;  %354 = vmatpush.msra.mxu2 %v164_v7  ;;  %v162_v13 = vld [vmem:[%s1371_s6 + $0x60] sm:$0xff]  ;;  %v72_v14 = vld [vmem:[%s1367_s2 + $0x48] sm:$0xff] }
  0x13   :  { %93 = vmatpush.msra.mxu0 %v76_v3  ;;  %v178_v15 = vld [vmem:[%s1371_s6 + $0xe0] sm:$0xff]  ;;  %v161_v16 = vld [vmem:[%s1371_s6 + $0x58] sm:$0xff]  ;;  %v160_v19 = vld [vmem:[%s1371_s6 + $0x50] sm:$0xff] }
  0x14   :  { %374 = vmatpush.msra.mxu3 %v180_v10  ;;  %355 = vmatpush.msra.mxu2 %v163_v9  ;;  %v71_v17 = vld [vmem:[%s1367_s2 + $0x40] sm:$0xff]  ;;  %v177_v18 = vld [vmem:[%s1371_s6 + $0xd8] sm:$0xff]  ;;  %v176_v21 = vld [vmem:[%s1371_s6 + $0xd0] sm:$0xff] }
  0x15   :  { %94 = vmatpush.msra.mxu0 %v75_v4  ;;  %v70_v20 = vld [vmem:[%s1367_s2 + $0x38] sm:$0xff]  ;;  %v159_v23 = vld [vmem:[%s1371_s6 + $0x48] sm:$0xff]  ;;  %v114_v24 = vld [vmem:[%s1369_s4 + $0x10] sm:$0xff] }
  0x16   :  { %375 = vmatpush.msra.mxu3 %v179_v12  ;;  %356 = vmatpush.msra.mxu2 %v162_v13  ;;  %v115_v22 = vld [vmem:[%s1369_s4 + $0x18] sm:$0xff]  ;;  %v69_v25 = vld [vmem:[%s1367_s2 + $0x30] sm:$0xff]  ;;  %v175_v26 = vld [vmem:[%s1371_s6 + $0xc8] sm:$0xff] }
  0x17   :  { %95 = vmatpush.msra.mxu0 %v74_v6  ;;  %136 = vmatpush.msra.mxu1 %v115_v22  ;;  %v158_v27 = vld [vmem:[%s1371_s6 + $0x40] sm:$0xff]  ;;  %v113_v28 = vld [vmem:[%s1369_s4 + $0x8] sm:$0xff]  ;;  %v157_v31 = vld [vmem:[%s1371_s6 + $0x38] sm:$0xff] }
  0x18   :  { %376 = vmatpush.msra.mxu3 %v178_v15  ;;  %357 = vmatpush.msra.mxu2 %v161_v16  ;;  %v68_v29 = vld [vmem:[%s1367_s2 + $0x28] sm:$0xff]  ;;  %v174_v30 = vld [vmem:[%s1371_s6 + $0xc0] sm:$0xff]  ;;  %v173_v34 = vld [vmem:[%s1371_s6 + $0xb8] sm:$0xff] }
  0x19   :  { %96 = vmatpush.msra.mxu0 %v73_v11  ;;  %137 = vmatpush.msra.mxu1 %v114_v24  ;;  %v112_v32 = vld [vmem:[%s1369_s4] sm:$0xff]  ;;  %v156_v35 = vld [vmem:[%s1371_s6 + $0x30] sm:$0xff]  ;;  %v197_v36 = vld [vmem:[%s1371_s6 + $0x178] sm:$0xff] }
  0x1a   :  { %377 = vmatpush.msra.mxu3 %v177_v18  ;;  %358 = vmatpush.msra.mxu2 %v160_v19  ;;  %v67_v33 = vld [vmem:[%s1367_s2 + $0x20] sm:$0xff]  ;;  %v66_v37 = vld [vmem:[%s1367_s2 + $0x18] sm:$0xff]  ;;  %v172_v38 = vld [vmem:[%s1371_s6 + $0xb0] sm:$0xff] }
  0x1b   :  { %97 = vmatpush.msra.mxu0 %v72_v14  ;;  %138 = vmatpush.msra.mxu1 %v113_v28  ;;  %v155_v39 = vld [vmem:[%s1371_s6 + $0x28] sm:$0xff]  ;;  %v196_v40 = vld [vmem:[%s1371_s6 + $0x170] sm:$0xff]  ;;  %v154_v43 = vld [vmem:[%s1371_s6 + $0x20] sm:$0xff] }
  0x1c   :  { %378 = vmatpush.msra.mxu3 %v176_v21  ;;  %359 = vmatpush.msra.mxu2 %v159_v23  ;;  %v65_v41 = vld [vmem:[%s1367_s2 + $0x10] sm:$0xff]  ;;  %v171_v42 = vld [vmem:[%s1371_s6 + $0xa8] sm:$0xff]  ;;  %v170_v46 = vld [vmem:[%s1371_s6 + $0xa0] sm:$0xff] }
  0x1d   :  { %98 = vmatpush.msra.mxu0 %v71_v17  ;;  %139 = vmatpush.msra.mxu1 %v112_v32  ;;  %v195_v44 = vld [vmem:[%s1371_s6 + $0x168] sm:$0xff]  ;;  %v153_v47 = vld [vmem:[%s1371_s6 + $0x18] sm:$0xff]  ;;  %v194_v48 = vld [vmem:[%s1371_s6 + $0x160] sm:$0xff] }
  0x1e   :  { %379 = vmatpush.msra.mxu3 %v175_v26  ;;  %360 = vmatpush.msra.mxu2 %v158_v27  ;;  %v64_v45 = vld [vmem:[%s1367_s2 + $0x8] sm:$0xff]  ;;  %v63_v49 = vld [vmem:[%s1367_s2] sm:$0xff]  ;;  %v169_v50 = vld [vmem:[%s1371_s6 + $0x98] sm:$0xff] }
  0x1f   :  { %99 = vmatpush.msra.mxu0 %v70_v20  ;;  %393 = vmatpush.msrb.mxu1 %v197_v36  ;;  %v62_v51 = vld [vmem:[%s1365_s0] sm:$0x3]  ;;  %v152_v52 = vld [vmem:[%s1371_s6 + $0x10] sm:$0xff]  ;;  %v213_v54 = vld [vmem:[%s1371_s6 + $0x1f8] sm:$0xff] }
  0x20   :  { %380 = vmatpush.msra.mxu3 %v174_v30  ;;  %361 = vmatpush.msra.mxu2 %v157_v31  ;;  %v168_v53 = vld [vmem:[%s1371_s6 + $0x90] sm:$0xff]  ;;  %v151_v55 = vld [vmem:[%s1371_s6 + $0x8] sm:$0xff]  ;;  %v193_v56 = vld [vmem:[%s1371_s6 + $0x158] sm:$0xff] }
  0x21   :  { %100 = vmatpush.msra.mxu0 %v69_v25  ;;  %394 = vmatpush.msrb.mxu1 %v196_v40  ;;  %v167_v57 = vld [vmem:[%s1371_s6 + $0x88] sm:$0xff]  ;;  %v212_v58 = vld [vmem:[%s1371_s6 + $0x1f0] sm:$0xff]  ;;  %v150_v59 = vld [vmem:[%s1371_s6] sm:$0xff] }
  0x22   :  { %381 = vmatpush.msra.mxu3 %v173_v34  ;;  %362 = vmatpush.msra.mxu2 %v156_v35  ;;  %v192_v60 = vld [vmem:[%s1371_s6 + $0x150] sm:$0xff]  ;;  %v229_v61 = vld [vmem:[%s1371_s6 + $0x278] sm:$0xff]  ;;  %v166_v62 = vld [vmem:[%s1371_s6 + $0x80] sm:$0xff] }
  0x23   :  { %101 = vmatpush.msra.mxu0 %v68_v29  ;;  %395 = vmatpush.msrb.mxu1 %v195_v44  ;;  %v245_v63 = vld [vmem:[%s1371_s6 + $0x2f8] sm:$0xff]  ;;  %v211_v0 = vld [vmem:[%s1371_s6 + $0x1e8] sm:$0xff]  ;;  %v228_v1 = vld [vmem:[%s1371_s6 + $0x270] sm:$0xff] }
  0x24   :  { %382 = vmatpush.msra.mxu3 %v172_v38  ;;  %363 = vmatpush.msra.mxu2 %v155_v39  ;;  %v191_v2 = vld [vmem:[%s1371_s6 + $0x148] sm:$0xff]  ;;  %v244_v3 = vld [vmem:[%s1371_s6 + $0x2f0] sm:$0xff]  ;;  %v210_v4 = vld [vmem:[%s1371_s6 + $0x1e0] sm:$0xff] }
  0x25   :  { %102 = vmatpush.msra.mxu0 %v67_v33  ;;  %396 = vmatpush.msrb.mxu1 %v194_v48  ;;  %v227_v5 = vld [vmem:[%s1371_s6 + $0x268] sm:$0xff]  ;;  %v190_v6 = vld [vmem:[%s1371_s6 + $0x140] sm:$0xff]  ;;  %v209_v8 = vld [vmem:[%s1371_s6 + $0x1d8] sm:$0xff] }
  0x26   :  { %383 = vmatpush.msra.mxu3 %v171_v42  ;;  %364 = vmatpush.msra.mxu2 %v154_v43  ;;  %v243_v7 = vld [vmem:[%s1371_s6 + $0x2e8] sm:$0xff]  ;;  %v226_v9 = vld [vmem:[%s1371_s6 + $0x260] sm:$0xff]  ;;  %v189_v10 = vld [vmem:[%s1371_s6 + $0x138] sm:$0xff] }
  0x27   :  { %103 = vmatpush.msra.mxu0 %v66_v37  ;;  %397 = vmatpush.msrb.mxu1 %v193_v56  ;;  %v242_v11 = vld [vmem:[%s1371_s6 + $0x2e0] sm:$0xff]  ;;  %v208_v12 = vld [vmem:[%s1371_s6 + $0x1d0] sm:$0xff]  ;;  %v225_v13 = vld [vmem:[%s1371_s6 + $0x258] sm:$0xff] }
  0x28   :  { %384 = vmatpush.msra.mxu3 %v170_v46  ;;  %365 = vmatpush.msra.mxu2 %v153_v47  ;;  %v188_v14 = vld [vmem:[%s1371_s6 + $0x130] sm:$0xff]  ;;  %v241_v15 = vld [vmem:[%s1371_s6 + $0x2d8] sm:$0xff]  ;;  %v207_v16 = vld [vmem:[%s1371_s6 + $0x1c8] sm:$0xff] }
  0x29   :  { %104 = vmatpush.msra.mxu0 %v65_v41  ;;  %398 = vmatpush.msrb.mxu1 %v192_v60  ;;  %v224_v17 = vld [vmem:[%s1371_s6 + $0x250] sm:$0xff]  ;;  %v187_v18 = vld [vmem:[%s1371_s6 + $0x128] sm:$0xff]  ;;  %v206_v20 = vld [vmem:[%s1371_s6 + $0x1c0] sm:$0xff] }
  0x2a   :  { %385 = vmatpush.msra.mxu3 %v169_v50  ;;  %366 = vmatpush.msra.mxu2 %v152_v52  ;;  %v240_v19 = vld [vmem:[%s1371_s6 + $0x2d0] sm:$0xff]  ;;  %v223_v21 = vld [vmem:[%s1371_s6 + $0x248] sm:$0xff]  ;;  %v186_v22 = vld [vmem:[%s1371_s6 + $0x120] sm:$0xff] }
  0x2b   :  { %105 = vmatpush.msra.mxu0 %v64_v45  ;;  %399 = vmatpush.msrb.mxu1 %v191_v2  ;;  %v239_v23 = vld [vmem:[%s1371_s6 + $0x2c8] sm:$0xff]  ;;  %v205_v24 = vld [vmem:[%s1371_s6 + $0x1b8] sm:$0xff]  ;;  %v222_v25 = vld [vmem:[%s1371_s6 + $0x240] sm:$0xff] }
  0x2c   :  { %386 = vmatpush.msra.mxu3 %v168_v53  ;;  %367 = vmatpush.msra.mxu2 %v151_v55  ;;  %v185_v26 = vld [vmem:[%s1371_s6 + $0x118] sm:$0xff]  ;;  %v238_v27 = vld [vmem:[%s1371_s6 + $0x2c0] sm:$0xff]  ;;  %v204_v28 = vld [vmem:[%s1371_s6 + $0x1b0] sm:$0xff] }
  0x2d   :  { %106 = vmatpush.msra.mxu0 %v63_v49  ;;  %400 = vmatpush.msrb.mxu1 %v190_v6  ;;  %v221_v29 = vld [vmem:[%s1371_s6 + $0x238] sm:$0xff]  ;;  %v203_v31 = vld [vmem:[%s1371_s6 + $0x1a8] sm:$0xff]  ;;  %v220_v32 = vld [vmem:[%s1371_s6 + $0x230] sm:$0xff] }
  0x2e   :  { %622 = vmatmul.msk.f32.vlgmr.msra.gmra.mxu0 %vm83_vm1, %v62_v51  ;;  %387 = vmatpush.msra.mxu3 %v167_v57  ;;  %v237_v30 = vld [vmem:[%s1371_s6 + $0x2b8] sm:$0xff]  ;;  %v236_v33 = vld [vmem:[%s1371_s6 + $0x2b0] sm:$0xff]  ;;  %v202_v34 = vld [vmem:[%s1371_s6 + $0x1a0] sm:$0xff] }
  0x2f   :  { %413 = vmatpush.msrb.mxu0 %v213_v54  ;;  %368 = vmatpush.msra.mxu2 %v150_v59  ;;  %v219_v35 = vld [vmem:[%s1371_s6 + $0x228] sm:$0xff]  ;;  %v218_v37 = vld [vmem:[%s1371_s6 + $0x220] sm:$0xff]  ;;  %v217_v39 = vld [vmem:[%s1371_s6 + $0x218] sm:$0xff] }
  0x30   :  { %388 = vmatpush.msra.mxu3 %v166_v62  ;;  %401 = vmatpush.msrb.mxu1 %v189_v10  ;;  %v235_v36 = vld [vmem:[%s1371_s6 + $0x2a8] sm:$0xff]  ;;  %v234_v38 = vld [vmem:[%s1371_s6 + $0x2a0] sm:$0xff]  ;;  %v233_v40 = vld [vmem:[%s1371_s6 + $0x298] sm:$0xff] }
  0x31   :  { %414 = vmatpush.msrb.mxu0 %v212_v58  ;;  %433 = vmatpush.msrb.mxu2 %v229_v61  ;;  %v216_v41 = vld [vmem:[%s1371_s6 + $0x210] sm:$0xff]  ;;  %v147_v42 = vld [vmem:[%s1366_s1] sm:$0xff]  ;;  %v201_v44 = vld [vmem:[%s1371_s6 + $0x198] sm:$0xff] }
  0x32   :  { %453 = vmatpush.msrb.mxu3 %v245_v63  ;;  %402 = vmatpush.msrb.mxu1 %v188_v14  ;;  %325 = vst [vmem:[#allocation1] ss:$4 sm:$0xff] %v147_v42  ;;  %v184_v43 = vld [vmem:[%s1371_s6 + $0x110] sm:$0xff]  ;;  %v215_v45 = vld [vmem:[%s1371_s6 + $0x208] sm:$0xff]  ;;  %v214_v49 = vld [vmem:[%s1371_s6 + $0x200] sm:$0xff] }
  0x33   :  { %415 = vmatpush.msrb.mxu0 %v211_v0  ;;  %434 = vmatpush.msrb.mxu2 %v228_v1  ;;  %v232_v46 = vld [vmem:[%s1371_s6 + $0x290] sm:$0xff]  ;;  %v183_v47 = vld [vmem:[%s1371_s6 + $0x108] sm:$0xff]  ;;  %v293_v52 = vld [vmem:[%s1371_s6 + $0x478] sm:$0xff] }
  0x34   :  { %454 = vmatpush.msrb.mxu3 %v244_v3  ;;  %403 = vmatpush.msrb.mxu1 %v187_v18  ;;  %v200_v48 = vld [vmem:[%s1371_s6 + $0x190] sm:$0xff]  ;;  %v231_v50 = vld [vmem:[%s1371_s6 + $0x288] sm:$0xff]  ;;  %v182_v53 = vld [vmem:[%s1371_s6 + $0x100] sm:$0xff] }
  0x35   :  { %416 = vmatpush.msrb.mxu0 %v210_v4  ;;  %435 = vmatpush.msrb.mxu2 %v227_v5  ;;  %v199_v54 = vld [vmem:[%s1371_s6 + $0x188] sm:$0xff]  ;;  %v230_v55 = vld [vmem:[%s1371_s6 + $0x280] sm:$0xff]  ;;  %v292_v57 = vld [vmem:[%s1371_s6 + $0x470] sm:$0xff] }
  0x36   :  { %455 = vmatpush.msrb.mxu3 %v243_v7  ;;  %404 = vmatpush.msrb.mxu1 %v186_v22  ;;  %v309_v58 = vld [vmem:[%s1371_s6 + $0x4f8] sm:$0xff]  ;;  %v198_v59 = vld [vmem:[%s1371_s6 + $0x180] sm:$0xff]  ;;  %v291_v61 = vld [vmem:[%s1371_s6 + $0x468] sm:$0xff] }
  0x37   :  { %417 = vmatpush.msrb.mxu0 %v209_v8  ;;  %436 = vmatpush.msrb.mxu2 %v226_v9  ;;  %v277_v60 = vld [vmem:[%s1371_s6 + $0x3f8] sm:$0xff]  ;;  %v308_v62 = vld [vmem:[%s1371_s6 + $0x4f0] sm:$0xff]  ;;  %v290_v0 = vld [vmem:[%s1371_s6 + $0x460] sm:$0xff] }
  0x38   :  { %456 = vmatpush.msrb.mxu3 %v242_v11  ;;  %405 = vmatpush.msrb.mxu1 %v185_v26  ;;  %v276_v63 = vld [vmem:[%s1371_s6 + $0x3f0] sm:$0xff]  ;;  %v307_v1 = vld [vmem:[%s1371_s6 + $0x4e8] sm:$0xff]  ;;  %v289_v4 = vld [vmem:[%s1371_s6 + $0x458] sm:$0xff] }
  0x39   :  { %418 = vmatpush.msrb.mxu0 %v208_v12  ;;  %437 = vmatpush.msrb.mxu2 %v225_v13  ;;  %v328_v51 = vld.sshfl [vmem:[#allocation1] sm:$0xff pattern:$0x73625140]  ;;  %v329_v56 = vld.sshfl [vmem:[#allocation1 + $0x8] sm:$0xff pattern:$0x73625140] }
  0x3a   :  { %457 = vmatpush.msrb.mxu3 %v241_v15  ;;  %406 = vmatpush.msrb.mxu1 %v184_v43  ;;  %v148_v2 = vld [vmem:[%s1366_s1 + $0x8] sm:$0xff]  ;;  %v306_v5 = vld [vmem:[%s1371_s6 + $0x4e0] sm:$0xff]  ;;  %v288_v7 = vld [vmem:[%s1371_s6 + $0x450] sm:$0xff] }
  0x3b   :  { %419 = vmatpush.msrb.mxu0 %v207_v16  ;;  %438 = vmatpush.msrb.mxu2 %v224_v17  ;;  %v275_v3 = vld [vmem:[%s1371_s6 + $0x3e8] sm:$0xff]  ;;  %327 = vst [vmem:[#allocation1 + $0x20] ss:$4 sm:$0xff] %v148_v2  ;;  %v274_v6 = vld [vmem:[%s1371_s6 + $0x3e0] sm:$0xff]  ;;  %v305_v8 = vld [vmem:[%s1371_s6 + $0x4d8] sm:$0xff] }
  0x3c   :  { %458 = vmatpush.msrb.mxu3 %v240_v19  ;;  %407 = vmatpush.msrb.mxu1 %v183_v47  ;;  %v273_v9 = vld [vmem:[%s1371_s6 + $0x3d8] sm:$0xff]  ;;  %v287_v10 = vld [vmem:[%s1371_s6 + $0x448] sm:$0xff]  ;;  %v304_v11 = vld [vmem:[%s1371_s6 + $0x4d0] sm:$0xff] }
  0x3d   :  { %420 = vmatpush.msrb.mxu0 %v206_v20  ;;  %439 = vmatpush.msrb.mxu2 %v223_v21  ;;  %v272_v12 = vld [vmem:[%s1371_s6 + $0x3d0] sm:$0xff]  ;;  %v286_v13 = vld [vmem:[%s1371_s6 + $0x440] sm:$0xff]  ;;  %v303_v14 = vld [vmem:[%s1371_s6 + $0x4c8] sm:$0xff] }
  0x3e   :  { %459 = vmatpush.msrb.mxu3 %v239_v23  ;;  %369 = vmatmul.f32.vlgmr.msra.gmra.mxu2 %v328_v51  ;;  %v271_v16 = vld [vmem:[%s1371_s6 + $0x3c8] sm:$0xff]  ;;  %v285_v17 = vld [vmem:[%s1371_s6 + $0x438] sm:$0xff]  ;;  %v302_v18 = vld [vmem:[%s1371_s6 + $0x4c0] sm:$0xff] }
  0x3f   :  { %421 = vmatpush.msrb.mxu0 %v205_v24  ;;  %440 = vmatpush.msrb.mxu2 %v222_v25  ;;  %v1206_v20 = vld.sshfl [vmem:[#allocation1 + $0x10] sm:$0xff pattern:$0x73625140]  ;;  %v270_v21 = vld [vmem:[%s1371_s6 + $0x3c0] sm:$0xff]  ;;  %v301_v23 = vld [vmem:[%s1371_s6 + $0x4b8] sm:$0xff] }
  0x40   :  { %460 = vmatpush.msrb.mxu3 %v238_v27  ;;  %408 = vmatpush.msrb.mxu1 %v182_v53  ;;  %v284_v22 = vld [vmem:[%s1371_s6 + $0x430] sm:$0xff]  ;;  %v331_v25 = vld.sshfl [vmem:[#allocation1 + $0x18] sm:$0xff pattern:$0x73625140]  ;;  %v283_v27 = vld [vmem:[%s1371_s6 + $0x428] sm:$0xff] }
  0x41   :  { %422 = vmatpush.msrb.mxu0 %v204_v28  ;;  %441 = vmatpush.msrb.mxu2 %v221_v29  ;;  %v149_v24 = vld [vmem:[%s1366_s1 + $0x10] sm:$0x3f]  ;;  %v269_v26 = vld [vmem:[%s1371_s6 + $0x3b8] sm:$0xff]  ;;  %v294_v51 = vld [vmem:[%s1371_s6 + $0x480] sm:$0xff] }
  0x42   :  { %461 = vmatpush.msrb.mxu3 %v237_v30  ;;  %v332_v15 = vld.sshfl [vmem:[#allocation1 + $0x20] sm:$0xff pattern:$0x73625140]  ;;  %v333_v19 = vld.sshfl [vmem:[#allocation1 + $0x28] sm:$0xff pattern:$0x73625140] }
  0x43   :  { %423 = vmatpush.msrb.mxu0 %v203_v31  ;;  %442 = vmatpush.msrb.mxu2 %v220_v32  ;;  %336 = vst [vmem:[#allocation1] ss:$4 sm:$0xff] %v149_v24  ;;  %v300_v28 = vld [vmem:[%s1371_s6 + $0x4b0] sm:$0xff]  ;;  %v282_v30 = vld [vmem:[%s1371_s6 + $0x420] sm:$0xff]  ;;  %v299_v31 = vld [vmem:[%s1371_s6 + $0x4a8] sm:$0xff] }
  0x44   :  { %462 = vmatpush.msrb.mxu3 %v236_v33  ;;  %v268_v29 = vld [vmem:[%s1371_s6 + $0x3b0] sm:$0xff]  ;;  %v267_v32 = vld [vmem:[%s1371_s6 + $0x3a8] sm:$0xff]  ;;  %v281_v33 = vld [vmem:[%s1371_s6 + $0x418] sm:$0xff] }
  0x45   :  { %424 = vmatpush.msrb.mxu0 %v202_v34  ;;  %443 = vmatpush.msrb.mxu2 %v219_v35  ;;  %v298_v34 = vld [vmem:[%s1371_s6 + $0x4a0] sm:$0xff]  ;;  %v628_v35 = vld [vmem:[#allocation3] ss:$0 sm:$0xff]  ;;  %v296_v42 = vld [vmem:[%s1371_s6 + $0x490] sm:$0xff] }
  0x46   :  { %463 = vmatpush.msrb.mxu3 %v235_v36  ;;  %v266_v36 = vld [vmem:[%s1371_s6 + $0x3a0] sm:$0xff]  ;;  %v249_v2 = vld [vmem:[%s1371_s6 + $0x318] sm:$0xff] }
  0x47   :  { %444 = vmatpush.msrb.mxu2 %v218_v37  ;;  %425 = vmatpush.msrb.mxu0 %v201_v44  ;;  %v280_v37 = vld [vmem:[%s1371_s6 + $0x410] sm:$0xff] }
  0x48   :  { %464 = vmatpush.msrb.mxu3 %v234_v38  ;;  %v297_v38 = vld [vmem:[%s1371_s6 + $0x498] sm:$0xff]  ;;  %v264_v44 = vld [vmem:[%s1371_s6 + $0x390] sm:$0xff] }
  0x49   :  { %445 = vmatpush.msrb.mxu2 %v217_v39  ;;  %426 = vmatpush.msrb.mxu0 %v200_v48  ;;  %v265_v39 = vld [vmem:[%s1371_s6 + $0x398] sm:$0xff] }
  0x4a   :  { %465 = vmatpush.msrb.mxu3 %v233_v40  ;;  %v279_v40 = vld [vmem:[%s1371_s6 + $0x408] sm:$0xff]  ;;  %v261_v48 = vld [vmem:[%s1371_s6 + $0x378] sm:$0xff] }
  0x4b   :  { %446 = vmatpush.msrb.mxu2 %v216_v41  ;;  %427 = vmatpush.msrb.mxu0 %v199_v54  ;;  %v338_v53 = vld.sshfl [vmem:[#allocation1 + $0x8] sm:$0xff pattern:$0x73625140]  ;;  %v262_v54 = vld [vmem:[%s1371_s6 + $0x380] sm:$0xff] }
  0x4c   :  { %466 = vmatpush.msrb.mxu3 %v232_v46  ;;  %v295_v46 = vld [vmem:[%s1371_s6 + $0x488] sm:$0xff] }
  0x4d   :  { %447 = vmatpush.msrb.mxu2 %v215_v45  ;;  %389 = vmatmul.f32.vlgmr.msra.gmra.mxu3 %v329_v56  ;;  %v278_v45 = vld [vmem:[%s1371_s6 + $0x400] sm:$0xff]  ;;  %v335_v56 = vld.sshfl [vmem:[#allocation1 + $0x38] sm:$0xff pattern:$0x73625140] }
  0x4e   :  { %467 = vmatpush.msrb.mxu3 %v231_v50  ;;  %428 = vmatpush.msrb.mxu0 %v198_v59  ;;  %v263_v50 = vld [vmem:[%s1371_s6 + $0x388] sm:$0xff]  ;;  %v256_v59 = vld [vmem:[%s1371_s6 + $0x350] sm:$0xff] }
  0x4f   :  { %448 = vmatpush.msrb.mxu2 %v214_v49  ;;  %429 = vmatmul.f32.vlgmr.msrb.gmra.mxu0 %v331_v25  ;;  %v337_v49 = vld.sshfl [vmem:[#allocation1] sm:$0xff pattern:$0x73625140] }
  0x50   :  { %468 = vmatpush.msrb.mxu3 %v230_v55  ;;  %493 = vmatpush.msra.mxu0 %v277_v60  ;;  %v259_v55 = vld [vmem:[%s1371_s6 + $0x368] sm:$0xff] }
  0x51   :  { %513 = vmatpush.msra.mxu2 %v293_v52  ;;  %v260_v52 = vld [vmem:[%s1371_s6 + $0x370] sm:$0xff]  ;;  %v255_v60 = vld [vmem:[%s1371_s6 + $0x348] sm:$0xff] }
  0x52   :  { %533 = vmatpush.msra.mxu3 %v309_v58  ;;  %494 = vmatpush.msra.mxu0 %v276_v63  ;;  %v257_v58 = vld [vmem:[%s1371_s6 + $0x358] sm:$0xff]  ;;  %v252_v63 = vld [vmem:[%s1371_s6 + $0x330] sm:$0xff] }
  0x53   :  { %514 = vmatpush.msra.mxu2 %v292_v57  ;;  %v258_v57 = vld [vmem:[%s1371_s6 + $0x360] sm:$0xff] }
  0x54   :  { %534 = vmatpush.msra.mxu3 %v308_v62  ;;  %495 = vmatpush.msra.mxu0 %v275_v3  ;;  %v253_v62 = vld [vmem:[%s1371_s6 + $0x338] sm:$0xff]  ;;  %v248_v3 = vld [vmem:[%s1371_s6 + $0x310] sm:$0xff] }
  0x55   :  { %515 = vmatpush.msra.mxu2 %v291_v61  ;;  %469 = vmatmul.f32.vlgmr.msrb.gmra.mxu3 %v333_v19  ;;  %v254_v61 = vld [vmem:[%s1371_s6 + $0x340] sm:$0xff] }
  0x56   :  { %535 = vmatpush.msra.mxu3 %v307_v1  ;;  %496 = vmatpush.msra.mxu0 %v274_v6  ;;  %v250_v1 = vld [vmem:[%s1371_s6 + $0x320] sm:$0xff]  ;;  %v334_v6 = vld.sshfl [vmem:[#allocation1 + $0x30] sm:$0xff pattern:$0x73625140] }
  0x57   :  { %516 = vmatpush.msra.mxu2 %v290_v0  ;;  %v251_v0 = vld [vmem:[%s1371_s6 + $0x328] sm:$0xff] }
  0x58   :  { %536 = vmatpush.msra.mxu3 %v306_v5  ;;  %497 = vmatpush.msra.mxu0 %v273_v9  ;;  %v246_v5 = vld [vmem:[%s1371_s6 + $0x300] sm:$0xff]  ;;  %v315_v9 = vld [vmem:[%s1371_s6 + $0x528] sm:$0xff] }
  0x59   :  { %517 = vmatpush.msra.mxu2 %v289_v4  ;;  %v247_v4 = vld [vmem:[%s1371_s6 + $0x308] sm:$0xff] }
  0x5a   :  { %537 = vmatpush.msra.mxu3 %v305_v8  ;;  %498 = vmatpush.msra.mxu0 %v272_v12  ;;  %v316_v8 = vld [vmem:[%s1371_s6 + $0x530] sm:$0xff] }
  0x5b   :  { %518 = vmatpush.msra.mxu2 %v288_v7  ;;  %v317_v7 = vld [vmem:[%s1371_s6 + $0x538] sm:$0xff]  ;;  %v312_v12 = vld [vmem:[%s1371_s6 + $0x510] sm:$0xff] }
  0x5c   :  { %538 = vmatpush.msra.mxu3 %v304_v11  ;;  %449 = vmatmul.f32.vlgmr.msrb.gmra.mxu2 %v332_v15  ;;  %v313_v11 = vld [vmem:[%s1371_s6 + $0x518] sm:$0xff]  ;;  %v339_v15 = vld.sshfl [vmem:[#allocation1 + $0x10] sm:$0xff pattern:$0x73625140] }
  0x5d   :  { %519 = vmatpush.msra.mxu2 %v287_v10  ;;  %499 = vmatpush.msra.mxu0 %v271_v16  ;;  %v314_v10 = vld [vmem:[%s1371_s6 + $0x520] sm:$0xff]  ;;  %v629_v16 = vld [vmem:[#allocation2] ss:$0 sm:$0xff] }
  0x5e   :  { %539 = vmatpush.msra.mxu3 %v303_v14  ;;  %v310_v14 = vld [vmem:[%s1371_s6 + $0x500] sm:$0xff] }
  0x5f   :  { %520 = vmatpush.msra.mxu2 %v286_v13  ;;  %500 = vmatpush.msra.mxu0 %v270_v21  ;;  %v311_v13 = vld [vmem:[%s1371_s6 + $0x508] sm:$0xff]  ;;  %s717_s6 = smov [#allocation8]  }
  0x60   :  { %540 = vmatpush.msra.mxu3 %v302_v18 }
  0x61   :  { %521 = vmatpush.msra.mxu2 %v285_v17  ;;  %501 = vmatpush.msra.mxu0 %v269_v26 }
  0x62   :  { %541 = vmatpush.msra.mxu3 %v301_v23 }
  0x63   :  { %522 = vmatpush.msra.mxu2 %v284_v22  ;;  %502 = vmatpush.msra.mxu0 %v268_v29 }
  0x64   :  { %542 = vmatpush.msra.mxu3 %v300_v28 }
  0x65   :  { %523 = vmatpush.msra.mxu2 %v283_v27  ;;  %503 = vmatpush.msra.mxu0 %v267_v32 }
  0x66   :  { %543 = vmatpush.msra.mxu3 %v299_v31 }
  0x67   :  { %524 = vmatpush.msra.mxu2 %v282_v30  ;;  %504 = vmatpush.msra.mxu0 %v266_v36 }
  0x68   :  { %544 = vmatpush.msra.mxu3 %v298_v34 }
  0x69   :  { %525 = vmatpush.msra.mxu2 %v281_v33  ;;  %505 = vmatpush.msra.mxu0 %v265_v39 }
  0x6a   :  { %545 = vmatpush.msra.mxu3 %v297_v38 }
  0x6b   :  { %526 = vmatpush.msra.mxu2 %v280_v37  ;;  %506 = vmatpush.msra.mxu0 %v264_v44 }
  0x6c   :  { %546 = vmatpush.msra.mxu3 %v296_v42 }
  0x6d   :  { %527 = vmatpush.msra.mxu2 %v279_v40  ;;  %507 = vmatpush.msra.mxu0 %v263_v50 }
  0x6e   :  { %547 = vmatpush.msra.mxu3 %v295_v46 }
  0x6f   :  { %528 = vmatpush.msra.mxu2 %v278_v45  ;;  %508 = vmatpush.msra.mxu0 %v262_v54 }
  0x70   :  { %529 = vmatmul.f32.vlgmr.msra.gmra.mxu2 %v337_v49  ;;  %548 = vmatpush.msra.mxu3 %v294_v51 }
  0x71   :  { %549 = vmatmul.f32.vlgmr.msra.gmra.mxu3 %v338_v53  ;;  %509 = vmatmul.f32.vlgmr.msra.gmra.mxu0 %v335_v56 }
  0xab   :  { %v108_v41 = vpop.f32.mrf.mxu0 }
  0xac   :  { %v109_v43 = vadd.f32 %v628_v35, %v108_v41 }
  0xae   :  { %v111_v47 = vmax.f32 %v109_v43, 0.0 }
  0xb0   :  { %623 = vmatmul.msk.f32.vlgmr.msra.gmra.mxu1 %vm120_vm2, %v111_v47 }
  0xb1   :  { %473 = vmatpush.msra.mxu1 %v261_v48 }
  0xb3   :  { %474 = vmatpush.msra.mxu1 %v260_v52 }
  0xb5   :  { %475 = vmatpush.msra.mxu1 %v259_v55 }
  0xb7   :  { %476 = vmatpush.msra.mxu1 %v258_v57 }
  0xb8   :  { %409 = vmatmul.f32.vlgmr.msrb.gmra.mxu1 %v1206_v20  ;;  %v630_v20 = vld [vmem:[#allocation6] ss:$0 sm:$0xff] }
  0xb9   :  { %477 = vmatpush.msra.mxu1 %v257_v58 }
  0xbb   :  { %478 = vmatpush.msra.mxu1 %v256_v59 }
  0xbd   :  { %479 = vmatpush.msra.mxu1 %v255_v60 }
  0xbf   :  { %480 = vmatpush.msra.mxu1 %v254_v61 }
  0xc1   :  { %481 = vmatpush.msra.mxu1 %v253_v62  ;;  %v370_v21 = vpop.f32.mrf.mxu2 }
  0xc2   :  { %v371_v22 = vadd.f32 %v630_v20, %v370_v21 }
  0xc3   :  { %482 = vmatpush.msra.mxu1 %v252_v63 }
  0xc5   :  { %483 = vmatpush.msra.mxu1 %v251_v0 }
  0xc7   :  { %484 = vmatpush.msra.mxu1 %v250_v1 }
  0xc9   :  { %485 = vmatpush.msra.mxu1 %v249_v2 }
  0xcb   :  { %486 = vmatpush.msra.mxu1 %v248_v3 }
  0xcc   :  { %v430_v27 = vpop.f32.mrf.mxu0 }
  0xcd   :  { %487 = vmatpush.msra.mxu1 %v247_v4 }
  0xcf   :  { %488 = vmatpush.msra.mxu1 %v246_v5 }
  0xd0   :  { %489 = vmatmul.f32.vlgmr.msra.gmra.mxu1 %v334_v6  ;;  %v390_v23 = vpop.f32.mrf.mxu3 }
  0xd1   :  { %561 = vmatpush.msrb.mxu1 %v317_v7  ;;  %v391_v24 = vadd.f32 %v390_v23, %v371_v22 }
  0xd3   :  { %562 = vmatpush.msrb.mxu1 %v316_v8 }
  0xd5   :  { %563 = vmatpush.msrb.mxu1 %v315_v9 }
  0xd7   :  { %564 = vmatpush.msrb.mxu1 %v314_v10 }
  0xd8   :  { %v470_v31 = vpop.f32.mrf.mxu3 }
  0xd9   :  { %565 = vmatpush.msrb.mxu1 %v313_v11 }
  0xdb   :  { %566 = vmatpush.msrb.mxu1 %v312_v12 }
  0xdd   :  { %567 = vmatpush.msrb.mxu1 %v311_v13 }
  0xdf   :  { %568 = vmatpush.msrb.mxu1 %v310_v14  ;;  %v450_v29 = vpop.f32.mrf.mxu2 }
  0xe0   :  { %624 = vmatmul.msk.f32.vlgmr.msrb.gmra.mxu1 %vm350_vm3, %v339_v15 }
  0xee   :  { %v510_v35 = vpop.f32.mrf.mxu0 }
  0xf3   :  { %v530_v37 = vpop.f32.mrf.mxu2 }
  0xf4   :  { %v550_v39 = vpop.f32.mrf.mxu3 }
 0x12d   :  { %v141_v17 = vpop.f32.mrf.mxu1 }
 0x12e   :  { %v142_v18 = vadd.f32 %v629_v16, %v141_v17 }
 0x130   :  { %631 = vtanh.f32 %v142_v18 }
 0x135   :  { %v410_v25 = vpop.f32.mrf.mxu1 }
 0x136   :  { %v632_v19 = vpop.eup %631  ;;  %v411_v26 = vadd.f32 %v410_v25, %v391_v24 }
 0x137   :  { %146 = vst.msk [vmem:[%s1374_s9] sm:$0x3] %vm145_vm4, %v632_v19  ;;  %s604_s9 = sshll.u32 %s717_s6, 4  ;;  %s605_s9 = int_to_ptr.vmem [resolvable:$true] %s604_s9 }
 0x138   :  { %v431_v28 = vadd.f32 %v430_v27, %v411_v26 }
 0x13a   :  { %v451_v30 = vadd.f32 %v450_v29, %v431_v28 }
 0x13c   :  { %v471_v33 = vadd.f32 %v470_v31, %v451_v30 }
 0x14d   :  { %v490_v32 = vpop.f32.mrf.mxu1 }
 0x14e   :  { %v491_v34 = vadd.f32 %v490_v32, %v471_v33 }
 0x150   :  { %v511_v36 = vadd.f32 %v510_v35, %v491_v34 }
 0x152   :  { %v531_v38 = vadd.f32 %v530_v37, %v511_v36 }
 0x154   :  { %v551_v40 = vadd.f32 %v550_v39, %v531_v38 }
 0x15d   :  { %v570_v41 = vpop.f32.mrf.mxu1 }
 0x15e   :  { %v571_v42 = vadd.f32 %v570_v41, %v551_v40 }
 0x160   :  { %v574_v43 = vsel %vm573_vm5, %v571_v42, -inf }
 0x161   :  { %575 = vmax.xlane.f32.xlu0 %v574_v43 }
 0x1d4   :  { %v576_v44 = vpop.xlane.xlu0 %575 }
 0x1d5   :  { %v577_v45 = vsub.f32 %v571_v42, %v576_v44 }
 0x1d7   :  { %v578_v46 = vmul.f32 1.442695, %v577_v45 }
 0x1d9   :  { %633 = vpow2.f32 %v578_v46 }
 0x1df   :  { %v634_v47 = vpop.eup %633 }
 0x1e0   :  { %v580_v48 = vsel %vm573_vm5, %v634_v47, 0.0 }
 0x1e1   :  { %581 = vadd.xlane.f32.xlu0 %v580_v48 }
 0x254   :  { %v582_v49 = vpop.xlane.xlu0 %581 }
 0x255   :  { %635 = vrcp.f32 %v582_v49  ;;  %v594_v53 = vand.u32 2147483648, %v582_v49  ;;  %v592_v55 = vand.u32 2147483647, %v582_v49  ;;  %vm588_vm7 = vweird.f32 %v582_v49 }
 0x257   :  { %v595_v57 = vor.u32 1.1754944e-38, %v594_v53  ;;  %vm593_vm9 = vcmp.eq.f32.partialorder %v592_v55, 8.507059e+37 }
 0x25b   :  { %v636_v50 = vpop.eup %635 }
 0x25c   :  { %v584_v51 = vmul.f32 %v636_v50, %v582_v49  ;;  %vm589_vm6 = vweird.f32 %v636_v50 }
 0x25d   :  { %vm590_vm8 = vmor %vm588_vm7, %vm589_vm6 }
 0x25e   :  { %v585_v52 = vsub.f32 1.0, %v584_v51 }
 0x260   :  { %v586_v54 = vmul.f32 %v636_v50, %v585_v52 }
 0x262   :  { %v587_v56 = vadd.f32 %v636_v50, %v586_v54 }
 0x264   :  { %v591_v58 = vsel %vm590_vm8, %v636_v50, %v587_v56 }
 0x265   :  { %v596_v59 = vsel %vm593_vm9, %v595_v57, %v591_v58 }
 0x266   :  { %v597_v60 = vmul.f32 %v634_v47, %v596_v59 }
 0x268   :  { %598 = vst.msk [vmem:[#allocation8] sm:$0x3] %vm573_vm5, %v597_v60 }
 0x269   :  { %609 = dma.vmem_to_hbm [thread:$0]  %s605_s9, 32, %s607_s11, [#allocation5]  }
 0x26a   :  { %713 = dma.done.wait [#allocation5], 32  }
 0x26b   :  { %714 = vsyncadd [#allocation5], 4294967264 }
 0x26c   :  { %618 = vsyncpa [#allocation4], 1 }
 0x26d   :  { %619 = vsyncpa [#allocation7], 1 }
 0x26e   :  { %620 = vsyncpa [#allocation5], 1 }

// kernel: connection_network_forward.2
= control target key start
LH: loop header
LB: loop body
LE: loop exit
PB: predicated region body
PF: predicated region fallthrough
CT: control target
= control target key end

     0   :  { %11 = vsyncpa [#allocation6], 0  ;;  %s10754_s0 = inlined_call_operand.vmem [shape: bf16[128,128], index: 0, kind: input, shape index: {}]   ;;  %s10755_s1 = inlined_call_operand.hbm [shape: bf16[9,128,128], index: 1, kind: input, shape index: {}]   ;;  %s10756_s2 = inlined_call_operand.hbm [shape: f32[40,128], index: 2, kind: input, shape index: {}]   ;;  %s10757_s3 = inlined_call_operand.hbm [shape: bf16[128,128], index: 3, kind: input, shape index: {}]   ;;  %s10758_s4 = inlined_call_operand.hbm [shape: f32[1,128], index: 4, kind: input, shape index: {}]   ;;  %s10759_s5 = inlined_call_operand.hbm [shape: bf16[20,2,1152,128], index: 5, kind: input, shape index: {}]   ;;  %s10760_s6 = inlined_call_operand.vmem [shape: f32[128,128], index: 6, kind: output, shape index: {}]  }
   0x1   :  { %12 = vsyncpa [#allocation8], 0 }
   0x2   :  { %13 = vsyncpa [#allocation11], 0  ;;  %s8618_s21 = smov 0   ;;  %s8620_s22 = smov 0  }
   0x3   :  { %s8622_s23 = smov 0   ;;  %s8624_s24 = smov 0  }
   0x4 LB: > { %s8637_s25 = sadd.s32 4294967295, %s8573_s24   ;;  %p144_p0 = scmp.ne.s32.totalorder %s8565_s22, %s8561_s21  ;;  %s8573_s24 = sphi %s8624_s24, %s11025_s24   ;;  %s8569_s23 = sphi %s8622_s23, %s11024_s23   ;;  %s8565_s22 = sphi %s8620_s22, %s11023_s22   ;;  %s8561_s21 = sphi %s8618_s21, %s11022_s21  }
   0x5   : > { %p145_p1 = scmp.eq.s32.totalorder %s8637_s25, 0  ;;  %p5801_p2 = scmp.ge.s32.totalorder %s8573_s24, 1 }
   0x6   : > { %p176_p3 = scmp.lt.s32.totalorder %s8573_s24, 21  ;;  %p5802_p4 = scmp.ne.s32.totalorder %s8637_s25, 0 }
   0x7   : > { %p8646_p5 = por %p145_p1, %p144_p0  ;;  %s190_s29 = sshll.u32 %s10755_s1, 4  ;;  %s191_s29 = int_to_ptr.hbm [resolvable:$true] %s190_s29 }
   0x8   : > { %p8653_p6 = pnand %p5801_p2, %p176_p3  ;;  %s8575_s7 = smov [#allocation5]  }
   0x9   : > { %s192_s8 = sshll.u32 %s8575_s7, 4  ;;  %s204_s12 = sshll.u32 %s10756_s2, 4  ;;  %s193_s8 = int_to_ptr.vmem [resolvable:$true] %s192_s8  ;;  %s205_s12 = int_to_ptr.hbm [resolvable:$true] %s204_s12 }
   0xa   : > { %p8280_p7 = pneg %p8653_p6  ;;  %s8576_s13 = smov 64  }
   0xb   : > { %s8577_s14 = smov 4   ;;  %s8578_s15 = smov [#allocation7]  }
   0xc   : > { %p8661_p8 = pnand %p8280_p7, %p145_p1  ;;  %s206_s16 = sshll.u32 %s8578_s15, 4  ;;  %s207_s16 = int_to_ptr.vmem [resolvable:$true] %s206_s16 }
   0xd   : > { %s8579_s17 = smov 128   ;;  %s8580_s18 = smov 8  }
   0xe   : > { %8283 = dma.hbm_to_vmem [thread:$0]  (!%p8661_p8), %s191_s29, 9216, %s193_s8, [#allocation6], %s8576_s13, %s8576_s13, %s8577_s14  }
   0xf   : > { %8286 = dma.hbm_to_vmem [thread:$0]  (!%p8661_p8), %s205_s12, 640, %s207_s16, [#allocation8], %s8579_s17, %s8579_s17, %s8580_s18  }
  0x10   : > { %s218_s21 = sshll.u32 %s10757_s3, 4  ;;  %s8581_s27 = smov [#allocation9]   ;;  %s219_s21 = int_to_ptr.hbm [resolvable:$true] %s218_s21 }
  0x11   : > { %s220_s28 = sshll.u32 %s8581_s27, 4  ;;  %s233_s8 = sshll.u32 %s10758_s4, 4  ;;  %s221_s28 = int_to_ptr.vmem [resolvable:$true] %s220_s28  ;;  %s234_s8 = int_to_ptr.hbm [resolvable:$true] %s233_s8 }
  0x12   : > { %8289 = dma.hbm_to_vmem [thread:$0]  (!%p8661_p8), %s219_s21, 1024, %s221_s28, [#allocation8], %s8576_s13, %s8576_s13, %s8577_s14  }
  0x13   : > { %s8582_s10 = smov [#allocation10]   ;;  %s8689_s12 = sadd.s32 1, %s8573_s24  }
  0x14   : > { %s235_s11 = sshll.u32 %s8582_s10, 4  ;;  %s131_s15 = sadd.s32 1, %s8569_s23  ;;  %s236_s11 = int_to_ptr.vmem [resolvable:$true] %s235_s11 }
  0x15   : > { %8292 = dma.hbm_to_vmem [thread:$0]  (!%p8661_p8), %s234_s8, 16, %s236_s11, [#allocation11]  }
  0x16   : > { %s128_s16 = ssub.s32 %s8573_s24, %s8689_s12  ;;  %p138_p9 = scmp.ne.s32.totalorder %s8569_s23, %s8565_s22 }
  0x17   : > { %p129_p10 = scmp.eq.s32.totalorder %s128_s16, 0  ;;  %p139_p11 = scmp.eq.s32.totalorder %s8573_s24, 0 }
  0x18   : > { %p8301_p12 = scmp.lt.s32.totalorder %s8573_s24, 20  ;;  %s246_s18 = sand.u32 1, %s8573_s24  }
  0x19   : > { %s8699_s17 = scalar_select %p129_p10, %s8569_s23, %s131_s15  }
  0x1a   : > { %p140_p13 = por %p139_p11, %p138_p9  ;;  %s248_s19 = sand.u32 1, %s8569_s23  }
  0x1b   : > { %s8260_s20 = smul.u32 1152, %s8573_s24  ;;  %s247_s11 = scalar_lea.sflag [#allocation6], %s246_s18 }
  0x1c   : > { %s8259_s21 = smul.u32 1152, %s248_s19  ;;  %p8704_p0 = pnand %p8301_p12, %p140_p13 }
  0x1d   : > { %s255_s29 = scalar_lea.hbm %s10759_s5, %s8260_s20  ;;  %s8504_s9 = scalar_lea.hbm %s10759_s5, 23040 }
  0x1e   : > { %s256_s7 = sshll.u32 %s255_s29, 4  ;;  %s250_s8 = scalar_lea.vmem [#allocation12], %s8259_s21  ;;  %s257_s7 = int_to_ptr.hbm [resolvable:$true] %s256_s7 }
  0x1f   : > { %s258_s10 = sshll.u32 %s250_s8, 4  ;;  %s8497_s15 = sshra.s32 %s257_s7, 4  ;;  %s259_s10 = int_to_ptr.vmem [resolvable:$true] %s258_s10  ;;  %s8498_s15 = int_to_ptr.hbm [resolvable:$true] %s8497_s15 }
  0x20   : > { %s8499_s16 = scalar_lea.hbm %s8498_s15, 1152  ;;  %p8501_p3 = pneg %p8704_p0 }
  0x21   : > { %p8500_p2 = scmp.ne.s32.totalorder %s8498_s15, %s8499_s16  ;;  %p8505_p9 = scmp.lt.s32.totalorder %s8498_s15, %s10759_s5 }
  0x22   : > { %p8506_p10 = scmp.lt.s32.totalorder %s8504_s9, %s8499_s16 }
  0x23   : > { %p8502_p7 = pnand %p8501_p3, %p8500_p2 }
  0x24   : > { %p8507_p11 = por %p8506_p10, %p8505_p9 }
  0x25   : > { %p8503_p8 = pneg %p8502_p7 }
  0x27   : > { %p8508_p12 = pnand %p8507_p11, %p8503_p8 }
  0x29   : > { %8511 = shalt.err (!%p8508_p12)
}
  0x2a   : > { %8296 = dma.hbm_to_vmem [thread:$0]  (!%p8704_p0), %s257_s7, 18432, %s259_s10, %s247_s11, %s8576_s13, %s8576_s13, %s8577_s14  }
  0x2b   : > { %270 = sbr.rel (%p8653_p6) target bundleno = 1240 (0x4d8), region = 44 }
  0x30   : > { %8544 = dma.done.wait (%p145_p1), [#allocation6], 9216  }
  0x31   : > { %8546 = vsyncadd (%p145_p1), [#allocation6], 4294958080 }
  0x32   : > { %8548 = dma.done.wait (%p145_p1), [#allocation8], 1664  }
  0x33   : > { %8550 = vsyncadd (%p145_p1), [#allocation8], 4294965632 }
  0x34   : > { %8552 = dma.done.wait (%p145_p1), [#allocation11], 16  }
  0x35   : > { %8554 = vsyncadd (%p145_p1), [#allocation11], 4294967280  ;;  %s292_s30 = sand.u32 1, %s8637_s25   ;;  %s294_s13 = sand.u32 1, %s8565_s22  }
  0x36   : > { %s8261_s14 = smul.u32 1152, %s294_s13  ;;  %s293_s18 = scalar_lea.sflag [#allocation6], %s292_s30 }
  0x38   : > { %s8740_s21 = scalar_lea.vmem [#allocation12], %s8261_s14 }
  0x39   : > { %8556 = dma.done.wait (%p8646_p5), %s293_s18, 18432  }
  0x3a   : > { %8558 = vsyncadd (%p8646_p5), %s293_s18, 4294948864  ;;  %324 = sbr.rel (%p5802_p4) target bundleno = 82 (0x52), region = 68 }
  0x3f   : > { %v7447_v0 = vld [vmem:[%s10754_s0] sm:$0xff]   ;;  %v8054_v1 = vld [vmem:[%s10754_s0 + $0x8] sm:$0xff]   ;;  %v8055_v2 = vld [vmem:[%s10754_s0 + $0x10] sm:$0xff]  }
  0x40   : > { %v7448_v3 = vunpack.c.l.bf16 %v7447_v0  ;;  %v7449_v4 = vunpack.c.h.bf16 %v7447_v0  ;;  %v7452_v5 = vunpack.c.l.bf16 %v8054_v1  ;;  %v7453_v6 = vunpack.c.h.bf16 %v8054_v1  ;;  %v8056_v7 = vld [vmem:[%s10754_s0 + $0x18] sm:$0xff]   ;;  %v8057_v10 = vld [vmem:[%s10754_s0 + $0x20] sm:$0xff]   ;;  %v8058_v13 = vld [vmem:[%s10754_s0 + $0x28] sm:$0xff]  }
  0x41   : > { %v7456_v8 = vunpack.c.l.bf16 %v8055_v2  ;;  %v7457_v9 = vunpack.c.h.bf16 %v8055_v2  ;;  %v7460_v11 = vunpack.c.l.bf16 %v8056_v7  ;;  %v7461_v12 = vunpack.c.h.bf16 %v8056_v7  ;;  %v8059_v16 = vld [vmem:[%s10754_s0 + $0x30] sm:$0xff]   ;;  %v8060_v19 = vld [vmem:[%s10754_s0 + $0x38] sm:$0xff]  }
  0x42   : > { %357 = vst [vmem:[#allocation2 + $0x30] sm:$0xff] %v7448_v3  ;;  %v7464_v14 = vunpack.c.l.bf16 %v8057_v10  ;;  %v7465_v15 = vunpack.c.h.bf16 %v8057_v10  ;;  %v7468_v17 = vunpack.c.l.bf16 %v8058_v13  ;;  %v7469_v18 = vunpack.c.h.bf16 %v8058_v13 }
  0x43   : > { %358 = vst [vmem:[#allocation2] sm:$0xff] %v7449_v4  ;;  %v7472_v20 = vunpack.c.l.bf16 %v8059_v16  ;;  %v7473_v21 = vunpack.c.h.bf16 %v8059_v16  ;;  %v7476_v22 = vunpack.c.l.bf16 %v8060_v19  ;;  %v7477_v23 = vunpack.c.h.bf16 %v8060_v19 }
  0x44   : > { %359 = vst [vmem:[#allocation2 + $0x58] sm:$0xff] %v7452_v5 }
  0x45   : > { %360 = vst [vmem:[#allocation2 + $0x18] sm:$0xff] %v7453_v6 }
  0x46   : > { %361 = vst [vmem:[#allocation2 + $0x50] sm:$0xff] %v7456_v8 }
  0x47   : > { %362 = vst [vmem:[#allocation2 + $0x68] sm:$0xff] %v7457_v9 }
  0x48   : > { %363 = vst [vmem:[#allocation2 + $0x8] sm:$0xff] %v7460_v11 }
  0x49   : > { %364 = vst [vmem:[#allocation2 + $0x48] sm:$0xff] %v7461_v12 }
  0x4a   : > { %365 = vst [vmem:[#allocation2 + $0x40] sm:$0xff] %v7464_v14 }
  0x4b   : > { %366 = vst [vmem:[#allocation2 + $0x20] sm:$0xff] %v7465_v15 }
  0x4c   : > { %367 = vst [vmem:[#allocation2 + $0x10] sm:$0xff] %v7468_v17 }
  0x4d   : > { %368 = vst [vmem:[#allocation2 + $0x38] sm:$0xff] %v7469_v18 }
  0x4e   : > { %369 = vst [vmem:[#allocation2 + $0x60] sm:$0xff] %v7472_v20 }
  0x4f   : > { %370 = vst [vmem:[#allocation2 + $0x70] sm:$0xff] %v7473_v21 }
  0x50   : > { %371 = vst [vmem:[#allocation2 + $0x78] sm:$0xff] %v7476_v22 }
  0x51   : > { %372 = vst [vmem:[#allocation2 + $0x28] sm:$0xff] %v7477_v23 }
  0x52 PF: > { %v7157_v24 = vld [vmem:[%s8740_s21 + $0x38] sm:$0xff]  ;;  %v7156_v25 = vld [vmem:[%s8740_s21 + $0x30] sm:$0xff]  ;;  %v8776_v27 = vld [vmem:[#allocation2 + $0x50] sm:$0xff]  ;;  %s5814_s14 = sshll.u32 %s8637_s25, 1 }
  0x53   : > { %8187 = vmatpush.bf16.msra.mxu1 %v7157_v24  ;;  %8188 = vmatpush.bf16.msra.mxu2 %v7157_v24  ;;  %v8774_v26 = vld [vmem:[#allocation2 + $0x18] sm:$0xff]  ;;  %v8062_v29 = vld [vmem:[#allocation5 + $0x10] sm:$0xff]   ;;  %v8780_v30 = vld [vmem:[#allocation2 + $0x48] sm:$0xff]  ;;  %v541_v31 = vpack.c.bf16 %v8776_v27, %v8776_v27  ;;  %s8904_s18 = scalar_lea.vmem [#allocation7], %s5814_s14 }
  0x54   : > { %8189 = vmatpush.bf16.msra.mxu3 %v7157_v24  ;;  %2439 = vmatpush.bf16.msra.mxu0 %v7157_v24  ;;  %v540_v28 = vpack.c.bf16 %v8774_v26, %v8774_v26  ;;  %v7488_v32 = vunpack.c.l.bf16 %v8062_v29  ;;  %v7489_v33 = vunpack.c.h.bf16 %v8062_v29  ;;  %v528_v34 = vld [vmem:[#allocation2 + $0x40] sm:$0xff]  ;;  %v544_v35 = vpack.c.bf16 %v8780_v30, %v8780_v30  ;;  %v531_v37 = vld [vmem:[#allocation2 + $0x38] sm:$0xff]  ;;  %v8066_v43 = vld [vmem:[#allocation5 + $0x30] sm:$0xff]  }
  0x55   : > { %v8064_v36 = vld [vmem:[#allocation5 + $0x20] sm:$0xff]   ;;  %v545_v39 = vpack.c.bf16 %v528_v34, %v528_v34  ;;  %v7155_v44 = vld [vmem:[%s8740_s21 + $0x28] sm:$0xff]  ;;  %v8789_v45 = vunpack.c.l.bf16 %v541_v31  ;;  %v548_v47 = vpack.c.bf16 %v531_v37, %v531_v37  ;;  %v7504_v52 = vunpack.c.l.bf16 %v8066_v43  ;;  %v7154_v0 = vld [vmem:[%s8740_s21 + $0x20] sm:$0xff] }
  0x56   : > { %v8786_v38 = vunpack.c.l.bf16 %v540_v28  ;;  %v7496_v40 = vunpack.c.l.bf16 %v8064_v36  ;;  %v7497_v41 = vunpack.c.h.bf16 %v8064_v36  ;;  %v532_v42 = vld [vmem:[#allocation2 + $0x60] sm:$0xff]  ;;  %v8791_v46 = vunpack.c.l.bf16 %v544_v35  ;;  %v8793_v49 = vld [vmem:[#allocation2 + $0x30] sm:$0xff]  ;;  %v8813_v5 = vld [vmem:[#allocation2 + $0x68] sm:$0xff] }
  0x57   : > { %8190 = vmatpush.bf16.msra.mxu1 %v7156_v25  ;;  %8191 = vmatpush.bf16.msra.mxu2 %v7156_v25  ;;  %v549_v48 = vpack.c.bf16 %v532_v42, %v532_v42  ;;  %v8796_v51 = vunpack.c.l.bf16 %v545_v39  ;;  %v7505_v53 = vunpack.c.h.bf16 %v8066_v43  ;;  %v7479_v55 = vld [vmem:[#allocation5] sm:$0xff]   ;;  %v605_v56 = vmul.f32 %v7489_v33, %v8789_v45  ;;  %v8815_v6 = vld [vmem:[#allocation2 + $0x8] sm:$0xff]  ;;  %v8063_v11 = vld [vmem:[#allocation5 + $0x18] sm:$0xff]  }
  0x58   : > { %10851 = vst [vmem:[#allocation17_spill] sm:$0xff] %v8791_v46  ;;  %8192 = vmatpush.bf16.msra.mxu3 %v7156_v25  ;;  %2440 = vmatpush.bf16.msra.mxu0 %v7156_v25  ;;  %v604_v50 = vmul.f32 %v7488_v32, %v8786_v38  ;;  %v8798_v54 = vld [vmem:[#allocation2 + $0x28] sm:$0xff]  ;;  %v608_v57 = vmul.f32 %v7496_v40, %v8791_v46  ;;  %v8802_v58 = vunpack.c.l.bf16 %v548_v47  ;;  %v7480_v4 = vunpack.c.l.bf16 %v7479_v55  ;;  %v8826_v16 = vld [vmem:[#allocation2 + $0x20] sm:$0xff]  ;;  %v530_v22 = vld [vmem:[#allocation2 + $0x10] sm:$0xff] }
  0x59   : > { %v8804_v59 = vunpack.c.l.bf16 %v549_v48  ;;  %v609_v61 = vmul.f32 %v7497_v41, %v8796_v51  ;;  %v536_v62 = vpack.c.bf16 %v8798_v54, %v8798_v54  ;;  %v537_v63 = vpack.c.bf16 %v8793_v49, %v8793_v49  ;;  %v7153_v17 = vld [vmem:[%s8740_s21 + $0x18] sm:$0xff]  ;;  %v533_v31 = vld [vmem:[#allocation2 + $0x70] sm:$0xff]  ;;  %v534_v32 = vld [vmem:[#allocation2 + $0x78] sm:$0xff] }
  0x5a   : > { %10852 = vst [vmem:[#allocation18_spill] sm:$0xff] %v8802_v58  ;;  %v620_v60 = vpack.c.bf16 %v604_v50, %v604_v50  ;;  %v621_v1 = vpack.c.bf16 %v605_v56, %v605_v56  ;;  %v624_v2 = vpack.c.bf16 %v608_v57, %v608_v57  ;;  %v612_v3 = vmul.f32 %v7504_v52, %v8802_v58  ;;  %v8065_v23 = vld [vmem:[#allocation5 + $0x28] sm:$0xff]   ;;  %v8067_v33 = vld [vmem:[#allocation5 + $0x38] sm:$0xff]   ;;  %v8843_v50 = vld [vmem:[#allocation2] sm:$0xff] }
  0x5b   : > { %8193 = vmatpush.bf16.msra.mxu1 %v7155_v44  ;;  %8194 = vmatpush.bf16.msra.mxu2 %v7155_v44  ;;  %v625_v7 = vpack.c.bf16 %v609_v61, %v609_v61  ;;  %v613_v8 = vmul.f32 %v7505_v53, %v8804_v59  ;;  %v7481_v9 = vunpack.c.h.bf16 %v7479_v55  ;;  %v8818_v10 = vunpack.c.l.bf16 %v536_v62  ;;  %v8845_v52 = vld [vmem:[#allocation2 + $0x58] sm:$0xff] }
  0x5c   : > { %8195 = vmatpush.bf16.msra.mxu3 %v7155_v44  ;;  %2441 = vmatpush.bf16.msra.mxu0 %v7155_v44  ;;  %636 = vst [vmem:[#allocation4 + $0x90] sm:$0xf] %v620_v60  ;;  %v628_v12 = vpack.c.bf16 %v612_v3, %v612_v3  ;;  %v8820_v13 = vunpack.c.l.bf16 %v537_v63  ;;  %v542_v14 = vpack.c.bf16 %v8813_v5, %v8813_v5  ;;  %v7492_v20 = vunpack.c.l.bf16 %v8063_v11  ;;  %v7152_v53 = vld [vmem:[%s8740_s21 + $0x10] sm:$0xff]  ;;  %v8061_v60 = vld [vmem:[#allocation5 + $0x8] sm:$0xff]  }
  0x5d   : > { %637 = vst [vmem:[#allocation4 + $0xb4] sm:$0xf] %v621_v1  ;;  %v543_v15 = vpack.c.bf16 %v8815_v6, %v8815_v6  ;;  %v629_v18 = vpack.c.bf16 %v613_v8, %v613_v8  ;;  %v600_v19 = vmul.f32 %v7480_v4, %v8818_v10  ;;  %v7493_v21 = vunpack.c.h.bf16 %v8063_v11  ;;  %v7151_v1 = vld [vmem:[%s8740_s21 + $0x8] sm:$0xff] }
  0x5e   : > { %10853 = vst [vmem:[#allocation19_spill] sm:$0xff] %v8820_v13  ;;  %v601_v24 = vmul.f32 %v7481_v9, %v8820_v13  ;;  %v8831_v25 = vunpack.c.l.bf16 %v542_v14  ;;  %v546_v29 = vpack.c.bf16 %v8826_v16, %v8826_v16  ;;  %v547_v35 = vpack.c.bf16 %v530_v22, %v530_v22  ;;  %v8875_v22 = vld [vmem:[#allocation5 + $0x40] sm:$0xff]  }
  0x5f   : > { %640 = vst [vmem:[#allocation4 + $0x120] sm:$0xf] %v624_v2  ;;  %8196 = vmatpush.bf16.msra.mxu1 %v7154_v0  ;;  %8197 = vmatpush.bf16.msra.mxu2 %v7154_v0  ;;  %v8833_v28 = vunpack.c.l.bf16 %v543_v15  ;;  %v616_v34 = vpack.c.bf16 %v600_v19, %v600_v19  ;;  %v7500_v36 = vunpack.c.l.bf16 %v8065_v23  ;;  %v7501_v37 = vunpack.c.h.bf16 %v8065_v23 }
  0x60   : > { %641 = vst [vmem:[#allocation4 + $0x144] sm:$0xf] %v625_v7  ;;  %8198 = vmatpush.bf16.msra.mxu3 %v7154_v0  ;;  %2442 = vmatpush.bf16.msra.mxu0 %v7154_v0  ;;  %v617_v39 = vpack.c.bf16 %v601_v24, %v601_v24  ;;  %v606_v40 = vmul.f32 %v7492_v20, %v8831_v25  ;;  %v8839_v42 = vunpack.c.l.bf16 %v546_v29  ;;  %v8841_v43 = vunpack.c.l.bf16 %v547_v35 }
  0x61   : > { %644 = vst [vmem:[#allocation4 + $0x1b0] sm:$0xf] %v628_v12  ;;  %v607_v41 = vmul.f32 %v7493_v21, %v8833_v28  ;;  %v550_v44 = vpack.c.bf16 %v533_v31, %v533_v31  ;;  %v551_v47 = vpack.c.bf16 %v534_v32, %v534_v32  ;;  %v7508_v48 = vunpack.c.l.bf16 %v8067_v33  ;;  %v8880_v32 = vld [vmem:[#allocation5 + $0x80] sm:$0xff]  }
  0x62   : > { %645 = vst [vmem:[#allocation4 + $0x1d4] sm:$0xf] %v629_v18  ;;  %v622_v55 = vpack.c.bf16 %v606_v40, %v606_v40  ;;  %v610_v57 = vmul.f32 %v7500_v36, %v8839_v42  ;;  %v611_v61 = vmul.f32 %v7501_v37, %v8841_v43  ;;  %v7509_v62 = vunpack.c.h.bf16 %v8067_v33  ;;  %v7150_v33 = vld [vmem:[%s8740_s21] sm:$0xff]  ;;  %v8891_v40 = vld [vmem:[#allocation5 + $0xc0] sm:$0xff]  }
  0x63   : > { %10854 = vst [vmem:[#allocation20_spill] sm:$0xff] %v8839_v42  ;;  %8199 = vmatpush.bf16.msra.mxu1 %v7153_v17  ;;  %8200 = vmatpush.bf16.msra.mxu2 %v7153_v17  ;;  %v623_v56 = vpack.c.bf16 %v607_v41, %v607_v41  ;;  %v8850_v63 = vunpack.c.l.bf16 %v550_v44  ;;  %v8852_v0 = vunpack.c.l.bf16 %v551_v47  ;;  %v8855_v2 = vld [vmem:[#allocation4 + $0x90] sm:$0xf]  ;;  %v538_v7 = vpack.c.bf16 %v8843_v50, %v8843_v50  ;;  %v8893_v41 = vld [vmem:[#allocation5 + $0x100] sm:$0xff]  }
  0x64   : > { %632 = vst [vmem:[#allocation4] sm:$0xf] %v616_v34  ;;  %8201 = vmatpush.bf16.msra.mxu3 %v7153_v17  ;;  %2443 = vmatpush.bf16.msra.mxu0 %v7153_v17  ;;  %v8857_v3 = vld [vmem:[#allocation4 + $0xb0] sm:$0xf0]  ;;  %v626_v4 = vpack.c.bf16 %v610_v57, %v610_v57  ;;  %v539_v8 = vpack.c.bf16 %v8845_v52, %v8845_v52  ;;  %v7484_v17 = vunpack.c.l.bf16 %v8061_v60  ;;  %v7485_v19 = vunpack.c.h.bf16 %v8061_v60 }
  0x65   : > { %633 = vst [vmem:[#allocation4 + $0x24] sm:$0xf] %v617_v39  ;;  %v627_v12 = vpack.c.bf16 %v611_v61, %v611_v61  ;;  %v614_v14 = vmul.f32 %v7508_v48, %v8850_v63  ;;  %v615_v15 = vmul.f32 %v7509_v62, %v8852_v0  ;;  %v8871_v20 = vunpack.c.l.bf16 %v538_v7  ;;  %v7173_v62 = vld [vmem:[%s8740_s21 + $0xb8] sm:$0xff] }
  0x66   : > { %638 = vst [vmem:[#allocation4 + $0xd8] sm:$0xf] %v622_v55  ;;  %v8863_v9 = vld [vmem:[#allocation4 + $0x120] sm:$0xf]  ;;  %v8873_v21 = vunpack.c.l.bf16 %v539_v8  ;;  %v664_v31 = vlaneseq  ;;  %v5890_v34 = vor.u32 %v8857_v3, %v8855_v2  ;;  %v648_v48 = vrot.slane %v8793_v49, 1 }
  0x67   : > { %v8865_v11 = vld [vmem:[#allocation4 + $0x140] sm:$0xf0]  ;;  %639 = vst [vmem:[#allocation4 + $0xfc] sm:$0xf] %v623_v56  ;;  %8202 = vmatpush.bf16.msra.mxu1 %v7152_v53  ;;  %8203 = vmatpush.bf16.msra.mxu2 %v7152_v53  ;;  %v630_v24 = vpack.c.bf16 %v614_v14, %v614_v14  ;;  %v631_v29 = vpack.c.bf16 %v615_v15, %v615_v15  ;;  %v10761_v60 = vrot.slane %v8843_v50, 1  ;;  %v10762_v61 = vrot.slane %v8798_v54, 1 }
  0x68   : > { %v8869_v18 = vld [vmem:[#allocation4 + $0x1b0] sm:$0xf]  ;;  %642 = vst [vmem:[#allocation4 + $0x168] sm:$0xf] %v626_v4  ;;  %8204 = vmatpush.bf16.msra.mxu3 %v7152_v53  ;;  %2444 = vmatpush.bf16.msra.mxu0 %v7152_v53  ;;  %v5962_v35 = vor.u32 %v8865_v11, %v8863_v9  ;;  %v602_v37 = vmul.f32 %v7484_v17, %v8871_v20  ;;  %v7512_v53 = vunpack.c.l.bf16 %v8875_v22  ;;  %v8911_v8 = vshrl.u32 %v664_v31, 7  ;;  %v7165_v15 = vld [vmem:[%s8740_s21 + $0x78] sm:$0xff] }
  0x69   : > { %v8878_v23 = vld [vmem:[#allocation4 + $0x1d0] sm:$0xf0]  ;;  %643 = vst [vmem:[#allocation4 + $0x18c] sm:$0xf] %v627_v12  ;;  %v603_v39 = vmul.f32 %v7485_v19, %v8873_v21  ;;  %v796_v19 = vrot.slane %v8793_v49, 2  ;;  %v10763_v31 = vrot.slane %v8798_v54, 2 }
  0x6a   : > { %v6034_v44 = vor.u32 %v8878_v23, %v8869_v18  ;;  %646 = vst [vmem:[#allocation4 + $0x1f8] sm:$0xf] %v630_v24  ;;  %v618_v56 = vpack.c.bf16 %v602_v37, %v602_v37  ;;  %vm666_vm0 = vcmp.lt.s32.totalorder %v8911_v8, 7  ;;  %v10766_v37 = vrot.slane %v8843_v50, 2  ;;  %v7189_v24 = vld [vmem:[%s8740_s21 + $0x138] sm:$0xff]  ;;  %v7172_v55 = vld [vmem:[%s8740_s21 + $0xb0] sm:$0xff] }
  0x6b   : > { %v8887_v36 = vld [vmem:[#allocation4] sm:$0xf]  ;;  %8205 = vmatpush.bf16.msra.mxu1 %v7151_v1  ;;  %8206 = vmatpush.bf16.msra.mxu2 %v7151_v1  ;;  %647 = vst [vmem:[#allocation4 + $0x21c] sm:$0xf] %v631_v29  ;;  %v619_v57 = vpack.c.bf16 %v603_v39, %v603_v39  ;;  %v7608_v29 = vunpack.c.l.bf16 %v8893_v41  ;;  %v7609_v39 = vunpack.c.h.bf16 %v8893_v41  ;;  %vm812_vm1 = vcmp.lt.s32.totalorder %v8911_v8, 6 }
  0x6c   : > { %v8897_v47 = vld [vmem:[#allocation4 + $0x20] sm:$0xf0]  ;;  %8207 = vmatpush.bf16.msra.mxu3 %v7151_v1  ;;  %2445 = vmatpush.bf16.msra.mxu0 %v7151_v1  ;;  %634 = vst [vmem:[#allocation4 + $0x48] sm:$0xf] %v618_v56  ;;  %v681_v56 = vsel %vm666_vm0, %v648_v48, %v10761_v60  ;;  %v942_v60 = vrot.slane %v8793_v49, 7  ;;  %v10765_v49 = vrot.slane %v8798_v54, 7  ;;  %v10856_v23 = vunpack.c.h.bf16 %v8875_v22 }
  0x6d   : > { %v5818_v4 = vor.u32 %v8897_v47, %v8887_v36  ;;  %v8909_v7 = vld [vmem:[#allocation4 + $0xd8] sm:$0xf]  ;;  %635 = vst [vmem:[#allocation4 + $0x6c] sm:$0xf] %v619_v57  ;;  %v682_v57 = vsel %vm666_vm0, %v10762_v61, %v648_v48  ;;  %v7181_v41 = vld [vmem:[%s8740_s21 + $0xf8] sm:$0xff]  ;;  %v684_v12 = vpack.c.bf16 %v681_v56, %v681_v56  ;;  %v10764_v56 = vrot.slane %v8843_v50, 7 }
  0x6e   : > { %v8916_v17 = vld [vmem:[#allocation4 + $0xf8] sm:$0xf0]  ;;  %v683_v14 = vpack.c.bf16 %v682_v57, %v682_v57  ;;  %v828_v57 = vsel %vm812_vm1, %v10763_v31, %v796_v19  ;;  %vm958_vm2 = vcmp.lt.s32.totalorder %v8911_v8, 1  ;;  %v1121_v9 = vmul.f32 %v7608_v29, %v8820_v13  ;;  %v7163_v29 = vld [vmem:[%s8740_s21 + $0x68] sm:$0xff] }
  0x6f   : > { %v8924_v36 = vld [vmem:[#allocation4 + $0x168] sm:$0xf]  ;;  %8208 = vmatpush.bf16.msra.mxu1 %v7150_v33  ;;  %8209 = vmatpush.bf16.msra.mxu2 %v7150_v33  ;;  %v7164_v48 = vld [vmem:[%s8740_s21 + $0x70] sm:$0xff]  ;;  %v8970_v1 = vunpack.c.l.bf16 %v684_v12  ;;  %v1122_v11 = vmul.f32 %v7609_v39, %v8871_v20  ;;  %v7187_v13 = vld [vmem:[%s8740_s21 + $0x128] sm:$0xff]  ;;  %vm1266_vm3 = vcmp.lt.s32.totalorder %v8911_v8, 2 }
  0x70   : > { %v8929_v47 = vld [vmem:[#allocation4 + $0x188] sm:$0xf0]  ;;  %8210 = vmatpush.bf16.msra.mxu3 %v7150_v33  ;;  %2446 = vmatpush.bf16.msra.mxu0 %v7150_v33  ;;  %v827_v33 = vsel %vm812_vm1, %v796_v19, %v10766_v37  ;;  %v829_v19 = vpack.c.bf16 %v828_v57, %v828_v57  ;;  %v7180_v2 = vld [vmem:[%s8740_s21 + $0xf0] sm:$0xff]  ;;  %v1137_v22 = vpack.c.bf16 %v1121_v9, %v1121_v9  ;;  %v10857_v57 = vunpack.c.l.bf16 %v8880_v32  ;;  %v7179_v37 = vld [vmem:[%s8740_s21 + $0xe8] sm:$0xff] }
  0x71   : > { %v8948_v61 = vld [vmem:[#allocation4 + $0x1f8] sm:$0xf]  ;;  %v830_v31 = vpack.c.bf16 %v827_v33, %v827_v33  ;;  %v1138_v9 = vpack.c.bf16 %v1122_v11, %v1122_v11  ;;  %v7170_v11 = vld [vmem:[%s8740_s21 + $0xa0] sm:$0xff] }
  0x72   : > { %2457 = vmatmul.bf16.vlgmr.msra.gmra.mxu1 %v5890_v34  ;;  %2467 = vmatmul.bf16.vlgmr.msra.gmra.mxu2 %v5962_v35  ;;  %v7188_v34 = vld [vmem:[%s8740_s21 + $0x130] sm:$0xff]  ;;  %v7171_v35 = vld [vmem:[%s8740_s21 + $0xa8] sm:$0xff]  ;;  %1153 = vst [vmem:[#allocation4 + $0x10] sm:$0xf] %v1137_v22 }
  0x73   : > { %2537 = vmatpush.bf16.msrb.mxu2 %v7173_v62  ;;  %2488 = vmatpush.bf16.msrb.mxu1 %v7165_v15  ;;  %v8966_v62 = vld [vmem:[#allocation4 + $0x218] sm:$0xf0]  ;;  %v8968_v15 = vunpack.c.l.bf16 %v683_v14  ;;  %v8983_v12 = vld [vmem:[#allocation4 + $0x48] sm:$0xf]  ;;  %v863_v14 = vunpack.c.l.bf16 %v830_v31  ;;  %v650_v31 = vrot.slane %v8845_v52, 1 }
  0x74   : > { %2477 = vmatmul.bf16.vlgmr.msra.gmra.mxu3 %v6034_v44  ;;  %2447 = vmatmul.bf16.vlgmr.msra.gmra.mxu0 %v5818_v4  ;;  %v749_v44 = vmul.f32 %v10856_v23, %v8970_v1  ;;  %v862_v4 = vunpack.c.l.bf16 %v829_v19  ;;  %v8992_v39 = vld [vmem:[#allocation4 + $0x68] sm:$0xf0]  ;;  %v10858_v23 = vunpack.c.h.bf16 %v8880_v32  ;;  %1154 = vst [vmem:[#allocation4 + $0x34] sm:$0xf] %v1138_v9 }
  0x75   : > { %10855 = vst [vmem:[#allocation21_spill] sm:$0xff] %v8968_v15  ;;  %2586 = vmatpush.bf16.msrb.mxu3 %v7181_v41  ;;  %2635 = vmatpush.bf16.msrb.mxu0 %v7189_v24  ;;  %v748_v18 = vmul.f32 %v7512_v53, %v8968_v15  ;;  %v973_v24 = vsel %vm958_vm2, %v942_v60, %v10764_v56  ;;  %v7160_v41 = vld [vmem:[%s8740_s21 + $0x50] sm:$0xff]  ;;  %v8090_v15 = vld [vmem:[#allocation5 + $0x110] sm:$0xff]  }
  0x76   : > { %v974_v53 = vsel %vm958_vm2, %v10765_v49, %v942_v60  ;;  %v765_v33 = vpack.c.bf16 %v749_v44, %v749_v44  ;;  %v894_v19 = vmul.f32 %v10857_v57, %v862_v4  ;;  %v895_v3 = vmul.f32 %v10858_v23, %v863_v14  ;;  %v7639_v49 = vld [vmem:[#allocation5 + $0x140] sm:$0xff]  }
  0x77   : > { %2538 = vmatpush.bf16.msrb.mxu2 %v7172_v55  ;;  %2489 = vmatpush.bf16.msrb.mxu1 %v7164_v48  ;;  %v9003_v55 = vld [vmem:[#allocation5 + $0x48] sm:$0xff]   ;;  %v764_v48 = vpack.c.bf16 %v748_v18, %v748_v18  ;;  %v975_v56 = vpack.c.bf16 %v974_v53, %v974_v53  ;;  %v976_v60 = vpack.c.bf16 %v973_v24, %v973_v24  ;;  %v10768_v44 = vrot.slane %v8774_v26, 1 }
  0x78   : > { %v910_v18 = vpack.c.bf16 %v894_v19, %v894_v19  ;;  %v10859_v4 = vrot.slane %v8843_v50, 1  ;;  %v7516_v14 = vunpack.c.l.bf16 %v9003_v55  ;;  %v7162_v24 = vld [vmem:[%s8740_s21 + $0x60] sm:$0xff]  ;;  %781 = vst [vmem:[#allocation4 + $0x28] sm:$0xf] %v765_v33  ;;  %v7641_v57 = vunpack.c.h.bf16 %v7639_v49 }
  0x79   : > { %2587 = vmatpush.bf16.msrb.mxu3 %v7180_v2  ;;  %2636 = vmatpush.bf16.msrb.mxu0 %v7188_v34  ;;  %780 = vst [vmem:[#allocation4 + $0x4] sm:$0xf] %v764_v48  ;;  %v911_v2 = vpack.c.bf16 %v895_v3, %v895_v3  ;;  %v9021_v34 = vunpack.c.l.bf16 %v975_v56  ;;  %v9023_v53 = vunpack.c.l.bf16 %v976_v60  ;;  %v9025_v48 = vld [vmem:[#allocation5 + $0x88] sm:$0xff]   ;;  %v798_v3 = vrot.slane %v8845_v52, 2 }
  0x7a   : > { %v680_v32 = vsel %vm666_vm0, %v10859_v4, %v650_v31  ;;  %926 = vst [vmem:[#allocation4 + $0x8] sm:$0xf] %v910_v18  ;;  %v10861_v56 = vunpack.c.l.bf16 %v8891_v40  ;;  %v10862_v19 = vunpack.c.h.bf16 %v8891_v40  ;;  %v10769_v49 = vrot.slane %v8774_v26, 2 }
  0x7b   : > { %2539 = vmatpush.bf16.msrb.mxu2 %v7171_v35  ;;  %2490 = vmatpush.bf16.msrb.mxu1 %v7163_v29  ;;  %10860 = vst [vmem:[#allocation22_spill] sm:$0xff] %v9021_v34  ;;  %v685_v22 = vpack.c.bf16 %v680_v32, %v680_v32  ;;  %v679_v35 = vsel %vm666_vm0, %v650_v31, %v10768_v44  ;;  %v7517_v29 = vunpack.c.h.bf16 %v9003_v55  ;;  %v7178_v31 = vld [vmem:[%s8740_s21 + $0xe0] sm:$0xff]  ;;  %v10863_v4 = vrot.slane %v8843_v50, 2 }
  0x7c   : > { %927 = vst [vmem:[#allocation4 + $0x2c] sm:$0xf] %v911_v2  ;;  %v1040_v33 = vmul.f32 %v10861_v56, %v9021_v34  ;;  %v1041_v23 = vmul.f32 %v10862_v19, %v9023_v53  ;;  %v686_v60 = vpack.c.bf16 %v679_v35, %v679_v35  ;;  %v7186_v55 = vld [vmem:[%s8740_s21 + $0x120] sm:$0xff]  ;;  %v7548_v2 = vunpack.c.l.bf16 %v9025_v48 }
  0x7d   : > { %v718_v18 = vunpack.c.l.bf16 %v685_v22  ;;  %2588 = vmatpush.bf16.msrb.mxu3 %v7179_v37  ;;  %2637 = vmatpush.bf16.msrb.mxu0 %v7187_v13  ;;  %v826_v32 = vsel %vm812_vm1, %v10863_v4, %v798_v3  ;;  %v7549_v40 = vunpack.c.h.bf16 %v9025_v48  ;;  %v7169_v22 = vld [vmem:[%s8740_s21 + $0x98] sm:$0xff]  ;;  %v825_v4 = vsel %vm812_vm1, %v798_v3, %v10769_v49 }
  0x7e   : > { %v7161_v37 = vld [vmem:[%s8740_s21 + $0x58] sm:$0xff]  ;;  %v1056_v13 = vpack.c.bf16 %v1040_v33, %v1040_v33  ;;  %v1057_v35 = vpack.c.bf16 %v1041_v23, %v1041_v23  ;;  %v9050_v9 = vunpack.c.l.bf16 %v686_v60  ;;  %v831_v44 = vpack.c.bf16 %v826_v32, %v826_v32 }
  0x7f   : > { %2540 = vmatpush.bf16.msrb.mxu2 %v7170_v11  ;;  %2491 = vmatpush.bf16.msrb.mxu1 %v7162_v24  ;;  %v750_v56 = vmul.f32 %v7516_v14, %v718_v18  ;;  %v1203_v19 = vmul.f32 %v7641_v57, %v718_v18  ;;  %v944_v11 = vrot.slane %v8845_v52, 7  ;;  %v9057_v24 = vld [vmem:[#allocation5 + $0xc8] sm:$0xff]   ;;  %v832_v60 = vpack.c.bf16 %v825_v4, %v825_v4  ;;  %v7168_v18 = vld [vmem:[%s8740_s21 + $0x90] sm:$0xff] }
  0x80   : > { %v7177_v48 = vld [vmem:[%s8740_s21 + $0xd8] sm:$0xff]  ;;  %1072 = vst [vmem:[#allocation4 + $0xc] sm:$0xf] %v1056_v13  ;;  %v751_v33 = vmul.f32 %v7517_v29, %v9050_v9  ;;  %v10771_v14 = vrot.slane %v8774_v26, 7  ;;  %v864_v32 = vunpack.c.l.bf16 %v831_v44  ;;  %v10864_v52 = vrot.slane %v8843_v50, 7 }
  0x81   : > { %v766_v23 = vpack.c.bf16 %v750_v56, %v750_v56  ;;  %2589 = vmatpush.bf16.msrb.mxu3 %v7178_v31  ;;  %2638 = vmatpush.bf16.msrb.mxu0 %v7186_v55  ;;  %v7185_v57 = vld [vmem:[%s8740_s21 + $0x118] sm:$0xff]  ;;  %1073 = vst [vmem:[#allocation4 + $0x30] sm:$0xf] %v1057_v35  ;;  %v1219_v3 = vpack.c.bf16 %v1203_v19, %v1203_v19  ;;  %v865_v55 = vunpack.c.l.bf16 %v832_v60  ;;  %v7580_v35 = vunpack.c.l.bf16 %v9057_v24 }
  0x82   : > { %v972_v49 = vsel %vm958_vm2, %v10864_v52, %v944_v11  ;;  %v9069_v29 = vld [vmem:[#allocation4 + $0x4] sm:$0xf]  ;;  %v9071_v13 = vld [vmem:[#allocation4 + $0x24] sm:$0xf0]  ;;  %v767_v31 = vpack.c.bf16 %v751_v33, %v751_v33  ;;  %v10865_v50 = vor.u32 %v8916_v17, %v8909_v7  ;;  %v10866_v44 = vor.u32 %v8929_v47, %v8924_v36  ;;  %v7176_v17 = vld [vmem:[%s8740_s21 + $0xd0] sm:$0xff] }
  0x83   : > { %2541 = vmatpush.bf16.msrb.mxu2 %v7169_v22  ;;  %2492 = vmatpush.bf16.msrb.mxu1 %v7161_v37  ;;  %782 = vst [vmem:[#allocation4 + $0x4c] sm:$0xf] %v766_v23  ;;  %v896_v22 = vmul.f32 %v7548_v2, %v864_v32  ;;  %v971_v37 = vsel %vm958_vm2, %v944_v11, %v10771_v14  ;;  %v7703_v19 = vld [vmem:[#allocation5 + $0x1c0] sm:$0xff]   ;;  %v8089_v4 = vld [vmem:[#allocation5 + $0x108] sm:$0xff]   ;;  %v7167_v47 = vld [vmem:[%s8740_s21 + $0x88] sm:$0xff]  ;;  %v7581_v60 = vunpack.c.h.bf16 %v9057_v24  ;;  %v946_v11 = vrot.slane %v8776_v27, 7 }
  0x84   : > { %2462 = vmatmul.bf16.gmra.mxu1 %v10865_v50  ;;  %2472 = vmatmul.bf16.gmra.mxu2 %v10866_v44  ;;  %1235 = vst [vmem:[#allocation4 + $0x38] sm:$0xf] %v1219_v3  ;;  %v977_v56 = vpack.c.bf16 %v972_v49, %v972_v49  ;;  %v10867_v33 = vor.u32 %v8966_v62, %v8948_v61  ;;  %v7184_v36 = vld [vmem:[%s8740_s21 + $0x110] sm:$0xff]  ;;  %v7159_v49 = vld [vmem:[%s8740_s21 + $0x48] sm:$0xff]  ;;  %v9097_v61 = vld [vmem:[#allocation4 + $0x8] sm:$0xf]  ;;  %v7705_v3 = vunpack.c.h.bf16 %v7703_v19  ;;  %v7613_v52 = vunpack.c.h.bf16 %v8089_v4 }
  0x85   : > { %v10868_v7 = vor.u32 %v8992_v39, %v8983_v12  ;;  %783 = vst [vmem:[#allocation4 + $0x70] sm:$0xf] %v767_v31  ;;  %v897_v2 = vmul.f32 %v7549_v40, %v865_v55  ;;  %v978_v23 = vpack.c.bf16 %v971_v37, %v971_v37  ;;  %2590 = vmatpush.bf16.msrb.mxu3 %v7177_v48  ;;  %v9099_v62 = vld [vmem:[#allocation4 + $0x28] sm:$0xf0]  ;;  %v9101_v32 = vld [vmem:[#allocation4 + $0x10] sm:$0xf] }
  0x86   : > { %2482 = vmatmul.bf16.gmra.mxu3 %v10867_v33  ;;  %2639 = vmatpush.bf16.msrb.mxu0 %v7185_v57  ;;  %v912_v12 = vpack.c.bf16 %v896_v22, %v896_v22  ;;  %v1010_v39 = vunpack.c.l.bf16 %v977_v56  ;;  %v9103_v40 = vld [vmem:[#allocation4 + $0x30] sm:$0xf0]  ;;  %v7612_v57 = vunpack.c.l.bf16 %v8089_v4  ;;  %v652_v44 = vrot.slane %v8776_v27, 1  ;;  %v7221_v14 = vld [vmem:[%s8740_s21 + $0x238] sm:$0xff] }
  0x87   : > { %2452 = vmatmul.bf16.gmra.mxu0 %v10868_v7  ;;  %2542 = vmatpush.bf16.msrb.mxu2 %v7168_v18  ;;  %v913_v24 = vpack.c.bf16 %v897_v2, %v897_v2  ;;  %v9105_v48 = vunpack.c.l.bf16 %v978_v23  ;;  %v9107_v31 = vld [vmem:[#allocation5 + $0x50] sm:$0xff]   ;;  %v1124_v56 = vmul.f32 %v7613_v52, %v8786_v38  ;;  %v947_v34 = vrot.slane %v8813_v5, 7 }
  0x88   : > { %2493 = vmatpush.bf16.msrb.mxu1 %v7160_v41  ;;  %928 = vst [vmem:[#allocation4 + $0x50] sm:$0xf] %v912_v12  ;;  %v1042_v55 = vmul.f32 %v7580_v35, %v1010_v39  ;;  %v1430_v50 = vmul.f32 %v7705_v3, %v1010_v39  ;;  %v10770_v41 = vrot.slane %v8813_v5, 1  ;;  %v1123_v37 = vmul.f32 %v7612_v57, %v8873_v21  ;;  %v7175_v35 = vld [vmem:[%s8740_s21 + $0xc8] sm:$0xff]  ;;  %v7158_v12 = vld [vmem:[%s8740_s21 + $0x40] sm:$0xff]  ;;  %v7197_v57 = vld [vmem:[%s8740_s21 + $0x178] sm:$0xff] }
  0x89   : > { %929 = vst [vmem:[#allocation4 + $0x74] sm:$0xf] %v913_v24  ;;  %v1043_v22 = vmul.f32 %v7581_v60, %v9105_v48  ;;  %2591 = vmatpush.bf16.msrb.mxu3 %v7176_v17  ;;  %v7183_v19 = vld [vmem:[%s8740_s21 + $0x108] sm:$0xff]  ;;  %v7520_v2 = vunpack.c.l.bf16 %v9107_v31  ;;  %v7166_v60 = vld [vmem:[%s8740_s21 + $0x80] sm:$0xff]  ;;  %v800_v3 = vrot.slane %v8776_v27, 2  ;;  %v7205_v24 = vld [vmem:[%s8740_s21 + $0x1b8] sm:$0xff]  ;;  %v1140_v52 = vpack.c.bf16 %v1124_v56, %v1124_v56 }
  0x8a   : > { %2640 = vmatpush.bf16.msrb.mxu0 %v7184_v36  ;;  %v1058_v33 = vpack.c.bf16 %v1042_v55, %v1042_v55  ;;  %v1446_v7 = vpack.c.bf16 %v1430_v50, %v1430_v50  ;;  %v9121_v23 = vld [vmem:[#allocation5 + $0x90] sm:$0xff]   ;;  %v1139_v17 = vpack.c.bf16 %v1123_v37, %v1123_v37  ;;  %v7521_v36 = vunpack.c.h.bf16 %v9107_v31 }
  0x8b   : > { %2543 = vmatpush.bf16.msrb.mxu2 %v7167_v47  ;;  %v1059_v39 = vpack.c.bf16 %v1043_v22, %v1043_v22  ;;  %v677_v47 = vsel %vm666_vm0, %v652_v44, %v10770_v41  ;;  %v801_v31 = vrot.slane %v8813_v5, 2  ;;  %v9138_v50 = vld [vmem:[#allocation5 + $0xd0] sm:$0xff]   ;;  %v9140_v22 = vld [vmem:[#allocation4 + $0xc] sm:$0xf]  ;;  %v10870_v41 = vrot.slane %v8774_v26, 2 }
  0x8c   : > { %2494 = vmatpush.bf16.msrb.mxu1 %v7159_v49  ;;  %1074 = vst [vmem:[#allocation4 + $0x54] sm:$0xf] %v1058_v33  ;;  %v10869_v49 = vrot.slane %v8774_v26, 1  ;;  %v9142_v37 = vld [vmem:[#allocation4 + $0x2c] sm:$0xf0]  ;;  %v688_v33 = vpack.c.bf16 %v677_v47, %v677_v47  ;;  %v7553_v47 = vunpack.c.h.bf16 %v9121_v23 }
  0x8d   : > { %1075 = vst [vmem:[#allocation4 + $0x78] sm:$0xf] %v1059_v39  ;;  %v824_v4 = vsel %vm812_vm1, %v10870_v41, %v800_v3  ;;  %2592 = vmatpush.bf16.msrb.mxu3 %v7175_v35  ;;  %v7182_v18 = vld [vmem:[%s8740_s21 + $0x100] sm:$0xff]  ;;  %v823_v39 = vsel %vm812_vm1, %v800_v3, %v801_v31  ;;  %v7213_v41 = vld [vmem:[%s8740_s21 + $0x1f8] sm:$0xff] }
  0x8e   : > { %v678_v55 = vsel %vm666_vm0, %v10869_v49, %v652_v44  ;;  %v7552_v44 = vunpack.c.l.bf16 %v9121_v23  ;;  %2641 = vmatpush.bf16.msrb.mxu0 %v7183_v19  ;;  %v7174_v49 = vld [vmem:[%s8740_s21 + $0xc0] sm:$0xff]  ;;  %1462 = vst [vmem:[#allocation4 + $0x40] sm:$0xf] %v1446_v7  ;;  %v9161_v19 = vunpack.c.l.bf16 %v688_v33  ;;  %v834_v7 = vpack.c.bf16 %v823_v39, %v823_v39 }
  0x8f   : > { %v687_v56 = vpack.c.bf16 %v678_v55, %v678_v55  ;;  %v833_v55 = vpack.c.bf16 %v824_v4, %v824_v4  ;;  %2544 = vmatpush.bf16.msrb.mxu2 %v7166_v60  ;;  %1155 = vst [vmem:[#allocation4 + $0x58] sm:$0xf] %v1139_v17  ;;  %v5830_v4 = vor.u32 %v9140_v22, %v9142_v37  ;;  %v10871_v23 = vrot.slane %v8774_v26, 7  ;;  %v7204_v17 = vld [vmem:[%s8740_s21 + $0x1b0] sm:$0xff]  ;;  %v9177_v26 = vld [vmem:[#allocation4 + $0x6c] sm:$0xf0] }
  0x90   : > { %2495 = vmatpush.bf16.msrb.mxu1 %v7158_v12  ;;  %1156 = vst [vmem:[#allocation4 + $0x7c] sm:$0xf] %v1140_v52  ;;  %v7584_v12 = vunpack.c.l.bf16 %v9138_v50  ;;  %v867_v22 = vunpack.c.l.bf16 %v834_v7  ;;  %v7196_v52 = vld [vmem:[%s8740_s21 + $0x170] sm:$0xff]  ;;  %v969_v33 = vsel %vm958_vm2, %v946_v11, %v947_v34  ;;  %v7616_v39 = vunpack.c.l.bf16 %v8090_v15 }
  0x91   : > { %v9159_v35 = vunpack.c.l.bf16 %v687_v56  ;;  %v866_v27 = vunpack.c.l.bf16 %v833_v55  ;;  %v970_v60 = vsel %vm958_vm2, %v10871_v23, %v946_v11  ;;  %v753_v56 = vmul.f32 %v7521_v36, %v9161_v19  ;;  %2593 = vmatpush.bf16.msrb.mxu3 %v7174_v49  ;;  %v7212_v36 = vld [vmem:[%s8740_s21 + $0x1f0] sm:$0xff]  ;;  %v9194_v11 = vld [vmem:[#allocation4 + $0x70] sm:$0xf0] }
  0x92   : > { %2642 = vmatpush.bf16.msrb.mxu0 %v7182_v18  ;;  %v7220_v55 = vld [vmem:[%s8740_s21 + $0x230] sm:$0xff]  ;;  %v899_v18 = vmul.f32 %v7553_v47, %v867_v22  ;;  %v7617_v7 = vunpack.c.h.bf16 %v8090_v15  ;;  %v10872_v23 = vor.u32 %v9069_v29, %v9071_v13  ;;  %v1125_v15 = vmul.f32 %v7616_v39, %v8789_v45 }
  0x93   : > { %2733 = vmatpush.bf16.msra.mxu2 %v7205_v24  ;;  %v752_v3 = vmul.f32 %v7520_v2, %v9159_v35  ;;  %v7585_v24 = vunpack.c.h.bf16 %v9138_v50  ;;  %v898_v37 = vmul.f32 %v7552_v44, %v866_v27  ;;  %v979_v2 = vpack.c.bf16 %v970_v60, %v970_v60  ;;  %v9192_v27 = vld [vmem:[#allocation4 + $0x50] sm:$0xf]  ;;  %v9199_v47 = vld [vmem:[#allocation5 + $0x58] sm:$0xff]  }
  0x94   : > { %2684 = vmatpush.bf16.msra.mxu1 %v7197_v57  ;;  %v9175_v57 = vld [vmem:[#allocation4 + $0x4c] sm:$0xf]  ;;  %v769_v49 = vpack.c.bf16 %v753_v56, %v753_v56  ;;  %v10873_v44 = vor.u32 %v9099_v62, %v9097_v61  ;;  %v10874_v29 = vor.u32 %v9103_v40, %v9101_v32  ;;  %v915_v61 = vpack.c.bf16 %v899_v18, %v899_v18  ;;  %v7203_v56 = vld [vmem:[%s8740_s21 + $0x1a8] sm:$0xff] }
  0x95   : > { %2782 = vmatpush.bf16.msra.mxu3 %v7213_v41  ;;  %v768_v50 = vpack.c.bf16 %v752_v3, %v752_v3  ;;  %2496 = vmatmul.bf16.vlgmr.msrb.gmra.mxu1 %v10872_v23  ;;  %v914_v41 = vpack.c.bf16 %v898_v37, %v898_v37  ;;  %v9196_v60 = vunpack.c.l.bf16 %v979_v2  ;;  %v5858_v13 = vor.u32 %v9175_v57, %v9177_v26  ;;  %v7195_v32 = vld [vmem:[%s8740_s21 + $0x168] sm:$0xff] }
  0x96   : > { %2831 = vmatpush.bf16.msra.mxu0 %v7221_v14  ;;  %2545 = vmatmul.bf16.vlgmr.msrb.gmra.mxu2 %v10873_v44  ;;  %v980_v14 = vpack.c.bf16 %v969_v33, %v969_v33  ;;  %v1126_v62 = vmul.f32 %v7617_v7, %v8831_v25  ;;  %785 = vst [vmem:[#allocation4 + $0xb8] sm:$0xf] %v769_v49  ;;  %v654_v40 = vrot.slane %v8815_v6, 1  ;;  %v7211_v2 = vld [vmem:[%s8740_s21 + $0x1e8] sm:$0xff]  ;;  %v7524_v39 = vunpack.c.l.bf16 %v9199_v47 }
  0x97   : > { %2594 = vmatmul.bf16.vlgmr.msrb.gmra.mxu3 %v5830_v4  ;;  %2643 = vmatmul.bf16.vlgmr.msrb.gmra.mxu0 %v10874_v29  ;;  %784 = vst [vmem:[#allocation4 + $0x94] sm:$0xf] %v768_v50  ;;  %v1044_v4 = vmul.f32 %v7584_v12, %v9196_v60  ;;  %v1141_v22 = vpack.c.bf16 %v1125_v15, %v1125_v15  ;;  %v8077_v50 = vld [vmem:[#allocation5 + $0x98] sm:$0xff]   ;;  %v9219_v12 = vld [vmem:[#allocation4 + $0x54] sm:$0xf]  ;;  %v10875_v7 = vrot.slane %v8813_v5, 1 }
  0x98   : > { %2734 = vmatpush.bf16.msra.mxu2 %v7204_v17  ;;  %2685 = vmatpush.bf16.msra.mxu1 %v7196_v52  ;;  %v9207_v3 = vunpack.c.l.bf16 %v980_v14  ;;  %930 = vst [vmem:[#allocation4 + $0x98] sm:$0xf] %v914_v41  ;;  %v1142_v33 = vpack.c.bf16 %v1126_v62, %v1126_v62  ;;  %v7219_v17 = vld [vmem:[%s8740_s21 + $0x228] sm:$0xff]  ;;  %v10775_v52 = vrot.slane %v8780_v30, 1  ;;  %v802_v14 = vrot.slane %v8815_v6, 2 }
  0x99   : > { %2783 = vmatpush.bf16.msra.mxu3 %v7212_v36  ;;  %931 = vst [vmem:[#allocation4 + $0xbc] sm:$0xf] %v915_v61  ;;  %v1060_v18 = vpack.c.bf16 %v1044_v4, %v1044_v4  ;;  %v676_v36 = vsel %vm666_vm0, %v10875_v7, %v654_v40  ;;  %v9227_v23 = vld [vmem:[#allocation4 + $0x74] sm:$0xf0]  ;;  %v7237_v29 = vld [vmem:[#allocation4 + $0x78] sm:$0xf0]  ;;  %v7556_v62 = vunpack.c.l.bf16 %v8077_v50  ;;  %v7557_v4 = vunpack.c.h.bf16 %v8077_v50 }
  0x9a   : > { %2832 = vmatpush.bf16.msra.mxu0 %v7220_v55  ;;  %v1045_v49 = vmul.f32 %v7585_v24, %v9207_v3  ;;  %v7525_v55 = vunpack.c.h.bf16 %v9199_v47  ;;  %1157 = vst [vmem:[#allocation4 + $0xa0] sm:$0xf] %v1141_v22  ;;  %v675_v44 = vsel %vm666_vm0, %v654_v40, %v10775_v52  ;;  %v689_v41 = vpack.c.bf16 %v676_v36, %v676_v36  ;;  %v5869_v15 = vld [vmem:[#allocation4 + $0x58] sm:$0xf]  ;;  %v8348_v52 = vld [vmem:[#allocation2 + $0x40] sm:$0xff] }
  0x9b   : > { %v10774_v24 = vrot.slane %v8780_v30, 2  ;;  %1076 = vst [vmem:[#allocation4 + $0x9c] sm:$0xf] %v1060_v18  ;;  %v690_v47 = vpack.c.bf16 %v675_v44, %v675_v44  ;;  %v8091_v7 = vld [vmem:[#allocation5 + $0x118] sm:$0xff]   ;;  %v5866_v36 = vor.u32 %v9219_v12, %v9227_v23  ;;  %v5870_v44 = vor.u32 %v7237_v29, %v5869_v15 }
  0x9c   : > { %v1061_v61 = vpack.c.bf16 %v1045_v49, %v1045_v49  ;;  %2735 = vmatpush.bf16.msra.mxu2 %v7203_v56  ;;  %2686 = vmatpush.bf16.msra.mxu1 %v7195_v32  ;;  %1158 = vst [vmem:[#allocation4 + $0xc4] sm:$0xf] %v1142_v33  ;;  %v9235_v22 = vunpack.c.l.bf16 %v689_v41  ;;  %v822_v49 = vsel %vm812_vm1, %v801_v31, %v802_v14  ;;  %v948_v56 = vrot.slane %v8815_v6, 7  ;;  %v8084_v32 = vld [vmem:[#allocation5 + $0xd8] sm:$0xff]  }
  0x9d   : > { %2784 = vmatpush.bf16.msra.mxu3 %v7211_v2  ;;  %v821_v40 = vsel %vm812_vm1, %v802_v14, %v10774_v24  ;;  %v9246_v50 = vunpack.c.l.bf16 %v690_v47  ;;  %v835_v33 = vpack.c.bf16 %v822_v49, %v822_v49  ;;  %v7588_v47 = vunpack.c.l.bf16 %v8084_v32 }
  0x9e   : > { %2833 = vmatpush.bf16.msra.mxu0 %v7219_v17  ;;  %1077 = vst [vmem:[#allocation4 + $0xc0] sm:$0xf] %v1061_v61  ;;  %v836_v2 = vpack.c.bf16 %v821_v40, %v821_v40  ;;  %v9248_v17 = vld [vmem:[#allocation2 + $0x48] sm:$0xff]  ;;  %v754_v41 = vmul.f32 %v7524_v39, %v9235_v22  ;;  %v968_v6 = vsel %vm958_vm2, %v947_v34, %v948_v56  ;;  %v7620_v23 = vunpack.c.l.bf16 %v8091_v7 }
  0x9f   : > { %v949_v18 = vrot.slane %v9248_v17, 7  ;;  %v755_v31 = vmul.f32 %v7525_v55, %v9246_v50  ;;  %v868_v14 = vunpack.c.l.bf16 %v835_v33  ;;  %v981_v12 = vpack.c.bf16 %v968_v6, %v968_v6 }
  0xa0   : > { %v869_v61 = vunpack.c.l.bf16 %v836_v2  ;;  %v770_v40 = vpack.c.bf16 %v754_v41, %v754_v41  ;;  %v7589_v5 = vunpack.c.h.bf16 %v8084_v32  ;;  %v7621_v55 = vunpack.c.h.bf16 %v8091_v7 }
  0xa1   : > { %v967_v49 = vsel %vm958_vm2, %v948_v56, %v949_v18  ;;  %v771_v15 = vpack.c.bf16 %v755_v31, %v755_v31  ;;  %v900_v39 = vmul.f32 %v7556_v62, %v868_v14  ;;  %v9263_v34 = vunpack.c.l.bf16 %v981_v12  ;;  %v8071_v31 = vld [vmem:[#allocation5 + $0x60] sm:$0xff]  }
  0xa2   : > { %v901_v29 = vmul.f32 %v7557_v4, %v869_v61  ;;  %786 = vst [vmem:[#allocation4 + $0xdc] sm:$0xf] %v770_v40  ;;  %v982_v24 = vpack.c.bf16 %v967_v49, %v967_v49  ;;  %v1127_v33 = vmul.f32 %v7620_v23, %v8833_v28  ;;  %v656_v37 = vrot.slane %v8348_v52, 1  ;;  %v9281_v14 = vld [vmem:[#allocation5 + $0xa0] sm:$0xff]   ;;  %v7194_v61 = vld [vmem:[%s8740_s21 + $0x160] sm:$0xff] }
  0xa3   : > { %787 = vst [vmem:[#allocation4 + $0x100] sm:$0xf] %v771_v15  ;;  %v916_v2 = vpack.c.bf16 %v900_v39, %v900_v39  ;;  %v10778_v56 = vrot.slane %v8826_v16, 1  ;;  %v1046_v62 = vmul.f32 %v7588_v47, %v9263_v34  ;;  %v1128_v4 = vmul.f32 %v7621_v55, %v8791_v46  ;;  %v7218_v47 = vld [vmem:[%s8740_s21 + $0x220] sm:$0xff]  ;;  %2687 = vmatpush.bf16.msra.mxu1 %v7194_v61  ;;  %v8092_v61 = vld [vmem:[#allocation5 + $0x120] sm:$0xff]  }
  0xa4   : > { %v917_v41 = vpack.c.bf16 %v901_v29, %v901_v29  ;;  %v9267_v6 = vunpack.c.l.bf16 %v982_v24  ;;  %v10876_v32 = vor.u32 %v9194_v11, %v9192_v27  ;;  %v1143_v7 = vpack.c.bf16 %v1127_v33, %v1127_v33  ;;  %v7210_v11 = vld [vmem:[%s8740_s21 + $0x1e0] sm:$0xff]  ;;  %v9292_v29 = vld [vmem:[#allocation2 + $0x20] sm:$0xff]  ;;  %2834 = vmatpush.bf16.msra.mxu0 %v7218_v47  ;;  %v5891_v47 = vld [vmem:[#allocation4 + $0xb4] sm:$0xf0] }
  0xa5   : > { %2501 = vmatmul.bf16.gmra.mxu1 %v5858_v13  ;;  %932 = vst [vmem:[#allocation4 + $0xe0] sm:$0xf] %v916_v2  ;;  %v673_v24 = vsel %vm666_vm0, %v656_v37, %v10778_v56  ;;  %v1062_v26 = vpack.c.bf16 %v1046_v62, %v1046_v62  ;;  %v7202_v13 = vld [vmem:[%s8740_s21 + $0x1a0] sm:$0xff]  ;;  %v1144_v27 = vpack.c.bf16 %v1128_v4, %v1128_v4  ;;  %v10877_v40 = vrot.slane %v8780_v30, 1  ;;  %v8085_v2 = vld [vmem:[#allocation5 + $0xe0] sm:$0xff]  }
  0xa6   : > { %2550 = vmatmul.bf16.gmra.mxu2 %v10876_v32  ;;  %933 = vst [vmem:[#allocation4 + $0x104] sm:$0xf] %v917_v41  ;;  %v1047_v57 = vmul.f32 %v7589_v5, %v9267_v6  ;;  %v692_v12 = vpack.c.bf16 %v673_v24, %v673_v24  ;;  %v7528_v23 = vunpack.c.l.bf16 %v8071_v31  ;;  %v7529_v15 = vunpack.c.h.bf16 %v8071_v31  ;;  %2785 = vmatpush.bf16.msra.mxu3 %v7210_v11 }
  0xa7   : > { %2599 = vmatmul.bf16.gmra.mxu3 %v5866_v36  ;;  %2648 = vmatmul.bf16.gmra.mxu0 %v5870_v44  ;;  %1159 = vst [vmem:[#allocation4 + $0xe8] sm:$0xf] %v1143_v7  ;;  %v674_v49 = vsel %vm666_vm0, %v10877_v40, %v656_v37  ;;  %v804_v39 = vrot.slane %v8348_v52, 2  ;;  %v10777_v5 = vrot.slane %v9292_v29, 2  ;;  %v7560_v37 = vunpack.c.l.bf16 %v9281_v14  ;;  %v5897_v40 = vld [vmem:[#allocation4 + $0x98] sm:$0xf] }
  0xa8   : > { %v1063_v36 = vpack.c.bf16 %v1047_v57, %v1047_v57  ;;  %1078 = vst [vmem:[#allocation4 + $0xe4] sm:$0xf] %v1062_v26  ;;  %2736 = vmatpush.bf16.msra.mxu2 %v7202_v13  ;;  %v691_v44 = vpack.c.bf16 %v674_v49, %v674_v49  ;;  %v9295_v55 = vunpack.c.l.bf16 %v692_v12  ;;  %v950_v33 = vrot.slane %v8348_v52, 7  ;;  %v7240_v26 = vld [vmem:[#allocation4 + $0x94] sm:$0xf] }
  0xa9   : > { %1160 = vst [vmem:[#allocation4 + $0x10c] sm:$0xf] %v1144_v27  ;;  %v819_v62 = vsel %vm812_vm1, %v804_v39, %v10777_v5  ;;  %v10879_v4 = vrot.slane %v8780_v30, 2  ;;  %v10776_v7 = vrot.slane %v9292_v29, 7  ;;  %v7561_v57 = vunpack.c.h.bf16 %v9281_v14  ;;  %v7245_v49 = vld [vmem:[#allocation4 + $0xb8] sm:$0xf0] }
  0xaa   : > { %10878 = vst [vmem:[#allocation23_spill] sm:$0xff] %v9295_v55  ;;  %v9298_v41 = vunpack.c.l.bf16 %v691_v44  ;;  %v757_v24 = vmul.f32 %v7529_v15, %v9295_v55  ;;  %v838_v52 = vpack.c.bf16 %v819_v62, %v819_v62  ;;  %v966_v30 = vsel %vm958_vm2, %v949_v18, %v950_v33  ;;  %v7246_v44 = vld [vmem:[#allocation4 + $0xc0] sm:$0xf0] }
  0xab   : > { %1079 = vst [vmem:[#allocation4 + $0x108] sm:$0xf] %v1063_v36  ;;  %v820_v32 = vsel %vm812_vm1, %v10879_v4, %v804_v39  ;;  %v965_v27 = vsel %vm958_vm2, %v950_v33, %v10776_v7  ;;  %v7592_v11 = vunpack.c.l.bf16 %v8085_v2  ;;  %v983_v36 = vpack.c.bf16 %v966_v30, %v966_v30  ;;  %v5899_v7 = vld [vmem:[#allocation4 + $0xbc] sm:$0xf0] }
  0xac   : > { %v837_v31 = vpack.c.bf16 %v820_v32, %v820_v32  ;;  %v756_v13 = vmul.f32 %v7528_v23, %v9298_v41  ;;  %v773_v12 = vpack.c.bf16 %v757_v24, %v757_v24  ;;  %v871_v15 = vunpack.c.l.bf16 %v838_v52  ;;  %v5905_v23 = vld [vmem:[#allocation4 + $0xa0] sm:$0xf]  ;;  %v7241_v32 = vld [vmem:[#allocation4 + $0x9c] sm:$0xf] }
  0xad   : > { %v984_v62 = vpack.c.bf16 %v965_v27, %v965_v27  ;;  %v7593_v4 = vunpack.c.h.bf16 %v8085_v2  ;;  %v9320_v18 = vunpack.c.l.bf16 %v983_v36  ;;  %v7624_v33 = vunpack.c.l.bf16 %v8092_v61 }
  0xae   : > { %v870_v14 = vunpack.c.l.bf16 %v837_v31  ;;  %v772_v39 = vpack.c.bf16 %v756_v13, %v756_v13  ;;  %789 = vst [vmem:[#allocation4 + $0x148] sm:$0xf] %v773_v12  ;;  %v903_v5 = vmul.f32 %v7561_v57, %v871_v15  ;;  %v5894_v56 = vor.u32 %v7240_v26, %v5891_v47  ;;  %v8350_v26 = vld [vmem:[#allocation2 + $0x10] sm:$0xff] }
  0xaf   : > { %v5898_v55 = vor.u32 %v7245_v49, %v5897_v40  ;;  %v9322_v24 = vunpack.c.l.bf16 %v984_v62  ;;  %v7625_v31 = vunpack.c.h.bf16 %v8092_v61  ;;  %v5906_v52 = vor.u32 %v7246_v44, %v5905_v23  ;;  %v9328_v40 = vld [vmem:[#allocation2 + $0x38] sm:$0xff]  ;;  %v8072_v23 = vld [vmem:[#allocation5 + $0x68] sm:$0xff]  }
  0xb0   : > { %v902_v17 = vmul.f32 %v7560_v37, %v870_v14  ;;  %788 = vst [vmem:[#allocation4 + $0x124] sm:$0xf] %v772_v39  ;;  %v919_v46 = vpack.c.bf16 %v903_v5, %v903_v5  ;;  %v1048_v13 = vmul.f32 %v7592_v11, %v9320_v18  ;;  %v5902_v2 = vor.u32 %v7241_v32, %v5899_v7  ;;  %v7201_v39 = vld [vmem:[%s8740_s21 + $0x198] sm:$0xff] }
  0xb1   : > { %v1049_v27 = vmul.f32 %v7593_v4, %v9322_v24  ;;  %v1129_v37 = vmul.f32 %v7624_v33, %v8796_v51  ;;  %v1130_v57 = vmul.f32 %v7625_v31, %v8839_v42  ;;  %v658_v47 = vrot.slane %v8350_v26, 1  ;;  %v7209_v62 = vld [vmem:[%s8740_s21 + $0x1d8] sm:$0xff]  ;;  %2737 = vmatpush.bf16.msra.mxu2 %v7201_v39 }
  0xb2   : > { %v918_v30 = vpack.c.bf16 %v902_v17, %v902_v17  ;;  %v1064_v12 = vpack.c.bf16 %v1048_v13, %v1048_v13  ;;  %v10782_v61 = vrot.slane %v9328_v40, 1  ;;  %v806_v49 = vrot.slane %v8350_v26, 2  ;;  %935 = vst [vmem:[#allocation4 + $0x14c] sm:$0xf] %v919_v46  ;;  %v7193_v33 = vld [vmem:[%s8740_s21 + $0x158] sm:$0xff]  ;;  %2786 = vmatpush.bf16.msra.mxu3 %v7209_v62 }
  0xb3   : > { %v1065_v5 = vpack.c.bf16 %v1049_v27, %v1049_v27  ;;  %v1145_v7 = vpack.c.bf16 %v1129_v37, %v1129_v37  ;;  %v1146_v11 = vpack.c.bf16 %v1130_v57, %v1130_v57  ;;  %v10781_v14 = vrot.slane %v9328_v40, 2  ;;  %v7217_v31 = vld [vmem:[%s8740_s21 + $0x218] sm:$0xff]  ;;  %2688 = vmatpush.bf16.msra.mxu1 %v7193_v33 }
  0xb4   : > { %934 = vst [vmem:[#allocation4 + $0x128] sm:$0xf] %v918_v30  ;;  %v671_v15 = vsel %vm666_vm0, %v658_v47, %v10782_v61  ;;  %v10880_v36 = vrot.slane %v8826_v16, 1  ;;  %v10881_v44 = vrot.slane %v9292_v29, 2  ;;  %v7532_v17 = vunpack.c.l.bf16 %v8072_v23  ;;  %v8086_v37 = vld [vmem:[#allocation5 + $0xe8] sm:$0xff]   ;;  %2835 = vmatpush.bf16.msra.mxu0 %v7217_v31 }
  0xb5   : > { %2506 = vmatmul.bf16.gmra.mxu1 %v5894_v56  ;;  %1080 = vst [vmem:[#allocation4 + $0x12c] sm:$0xf] %v1064_v12  ;;  %v694_v32 = vpack.c.bf16 %v671_v15, %v671_v15  ;;  %v7533_v16 = vunpack.c.h.bf16 %v8072_v23  ;;  %v817_v30 = vsel %vm812_vm1, %v806_v49, %v10781_v14  ;;  %v10783_v15 = vrot.slane %v9328_v40, 7  ;;  %v7249_v23 = vld [vmem:[#allocation4 + $0xdc] sm:$0xf] }
  0xb6   : > { %2555 = vmatmul.bf16.gmra.mxu2 %v5898_v55  ;;  %v672_v46 = vsel %vm666_vm0, %v10880_v36, %v658_v47  ;;  %v818_v56 = vsel %vm812_vm1, %v10881_v44, %v806_v49  ;;  %v8079_v55 = vld [vmem:[#allocation5 + $0xa8] sm:$0xff]   ;;  %1081 = vst [vmem:[#allocation4 + $0x150] sm:$0xf] %v1065_v5  ;;  %v840_v57 = vpack.c.bf16 %v817_v30, %v817_v30  ;;  %v5927_v44 = vld [vmem:[#allocation4 + $0xfc] sm:$0xf0]  ;;  %v10883_v39 = vrot.slane %v9292_v29, 7 }
  0xb7   : > { %2604 = vmatmul.bf16.gmra.mxu3 %v5902_v2  ;;  %2653 = vmatmul.bf16.gmra.mxu0 %v5906_v52  ;;  %v693_v4 = vpack.c.bf16 %v672_v46, %v672_v46  ;;  %1161 = vst [vmem:[#allocation4 + $0x130] sm:$0xf] %v1145_v7  ;;  %v839_v13 = vpack.c.bf16 %v818_v56, %v818_v56  ;;  %v7564_v27 = vunpack.c.l.bf16 %v8079_v55  ;;  %v9354_v2 = vunpack.c.l.bf16 %v694_v32  ;;  %v8093_v47 = vld [vmem:[#allocation5 + $0x128] sm:$0xff]   ;;  %v7254_v32 = vld [vmem:[#allocation4 + $0x100] sm:$0xf0] }
  0xb8   : > { %1162 = vst [vmem:[#allocation4 + $0x154] sm:$0xf] %v1146_v11  ;;  %v7565_v12 = vunpack.c.h.bf16 %v8079_v55  ;;  %v952_v7 = vrot.slane %v8350_v26, 7  ;;  %v873_v46 = vunpack.c.l.bf16 %v840_v57  ;;  %v7596_v11 = vunpack.c.l.bf16 %v8086_v37  ;;  %v7255_v57 = vld [vmem:[#allocation4 + $0x108] sm:$0xf0] }
  0xb9   : > { %v9352_v52 = vunpack.c.l.bf16 %v693_v4  ;;  %10882 = vst [vmem:[#allocation24_spill] sm:$0xff] %v9354_v2  ;;  %v872_v5 = vunpack.c.l.bf16 %v839_v13  ;;  %v759_v36 = vmul.f32 %v7533_v16, %v9354_v2  ;;  %v7628_v62 = vunpack.c.l.bf16 %v8093_v47  ;;  %v5933_v4 = vld [vmem:[#allocation4 + $0xe0] sm:$0xf]  ;;  %v7250_v13 = vld [vmem:[#allocation4 + $0xe4] sm:$0xf] }
  0xba   : > { %v963_v55 = vsel %vm958_vm2, %v952_v7, %v10783_v15  ;;  %v964_v26 = vsel %vm958_vm2, %v10883_v39, %v952_v7  ;;  %v905_v31 = vmul.f32 %v7565_v12, %v873_v46  ;;  %v7597_v30 = vunpack.c.h.bf16 %v8086_v37 }
  0xbb   : > { %v758_v49 = vmul.f32 %v7532_v17, %v9352_v52  ;;  %v904_v56 = vmul.f32 %v7564_v27, %v872_v5  ;;  %v5941_v17 = vld [vmem:[#allocation4 + $0xe8] sm:$0xf]  ;;  %v775_v33 = vpack.c.bf16 %v759_v36, %v759_v36  ;;  %v985_v14 = vpack.c.bf16 %v964_v26, %v964_v26  ;;  %v8352_v26 = vld [vmem:[#allocation2 + $0x60] sm:$0xff] }
  0xbc   : > { %v5935_v27 = vld [vmem:[#allocation4 + $0x104] sm:$0xf0]  ;;  %v986_v61 = vpack.c.bf16 %v963_v55, %v963_v55  ;;  %v7629_v15 = vunpack.c.h.bf16 %v8093_v47  ;;  %v921_v29 = vpack.c.bf16 %v905_v31, %v905_v31  ;;  %v1131_v2 = vmul.f32 %v7628_v62, %v8841_v43 }
  0xbd   : > { %v774_v16 = vpack.c.bf16 %v758_v49, %v758_v49  ;;  %v920_v5 = vpack.c.bf16 %v904_v56, %v904_v56  ;;  %v5930_v7 = vor.u32 %v7249_v23, %v5927_v44  ;;  %791 = vst [vmem:[#allocation4 + $0x190] sm:$0xf] %v775_v33  ;;  %v9368_v39 = vunpack.c.l.bf16 %v985_v14  ;;  %v9375_v14 = vld [vmem:[#allocation2 + $0x70] sm:$0xff] }
  0xbe   : > { %v9370_v42 = vunpack.c.l.bf16 %v986_v61  ;;  %v1132_v12 = vmul.f32 %v7629_v15, %v8802_v58  ;;  %v5934_v37 = vor.u32 %v7254_v32, %v5933_v4  ;;  %v5938_v49 = vor.u32 %v7250_v13, %v5935_v27  ;;  %937 = vst [vmem:[#allocation4 + $0x194] sm:$0xf] %v921_v29 }
  0xbf   : > { %790 = vst [vmem:[#allocation4 + $0x16c] sm:$0xf] %v774_v16  ;;  %v5942_v36 = vor.u32 %v7255_v57, %v5941_v17  ;;  %v1147_v46 = vpack.c.bf16 %v1131_v2, %v1131_v2  ;;  %v1050_v47 = vmul.f32 %v7596_v11, %v9368_v39  ;;  %v660_v23 = vrot.slane %v8352_v26, 1  ;;  %v8073_v57 = vld [vmem:[#allocation5 + $0x70] sm:$0xff]  }
  0xc0   : > { %936 = vst [vmem:[#allocation4 + $0x170] sm:$0xf] %v920_v5  ;;  %v1051_v56 = vmul.f32 %v7597_v30, %v9370_v42  ;;  %v1148_v55 = vpack.c.bf16 %v1132_v12, %v1132_v12  ;;  %v10788_v61 = vrot.slane %v9375_v14, 1  ;;  %v808_v44 = vrot.slane %v8352_v26, 2  ;;  %v8080_v12 = vld [vmem:[#allocation5 + $0xb0] sm:$0xff]  }
  0xc1   : > { %1163 = vst [vmem:[#allocation4 + $0x178] sm:$0xf] %v1147_v46  ;;  %v10787_v15 = vrot.slane %v9375_v14, 2  ;;  %v954_v62 = vrot.slane %v8352_v26, 7  ;;  %v1066_v4 = vpack.c.bf16 %v1050_v47, %v1050_v47  ;;  %v10884_v2 = vrot.slane %v9328_v40, 1  ;;  %v7200_v46 = vld [vmem:[%s8740_s21 + $0x190] sm:$0xff] }
  0xc2   : > { %v1067_v32 = vpack.c.bf16 %v1051_v56, %v1051_v56  ;;  %1164 = vst [vmem:[#allocation4 + $0x19c] sm:$0xf] %v1148_v55  ;;  %v10786_v17 = vrot.slane %v9375_v14, 7  ;;  %v669_v16 = vsel %vm666_vm0, %v660_v23, %v10788_v61  ;;  %v10885_v30 = vrot.slane %v9328_v40, 2  ;;  %v7208_v47 = vld [vmem:[%s8740_s21 + $0x1d0] sm:$0xff]  ;;  %2738 = vmatpush.bf16.msra.mxu2 %v7200_v46 }
  0xc3   : > { %v670_v11 = vsel %vm666_vm0, %v10884_v2, %v660_v23  ;;  %v815_v31 = vsel %vm812_vm1, %v808_v44, %v10787_v15  ;;  %1082 = vst [vmem:[#allocation4 + $0x174] sm:$0xf] %v1066_v4  ;;  %v696_v27 = vpack.c.bf16 %v669_v16, %v669_v16  ;;  %v7536_v56 = vunpack.c.l.bf16 %v8073_v57  ;;  %2787 = vmatpush.bf16.msra.mxu3 %v7208_v47 }
  0xc4   : > { %v695_v33 = vpack.c.bf16 %v670_v11, %v670_v11  ;;  %v816_v13 = vsel %vm812_vm1, %v10885_v30, %v808_v44  ;;  %v842_v29 = vpack.c.bf16 %v815_v31, %v815_v31  ;;  %1083 = vst [vmem:[#allocation4 + $0x198] sm:$0xf] %v1067_v32  ;;  %v7537_v55 = vunpack.c.h.bf16 %v8073_v57 }
  0xc5   : > { %2511 = vmatmul.bf16.gmra.mxu1 %v5930_v7  ;;  %v841_v5 = vpack.c.bf16 %v816_v13, %v816_v13  ;;  %v7568_v23 = vunpack.c.l.bf16 %v8080_v12  ;;  %v7192_v7 = vld [vmem:[%s8740_s21 + $0x150] sm:$0xff]  ;;  %v9402_v44 = vunpack.c.l.bf16 %v696_v27  ;;  %v7569_v4 = vunpack.c.h.bf16 %v8080_v12  ;;  %v8094_v27 = vld [vmem:[#allocation5 + $0x130] sm:$0xff]  }
  0xc6   : > { %2560 = vmatmul.bf16.gmra.mxu2 %v5934_v37  ;;  %v9398_v26 = vunpack.c.l.bf16 %v695_v33  ;;  %v7216_v37 = vld [vmem:[%s8740_s21 + $0x210] sm:$0xff]  ;;  %v10887_v32 = vrot.slane %v9328_v40, 7  ;;  %v8087_v33 = vld [vmem:[#allocation5 + $0xf0] sm:$0xff]   ;;  %2689 = vmatpush.bf16.msra.mxu1 %v7192_v7  ;;  %v5963_v40 = vld [vmem:[#allocation4 + $0x144] sm:$0xf0] }
  0xc7   : > { %2609 = vmatmul.bf16.gmra.mxu3 %v5938_v49  ;;  %2658 = vmatmul.bf16.gmra.mxu0 %v5942_v36  ;;  %10886 = vst [vmem:[#allocation25_spill] sm:$0xff] %v9402_v44  ;;  %v874_v2 = vunpack.c.l.bf16 %v841_v5  ;;  %v875_v49 = vunpack.c.l.bf16 %v842_v29  ;;  %v961_v36 = vsel %vm958_vm2, %v954_v62, %v10786_v17  ;;  %v761_v31 = vmul.f32 %v7537_v55, %v9402_v44  ;;  %v7258_v17 = vld [vmem:[#allocation4 + $0x124] sm:$0xf]  ;;  %v5969_v55 = vld [vmem:[#allocation4 + $0x128] sm:$0xf] }
  0xc8   : > { %v760_v11 = vmul.f32 %v7536_v56, %v9398_v26  ;;  %v962_v16 = vsel %vm958_vm2, %v10887_v32, %v954_v62  ;;  %2836 = vmatpush.bf16.msra.mxu0 %v7216_v37  ;;  %v7600_v13 = vunpack.c.l.bf16 %v8087_v33  ;;  %v988_v12 = vpack.c.bf16 %v961_v36, %v961_v36 }
  0xc9   : > { %v906_v30 = vmul.f32 %v7568_v23, %v874_v2  ;;  %v907_v5 = vmul.f32 %v7569_v4, %v875_v49  ;;  %v987_v29 = vpack.c.bf16 %v962_v16, %v962_v16  ;;  %v777_v46 = vpack.c.bf16 %v761_v31, %v761_v31  ;;  %v7263_v23 = vld [vmem:[#allocation4 + $0x148] sm:$0xf0]  ;;  %v5971_v4 = vld [vmem:[#allocation4 + $0x14c] sm:$0xf0]  ;;  %v7264_v31 = vld [vmem:[#allocation4 + $0x150] sm:$0xf0] }
  0xca   : > { %v776_v57 = vpack.c.bf16 %v760_v11, %v760_v11  ;;  %v7601_v56 = vunpack.c.h.bf16 %v8087_v33  ;;  %v9416_v7 = vunpack.c.l.bf16 %v988_v12  ;;  %v7632_v37 = vunpack.c.l.bf16 %v8094_v27  ;;  %v7259_v11 = vld [vmem:[#allocation4 + $0x12c] sm:$0xf]  ;;  %v5977_v33 = vld [vmem:[#allocation4 + $0x130] sm:$0xf] }
  0xcb   : > { %v922_v47 = vpack.c.bf16 %v906_v30, %v906_v30  ;;  %v923_v15 = vpack.c.bf16 %v907_v5, %v907_v5  ;;  %v9414_v62 = vunpack.c.l.bf16 %v987_v29  ;;  %793 = vst [vmem:[#allocation4 + $0x1d8] sm:$0xf] %v777_v46  ;;  %v7633_v2 = vunpack.c.h.bf16 %v8094_v27  ;;  %v8354_v46 = vld [vmem:[#allocation2 + $0x78] sm:$0xff] }
  0xcc   : > { %792 = vst [vmem:[#allocation4 + $0x1b4] sm:$0xf] %v776_v57  ;;  %v1053_v36 = vmul.f32 %v7601_v56, %v9416_v7  ;;  %v1133_v32 = vmul.f32 %v7632_v37, %v8804_v59  ;;  %v5966_v16 = vor.u32 %v7258_v17, %v5963_v40  ;;  %v5970_v57 = vor.u32 %v7263_v23, %v5969_v55 }
  0xcd   : > { %938 = vst [vmem:[#allocation4 + $0x1b8] sm:$0xf] %v922_v47  ;;  %v1052_v49 = vmul.f32 %v7600_v13, %v9414_v62  ;;  %v1134_v30 = vmul.f32 %v7633_v2, %v8850_v63  ;;  %v662_v61 = vrot.slane %v8354_v46, 1  ;;  %v810_v47 = vrot.slane %v8354_v46, 2 }
  0xce   : > { %939 = vst [vmem:[#allocation4 + $0x1dc] sm:$0xf] %v923_v15  ;;  %v1069_v29 = vpack.c.bf16 %v1053_v36, %v1053_v36  ;;  %v1149_v12 = vpack.c.bf16 %v1133_v32, %v1133_v32  ;;  %v956_v44 = vrot.slane %v8354_v46, 7  ;;  %v5974_v13 = vor.u32 %v7259_v11, %v5971_v4  ;;  %v8081_v32 = vld [vmem:[#allocation5 + $0xb8] sm:$0xff]  }
  0xcf   : > { %v1068_v5 = vpack.c.bf16 %v1052_v49, %v1052_v49  ;;  %v1150_v27 = vpack.c.bf16 %v1134_v30, %v1134_v30  ;;  %v5978_v58 = vor.u32 %v7264_v31, %v5977_v33  ;;  %v10888_v17 = vrot.slane %v8798_v54, 1 }
  0xd0   : > { %1085 = vst [vmem:[#allocation4 + $0x1e0] sm:$0xf] %v1069_v29  ;;  %v10889_v56 = vrot.slane %v9375_v14, 1  ;;  %v10890_v37 = vrot.slane %v8798_v54, 2  ;;  %v10891_v23 = vrot.slane %v9375_v14, 2  ;;  %v10892_v33 = vrot.slane %v8798_v54, 7 }
  0xd1   : > { %1084 = vst [vmem:[#allocation4 + $0x1bc] sm:$0xf] %v1068_v5  ;;  %v667_v15 = vsel %vm666_vm0, %v662_v61, %v10888_v17  ;;  %v10893_v30 = vrot.slane %v9375_v14, 7  ;;  %v7199_v29 = vld [vmem:[%s8740_s21 + $0x188] sm:$0xff]  ;;  %v7572_v54 = vunpack.c.l.bf16 %v8081_v32 }
  0xd2   : > { %v668_v40 = vsel %vm666_vm0, %v10889_v56, %v662_v61  ;;  %v813_v55 = vsel %vm812_vm1, %v810_v47, %v10890_v37  ;;  %v814_v2 = vsel %vm812_vm1, %v10891_v23, %v810_v47  ;;  %1165 = vst [vmem:[#allocation4 + $0x1c0] sm:$0xf] %v1149_v12  ;;  %v698_v4 = vpack.c.bf16 %v667_v15, %v667_v15  ;;  %v8074_v61 = vld [vmem:[#allocation5 + $0x78] sm:$0xff]  }
  0xd3   : > { %v697_v11 = vpack.c.bf16 %v668_v40, %v668_v40  ;;  %v843_v49 = vpack.c.bf16 %v814_v2, %v814_v2  ;;  %v844_v36 = vpack.c.bf16 %v813_v55, %v813_v55  ;;  %1166 = vst [vmem:[#allocation4 + $0x1e4] sm:$0xf] %v1150_v27  ;;  %v959_v31 = vsel %vm958_vm2, %v956_v44, %v10892_v33  ;;  %v7207_v12 = vld [vmem:[%s8740_s21 + $0x1c8] sm:$0xff] }
  0xd4   : > { %v960_v5 = vsel %vm958_vm2, %v10893_v30, %v956_v44  ;;  %v7540_v46 = vunpack.c.l.bf16 %v8074_v61  ;;  %v9450_v27 = vunpack.c.l.bf16 %v698_v4  ;;  %v7573_v47 = vunpack.c.h.bf16 %v8081_v32  ;;  %v8088_v15 = vld [vmem:[#allocation5 + $0xf8] sm:$0xff]   ;;  %2739 = vmatpush.bf16.msra.mxu2 %v7199_v29  ;;  %2788 = vmatpush.bf16.msra.mxu3 %v7207_v12  ;;  %v7267_v32 = vld [vmem:[#allocation4 + $0x16c] sm:$0xf]  ;;  %v5999_v12 = vld [vmem:[#allocation4 + $0x18c] sm:$0xf0] }
  0xd5   : > { %2516 = vmatmul.bf16.gmra.mxu1 %v5966_v16  ;;  %v7541_v16 = vunpack.c.h.bf16 %v8074_v61  ;;  %v876_v17 = vunpack.c.l.bf16 %v843_v49  ;;  %v8095_v56 = vld [vmem:[#allocation5 + $0x138] sm:$0xff]   ;;  %v990_v37 = vpack.c.bf16 %v959_v31, %v959_v31  ;;  %v7604_v55 = vunpack.c.l.bf16 %v8088_v15 }
  0xd6   : > { %2565 = vmatmul.bf16.gmra.mxu2 %v5970_v57  ;;  %v9448_v57 = vunpack.c.l.bf16 %v697_v11  ;;  %v7605_v23 = vunpack.c.h.bf16 %v8088_v15  ;;  %v7191_v2 = vld [vmem:[%s8740_s21 + $0x148] sm:$0xff]  ;;  %v7636_v29 = vunpack.c.l.bf16 %v8095_v56 }
  0xd7   : > { %2614 = vmatmul.bf16.gmra.mxu3 %v5974_v13  ;;  %2663 = vmatmul.bf16.gmra.mxu0 %v5978_v58  ;;  %v763_v44 = vmul.f32 %v7541_v16, %v9450_v27  ;;  %v877_v58 = vunpack.c.l.bf16 %v844_v36  ;;  %v989_v13 = vpack.c.bf16 %v960_v5, %v960_v5  ;;  %v908_v40 = vmul.f32 %v7572_v54, %v876_v17  ;;  %v7215_v36 = vld [vmem:[%s8740_s21 + $0x208] sm:$0xff] }
  0xd8   : > { %v762_v14 = vmul.f32 %v7540_v46, %v9448_v57  ;;  %v9457_v30 = vunpack.c.l.bf16 %v990_v37  ;;  %2690 = vmatpush.bf16.msra.mxu1 %v7191_v2  ;;  %v7637_v46 = vunpack.c.h.bf16 %v8095_v56  ;;  %v6005_v16 = vld [vmem:[#allocation4 + $0x170] sm:$0xf]  ;;  %v7272_v54 = vld [vmem:[#allocation4 + $0x190] sm:$0xf0]  ;;  %v1135_v17 = vmul.f32 %v7636_v29, %v8852_v0  ;;  %v6013_v15 = vld [vmem:[#allocation4 + $0x178] sm:$0xf]  ;;  %2837 = vmatpush.bf16.msra.mxu0 %v7215_v36 }
  0xd9   : > { %v779_v4 = vpack.c.bf16 %v763_v44, %v763_v44  ;;  %v909_v61 = vmul.f32 %v7573_v47, %v877_v58  ;;  %v9455_v49 = vunpack.c.l.bf16 %v989_v13  ;;  %v924_v33 = vpack.c.bf16 %v908_v40, %v908_v40  ;;  %v7268_v13 = vld [vmem:[#allocation4 + $0x174] sm:$0xf]  ;;  %v6007_v40 = vld [vmem:[#allocation4 + $0x194] sm:$0xf0] }
  0xda   : > { %v778_v11 = vpack.c.bf16 %v762_v14, %v762_v14  ;;  %v1055_v47 = vmul.f32 %v7605_v23, %v9457_v30  ;;  %v7273_v14 = vld [vmem:[#allocation4 + $0x198] sm:$0xf0]  ;;  %v1136_v58 = vmul.f32 %v7637_v46, %v8818_v10  ;;  %v6002_v56 = vor.u32 %v7267_v32, %v5999_v12  ;;  %v9464_v23 = vld [vmem:[#allocation2 + $0x30] sm:$0xff] }
  0xdb   : > { %v925_v5 = vpack.c.bf16 %v909_v61, %v909_v61  ;;  %v1054_v31 = vmul.f32 %v7604_v55, %v9455_v49  ;;  %795 = vst [vmem:[#allocation4 + $0x220] sm:$0xf] %v779_v4  ;;  %v1151_v55 = vpack.c.bf16 %v1135_v17, %v1135_v17  ;;  %v10791_v4 = vrot.slane %v9464_v23, 6  ;;  %v8356_v61 = vld [vmem:[#allocation2] sm:$0xff]  ;;  %v7206_v17 = vld [vmem:[%s8740_s21 + $0x1c0] sm:$0xff] }
  0xdc   : > { %794 = vst [vmem:[#allocation4 + $0x1fc] sm:$0xf] %v778_v11  ;;  %v1071_v37 = vpack.c.bf16 %v1055_v47, %v1055_v47  ;;  %v1152_v2 = vpack.c.bf16 %v1136_v58, %v1136_v58  ;;  %v6006_v11 = vor.u32 %v7272_v54, %v6005_v16  ;;  %v1251_v29 = vrot.slane %v8356_v61, 6  ;;  %v7671_v54 = vld [vmem:[#allocation5 + $0x180] sm:$0xff]   ;;  %v7198_v47 = vld [vmem:[%s8740_s21 + $0x180] sm:$0xff]  ;;  %2789 = vmatpush.bf16.msra.mxu3 %v7206_v17 }
  0xdd   : > { %940 = vst [vmem:[#allocation4 + $0x200] sm:$0xf] %v924_v33  ;;  %v1070_v44 = vpack.c.bf16 %v1054_v31, %v1054_v31  ;;  %v9467_v33 = vld [vmem:[#allocation2 + $0x58] sm:$0xff]  ;;  %v6014_v31 = vor.u32 %v7273_v14, %v6013_v15  ;;  %v8358_v15 = vld [vmem:[#allocation5 + $0x140] sm:$0xff]   ;;  %v7673_v58 = vunpack.c.h.bf16 %v7671_v54  ;;  %2740 = vmatpush.bf16.msra.mxu2 %v7198_v47  ;;  %v7276_v47 = vld [vmem:[#allocation4 + $0x1b4] sm:$0xf] }
  0xde   : > { %941 = vst [vmem:[#allocation4 + $0x224] sm:$0xf] %v925_v5  ;;  %v1252_v36 = vrot.slane %v9467_v33, 6  ;;  %v6010_v5 = vor.u32 %v7268_v13, %v6007_v40  ;;  %v1281_v12 = vsel %vm1266_vm3, %v10791_v4, %v1251_v29  ;;  %v7640_v14 = vunpack.c.l.bf16 %v8358_v15  ;;  %v6035_v17 = vld [vmem:[#allocation4 + $0x1d4] sm:$0xf0] }
  0xdf   : > { %1086 = vst [vmem:[#allocation4 + $0x204] sm:$0xf] %v1070_v44  ;;  %v1283_v46 = vpack.c.bf16 %v1281_v12, %v1281_v12  ;;  %v7672_v44 = vunpack.c.l.bf16 %v7671_v54 }
  0xe0   : > { %1087 = vst [vmem:[#allocation4 + $0x228] sm:$0xf] %v1071_v37  ;;  %v1280_v32 = vsel %vm1266_vm3, %v1251_v29, %v1252_v36  ;;  %v8359_v37 = vld [vmem:[#allocation5 + $0x1c0] sm:$0xff]  }
  0xe1   : > { %1167 = vst [vmem:[#allocation4 + $0x208] sm:$0xf] %v1151_v55  ;;  %v1284_v16 = vpack.c.bf16 %v1280_v32, %v1280_v32  ;;  %v1316_v13 = vunpack.c.l.bf16 %v1283_v46  ;;  %v7704_v55 = vunpack.c.l.bf16 %v8359_v37  ;;  %v7190_v32 = vld [vmem:[%s8740_s21 + $0x140] sm:$0xff] }
  0xe2   : > { %1168 = vst [vmem:[#allocation4 + $0x22c] sm:$0xf] %v1152_v2  ;;  %v7735_v2 = vld [vmem:[#allocation5 + $0x200] sm:$0xff]   ;;  %2691 = vmatpush.bf16.msra.mxu1 %v7190_v32 }
  0xe3   : > { %v1317_v40 = vunpack.c.l.bf16 %v1284_v16  ;;  %v7736_v61 = vunpack.c.l.bf16 %v7735_v2  ;;  %v7737_v29 = vunpack.c.h.bf16 %v7735_v2 }
  0xe5   : > { %2521 = vmatmul.bf16.gmra.mxu1 %v6002_v56  ;;  %v1202_v56 = vmul.f32 %v7640_v14, %v8970_v1  ;;  %v1510_v46 = vmul.f32 %v7736_v61, %v8871_v20  ;;  %v1511_v16 = vmul.f32 %v7737_v29, %v8873_v21  ;;  %v7214_v1 = vld [vmem:[%s8740_s21 + $0x200] sm:$0xff]  ;;  %v7282_v20 = vld [vmem:[#allocation4 + $0x1e0] sm:$0xf0]  ;;  %v6038_v21 = vor.u32 %v7276_v47, %v6035_v17 }
  0xe6   : > { %2570 = vmatmul.bf16.gmra.mxu2 %v6006_v11  ;;  %v1348_v11 = vmul.f32 %v7672_v44, %v1316_v13  ;;  %v6041_v44 = vld [vmem:[#allocation4 + $0x1b8] sm:$0xf]  ;;  %v7281_v13 = vld [vmem:[#allocation4 + $0x1d8] sm:$0xf0]  ;;  %2838 = vmatpush.bf16.msra.mxu0 %v7214_v1  ;;  %v9487_v61 = vld [vmem:[#allocation2 + $0x50] sm:$0xff] }
  0xe7   : > { %2619 = vmatmul.bf16.gmra.mxu3 %v6010_v5  ;;  %2668 = vmatmul.bf16.gmra.mxu0 %v6014_v31  ;;  %v1349_v5 = vmul.f32 %v7673_v58, %v1317_v40  ;;  %v1429_v31 = vmul.f32 %v7704_v55, %v9023_v53  ;;  %v1218_v12 = vpack.c.bf16 %v1202_v56, %v1202_v56  ;;  %v7277_v53 = vld [vmem:[#allocation4 + $0x1bc] sm:$0xf]  ;;  %v6043_v40 = vld [vmem:[#allocation4 + $0x1dc] sm:$0xf0]  ;;  %v1254_v29 = vrot.slane %v9487_v61, 6  ;;  %v8103_v47 = vld [vmem:[#allocation5 + $0x188] sm:$0xff]  }
  0xe8   : > { %v1364_v15 = vpack.c.bf16 %v1348_v11, %v1348_v11  ;;  %v1526_v14 = vpack.c.bf16 %v1510_v46, %v1510_v46  ;;  %v1527_v58 = vpack.c.bf16 %v1511_v16, %v1511_v16  ;;  %v6049_v55 = vld [vmem:[#allocation4 + $0x1c0] sm:$0xf]  ;;  %v6042_v2 = vor.u32 %v7281_v13, %v6041_v44  ;;  %v8360_v56 = vld [vmem:[#allocation2 + $0x18] sm:$0xff]  ;;  %v8110_v44 = vld [vmem:[#allocation5 + $0x1c8] sm:$0xff]  }
  0xe9   : > { %v1365_v54 = vpack.c.bf16 %v1349_v5, %v1349_v5  ;;  %v1445_v37 = vpack.c.bf16 %v1429_v31, %v1429_v31  ;;  %1234 = vst [vmem:[#allocation4 + $0x14] sm:$0xf] %v1218_v12  ;;  %v1253_v11 = vrot.slane %v8360_v56, 6  ;;  %v6046_v31 = vor.u32 %v7277_v53, %v6043_v40  ;;  %v8118_v61 = vld [vmem:[#allocation5 + $0x210] sm:$0xff]  }
  0xea   : > { %1380 = vst [vmem:[#allocation4 + $0x18] sm:$0xf] %v1364_v15  ;;  %v6050_v32 = vor.u32 %v7282_v20, %v6049_v55  ;;  %v7677_v13 = vunpack.c.h.bf16 %v8103_v47  ;;  %v7708_v55 = vunpack.c.l.bf16 %v8110_v44  ;;  %v7709_v20 = vunpack.c.h.bf16 %v8110_v44  ;;  %v6077_v44 = vld [vmem:[#allocation4 + $0x200] sm:$0xf] }
  0xeb   : > { %1381 = vst [vmem:[#allocation4 + $0x3c] sm:$0xf] %v1365_v54  ;;  %v1278_v15 = vsel %vm1266_vm3, %v1253_v11, %v1254_v29  ;;  %v1279_v46 = vsel %vm1266_vm3, %v1252_v36, %v1253_v11  ;;  %v8117_v11 = vld [vmem:[#allocation5 + $0x208] sm:$0xff]  }
  0xec   : > { %1461 = vst [vmem:[#allocation4 + $0x1c] sm:$0xf] %v1445_v37  ;;  %v1285_v16 = vpack.c.bf16 %v1279_v46, %v1279_v46  ;;  %v1286_v54 = vpack.c.bf16 %v1278_v15, %v1278_v15  ;;  %v8096_v37 = vld [vmem:[#allocation5 + $0x148] sm:$0xff]   ;;  %v1431_v46 = vmul.f32 %v7708_v55, %v9105_v48 }
  0xed   : > { %1542 = vst [vmem:[#allocation4 + $0x20] sm:$0xf] %v1526_v14  ;;  %v7644_v17 = vunpack.c.l.bf16 %v8096_v37  ;;  %v7645_v1 = vunpack.c.h.bf16 %v8096_v37  ;;  %v7676_v14 = vunpack.c.l.bf16 %v8103_v47  ;;  %v6071_v47 = vld [vmem:[#allocation4 + $0x21c] sm:$0xf0]  ;;  %v6085_v55 = vld [vmem:[#allocation4 + $0x208] sm:$0xf] }
  0xee   : > { %1543 = vst [vmem:[#allocation4 + $0x44] sm:$0xf] %v1527_v58  ;;  %v1318_v58 = vunpack.c.l.bf16 %v1285_v16  ;;  %v1319_v53 = vunpack.c.l.bf16 %v1286_v54 }
  0xef   : > { %v9490_v5 = vpop.f32.mrf.mxu1  ;;  %v1204_v33 = vmul.f32 %v7644_v17, %v9050_v9  ;;  %v1205_v36 = vmul.f32 %v7645_v1, %v9159_v35  ;;  %v1432_v9 = vmul.f32 %v7709_v20, %v9196_v60  ;;  %v7285_v35 = vld [vmem:[#allocation4 + $0x1fc] sm:$0xf]  ;;  %v1447_v17 = vpack.c.bf16 %v1431_v46, %v1431_v46  ;;  %v8362_v46 = vld [vmem:[#allocation2 + $0x68] sm:$0xff] }
  0xf0   : > { %v1351_v56 = vmul.f32 %v7677_v13, %v1319_v53  ;;  %v7740_v1 = vunpack.c.l.bf16 %v8117_v11  ;;  %v7290_v13 = vld [vmem:[#allocation4 + $0x220] sm:$0xf0] }
  0xf1   : > { %v9492_v12 = vpop.f32.mrf.mxu0  ;;  %v1221_v15 = vpack.c.bf16 %v1205_v36, %v1205_v36  ;;  %v7286_v53 = vld [vmem:[#allocation4 + $0x204] sm:$0xf]  ;;  %1463 = vst [vmem:[#allocation4 + $0x64] sm:$0xf] %v1447_v17 }
  0xf2   : > { %v1367_v37 = vpack.c.bf16 %v1351_v56, %v1351_v56  ;;  %v1512_v48 = vmul.f32 %v7740_v1, %v8786_v38 }
  0xf3   : > { %1237 = vst [vmem:[#allocation4 + $0x80] sm:$0xf] %v1221_v15  ;;  %v6078_v15 = vor.u32 %v7290_v13, %v6077_v44  ;;  %v8097_v13 = vld [vmem:[#allocation5 + $0x150] sm:$0xff]  }
  0xf4   : > { %1383 = vst [vmem:[#allocation4 + $0x84] sm:$0xf] %v1367_v37  ;;  %v1528_v20 = vpack.c.bf16 %v1512_v48, %v1512_v48 }
  0xf5   : > { %2526 = vmatmul.bf16.gmra.mxu1 %v6038_v21  ;;  %v9502_v40 = vpop.f32.mrf.mxu2 }
  0xf6   : > { %2575 = vmatmul.bf16.gmra.mxu2 %v6042_v2  ;;  %v1350_v2 = vmul.f32 %v7676_v14, %v1318_v58  ;;  %v7741_v14 = vunpack.c.h.bf16 %v8117_v11  ;;  %v1448_v58 = vpack.c.bf16 %v1432_v9, %v1432_v9  ;;  %v1255_v9 = vrot.slane %v8362_v46, 6  ;;  %1544 = vst [vmem:[#allocation4 + $0x68] sm:$0xf] %v1528_v20 }
  0xf7   : > { %2624 = vmatmul.bf16.gmra.mxu3 %v6046_v31  ;;  %2673 = vmatmul.bf16.gmra.mxu0 %v6050_v32  ;;  %v9506_v21 = vpop.f32.mrf.mxu3  ;;  %v9508_v31 = vpop.f32.mrf.mxu1  ;;  %v1220_v32 = vpack.c.bf16 %v1204_v33, %v1204_v33  ;;  %v6079_v33 = vld [vmem:[#allocation4 + $0x224] sm:$0xf0] }
  0xf8   : > { %10894 = vst [vmem:[#allocation26_spill] sm:$0xff] %v9506_v21  ;;  %v1366_v54 = vpack.c.bf16 %v1350_v2, %v1350_v2  ;;  %v1513_v36 = vmul.f32 %v7741_v14, %v8789_v45  ;;  %v7291_v2 = vld [vmem:[#allocation4 + $0x228] sm:$0xf0]  ;;  %v6082_v1 = vor.u32 %v7286_v53, %v6079_v33  ;;  %v7648_v53 = vunpack.c.l.bf16 %v8097_v13 }
  0xf9   : > { %v9511_v16 = vpop.f32.mrf.mxu0  ;;  %1236 = vst [vmem:[#allocation4 + $0x5c] sm:$0xf] %v1220_v32  ;;  %v6074_v32 = vor.u32 %v7285_v35, %v6071_v47  ;;  %v6086_v37 = vor.u32 %v7291_v2, %v6085_v55  ;;  %v1277_v47 = vsel %vm1266_vm3, %v1254_v29, %v1255_v9  ;;  %v7649_v33 = vunpack.c.h.bf16 %v8097_v13  ;;  %v8111_v55 = vld [vmem:[#allocation5 + $0x1d0] sm:$0xff]  }
  0xfa   : > { %1382 = vst [vmem:[#allocation4 + $0x60] sm:$0xf] %v1366_v54  ;;  %v1529_v56 = vpack.c.bf16 %v1513_v36, %v1513_v36  ;;  %v9520_v54 = vld [vmem:[#allocation2 + $0x8] sm:$0xff]  ;;  %v1287_v17 = vpack.c.bf16 %v1277_v47, %v1277_v47  ;;  %v1206_v29 = vmul.f32 %v7648_v53, %v9161_v19  ;;  %v7224_v19 = vld [vmem:[#allocation4 + $0x14] sm:$0xf] }
  0xfb   : > { %1464 = vst [vmem:[#allocation4 + $0x88] sm:$0xf] %v1448_v58  ;;  %v10792_v38 = vrot.slane %v9520_v54, 6  ;;  %v8104_v58 = vld [vmem:[#allocation5 + $0x190] sm:$0xff]  }
  0xfc   : > { %1545 = vst [vmem:[#allocation4 + $0x8c] sm:$0xf] %v1529_v56  ;;  %v7680_v48 = vunpack.c.l.bf16 %v8104_v58  ;;  %v7681_v36 = vunpack.c.h.bf16 %v8104_v58  ;;  %v1320_v2 = vunpack.c.l.bf16 %v1287_v17  ;;  %v7712_v56 = vunpack.c.l.bf16 %v8111_v55 }
  0xfd   : > { %v9516_v60 = vpop.f32.mrf.mxu2  ;;  %v1276_v35 = vsel %vm1266_vm3, %v1255_v9, %v10792_v38  ;;  %v1222_v13 = vpack.c.bf16 %v1206_v29, %v1206_v29 }
  0xfe   : > { %v1288_v44 = vpack.c.bf16 %v1276_v35, %v1276_v35  ;;  %v7744_v35 = vunpack.c.l.bf16 %v8118_v61 }
  0xff   : > { %v9518_v11 = vpop.f32.mrf.mxu3  ;;  %1238 = vst [vmem:[#allocation4 + $0xa4] sm:$0xf] %v1222_v13 }
 0x100   : > { %10895 = vst [vmem:[#allocation27_spill] sm:$0xff] %v9518_v11  ;;  %v1321_v20 = vunpack.c.l.bf16 %v1288_v44  ;;  %v1433_v44 = vmul.f32 %v7712_v56, %v9207_v3  ;;  %v9547_v11 = vld [vmem:[%s8904_s18] ss:$0 sm:$0xff]  ;;  %v7225_v3 = vld [vmem:[#allocation4 + $0x1c] sm:$0xf] }
 0x101   : > { %v9523_v45 = vpop.f32.mrf.mxu1 }
 0x104   : > { %v9525_v14 = vpop.f32.mrf.mxu0 }
 0x105   : > { %2531 = vmatmul.bf16.gmra.mxu1 %v6074_v32  ;;  %v1207_v32 = vmul.f32 %v7649_v33, %v9235_v22  ;;  %v5835_v22 = vld [vmem:[#allocation4 + $0x34] sm:$0xf0]  ;;  %v1449_v33 = vpack.c.bf16 %v1433_v44, %v1433_v44  ;;  %v9558_v44 = vld [vmem:[#allocation2 + $0x40] sm:$0xff] }
 0x106   : > { %2580 = vmatmul.bf16.gmra.mxu2 %v6078_v15  ;;  %v7713_v15 = vunpack.c.h.bf16 %v8111_v55  ;;  %v5843_v55 = vld [vmem:[#allocation4 + $0x3c] sm:$0xf0] }
 0x107   : > { %2629 = vmatmul.bf16.gmra.mxu3 %v6082_v1  ;;  %2678 = vmatmul.bf16.gmra.mxu0 %v6086_v37  ;;  %v9535_v46 = vpop.f32.mrf.mxu2  ;;  %v1352_v1 = vmul.f32 %v7680_v48, %v1320_v2  ;;  %v1353_v37 = vmul.f32 %v7681_v36, %v1321_v20  ;;  %v1223_v17 = vpack.c.bf16 %v1207_v32, %v1207_v32  ;;  %v7745_v48 = vunpack.c.h.bf16 %v8118_v61  ;;  %v5841_v36 = vld [vmem:[#allocation4 + $0x18] sm:$0xf]  ;;  %v7229_v20 = vld [vmem:[#allocation4 + $0x38] sm:$0xf0]  ;;  %v5849_v32 = vld [vmem:[#allocation4 + $0x20] sm:$0xf] }
 0x108   : > { %v1434_v53 = vmul.f32 %v7713_v15, %v9263_v34  ;;  %v1514_v2 = vmul.f32 %v7744_v35, %v8831_v25  ;;  %v2449_v34 = vadd.f32 %v9547_v11, %v9492_v12  ;;  %1465 = vst [vmem:[#allocation4 + $0xac] sm:$0xf] %v1449_v33  ;;  %v5838_v25 = vor.u32 %v7224_v19, %v5835_v22 }
 0x109   : > { %v9539_v9 = vpop.f32.mrf.mxu3  ;;  %v9541_v47 = vpop.f32.mrf.mxu1  ;;  %v1368_v4 = vpack.c.bf16 %v1352_v1, %v1352_v1  ;;  %v1369_v38 = vpack.c.bf16 %v1353_v37, %v1353_v37  ;;  %1239 = vst [vmem:[#allocation4 + $0xc8] sm:$0xf] %v1223_v17  ;;  %v1515_v29 = vmul.f32 %v7745_v48, %v8833_v28  ;;  %v7230_v1 = vld [vmem:[#allocation4 + $0x40] sm:$0xf0]  ;;  %v5842_v35 = vor.u32 %v7229_v20, %v5841_v36 }
 0x10a   : > { %10896 = vst [vmem:[#allocation28_spill] sm:$0xff] %v9539_v9  ;;  %v1450_v56 = vpack.c.bf16 %v1434_v53, %v1434_v53  ;;  %v1530_v37 = vpack.c.bf16 %v1514_v2, %v1514_v2  ;;  %v10793_v28 = vrot.slane %v9558_v44, 6  ;;  %v5846_v53 = vor.u32 %v7225_v3, %v5843_v55  ;;  %v8098_v55 = vld [vmem:[#allocation5 + $0x158] sm:$0xff]  }
 0x10b   : > { %1384 = vst [vmem:[#allocation4 + $0xa8] sm:$0xf] %v1368_v4  ;;  %v1531_v61 = vpack.c.bf16 %v1515_v29, %v1515_v29  ;;  %v8364_v4 = vld [vmem:[#allocation2 + $0x48] sm:$0xff]  ;;  %v5850_v48 = vor.u32 %v7230_v1, %v5849_v32  ;;  %v10899_v22 = vrot.slane %v9520_v54, 6  ;;  %v8105_v3 = vld [vmem:[#allocation5 + $0x198] sm:$0xff]   ;;  %v7653_v29 = vunpack.c.h.bf16 %v8098_v55 }
 0x10c   : > { %v9544_v58 = vpop.f32.mrf.mxu0  ;;  %1385 = vst [vmem:[#allocation4 + $0xcc] sm:$0xf] %v1369_v38  ;;  %v1257_v17 = vrot.slane %v8364_v4, 6  ;;  %v7684_v32 = vunpack.c.l.bf16 %v8105_v3  ;;  %v7685_v1 = vunpack.c.h.bf16 %v8105_v3  ;;  %v8119_v54 = vld [vmem:[#allocation5 + $0x218] sm:$0xff]  }
 0x10d   : > { %1466 = vst [vmem:[#allocation4 + $0xd0] sm:$0xf] %v1450_v56  ;;  %v7652_v56 = vunpack.c.l.bf16 %v8098_v55  ;;  %v7748_v55 = vunpack.c.l.bf16 %v8119_v54 }
 0x10e   : > { %1546 = vst [vmem:[#allocation4 + $0xb0] sm:$0xf] %v1530_v37  ;;  %v1274_v19 = vsel %vm1266_vm3, %v1257_v17, %v10793_v28  ;;  %v1275_v33 = vsel %vm1266_vm3, %v10899_v22, %v1257_v17  ;;  %v8112_v37 = vld [vmem:[#allocation5 + $0x1d8] sm:$0xff]   ;;  %v2451_v17 = vadd.f32 %v9547_v11, %v9511_v16 }
 0x10f   : > { %v9554_v15 = vpop.f32.mrf.mxu2  ;;  %1547 = vst [vmem:[#allocation4 + $0xd4] sm:$0xf] %v1531_v61  ;;  %v1289_v36 = vpack.c.bf16 %v1275_v33, %v1275_v33  ;;  %v1290_v20 = vpack.c.bf16 %v1274_v19, %v1274_v19  ;;  %v7716_v4 = vunpack.c.l.bf16 %v8112_v37  ;;  %v7717_v19 = vunpack.c.h.bf16 %v8112_v37 }
 0x110   : > { %10897 = vst [vmem:[#allocation29_spill] sm:$0xff] %v9554_v15 }
 0x111   : > { %v9556_v13 = vpop.f32.mrf.mxu3  ;;  %v1323_v61 = vunpack.c.l.bf16 %v1290_v20  ;;  %v1435_v20 = vmul.f32 %v7716_v4, %v9267_v6  ;;  %v7234_v6 = vld [vmem:[#allocation4 + $0x64] sm:$0xf] }
 0x112   : > { %10898 = vst [vmem:[#allocation30_spill] sm:$0xff] %v9556_v13  ;;  %v2497_v38 = vpop.f32.mrf.mxu1  ;;  %v1436_v13 = vmul.f32 %v7717_v19, %v9320_v18  ;;  %v5879_v18 = vld [vmem:[#allocation4 + $0x84] sm:$0xf0] }
 0x113   : > { %v2498_v12 = vadd.f32 %v2497_v38, %v2449_v34  ;;  %v1322_v34 = vunpack.c.l.bf16 %v1289_v36  ;;  %v1355_v33 = vmul.f32 %v7685_v1, %v1323_v61  ;;  %v7238_v1 = vld [vmem:[#allocation4 + $0x80] sm:$0xf0] }
 0x114   : > { %v2644_v2 = vpop.f32.mrf.mxu0  ;;  %v1452_v37 = vpack.c.bf16 %v1436_v13, %v1436_v13 }
 0x115   : > { %2692 = vmatmul.bf16.vlgmr.msra.gmra.mxu1 %v5838_v25  ;;  %v1208_v25 = vmul.f32 %v7652_v56, %v9246_v50  ;;  %v1354_v22 = vmul.f32 %v7684_v32, %v1322_v34  ;;  %v7233_v50 = vld [vmem:[#allocation4 + $0x5c] sm:$0xf]  ;;  %v5871_v56 = vld [vmem:[#allocation4 + $0x7c] sm:$0xf0]  ;;  %v10900_v34 = vld [vmem:[#allocation17_spill] sm:$0xff] }
 0x116   : > { %2741 = vmatmul.bf16.vlgmr.msra.gmra.mxu2 %v5842_v35  ;;  %v1209_v35 = vmul.f32 %v7653_v29, %v9298_v41  ;;  %v1371_v41 = vpack.c.bf16 %v1355_v33, %v1355_v33  ;;  %v7749_v29 = vunpack.c.h.bf16 %v8119_v54  ;;  %v5877_v32 = vld [vmem:[#allocation4 + $0x60] sm:$0xf]  ;;  %v1516_v61 = vmul.f32 %v7748_v55, %v10900_v34  ;;  %1468 = vst [vmem:[#allocation4 + $0x118] sm:$0xf] %v1452_v37 }
 0x117   : > { %2790 = vmatmul.bf16.vlgmr.msra.gmra.mxu3 %v5846_v53  ;;  %2839 = vmatmul.bf16.vlgmr.msra.gmra.mxu0 %v5850_v48  ;;  %v1224_v28 = vpack.c.bf16 %v1208_v25, %v1208_v25  ;;  %v1370_v15 = vpack.c.bf16 %v1354_v22, %v1354_v22  ;;  %v7239_v25 = vld [vmem:[#allocation4 + $0x88] sm:$0xf0]  ;;  %v2454_v54 = vadd.f32 %v9547_v11, %v9525_v14 }
 0x118   : > { %v1225_v36 = vpack.c.bf16 %v1209_v35, %v1209_v35  ;;  %v1517_v4 = vmul.f32 %v7749_v29, %v8796_v51  ;;  %1387 = vst [vmem:[#allocation4 + $0x114] sm:$0xf] %v1371_v41  ;;  %v5874_v19 = vor.u32 %v7233_v50, %v5871_v56  ;;  %v5882_v55 = vor.u32 %v7234_v6, %v5879_v18  ;;  %v8099_v29 = vld [vmem:[#allocation5 + $0x160] sm:$0xff]  }
 0x119   : > { %v2546_v38 = vpop.f32.mrf.mxu2  ;;  %1240 = vst [vmem:[#allocation4 + $0xec] sm:$0xf] %v1224_v28  ;;  %v1532_v28 = vpack.c.bf16 %v1516_v61, %v1516_v61  ;;  %v10901_v50 = vrot.slane %v9558_v44, 6  ;;  %v7656_v37 = vunpack.c.l.bf16 %v8099_v29  ;;  %v7657_v34 = vunpack.c.h.bf16 %v8099_v29  ;;  %v8113_v18 = vld [vmem:[#allocation5 + $0x1e0] sm:$0xff]   ;;  %v5907_v29 = vld [vmem:[#allocation4 + $0xc4] sm:$0xf0] }
 0x11a   : > { %v2547_v53 = vadd.f32 %v2546_v38, %v2498_v12  ;;  %v2595_v48 = vpop.f32.mrf.mxu3  ;;  %v2499_v3 = vpop.f32.mrf.mxu1  ;;  %v1451_v12 = vpack.c.bf16 %v1435_v20, %v1435_v20  ;;  %1241 = vst [vmem:[#allocation4 + $0x110] sm:$0xf] %v1225_v36  ;;  %v1533_v13 = vpack.c.bf16 %v1517_v4, %v1517_v4 }
 0x11b   : > { %v2500_v16 = vadd.f32 %v2499_v3, %v2451_v17  ;;  %1386 = vst [vmem:[#allocation4 + $0xf0] sm:$0xf] %v1370_v15  ;;  %v5885_v17 = vld [vmem:[#allocation4 + $0x68] sm:$0xf]  ;;  %v9581_v15 = vld [vmem:[#allocation2 + $0x10] sm:$0xff] }
 0x11c   : > { %v2596_v9 = vadd.f32 %v2595_v48, %v2547_v53  ;;  %v2646_v21 = vpop.f32.mrf.mxu0  ;;  %1467 = vst [vmem:[#allocation4 + $0xf4] sm:$0xf] %v1451_v12  ;;  %v1260_v51 = vrot.slane %v9581_v15, 6  ;;  %v5886_v3 = vor.u32 %v7239_v25, %v5885_v17  ;;  %v7720_v17 = vunpack.c.l.bf16 %v8113_v18  ;;  %v8120_v25 = vld [vmem:[#allocation5 + $0x220] sm:$0xff]  }
 0x11d   : > { %1548 = vst [vmem:[#allocation4 + $0xf8] sm:$0xf] %v1532_v28  ;;  %v2456_v28 = vadd.f32 %v9547_v11, %v9544_v58 }
 0x11e   : > { %v9576_v38 = vadd.f32 %v2644_v2, %v2596_v9  ;;  %v5878_v9 = vor.u32 %v7238_v1, %v5877_v32  ;;  %v8366_v2 = vld [vmem:[#allocation2 + $0x20] sm:$0xff]  ;;  %1549 = vst [vmem:[#allocation4 + $0x11c] sm:$0xf] %v1533_v13  ;;  %v7721_v13 = vunpack.c.h.bf16 %v8113_v18 }
 0x11f   : > { %v1259_v22 = vrot.slane %v8366_v2, 6  ;;  %v8106_v32 = vld [vmem:[#allocation5 + $0x1a0] sm:$0xff]  }
 0x120   : > { %v7688_v61 = vunpack.c.l.bf16 %v8106_v32  ;;  %v7689_v6 = vunpack.c.h.bf16 %v8106_v32  ;;  %v7753_v32 = vunpack.c.h.bf16 %v8120_v25 }
 0x121   : > { %v2548_v35 = vpop.f32.mrf.mxu2  ;;  %v1273_v56 = vsel %vm1266_vm3, %v10901_v50, %v1259_v22 }
 0x122   : > { %v2549_v53 = vadd.f32 %v2548_v35, %v2500_v16  ;;  %v2597_v48 = vpop.f32.mrf.mxu3  ;;  %v2502_v33 = vpop.f32.mrf.mxu1  ;;  %v1272_v16 = vsel %vm1266_vm3, %v1259_v22, %v1260_v51  ;;  %v1291_v41 = vpack.c.bf16 %v1273_v56, %v1273_v56  ;;  %v10902_v35 = vld [vmem:[#allocation23_spill] sm:$0xff]  ;;  %v7752_v22 = vunpack.c.l.bf16 %v8120_v25 }
 0x123   : > { %v2503_v14 = vadd.f32 %v2502_v33, %v2454_v54  ;;  %v1292_v12 = vpack.c.bf16 %v1272_v16, %v1272_v16  ;;  %v1438_v16 = vmul.f32 %v7721_v13, %v9368_v39  ;;  %v5915_v39 = vld [vmem:[#allocation4 + $0xcc] sm:$0xf0]  ;;  %v2459_v25 = vadd.f32 %v9547_v11, %v9490_v5 }
 0x124   : > { %v2598_v36 = vadd.f32 %v2597_v48, %v2549_v53  ;;  %v2649_v20 = vpop.f32.mrf.mxu0  ;;  %v1324_v4 = vunpack.c.l.bf16 %v1291_v41 }
 0x125   : > { %2697 = vmatmul.bf16.gmra.mxu1 %v5874_v19  ;;  %v1325_v44 = vunpack.c.l.bf16 %v1292_v12  ;;  %v1210_v19 = vmul.f32 %v7656_v37, %v10902_v35  ;;  %v7242_v12 = vld [vmem:[#allocation4 + $0xa4] sm:$0xf]  ;;  %v5913_v37 = vld [vmem:[#allocation4 + $0xa8] sm:$0xf] }
 0x126   : > { %2746 = vmatmul.bf16.gmra.mxu2 %v5878_v9  ;;  %v9592_v1 = vadd.f32 %v2646_v21, %v2598_v36  ;;  %v1211_v21 = vmul.f32 %v7657_v34, %v9352_v52  ;;  %v1356_v9 = vmul.f32 %v7688_v61, %v1324_v4  ;;  %v1437_v36 = vmul.f32 %v7720_v17, %v9322_v24  ;;  %v7247_v34 = vld [vmem:[#allocation4 + $0xc8] sm:$0xf0]  ;;  %v5921_v17 = vld [vmem:[#allocation4 + $0xb0] sm:$0xf] }
 0x127   : > { %2795 = vmatmul.bf16.gmra.mxu3 %v5882_v55  ;;  %2844 = vmatmul.bf16.gmra.mxu0 %v5886_v3  ;;  %v1357_v2 = vmul.f32 %v7689_v6, %v1325_v44  ;;  %v1226_v55 = vpack.c.bf16 %v1210_v19, %v1210_v19  ;;  %v1454_v61 = vpack.c.bf16 %v1438_v16, %v1438_v16  ;;  %v10903_v6 = vld [vmem:[#allocation20_spill] sm:$0xff]  ;;  %v7243_v24 = vld [vmem:[#allocation4 + $0xac] sm:$0xf] }
 0x128   : > { %v1227_v3 = vpack.c.bf16 %v1211_v21, %v1211_v21  ;;  %v1372_v41 = vpack.c.bf16 %v1356_v9, %v1356_v9  ;;  %v1518_v18 = vmul.f32 %v7752_v22, %v10903_v6  ;;  %v1519_v44 = vmul.f32 %v7753_v32, %v8841_v43 }
 0x129   : > { %v2551_v54 = vpop.f32.mrf.mxu2  ;;  %1242 = vst [vmem:[#allocation4 + $0x134] sm:$0xf] %v1226_v55  ;;  %v1373_v52 = vpack.c.bf16 %v1357_v2, %v1357_v2  ;;  %v5910_v19 = vor.u32 %v7242_v12, %v5907_v29  ;;  %v9606_v2 = vld [vmem:[#allocation2 + $0x60] sm:$0xff]  ;;  %v8100_v12 = vld [vmem:[#allocation5 + $0x168] sm:$0xff]  }
 0x12a   : > { %v2552_v53 = vadd.f32 %v2551_v54, %v2503_v14  ;;  %v2600_v48 = vpop.f32.mrf.mxu3  ;;  %v2504_v33 = vpop.f32.mrf.mxu1  ;;  %v1453_v14 = vpack.c.bf16 %v1437_v36, %v1437_v36  ;;  %1243 = vst [vmem:[#allocation4 + $0x158] sm:$0xf] %v1227_v3  ;;  %v1534_v54 = vpack.c.bf16 %v1518_v18, %v1518_v18  ;;  %v1535_v21 = vpack.c.bf16 %v1519_v44, %v1519_v44  ;;  %v8107_v29 = vld [vmem:[#allocation5 + $0x1a8] sm:$0xff]  }
 0x12b   : > { %v2505_v58 = vadd.f32 %v2504_v33, %v2456_v28  ;;  %1388 = vst [vmem:[#allocation4 + $0x138] sm:$0xf] %v1372_v41  ;;  %v7248_v28 = vld [vmem:[#allocation4 + $0xd0] sm:$0xf0]  ;;  %v1262_v43 = vrot.slane %v9606_v2, 6  ;;  %v5918_v33 = vor.u32 %v7243_v24, %v5915_v39  ;;  %v7661_v32 = vunpack.c.h.bf16 %v8100_v12  ;;  %v8121_v24 = vld [vmem:[#allocation5 + $0x228] sm:$0xff]  }
 0x12c   : > { %v2601_v50 = vadd.f32 %v2600_v48, %v2552_v53  ;;  %v2651_v56 = vpop.f32.mrf.mxu0  ;;  %1389 = vst [vmem:[#allocation4 + $0x15c] sm:$0xf] %v1373_v52  ;;  %v8368_v48 = vld [vmem:[#allocation2 + $0x38] sm:$0xff]  ;;  %v5922_v55 = vor.u32 %v7248_v28, %v5921_v17  ;;  %v10904_v44 = vld [vmem:[#allocation24_spill] sm:$0xff] }
 0x12d   : > { %1469 = vst [vmem:[#allocation4 + $0x13c] sm:$0xf] %v1453_v14  ;;  %v1261_v9 = vrot.slane %v8368_v48, 6  ;;  %v7660_v14 = vunpack.c.l.bf16 %v8100_v12 }
 0x12e   : > { %v9601_v4 = vadd.f32 %v2649_v20, %v2601_v50  ;;  %v5914_v20 = vor.u32 %v7247_v34, %v5913_v37  ;;  %1470 = vst [vmem:[#allocation4 + $0x160] sm:$0xf] %v1454_v61  ;;  %v7692_v37 = vunpack.c.l.bf16 %v8107_v29  ;;  %v7693_v34 = vunpack.c.h.bf16 %v8107_v29  ;;  %v8114_v61 = vld [vmem:[#allocation5 + $0x1e8] sm:$0xff]   ;;  %v10905_v29 = vld [vmem:[#allocation18_spill] sm:$0xff] }
 0x12f   : > { %1550 = vst [vmem:[#allocation4 + $0x140] sm:$0xf] %v1534_v54  ;;  %v1270_v16 = vsel %vm1266_vm3, %v1261_v9, %v1262_v43  ;;  %v1271_v50 = vsel %vm1266_vm3, %v1260_v51, %v1261_v9  ;;  %v7724_v18 = vunpack.c.l.bf16 %v8114_v61  ;;  %v2461_v51 = vadd.f32 %v9547_v11, %v9508_v31 }
 0x130   : > { %1551 = vst [vmem:[#allocation4 + $0x164] sm:$0xf] %v1535_v21  ;;  %v1294_v41 = vpack.c.bf16 %v1270_v16, %v1270_v16  ;;  %v1212_v17 = vmul.f32 %v7660_v14, %v10904_v44  ;;  %v7725_v28 = vunpack.c.h.bf16 %v8114_v61  ;;  %v7756_v21 = vunpack.c.l.bf16 %v8121_v24  ;;  %v5943_v16 = vld [vmem:[#allocation4 + $0x10c] sm:$0xf0]  ;;  %v7257_v61 = vld [vmem:[#allocation4 + $0x118] sm:$0xf0] }
 0x131   : > { %v2553_v35 = vpop.f32.mrf.mxu2  ;;  %v1439_v48 = vmul.f32 %v7724_v18, %v9370_v42  ;;  %v7252_v42 = vld [vmem:[#allocation4 + $0xf4] sm:$0xf] }
 0x132   : > { %v2554_v13 = vadd.f32 %v2553_v35, %v2505_v58  ;;  %v2602_v53 = vpop.f32.mrf.mxu3  ;;  %v2507_v22 = vpop.f32.mrf.mxu1  ;;  %v1293_v58 = vpack.c.bf16 %v1271_v50, %v1271_v50  ;;  %v1327_v15 = vunpack.c.l.bf16 %v1294_v41  ;;  %v1440_v9 = vmul.f32 %v7725_v28, %v9414_v62  ;;  %v7256_v41 = vld [vmem:[#allocation4 + $0x110] sm:$0xf0]  ;;  %v5951_v62 = vld [vmem:[#allocation4 + $0x114] sm:$0xf0] }
 0x133   : > { %v2508_v5 = vadd.f32 %v2507_v22, %v2459_v25  ;;  %v7757_v50 = vunpack.c.h.bf16 %v8121_v24  ;;  %v1520_v14 = vmul.f32 %v7756_v21, %v10905_v29  ;;  %v9631_v28 = vld [vmem:[#allocation2 + $0x78] sm:$0xff]  ;;  %v10906_v29 = vld [vmem:[#allocation25_spill] sm:$0xff] }
 0x134   : > { %v2603_v3 = vadd.f32 %v2602_v53, %v2554_v13  ;;  %v2654_v36 = vpop.f32.mrf.mxu0  ;;  %v1326_v6 = vunpack.c.l.bf16 %v1293_v58  ;;  %v1228_v53 = vpack.c.bf16 %v1212_v17, %v1212_v17  ;;  %v5949_v58 = vld [vmem:[#allocation4 + $0xf0] sm:$0xf]  ;;  %v1456_v12 = vpack.c.bf16 %v1440_v9, %v1440_v9 }
 0x135   : > { %2702 = vmatmul.bf16.gmra.mxu1 %v5910_v19  ;;  %v1359_v19 = vmul.f32 %v7693_v34, %v1327_v15  ;;  %v5957_v34 = vld [vmem:[#allocation4 + $0xf8] sm:$0xf]  ;;  %v2464_v15 = vadd.f32 %v9547_v11, %v9523_v45  ;;  %v8370_v17 = vld [vmem:[#allocation2 + $0x70] sm:$0xff] }
 0x136   : > { %2751 = vmatmul.bf16.gmra.mxu2 %v5914_v20  ;;  %v9617_v52 = vadd.f32 %v2651_v56, %v2603_v3  ;;  %v1213_v56 = vmul.f32 %v7661_v32, %v9398_v26  ;;  %v1358_v35 = vmul.f32 %v7692_v37, %v1326_v6  ;;  %v7251_v3 = vld [vmem:[#allocation4 + $0xec] sm:$0xf]  ;;  %1244 = vst [vmem:[#allocation4 + $0x17c] sm:$0xf] %v1228_v53  ;;  %v8101_v9 = vld [vmem:[#allocation5 + $0x170] sm:$0xff]  }
 0x137   : > { %2800 = vmatmul.bf16.gmra.mxu3 %v5918_v33  ;;  %2849 = vmatmul.bf16.gmra.mxu0 %v5922_v55  ;;  %v1375_v26 = vpack.c.bf16 %v1359_v19, %v1359_v19  ;;  %v1521_v37 = vmul.f32 %v7757_v50, %v8804_v59  ;;  %v1536_v6 = vpack.c.bf16 %v1520_v14, %v1520_v14  ;;  %v1264_v59 = vrot.slane %v9631_v28, 6 }
 0x138   : > { %v1229_v20 = vpack.c.bf16 %v1213_v56, %v1213_v56  ;;  %v1374_v55 = vpack.c.bf16 %v1358_v35, %v1358_v35  ;;  %v5946_v24 = vor.u32 %v7251_v3, %v5943_v16  ;;  %1472 = vst [vmem:[#allocation4 + $0x1a8] sm:$0xf] %v1456_v12  ;;  %v1263_v56 = vrot.slane %v8370_v17, 6 }
 0x139   : > { %v2556_v39 = vpop.f32.mrf.mxu2  ;;  %1391 = vst [vmem:[#allocation4 + $0x1a4] sm:$0xf] %v1375_v26  ;;  %v5958_v35 = vor.u32 %v7257_v61, %v5957_v34  ;;  %v7665_v3 = vunpack.c.h.bf16 %v8101_v9 }
 0x13a   : > { %v2557_v54 = vadd.f32 %v2556_v39, %v2508_v5  ;;  %v2605_v25 = vpop.f32.mrf.mxu3  ;;  %v2509_v13 = vpop.f32.mrf.mxu1  ;;  %v1455_v5 = vpack.c.bf16 %v1439_v48, %v1439_v48  ;;  %1245 = vst [vmem:[#allocation4 + $0x1a0] sm:$0xf] %v1229_v20  ;;  %v1269_v53 = vsel %vm1266_vm3, %v1262_v43, %v1263_v56  ;;  %v2466_v43 = vadd.f32 %v9547_v11, %v9541_v47 }
 0x13b   : > { %v2510_v31 = vadd.f32 %v2509_v13, %v2461_v51  ;;  %1390 = vst [vmem:[#allocation4 + $0x180] sm:$0xf] %v1374_v55  ;;  %v1537_v51 = vpack.c.bf16 %v1521_v37, %v1521_v37  ;;  %v1268_v13 = vsel %vm1266_vm3, %v1263_v56, %v1264_v59  ;;  %v1295_v20 = vpack.c.bf16 %v1269_v53, %v1269_v53  ;;  %v7260_v56 = vld [vmem:[#allocation4 + $0x134] sm:$0xf] }
 0x13c   : > { %v2606_v22 = vadd.f32 %v2605_v25, %v2557_v54  ;;  %v2656_v33 = vpop.f32.mrf.mxu0  ;;  %1471 = vst [vmem:[#allocation4 + $0x184] sm:$0xf] %v1455_v5  ;;  %v5954_v25 = vor.u32 %v7252_v42, %v5951_v62  ;;  %v1296_v48 = vpack.c.bf16 %v1268_v13, %v1268_v13  ;;  %v7664_v55 = vunpack.c.l.bf16 %v8101_v9  ;;  %v8115_v5 = vld [vmem:[#allocation5 + $0x1f0] sm:$0xff]   ;;  %v5993_v9 = vld [vmem:[#allocation4 + $0x140] sm:$0xf] }
 0x13d   : > { %1552 = vst [vmem:[#allocation4 + $0x188] sm:$0xf] %v1536_v6  ;;  %v1328_v50 = vunpack.c.l.bf16 %v1295_v20  ;;  %v7729_v42 = vunpack.c.h.bf16 %v8115_v5 }
 0x13e   : > { %v9626_v32 = vadd.f32 %v2654_v36, %v2606_v22  ;;  %v5950_v36 = vor.u32 %v7256_v41, %v5949_v58  ;;  %1553 = vst [vmem:[#allocation4 + $0x1ac] sm:$0xf] %v1537_v51  ;;  %v8108_v22 = vld [vmem:[#allocation5 + $0x1b0] sm:$0xff]   ;;  %v1329_v2 = vunpack.c.l.bf16 %v1296_v48  ;;  %v7728_v58 = vunpack.c.l.bf16 %v8115_v5 }
 0x13f   : > { %v7696_v16 = vunpack.c.l.bf16 %v8108_v22  ;;  %v7697_v26 = vunpack.c.h.bf16 %v8108_v22  ;;  %v8122_v41 = vld [vmem:[#allocation5 + $0x230] sm:$0xff]   ;;  %v1214_v14 = vmul.f32 %v7664_v55, %v10906_v29  ;;  %v7266_v22 = vld [vmem:[#allocation4 + $0x160] sm:$0xf0] }
 0x140   : > { %v7760_v6 = vunpack.c.l.bf16 %v8122_v41  ;;  %v1441_v51 = vmul.f32 %v7728_v58, %v9416_v7  ;;  %v7261_v7 = vld [vmem:[#allocation4 + $0x13c] sm:$0xf] }
 0x141   : > { %v2558_v18 = vpop.f32.mrf.mxu2  ;;  %v1360_v34 = vmul.f32 %v7696_v16, %v1328_v50  ;;  %v1361_v61 = vmul.f32 %v7697_v26, %v1329_v2  ;;  %v8372_v2 = vld [vmem:[#allocation2 + $0x28] sm:$0xff] }
 0x142   : > { %v2559_v39 = vadd.f32 %v2558_v18, %v2510_v31  ;;  %v2607_v44 = vpop.f32.mrf.mxu3  ;;  %v2512_v54 = vpop.f32.mrf.mxu1  ;;  %v1230_v18 = vpack.c.bf16 %v1214_v14, %v1214_v14  ;;  %v1522_v53 = vmul.f32 %v7760_v6, %v8850_v63  ;;  %v1265_v58 = vrot.slane %v8372_v2, 6  ;;  %v7274_v2 = vld [vmem:[#allocation4 + $0x1a0] sm:$0xf0] }
 0x143   : > { %v2513_v45 = vadd.f32 %v2512_v54, %v2464_v15  ;;  %v1376_v17 = vpack.c.bf16 %v1360_v34, %v1360_v34  ;;  %v5979_v54 = vld [vmem:[#allocation4 + $0x154] sm:$0xf0] }
 0x144   : > { %v2608_v19 = vadd.f32 %v2607_v44, %v2559_v39  ;;  %v2659_v21 = vpop.f32.mrf.mxu0  ;;  %v1442_v39 = vmul.f32 %v7729_v42, %v9455_v49  ;;  %1246 = vst [vmem:[#allocation4 + $0x1c4] sm:$0xf] %v1230_v18  ;;  %v5987_v49 = vld [vmem:[#allocation4 + $0x15c] sm:$0xf0]  ;;  %v1538_v55 = vpack.c.bf16 %v1522_v53, %v1522_v53  ;;  %v5982_v63 = vor.u32 %v7260_v56, %v5979_v54  ;;  %v8102_v34 = vld [vmem:[#allocation5 + $0x178] sm:$0xff]   ;;  %v10908_v54 = vld [vmem:[#allocation21_spill] sm:$0xff] }
 0x145   : > { %2707 = vmatmul.bf16.gmra.mxu1 %v5946_v24  ;;  %1392 = vst [vmem:[#allocation4 + $0x1c8] sm:$0xf] %v1376_v17  ;;  %v7669_v28 = vunpack.c.h.bf16 %v8102_v34 }
 0x146   : > { %2756 = vmatmul.bf16.gmra.mxu2 %v5950_v36  ;;  %v9642_v31 = vadd.f32 %v2656_v33, %v2608_v19  ;;  %v1215_v33 = vmul.f32 %v7665_v3, %v9448_v57  ;;  %v1377_v57 = vpack.c.bf16 %v1361_v61, %v1361_v61  ;;  %v5985_v19 = vld [vmem:[#allocation4 + $0x138] sm:$0xf]  ;;  %v1458_v13 = vpack.c.bf16 %v1442_v39, %v1442_v39 }
 0x147   : > { %2805 = vmatmul.bf16.gmra.mxu3 %v5954_v25  ;;  %2854 = vmatmul.bf16.gmra.mxu0 %v5958_v35  ;;  %v1457_v25 = vpack.c.bf16 %v1441_v51, %v1441_v51  ;;  %v7761_v35 = vunpack.c.h.bf16 %v8122_v41  ;;  %v2469_v3 = vadd.f32 %v9547_v11, %v9502_v40  ;;  %1554 = vst [vmem:[#allocation4 + $0x1d0] sm:$0xf] %v1538_v55  ;;  %v8109_v61 = vld [vmem:[#allocation5 + $0x1b8] sm:$0xff]  }
 0x148   : > { %v1231_v24 = vpack.c.bf16 %v1215_v33, %v1215_v33  ;;  %1393 = vst [vmem:[#allocation4 + $0x1ec] sm:$0xf] %v1377_v57  ;;  %v1267_v40 = vsel %vm1266_vm3, %v1264_v59, %v1265_v58  ;;  %v10907_v33 = vrot.slane %v9464_v23, 6  ;;  %v7700_v18 = vunpack.c.l.bf16 %v8109_v61  ;;  %v8116_v59 = vld [vmem:[#allocation5 + $0x1f8] sm:$0xff]  }
 0x149   : > { %v2561_v12 = vpop.f32.mrf.mxu2  ;;  %v1523_v48 = vmul.f32 %v7761_v35, %v8852_v0  ;;  %1473 = vst [vmem:[#allocation4 + $0x1cc] sm:$0xf] %v1457_v25  ;;  %v5994_v0 = vor.u32 %v7266_v22, %v5993_v9  ;;  %v7732_v39 = vunpack.c.l.bf16 %v8116_v59  ;;  %v7733_v57 = vunpack.c.h.bf16 %v8116_v59  ;;  %v10909_v9 = vld [vmem:[#allocation22_spill] sm:$0xff] }
 0x14a   : > { %v2562_v62 = vadd.f32 %v2561_v12, %v2513_v45  ;;  %v2610_v37 = vpop.f32.mrf.mxu3  ;;  %v2514_v15 = vpop.f32.mrf.mxu1  ;;  %v7265_v45 = vld [vmem:[#allocation4 + $0x158] sm:$0xf0]  ;;  %1247 = vst [vmem:[#allocation4 + $0x1e8] sm:$0xf] %v1231_v24  ;;  %v1282_v42 = vsel %vm1266_vm3, %v1265_v58, %v10907_v33  ;;  %v7701_v24 = vunpack.c.h.bf16 %v8109_v61  ;;  %v7275_v33 = vld [vmem:[#allocation4 + $0x1a8] sm:$0xf0] }
 0x14b   : > { %v2515_v47 = vadd.f32 %v2514_v15, %v2466_v43  ;;  %v1539_v26 = vpack.c.bf16 %v1523_v48, %v1523_v48  ;;  %1474 = vst [vmem:[#allocation4 + $0x1f0] sm:$0xf] %v1458_v13  ;;  %v5990_v43 = vor.u32 %v7261_v7, %v5987_v49  ;;  %v7668_v15 = vunpack.c.l.bf16 %v8102_v34 }
 0x14c   : > { %v2611_v44 = vadd.f32 %v2610_v37, %v2562_v62  ;;  %v2661_v36 = vpop.f32.mrf.mxu0  ;;  %v1297_v62 = vpack.c.bf16 %v1267_v40, %v1267_v40  ;;  %v1298_v37 = vpack.c.bf16 %v1282_v42, %v1282_v42  ;;  %v1443_v48 = vmul.f32 %v7732_v39, %v9457_v30  ;;  %v7270_v30 = vld [vmem:[#allocation4 + $0x184] sm:$0xf]  ;;  %v6029_v40 = vld [vmem:[#allocation4 + $0x188] sm:$0xf] }
 0x14d   : > { %1555 = vst [vmem:[#allocation4 + $0x1f4] sm:$0xf] %v1539_v26  ;;  %v1216_v56 = vmul.f32 %v7668_v15, %v9450_v27  ;;  %v1444_v22 = vmul.f32 %v7733_v57, %v10909_v9  ;;  %v7269_v27 = vld [vmem:[#allocation4 + $0x17c] sm:$0xf]  ;;  %v6015_v26 = vld [vmem:[#allocation4 + $0x19c] sm:$0xf0]  ;;  %v2474_v34 = vadd.f32 %v9547_v11, %v9535_v46 }
 0x14e   : > { %v9651_v20 = vadd.f32 %v2659_v21, %v2611_v44  ;;  %v5986_v21 = vor.u32 %v7265_v45, %v5985_v19  ;;  %v1330_v51 = vunpack.c.l.bf16 %v1297_v62  ;;  %v1331_v23 = vunpack.c.l.bf16 %v1298_v37  ;;  %v8123_v44 = vld [vmem:[#allocation5 + $0x238] sm:$0xff]  }
 0x14f   : > { %v7764_v13 = vunpack.c.l.bf16 %v8123_v44  ;;  %v1232_v7 = vpack.c.bf16 %v1216_v56, %v1216_v56  ;;  %v1460_v58 = vpack.c.bf16 %v1444_v22, %v1444_v22 }
 0x150   : > { %v1362_v19 = vmul.f32 %v7700_v18, %v1330_v51  ;;  %v1363_v45 = vmul.f32 %v7701_v24, %v1331_v23  ;;  %v6030_v24 = vor.u32 %v7275_v33, %v6029_v40 }
 0x151   : > { %v2563_v16 = vpop.f32.mrf.mxu2  ;;  %1248 = vst [vmem:[#allocation4 + $0x20c] sm:$0xf] %v1232_v7  ;;  %v7279_v7 = vld [vmem:[#allocation4 + $0x1cc] sm:$0xf] }
 0x152   : > { %v2564_v5 = vadd.f32 %v2563_v16, %v2515_v47  ;;  %v2612_v50 = vpop.f32.mrf.mxu3  ;;  %v2517_v41 = vpop.f32.mrf.mxu1  ;;  %v2471_v47 = vadd.f32 %v9547_v11, %v9516_v60  ;;  %v1378_v16 = vpack.c.bf16 %v1362_v19, %v1362_v19  ;;  %1476 = vst [vmem:[#allocation4 + $0x238] sm:$0xf] %v1460_v58  ;;  %v6051_v19 = vld [vmem:[#allocation4 + $0x1e4] sm:$0xf0] }
 0x153   : > { %v2518_v29 = vadd.f32 %v2517_v41, %v2469_v3  ;;  %v1524_v41 = vmul.f32 %v7764_v13, %v8818_v10  ;;  %v6018_v10 = vor.u32 %v7269_v27, %v6015_v26  ;;  %v6057_v13 = vld [vmem:[#allocation4 + $0x1c8] sm:$0xf] }
 0x154   : > { %v2613_v12 = vadd.f32 %v2612_v50, %v2564_v5  ;;  %v2664_v14 = vpop.f32.mrf.mxu0  ;;  %v1379_v5 = vpack.c.bf16 %v1363_v45, %v1363_v45  ;;  %v1459_v50 = vpack.c.bf16 %v1443_v48, %v1443_v48  ;;  %1394 = vst [vmem:[#allocation4 + $0x210] sm:$0xf] %v1378_v16  ;;  %v6065_v48 = vld [vmem:[#allocation4 + $0x1d0] sm:$0xf]  ;;  %v7284_v9 = vld [vmem:[#allocation4 + $0x1f0] sm:$0xf0] }
 0x155   : > { %2712 = vmatmul.bf16.gmra.mxu1 %v5982_v63  ;;  %v7765_v63 = vunpack.c.h.bf16 %v8123_v44  ;;  %v1540_v42 = vpack.c.bf16 %v1524_v41, %v1524_v41  ;;  %v10911_v44 = vld [vmem:[#allocation29_spill] sm:$0xff] }
 0x156   : > { %2761 = vmatmul.bf16.gmra.mxu2 %v5986_v21  ;;  %v9664_v6 = vadd.f32 %v2661_v36, %v2613_v12  ;;  %v1217_v36 = vmul.f32 %v7669_v28, %v10908_v54  ;;  %v6021_v21 = vld [vmem:[#allocation4 + $0x180] sm:$0xf]  ;;  %1395 = vst [vmem:[#allocation4 + $0x234] sm:$0xf] %v1379_v5 }
 0x157   : > { %2810 = vmatmul.bf16.gmra.mxu3 %v5990_v43  ;;  %2859 = vmatmul.bf16.gmra.mxu0 %v5994_v0  ;;  %v6023_v0 = vld [vmem:[#allocation4 + $0x1a4] sm:$0xf0]  ;;  %v10910_v12 = vld [vmem:[#allocation19_spill] sm:$0xff]  ;;  %1475 = vst [vmem:[#allocation4 + $0x214] sm:$0xf] %v1459_v50 }
 0x158   : > { %v1233_v49 = vpack.c.bf16 %v1217_v36, %v1217_v36  ;;  %v6026_v18 = vor.u32 %v7270_v30, %v6023_v0  ;;  %1556 = vst [vmem:[#allocation4 + $0x218] sm:$0xf] %v1540_v42  ;;  %v10913_v0 = vld [vmem:[#allocation27_spill] sm:$0xff] }
 0x159   : > { %v2566_v17 = vpop.f32.mrf.mxu2 }
 0x15a   : > { %v2567_v25 = vadd.f32 %v2566_v17, %v2518_v29  ;;  %v2615_v35 = vpop.f32.mrf.mxu3  ;;  %v2519_v53 = vpop.f32.mrf.mxu1  ;;  %1249 = vst [vmem:[#allocation4 + $0x230] sm:$0xf] %v1233_v49  ;;  %v1525_v29 = vmul.f32 %v7765_v63, %v10910_v12  ;;  %v6059_v49 = vld [vmem:[#allocation4 + $0x1ec] sm:$0xf0]  ;;  %v6066_v63 = vor.u32 %v7284_v9, %v6065_v48  ;;  %v2481_v12 = vadd.f32 %v9547_v11, %v10913_v0 }
 0x15b   : > { %v2520_v60 = vadd.f32 %v2519_v53, %v2471_v47  ;;  %v2476_v47 = vadd.f32 %v9547_v11, %v10911_v44  ;;  %v7283_v53 = vld [vmem:[#allocation4 + $0x1e8] sm:$0xf0]  ;;  %v6062_v50 = vor.u32 %v7279_v7, %v6059_v49  ;;  %v10915_v7 = vld [vmem:[#allocation30_spill] sm:$0xff] }
 0x15c   : > { %v2616_v55 = vadd.f32 %v2615_v35, %v2567_v25  ;;  %v2666_v3 = vpop.f32.mrf.mxu0  ;;  %v1541_v37 = vpack.c.bf16 %v1525_v29, %v1525_v29  ;;  %v7278_v35 = vld [vmem:[#allocation4 + $0x1c4] sm:$0xf]  ;;  %v6058_v26 = vor.u32 %v7283_v53, %v6057_v13  ;;  %v2486_v49 = vadd.f32 %v9547_v11, %v10915_v7 }
 0x15d   : > { %v6054_v27 = vor.u32 %v7278_v35, %v6051_v19 }
 0x15e   : > { %v9673_v43 = vadd.f32 %v2664_v14, %v2616_v55  ;;  %v6022_v14 = vor.u32 %v7274_v2, %v6021_v21  ;;  %1557 = vst [vmem:[#allocation4 + $0x23c] sm:$0xf] %v1541_v37  ;;  %v10912_v55 = vld [vmem:[#allocation26_spill] sm:$0xff] }
 0x161   : > { %v2568_v62 = vpop.f32.mrf.mxu2 }
 0x162   : > { %v2569_v61 = vadd.f32 %v2568_v62, %v2520_v60  ;;  %v2617_v15 = vpop.f32.mrf.mxu3  ;;  %v2522_v28 = vpop.f32.mrf.mxu1  ;;  %v2479_v60 = vadd.f32 %v9547_v11, %v10912_v55 }
 0x163   : > { %v2523_v51 = vadd.f32 %v2522_v28, %v2474_v34  ;;  %v7287_v34 = vld [vmem:[#allocation4 + $0x20c] sm:$0xf]  ;;  %v7288_v28 = vld [vmem:[#allocation4 + $0x214] sm:$0xf] }
 0x164   : > { %v2618_v59 = vadd.f32 %v2617_v15, %v2569_v61  ;;  %v2669_v23 = vpop.f32.mrf.mxu0  ;;  %v6087_v61 = vld [vmem:[#allocation4 + $0x22c] sm:$0xf0] }
 0x165   : > { %2717 = vmatmul.bf16.gmra.mxu1 %v6018_v10  ;;  %v6093_v10 = vld [vmem:[#allocation4 + $0x210] sm:$0xf] }
 0x166   : > { %2766 = vmatmul.bf16.gmra.mxu2 %v6022_v14  ;;  %v9678_v39 = vadd.f32 %v2666_v3, %v2618_v59  ;;  %v7292_v14 = vld [vmem:[#allocation4 + $0x230] sm:$0xf0]  ;;  %v7293_v59 = vld [vmem:[#allocation4 + $0x238] sm:$0xf0] }
 0x167   : > { %2815 = vmatmul.bf16.gmra.mxu3 %v6026_v18  ;;  %2864 = vmatmul.bf16.gmra.mxu0 %v6030_v24  ;;  %v6095_v18 = vld [vmem:[#allocation4 + $0x234] sm:$0xf0] }
 0x168   : > { %v6101_v24 = vld [vmem:[#allocation4 + $0x218] sm:$0xf] }
 0x169   : > { %v2571_v46 = vpop.f32.mrf.mxu2 }
 0x16a   : > { %v2572_v17 = vadd.f32 %v2571_v46, %v2523_v51  ;;  %v2620_v56 = vpop.f32.mrf.mxu3  ;;  %v2524_v54 = vpop.f32.mrf.mxu1 }
 0x16b   : > { %v2525_v57 = vadd.f32 %v2524_v54, %v2476_v47 }
 0x16c   : > { %v2621_v36 = vadd.f32 %v2620_v56, %v2572_v17  ;;  %v2671_v25 = vpop.f32.mrf.mxu0  ;;  %v6090_v17 = vor.u32 %v7287_v34, %v6087_v61  ;;  %v6094_v56 = vor.u32 %v7292_v14, %v6093_v10 }
 0x16e   : > { %v9682_v45 = vadd.f32 %v2669_v23, %v2621_v36  ;;  %v10914_v23 = vld [vmem:[#allocation28_spill] sm:$0xff]  ;;  %v6098_v36 = vor.u32 %v7288_v28, %v6095_v18 }
 0x16f   : > { %v2484_v46 = vadd.f32 %v9547_v11, %v10914_v23 }
 0x171   : > { %v2573_v22 = vpop.f32.mrf.mxu2 }
 0x172   : > { %v2574_v3 = vadd.f32 %v2573_v22, %v2525_v57  ;;  %v2622_v16 = vpop.f32.mrf.mxu3  ;;  %v2527_v5 = vpop.f32.mrf.mxu1  ;;  %v6102_v57 = vor.u32 %v7293_v59, %v6101_v24 }
 0x173   : > { %v2528_v2 = vadd.f32 %v2527_v5, %v2479_v60 }
 0x174   : > { %v2623_v21 = vadd.f32 %v2622_v16, %v2574_v3  ;;  %v2674_v58 = vpop.f32.mrf.mxu0 }
 0x175   : > { %2722 = vmatmul.bf16.gmra.mxu1 %v6054_v27 }
 0x176   : > { %2771 = vmatmul.bf16.gmra.mxu2 %v6058_v26  ;;  %v9686_v41 = vadd.f32 %v2671_v25, %v2623_v21 }
 0x177   : > { %2820 = vmatmul.bf16.gmra.mxu3 %v6062_v50  ;;  %2869 = vmatmul.bf16.gmra.mxu0 %v6066_v63 }
 0x179   : > { %v2576_v30 = vpop.f32.mrf.mxu2 }
 0x17a   : > { %v2577_v29 = vadd.f32 %v2576_v30, %v2528_v2  ;;  %v2625_v40 = vpop.f32.mrf.mxu3  ;;  %v2529_v33 = vpop.f32.mrf.mxu1 }
 0x17b   : > { %v2530_v62 = vadd.f32 %v2529_v33, %v2481_v12 }
 0x17c   : > { %v2626_v42 = vadd.f32 %v2625_v40, %v2577_v29  ;;  %v2676_v37 = vpop.f32.mrf.mxu0 }
 0x17e   : > { %v9690_v15 = vadd.f32 %v2674_v58, %v2626_v42 }
 0x181   : > { %v2578_v51 = vpop.f32.mrf.mxu2 }
 0x182   : > { %v2579_v44 = vadd.f32 %v2578_v51, %v2530_v62  ;;  %v2627_v47 = vpop.f32.mrf.mxu3  ;;  %v2532_v54 = vpop.f32.mrf.mxu1 }
 0x183   : > { %v2533_v35 = vadd.f32 %v2532_v54, %v2484_v46 }
 0x184   : > { %v2628_v25 = vadd.f32 %v2627_v47, %v2579_v44  ;;  %v2679_v19 = vpop.f32.mrf.mxu0 }
 0x185   : > { %2727 = vmatmul.bf16.gmra.mxu1 %v6090_v17 }
 0x186   : > { %2776 = vmatmul.bf16.gmra.mxu2 %v6094_v56  ;;  %v9694_v13 = vadd.f32 %v2676_v37, %v2628_v25 }
 0x187   : > { %2825 = vmatmul.bf16.gmra.mxu3 %v6098_v36  ;;  %2874 = vmatmul.bf16.gmra.mxu0 %v6102_v57 }
 0x189   : > { %v2581_v53 = vpop.f32.mrf.mxu2 }
 0x18a   : > { %v2582_v48 = vadd.f32 %v2581_v53, %v2533_v35  ;;  %v2630_v9 = vpop.f32.mrf.mxu3  ;;  %v2534_v22 = vpop.f32.mrf.mxu1 }
 0x18b   : > { %v2535_v60 = vadd.f32 %v2534_v22, %v2486_v49 }
 0x18c   : > { %v2631_v55 = vadd.f32 %v2630_v9, %v2582_v48  ;;  %v2681_v3 = vpop.f32.mrf.mxu0 }
 0x18e   : > { %v9698_v16 = vadd.f32 %v2679_v19, %v2631_v55 }
 0x191   : > { %v2583_v27 = vpop.f32.mrf.mxu2 }
 0x192   : > { %v2584_v26 = vadd.f32 %v2583_v27, %v2535_v60  ;;  %v2632_v5 = vpop.f32.mrf.mxu3  ;;  %v2693_v50 = vpop.f32.mrf.mxu1 }
 0x193   : > { %v2694_v21 = vadd.f32 %v2693_v50, %v9576_v38 }
 0x194   : > { %v2633_v63 = vadd.f32 %v2632_v5, %v2584_v26  ;;  %v2840_v2 = vpop.f32.mrf.mxu0 }
 0x196   : > { %v9701_v58 = vadd.f32 %v2681_v3, %v2633_v63 }
 0x199   : > { %v2742_v30 = vpop.f32.mrf.mxu2 }
 0x19a   : > { %v2743_v11 = vadd.f32 %v2742_v30, %v2694_v21  ;;  %v2791_v0 = vpop.f32.mrf.mxu3  ;;  %v2695_v12 = vpop.f32.mrf.mxu1 }
 0x19b   : > { %v2696_v40 = vadd.f32 %v2695_v12, %v9592_v1 }
 0x19c   : > { %v2792_v29 = vadd.f32 %v2791_v0, %v2743_v11  ;;  %v2842_v33 = vpop.f32.mrf.mxu0 }
 0x19e   : > { %v9704_v42 = vadd.f32 %v2840_v2, %v2792_v29 }
 0x1a1   : > { %v2744_v62 = vpop.f32.mrf.mxu2 }
 0x1a2   : > { %v2745_v37 = vadd.f32 %v2744_v62, %v2696_v40  ;;  %v2793_v34 = vpop.f32.mrf.mxu3  ;;  %v2698_v61 = vpop.f32.mrf.mxu1 }
 0x1a3   : > { %v2699_v38 = vadd.f32 %v2698_v61, %v9601_v4 }
 0x1a4   : > { %v2794_v10 = vadd.f32 %v2793_v34, %v2745_v37  ;;  %v2845_v14 = vpop.f32.mrf.mxu0 }
 0x1a6   : > { %v9707_v28 = vadd.f32 %v2842_v33, %v2794_v10 }
 0x1a9   : > { %v2747_v18 = vpop.f32.mrf.mxu2 }
 0x1aa   : > { %v2748_v24 = vadd.f32 %v2747_v18, %v2699_v38  ;;  %v2796_v59 = vpop.f32.mrf.mxu3  ;;  %v2700_v51 = vpop.f32.mrf.mxu1 }
 0x1ab   : > { %v2701_v1 = vadd.f32 %v2700_v51, %v9617_v52 }
 0x1ac   : > { %v2797_v23 = vadd.f32 %v2796_v59, %v2748_v24  ;;  %v2847_v46 = vpop.f32.mrf.mxu0 }
 0x1ae   : > { %v9710_v44 = vadd.f32 %v2845_v14, %v2797_v23 }
 0x1b1   : > { %v2749_v47 = vpop.f32.mrf.mxu2 }
 0x1b2   : > { %v2750_v17 = vadd.f32 %v2749_v47, %v2701_v1  ;;  %v2798_v56 = vpop.f32.mrf.mxu3  ;;  %v2703_v54 = vpop.f32.mrf.mxu1 }
 0x1b3   : > { %v2704_v4 = vadd.f32 %v2703_v54, %v9626_v32 }
 0x1b4   : > { %v2799_v36 = vadd.f32 %v2798_v56, %v2750_v17  ;;  %v2850_v57 = vpop.f32.mrf.mxu0 }
 0x1b6   : > { %v9713_v25 = vadd.f32 %v2847_v46, %v2799_v36 }
 0x1b9   : > { %v2752_v35 = vpop.f32.mrf.mxu2 }
 0x1ba   : > { %v2753_v19 = vadd.f32 %v2752_v35, %v2704_v4  ;;  %v2801_v53 = vpop.f32.mrf.mxu3  ;;  %v2705_v7 = vpop.f32.mrf.mxu1 }
 0x1bb   : > { %v2706_v52 = vadd.f32 %v2705_v7, %v9642_v31 }
 0x1bc   : > { %v2802_v49 = vadd.f32 %v2801_v53, %v2753_v19  ;;  %v2852_v48 = vpop.f32.mrf.mxu0 }
 0x1be   : > { %v9716_v9 = vadd.f32 %v2850_v57, %v2802_v49 }
 0x1c1   : > { %v2754_v22 = vpop.f32.mrf.mxu2 }
 0x1c2   : > { %v2755_v55 = vadd.f32 %v2754_v22, %v2706_v52  ;;  %v2803_v60 = vpop.f32.mrf.mxu3  ;;  %v2708_v3 = vpop.f32.mrf.mxu1 }
 0x1c3   : > { %v2709_v32 = vadd.f32 %v2708_v3, %v9651_v20 }
 0x1c4   : > { %v2804_v27 = vadd.f32 %v2803_v60, %v2755_v55  ;;  %v2855_v26 = vpop.f32.mrf.mxu0 }
 0x1c6   : > { %v9719_v5 = vadd.f32 %v2852_v48, %v2804_v27 }
 0x1c9   : > { %v2757_v50 = vpop.f32.mrf.mxu2 }
 0x1ca   : > { %v2758_v63 = vadd.f32 %v2757_v50, %v2709_v32  ;;  %v2806_v21 = vpop.f32.mrf.mxu3  ;;  %v2710_v2 = vpop.f32.mrf.mxu1 }
 0x1cb   : > { %v2711_v31 = vadd.f32 %v2710_v2, %v9664_v6 }
 0x1cc   : > { %v2807_v30 = vadd.f32 %v2806_v21, %v2758_v63  ;;  %v2857_v11 = vpop.f32.mrf.mxu0 }
 0x1ce   : > { %v9722_v0 = vadd.f32 %v2855_v26, %v2807_v30 }
 0x1d1   : > { %v2759_v12 = vpop.f32.mrf.mxu2 }
 0x1d2   : > { %v2760_v29 = vadd.f32 %v2759_v12, %v2711_v31  ;;  %v2808_v40 = vpop.f32.mrf.mxu3  ;;  %v2713_v33 = vpop.f32.mrf.mxu1 }
 0x1d3   : > { %v2714_v34 = vadd.f32 %v2713_v33, %v9673_v43 }
 0x1d4   : > { %v2809_v62 = vadd.f32 %v2808_v40, %v2760_v29  ;;  %v2860_v37 = vpop.f32.mrf.mxu0 }
 0x1d6   : > { %v9724_v20 = vadd.f32 %v2857_v11, %v2809_v62 }
 0x1d9   : > { %v2762_v61 = vpop.f32.mrf.mxu2 }
 0x1da   : > { %v2763_v10 = vadd.f32 %v2762_v61, %v2714_v34  ;;  %v2811_v38 = vpop.f32.mrf.mxu3  ;;  %v2715_v14 = vpop.f32.mrf.mxu1 }
 0x1db   : > { %v2716_v59 = vadd.f32 %v2715_v14, %v9678_v39 }
 0x1dc   : > { %v2812_v18 = vadd.f32 %v2811_v38, %v2763_v10  ;;  %v2862_v24 = vpop.f32.mrf.mxu0 }
 0x1de   : > { %v9727_v6 = vadd.f32 %v2860_v37, %v2812_v18 }
 0x1e1   : > { %v2764_v51 = vpop.f32.mrf.mxu2 }
 0x1e2   : > { %v2765_v23 = vadd.f32 %v2764_v51, %v2716_v59  ;;  %v2813_v1 = vpop.f32.mrf.mxu3  ;;  %v2718_v46 = vpop.f32.mrf.mxu1 }
 0x1e3   : > { %v2719_v43 = vadd.f32 %v2718_v46, %v9682_v45 }
 0x1e4   : > { %v2814_v47 = vadd.f32 %v2813_v1, %v2765_v23  ;;  %v2865_v17 = vpop.f32.mrf.mxu0 }
 0x1e6   : > { %v9730_v56 = vadd.f32 %v2862_v24, %v2814_v47 }
 0x1e9   : > { %v2767_v54 = vpop.f32.mrf.mxu2 }
 0x1ea   : > { %v2768_v36 = vadd.f32 %v2767_v54, %v2719_v43  ;;  %v2816_v4 = vpop.f32.mrf.mxu3  ;;  %v2720_v57 = vpop.f32.mrf.mxu1 }
 0x1eb   : > { %v2721_v39 = vadd.f32 %v2720_v57, %v9686_v41 }
 0x1ec   : > { %v2817_v35 = vadd.f32 %v2816_v4, %v2768_v36  ;;  %v2867_v19 = vpop.f32.mrf.mxu0 }
 0x1ee   : > { %v9733_v53 = vadd.f32 %v2865_v17, %v2817_v35 }
 0x1f1   : > { %v2769_v7 = vpop.f32.mrf.mxu2 }
 0x1f2   : > { %v2770_v49 = vadd.f32 %v2769_v7, %v2721_v39  ;;  %v2818_v52 = vpop.f32.mrf.mxu3  ;;  %v2723_v48 = vpop.f32.mrf.mxu1 }
 0x1f3   : > { %v2724_v45 = vadd.f32 %v2723_v48, %v9690_v15 }
 0x1f4   : > { %v2819_v22 = vadd.f32 %v2818_v52, %v2770_v49  ;;  %v2870_v60 = vpop.f32.mrf.mxu0 }
 0x1f6   : > { %v9736_v55 = vadd.f32 %v2867_v19, %v2819_v22 }
 0x1f9   : > { %v2772_v3 = vpop.f32.mrf.mxu2 }
 0x1fa   : > { %v2773_v27 = vadd.f32 %v2772_v3, %v2724_v45  ;;  %v2821_v32 = vpop.f32.mrf.mxu3  ;;  %v2725_v26 = vpop.f32.mrf.mxu1 }
 0x1fb   : > { %v2726_v21 = vadd.f32 %v2725_v26, %v9694_v13 }
 0x1fc   : > { %v2822_v50 = vadd.f32 %v2821_v32, %v2773_v27  ;;  %v2872_v41 = vpop.f32.mrf.mxu0 }
 0x1fe   : > { %v9739_v63 = vadd.f32 %v2870_v60, %v2822_v50 }
 0x201   : > { %v2774_v2 = vpop.f32.mrf.mxu2 }
 0x202   : > { %v2775_v30 = vadd.f32 %v2774_v2, %v2726_v21  ;;  %v2823_v31 = vpop.f32.mrf.mxu3  ;;  %v2728_v11 = vpop.f32.mrf.mxu1 }
 0x203   : > { %v2729_v40 = vadd.f32 %v2728_v11, %v9698_v16 }
 0x204   : > { %v2824_v12 = vadd.f32 %v2823_v31, %v2775_v30  ;;  %v2875_v37 = vpop.f32.mrf.mxu0 }
 0x206   : > { %v9742_v29 = vadd.f32 %v2872_v41, %v2824_v12 }
 0x209   : > { %v2777_v15 = vpop.f32.mrf.mxu2 }
 0x20a   : > { %v2778_v33 = vadd.f32 %v2777_v15, %v2729_v40  ;;  %v2826_v62 = vpop.f32.mrf.mxu3  ;;  %v2730_v61 = vpop.f32.mrf.mxu1 }
 0x20b   : > { %v2731_v13 = vadd.f32 %v2730_v61, %v9701_v58 }
 0x20c   : > { %v2827_v34 = vadd.f32 %v2826_v62, %v2778_v33  ;;  %v2877_v59 = vpop.f32.mrf.mxu0 }
 0x20e   : > { %v9745_v10 = vadd.f32 %v2875_v37, %v2827_v34 }
 0x211   : > { %v2779_v38 = vpop.f32.mrf.mxu2 }
 0x212   : > { %v2780_v14 = vadd.f32 %v2779_v38, %v2731_v13  ;;  %v2828_v18 = vpop.f32.mrf.mxu3  ;;  %2882 = sbr.rel (%p5802_p4) target bundleno = 569 (0x239), region = 72 }
 0x214   : > { %v2829_v24 = vadd.f32 %v2828_v18, %v2780_v14 }
 0x216   : > { %v9748_v51 = vadd.f32 %v2877_v59, %v2829_v24 }
 0x217   : > { %v2883_v16 = vmax.f32 %v9704_v42, 0.0  ;;  %v2884_v23 = vmax.f32 %v9707_v28, 0.0  ;;  %v2885_v1 = vmax.f32 %v9710_v44, 0.0  ;;  %v2886_v58 = vmax.f32 %v9713_v25, 0.0 }
 0x218   : > { %v2887_v46 = vmax.f32 %v9716_v9, 0.0  ;;  %v2888_v47 = vmax.f32 %v9719_v5, 0.0  ;;  %v2889_v17 = vmax.f32 %v9722_v0, 0.0  ;;  %v2890_v43 = vmax.f32 %v9724_v20, 0.0 }
 0x219   : > { %2899 = vst [vmem:[#allocation2 + $0x30] sm:$0xff] %v2883_v16  ;;  %v2891_v54 = vmax.f32 %v9727_v6, 0.0  ;;  %v2892_v36 = vmax.f32 %v9730_v56, 0.0  ;;  %v2893_v4 = vmax.f32 %v9733_v53, 0.0  ;;  %v2894_v57 = vmax.f32 %v9736_v55, 0.0 }
 0x21a   : > { %2915 = vst [vmem:[#allocation3 + $0x28] sm:$0xff] %v2883_v16  ;;  %v2895_v35 = vmax.f32 %v9739_v63, 0.0  ;;  %v2896_v19 = vmax.f32 %v9742_v29, 0.0  ;;  %v2897_v39 = vmax.f32 %v9745_v10, 0.0  ;;  %v2898_v7 = vmax.f32 %v9748_v51, 0.0 }
 0x21b   : > { %2900 = vst [vmem:[#allocation2] sm:$0xff] %v2884_v23 }
 0x21c   : > { %2916 = vst [vmem:[#allocation3 + $0x68] sm:$0xff] %v2884_v23 }
 0x21d   : > { %2901 = vst [vmem:[#allocation2 + $0x58] sm:$0xff] %v2885_v1 }
 0x21e   : > { %2917 = vst [vmem:[#allocation3 + $0x10] sm:$0xff] %v2885_v1 }
 0x21f   : > { %2902 = vst [vmem:[#allocation2 + $0x18] sm:$0xff] %v2886_v58 }
 0x220   : > { %2918 = vst [vmem:[#allocation3 + $0x40] sm:$0xff] %v2886_v58 }
 0x221   : > { %2903 = vst [vmem:[#allocation2 + $0x50] sm:$0xff] %v2887_v46 }
 0x222   : > { %2919 = vst [vmem:[#allocation3 + $0x48] sm:$0xff] %v2887_v46 }
 0x223   : > { %2904 = vst [vmem:[#allocation2 + $0x68] sm:$0xff] %v2888_v47 }
 0x224   : > { %2920 = vst [vmem:[#allocation3 + $0x30] sm:$0xff] %v2888_v47 }
 0x225   : > { %2905 = vst [vmem:[#allocation2 + $0x8] sm:$0xff] %v2889_v17 }
 0x226   : > { %2921 = vst [vmem:[#allocation3 + $0x70] sm:$0xff] %v2889_v17 }
 0x227   : > { %2906 = vst [vmem:[#allocation2 + $0x48] sm:$0xff] %v2890_v43 }
 0x228   : > { %2922 = vst [vmem:[#allocation3 + $0x38] sm:$0xff] %v2890_v43 }
 0x229   : > { %2907 = vst [vmem:[#allocation2 + $0x40] sm:$0xff] %v2891_v54 }
 0x22a   : > { %2923 = vst [vmem:[#allocation3 + $0x20] sm:$0xff] %v2891_v54 }
 0x22b   : > { %2908 = vst [vmem:[#allocation2 + $0x20] sm:$0xff] %v2892_v36 }
 0x22c   : > { %2924 = vst [vmem:[#allocation3 + $0x78] sm:$0xff] %v2892_v36 }
 0x22d   : > { %2909 = vst [vmem:[#allocation2 + $0x10] sm:$0xff] %v2893_v4 }
 0x22e   : > { %2925 = vst [vmem:[#allocation3 + $0x18] sm:$0xff] %v2893_v4 }
 0x22f   : > { %2910 = vst [vmem:[#allocation2 + $0x38] sm:$0xff] %v2894_v57 }
 0x230   : > { %2926 = vst [vmem:[#allocation3 + $0x58] sm:$0xff] %v2894_v57 }
 0x231   : > { %2911 = vst [vmem:[#allocation2 + $0x60] sm:$0xff] %v2895_v35 }
 0x232   : > { %2927 = vst [vmem:[#allocation3] sm:$0xff] %v2895_v35 }
 0x233   : > { %2912 = vst [vmem:[#allocation2 + $0x70] sm:$0xff] %v2896_v19 }
 0x234   : > { %2928 = vst [vmem:[#allocation3 + $0x8] sm:$0xff] %v2896_v19 }
 0x235   : > { %2913 = vst [vmem:[#allocation2 + $0x78] sm:$0xff] %v2897_v39 }
 0x236   : > { %2929 = vst [vmem:[#allocation3 + $0x60] sm:$0xff] %v2897_v39 }
 0x237   : > { %2914 = vst [vmem:[#allocation2 + $0x28] sm:$0xff] %v2898_v7 }
 0x238   : > { %2930 = vst [vmem:[#allocation3 + $0x50] sm:$0xff] %v2898_v7 }
 0x239 PF: > { %p6392_p1 = scmp.le.s32.totalorder %s8637_s25, 0 }
 0x23b   : > { %2934 = sbr.rel (%p6392_p1) target bundleno = 1038 (0x40e), region = 76 }
 0x240   : > { %v7301_v49 = vld [vmem:[%s8740_s21 + $0x278] sm:$0xff]  ;;  %v9771_v52 = vmax.f32 %v9713_v25, 0.0  ;;  %v9774_v48 = vmax.f32 %v9716_v9, 0.0  ;;  %v9777_v22 = vmax.f32 %v9724_v20, 0.0  ;;  %v9780_v60 = vmax.f32 %v9727_v6, 0.0  ;;  %v7300_v27 = vld [vmem:[%s8740_s21 + $0x270] sm:$0xff] }
 0x241   : > { %v9783_v45 = vmax.f32 %v9736_v55, 0.0  ;;  %v9786_v3 = vmax.f32 %v9739_v63, 0.0  ;;  %8211 = vmatpush.bf16.msra.mxu1 %v7301_v49  ;;  %8212 = vmatpush.bf16.msra.mxu2 %v7301_v49  ;;  %v8125_v20 = vld [vmem:[#allocation5 + $0x10] sm:$0xff]   ;;  %v9796_v32 = vmax.f32 %v9704_v42, 0.0  ;;  %v8127_v63 = vld [vmem:[#allocation5 + $0x20] sm:$0xff]   ;;  %v9822_v18 = vmax.f32 %v9748_v51, 0.0 }
 0x242   : > { %10916 = vst [vmem:[#allocation31_spill] sm:$0xff] %v9771_v52  ;;  %v3135_v25 = vpack.c.bf16 %v9771_v52, %v9771_v52  ;;  %v3136_v9 = vpack.c.bf16 %v9774_v48, %v9774_v48  ;;  %v3139_v6 = vpack.c.bf16 %v9777_v22, %v9777_v22  ;;  %8213 = vmatpush.bf16.msra.mxu3 %v7301_v49  ;;  %v7776_v55 = vunpack.c.l.bf16 %v8125_v20  ;;  %v8129_v41 = vld [vmem:[#allocation5 + $0x30] sm:$0xff]   ;;  %v7767_v24 = vld [vmem:[#allocation5] sm:$0xff]   ;;  %v8126_v43 = vld [vmem:[#allocation5 + $0x18] sm:$0xff]  }
 0x243   : > { %10917 = vst [vmem:[#allocation32_spill] sm:$0xff] %v9774_v48  ;;  %5020 = vmatpush.bf16.msra.mxu0 %v7301_v49  ;;  %v7777_v26 = vunpack.c.h.bf16 %v8125_v20  ;;  %v3140_v50 = vpack.c.bf16 %v9780_v60, %v9780_v60  ;;  %v3143_v21 = vpack.c.bf16 %v9783_v45, %v9783_v45  ;;  %v7784_v31 = vunpack.c.l.bf16 %v8127_v63  ;;  %v7299_v33 = vld [vmem:[%s8740_s21 + $0x268] sm:$0xff]  ;;  %v7298_v51 = vld [vmem:[%s8740_s21 + $0x260] sm:$0xff] }
 0x244   : > { %10918 = vst [vmem:[#allocation33_spill] sm:$0xff] %v9796_v32  ;;  %v9802_v2 = vunpack.c.l.bf16 %v3135_v25  ;;  %v9804_v30 = vunpack.c.l.bf16 %v3136_v9  ;;  %v7785_v42 = vunpack.c.h.bf16 %v8127_v63  ;;  %v9806_v11 = vunpack.c.l.bf16 %v3139_v6  ;;  %v8128_v49 = vld [vmem:[#allocation5 + $0x28] sm:$0xff]   ;;  %v8186_v8 = vld [vmem:[#allocation5 + $0x238] sm:$0xff]  }
 0x245   : > { %v9808_v12 = vunpack.c.l.bf16 %v3140_v50  ;;  %v3144_v40 = vpack.c.bf16 %v9786_v3, %v9786_v3  ;;  %v7792_v15 = vunpack.c.l.bf16 %v8129_v41  ;;  %8214 = vmatpush.bf16.msra.mxu1 %v7300_v27  ;;  %8215 = vmatpush.bf16.msra.mxu2 %v7300_v27  ;;  %v7793_v34 = vunpack.c.h.bf16 %v8129_v41  ;;  %10921 = vst [vmem:[#allocation36_spill] sm:$0xff] %v9822_v18  ;;  %v7297_v50 = vld [vmem:[%s8740_s21 + $0x258] sm:$0xff] }
 0x246   : > { %10919 = vst [vmem:[#allocation34_spill] sm:$0xff] %v9802_v2  ;;  %v3199_v62 = vmul.f32 %v7776_v55, %v9802_v2  ;;  %v3200_v37 = vmul.f32 %v7777_v26, %v9804_v30  ;;  %v9815_v61 = vunpack.c.l.bf16 %v3143_v21  ;;  %8216 = vmatpush.bf16.msra.mxu3 %v7300_v27  ;;  %v3203_v13 = vmul.f32 %v7784_v31, %v9806_v11  ;;  %v8130_v26 = vld [vmem:[#allocation5 + $0x38] sm:$0xff]  }
 0x247   : > { %10920 = vst [vmem:[#allocation35_spill] sm:$0xff] %v9806_v11  ;;  %5021 = vmatpush.bf16.msra.mxu0 %v7300_v27  ;;  %v3204_v38 = vmul.f32 %v7785_v42, %v9808_v12  ;;  %v9819_v14 = vunpack.c.l.bf16 %v3144_v40  ;;  %v3132_v1 = vpack.c.bf16 %v9796_v32, %v9796_v32  ;;  %v3131_v17 = vpack.c.bf16 %v9822_v18, %v9822_v18 }
 0x248   : > { %v3215_v59 = vpack.c.bf16 %v3199_v62, %v3199_v62  ;;  %v3216_v16 = vpack.c.bf16 %v3200_v37, %v3200_v37  ;;  %v3207_v23 = vmul.f32 %v7792_v15, %v9815_v61  ;;  %v3219_v58 = vpack.c.bf16 %v3203_v13, %v3203_v13 }
 0x249   : > { %v3220_v46 = vpack.c.bf16 %v3204_v38, %v3204_v38  ;;  %v3208_v47 = vmul.f32 %v7793_v34, %v9819_v14  ;;  %8217 = vmatpush.bf16.msra.mxu1 %v7299_v33  ;;  %8218 = vmatpush.bf16.msra.mxu2 %v7299_v33  ;;  %v7768_v36 = vunpack.c.l.bf16 %v7767_v24  ;;  %v7769_v4 = vunpack.c.h.bf16 %v7767_v24  ;;  %v7296_v34 = vld [vmem:[%s8740_s21 + $0x250] sm:$0xff] }
 0x24a   : > { %3231 = vst [vmem:[#allocation4 + $0x90] sm:$0xf] %v3215_v59  ;;  %v3223_v54 = vpack.c.bf16 %v3207_v23, %v3207_v23  ;;  %v9831_v57 = vunpack.c.l.bf16 %v3132_v1  ;;  %8219 = vmatpush.bf16.msra.mxu3 %v7299_v33  ;;  %v9833_v19 = vunpack.c.l.bf16 %v3131_v17  ;;  %v9836_v39 = vmax.f32 %v9719_v5, 0.0 }
 0x24b   : > { %5022 = vmatpush.bf16.msra.mxu0 %v7299_v33  ;;  %3232 = vst [vmem:[#allocation4 + $0xb4] sm:$0xf] %v3216_v16  ;;  %v3224_v35 = vpack.c.bf16 %v3208_v47, %v3208_v47  ;;  %v9839_v7 = vmax.f32 %v9722_v0, 0.0  ;;  %v7780_v25 = vunpack.c.l.bf16 %v8126_v43  ;;  %v7781_v9 = vunpack.c.h.bf16 %v8126_v43 }
 0x24c   : > { %10922 = vst [vmem:[#allocation37_spill] sm:$0xff] %v9831_v57  ;;  %v3196_v27 = vmul.f32 %v7769_v4, %v9831_v57  ;;  %v9843_v20 = vmax.f32 %v9730_v56, 0.0  ;;  %v3195_v6 = vmul.f32 %v7768_v36, %v9833_v19  ;;  %v3137_v5 = vpack.c.bf16 %v9836_v39, %v9836_v39 }
 0x24d   : > { %10923 = vst [vmem:[#allocation38_spill] sm:$0xff] %v9833_v19  ;;  %v3138_v55 = vpack.c.bf16 %v9839_v7, %v9839_v7  ;;  %v9851_v0 = vmax.f32 %v9733_v53, 0.0  ;;  %8220 = vmatpush.bf16.msra.mxu1 %v7298_v51  ;;  %8221 = vmatpush.bf16.msra.mxu2 %v7298_v51  ;;  %v7788_v21 = vunpack.c.l.bf16 %v8128_v49  ;;  %v7789_v41 = vunpack.c.h.bf16 %v8128_v49  ;;  %v7333_v49 = vld [vmem:[%s8740_s21 + $0x378] sm:$0xff] }
 0x24e   : > { %3235 = vst [vmem:[#allocation4 + $0x120] sm:$0xf] %v3219_v58  ;;  %v3212_v63 = vpack.c.bf16 %v3196_v27, %v3196_v27  ;;  %v3141_v56 = vpack.c.bf16 %v9843_v20, %v9843_v20  ;;  %8222 = vmatpush.bf16.msra.mxu3 %v7298_v51  ;;  %v3211_v31 = vpack.c.bf16 %v3195_v6, %v3195_v6  ;;  %v9856_v42 = vunpack.c.l.bf16 %v3137_v5  ;;  %v9907_v6 = vld [vmem:[#allocation5 + $0x40] sm:$0xff]   ;;  %v7295_v5 = vld [vmem:[%s8740_s21 + $0x248] sm:$0xff] }
 0x24f   : > { %3236 = vst [vmem:[#allocation4 + $0x144] sm:$0xf] %v3220_v46  ;;  %5023 = vmatpush.bf16.msra.mxu0 %v7298_v51  ;;  %v9858_v53 = vunpack.c.l.bf16 %v3138_v55  ;;  %v3142_v40 = vpack.c.bf16 %v9851_v0, %v9851_v0  ;;  %v9865_v33 = vmax.f32 %v9742_v29, 0.0  ;;  %v9868_v62 = vmax.f32 %v9745_v10, 0.0  ;;  %v8124_v46 = vld [vmem:[#allocation5 + $0x8] sm:$0xff]  }
 0x250   : > { %3239 = vst [vmem:[#allocation4 + $0x1b0] sm:$0xf] %v3223_v54  ;;  %v9862_v15 = vunpack.c.l.bf16 %v3141_v56  ;;  %v7796_v37 = vunpack.c.l.bf16 %v8130_v26  ;;  %v3201_v13 = vmul.f32 %v7780_v25, %v9856_v42  ;;  %v7797_v59 = vunpack.c.h.bf16 %v8130_v26 }
 0x251   : > { %3240 = vst [vmem:[#allocation4 + $0x1d4] sm:$0xf] %v3224_v35  ;;  %v3202_v38 = vmul.f32 %v7781_v9, %v9858_v53  ;;  %v9873_v24 = vunpack.c.l.bf16 %v3142_v40  ;;  %8223 = vmatpush.bf16.msra.mxu1 %v7297_v50  ;;  %8224 = vmatpush.bf16.msra.mxu2 %v7297_v50  ;;  %v9875_v16 = vld [vmem:[#allocation4 + $0x90] sm:$0xf]  ;;  %v3145_v10 = vpack.c.bf16 %v9865_v33, %v9865_v33  ;;  %v9885_v58 = vmax.f32 %v9707_v28, 0.0 }
 0x252   : > { %3228 = vst [vmem:[#allocation4 + $0x24] sm:$0xf] %v3212_v63  ;;  %v9877_v23 = vld [vmem:[#allocation4 + $0xb0] sm:$0xf0]  ;;  %v3205_v29 = vmul.f32 %v7788_v21, %v9862_v15  ;;  %v3146_v1 = vpack.c.bf16 %v9868_v62, %v9868_v62  ;;  %8225 = vmatpush.bf16.msra.mxu3 %v7297_v50  ;;  %v3217_v47 = vpack.c.bf16 %v3201_v13, %v3201_v13  ;;  %v9888_v43 = vmax.f32 %v9710_v44, 0.0 }
 0x253   : > { %3227 = vst [vmem:[#allocation4] sm:$0xf] %v3211_v31  ;;  %5024 = vmatpush.bf16.msra.mxu0 %v7297_v50  ;;  %v3218_v17 = vpack.c.bf16 %v3202_v38, %v3202_v38  ;;  %v3206_v36 = vmul.f32 %v7789_v41, %v9873_v24  ;;  %v9895_v35 = vunpack.c.l.bf16 %v3145_v10  ;;  %v3133_v44 = vpack.c.bf16 %v9885_v58, %v9885_v58 }
 0x254   : > { %v3221_v4 = vpack.c.bf16 %v3205_v29, %v3205_v29  ;;  %v9897_v28 = vunpack.c.l.bf16 %v3146_v1  ;;  %3233 = vst [vmem:[#allocation4 + $0xd8] sm:$0xf] %v3217_v47  ;;  %v3134_v25 = vpack.c.bf16 %v9888_v43, %v9888_v43  ;;  %v7772_v9 = vunpack.c.l.bf16 %v8124_v46  ;;  %v7294_v29 = vld [vmem:[%s8740_s21 + $0x240] sm:$0xff] }
 0x255   : > { %v9890_v51 = vld [vmem:[#allocation4 + $0x120] sm:$0xf]  ;;  %10924 = vst [vmem:[#allocation39_spill] sm:$0xff] %v9895_v35  ;;  %8226 = vmatpush.bf16.msra.mxu1 %v7296_v34  ;;  %8227 = vmatpush.bf16.msra.mxu2 %v7296_v34  ;;  %v3222_v26 = vpack.c.bf16 %v3206_v36, %v3206_v36  ;;  %v3209_v50 = vmul.f32 %v7796_v37, %v9895_v35  ;;  %v7773_v41 = vunpack.c.h.bf16 %v8124_v46  ;;  %v9918_v31 = vunpack.c.l.bf16 %v3133_v44 }
 0x256   : > { %v9892_v54 = vld [vmem:[#allocation4 + $0x140] sm:$0xf0]  ;;  %10925 = vst [vmem:[#allocation40_spill] sm:$0xff] %v9897_v28  ;;  %v3210_v63 = vmul.f32 %v7797_v59, %v9897_v28  ;;  %8228 = vmatpush.bf16.msra.mxu3 %v7296_v34  ;;  %v9920_v40 = vunpack.c.l.bf16 %v3134_v25  ;;  %v3243_v47 = vrot.slane %v9796_v32, 1  ;;  %v10794_v36 = vrot.slane %v9885_v58, 1  ;;  %v7332_v28 = vld [vmem:[%s8740_s21 + $0x370] sm:$0xff] }
 0x257   : > { %v9901_v27 = vld [vmem:[#allocation4 + $0x1b0] sm:$0xf]  ;;  %3234 = vst [vmem:[#allocation4 + $0xfc] sm:$0xf] %v3218_v17  ;;  %5025 = vmatpush.bf16.msra.mxu0 %v7296_v34  ;;  %v3225_v38 = vpack.c.bf16 %v3209_v50, %v3209_v50  ;;  %v7800_v34 = vunpack.c.l.bf16 %v9907_v6  ;;  %v3197_v1 = vmul.f32 %v7772_v9, %v9918_v31  ;;  %v9933_v17 = vld [vmem:[#allocation5 + $0x80] sm:$0xff]   ;;  %v3387_v44 = vrot.slane %v9796_v32, 2 }
 0x258   : > { %v9910_v55 = vld [vmem:[#allocation4 + $0x1d0] sm:$0xf0]  ;;  %3237 = vst [vmem:[#allocation4 + $0x168] sm:$0xf] %v3221_v4  ;;  %v3226_v59 = vpack.c.bf16 %v3210_v63, %v3210_v63  ;;  %v3198_v46 = vmul.f32 %v7773_v41, %v9920_v40  ;;  %v10795_v4 = vrot.slane %v9822_v18, 1  ;;  %v10796_v25 = vrot.slane %v9885_v58, 2 }
 0x259   : > { %v9916_v21 = vld [vmem:[#allocation4 + $0x20] sm:$0xf0]  ;;  %10926 = vst [vmem:[#allocation41_spill] sm:$0xff] %v9918_v31  ;;  %8229 = vmatpush.bf16.msra.mxu1 %v7295_v5  ;;  %8230 = vmatpush.bf16.msra.mxu2 %v7295_v5  ;;  %v3213_v9 = vpack.c.bf16 %v3197_v1, %v3197_v1  ;;  %v7801_v50 = vunpack.c.h.bf16 %v9907_v6  ;;  %v10797_v63 = vrot.slane %v9822_v18, 2  ;;  %v7833_v6 = vunpack.c.h.bf16 %v9933_v17 }
 0x25a   : > { %v9924_v37 = vld [vmem:[#allocation4] sm:$0xf]  ;;  %3238 = vst [vmem:[#allocation4 + $0x18c] sm:$0xf] %v3222_v26  ;;  %8231 = vmatpush.bf16.msra.mxu3 %v7295_v5  ;;  %v3214_v26 = vpack.c.bf16 %v3198_v46, %v3198_v46  ;;  %v7832_v13 = vunpack.c.l.bf16 %v9933_v17  ;;  %v3531_v56 = vrot.slane %v9796_v32, 7  ;;  %v10928_v19 = vrot.slane %v9885_v58, 7 }
 0x25b   : > { %v6542_v10 = vor.u32 %v9916_v21, %v9924_v37  ;;  %3241 = vst [vmem:[#allocation4 + $0x1f8] sm:$0xf] %v3225_v38  ;;  %5026 = vmatpush.bf16.msra.mxu0 %v7295_v5  ;;  %v7317_v21 = vld [vmem:[%s8740_s21 + $0x2f8] sm:$0xff]  ;;  %v3273_v37 = vsel %vm666_vm0, %v3243_v47, %v10794_v36  ;;  %v3274_v38 = vsel %vm666_vm0, %v10795_v4, %v3243_v47  ;;  %v7316_v17 = vld [vmem:[%s8740_s21 + $0x2f0] sm:$0xff] }
 0x25c   : > { %3242 = vst [vmem:[#allocation4 + $0x21c] sm:$0xf] %v3226_v59  ;;  %v7309_v41 = vld [vmem:[%s8740_s21 + $0x2b8] sm:$0xff]  ;;  %v3417_v5 = vsel %vm812_vm1, %v3387_v44, %v10796_v25  ;;  %v9956_v59 = vld [vmem:[#allocation4 + $0xd8] sm:$0xf]  ;;  %v3275_v46 = vpack.c.bf16 %v3274_v38, %v3274_v38  ;;  %v3276_v36 = vpack.c.bf16 %v3273_v37, %v3273_v37  ;;  %v3418_v47 = vsel %vm812_vm1, %v10797_v63, %v3387_v44 }
 0x25d   : > { %3229 = vst [vmem:[#allocation4 + $0x48] sm:$0xf] %v3213_v9  ;;  %v3420_v4 = vpack.c.bf16 %v3417_v5, %v3417_v5  ;;  %8232 = vmatpush.bf16.msra.mxu1 %v7294_v29  ;;  %8233 = vmatpush.bf16.msra.mxu2 %v7294_v29  ;;  %v3419_v25 = vpack.c.bf16 %v3418_v47, %v3418_v47  ;;  %v9967_v38 = vld [vmem:[#allocation5 + $0xc0] sm:$0xff]  }
 0x25e   : > { %v9958_v1 = vld [vmem:[#allocation4 + $0xf8] sm:$0xf0]  ;;  %3230 = vst [vmem:[#allocation4 + $0x6c] sm:$0xf] %v3214_v26  ;;  %8234 = vmatpush.bf16.msra.mxu3 %v7294_v29  ;;  %v7325_v37 = vld [vmem:[%s8740_s21 + $0x338] sm:$0xff]  ;;  %v9971_v44 = vunpack.c.l.bf16 %v3275_v46  ;;  %v9973_v5 = vunpack.c.l.bf16 %v3276_v36  ;;  %v3561_v36 = vsel %vm958_vm2, %v3531_v56, %v10928_v19  ;;  %v10931_v32 = vor.u32 %v9910_v55, %v9901_v27 }
 0x25f   : > { %5027 = vmatpush.bf16.msra.mxu0 %v7294_v29  ;;  %v3452_v26 = vunpack.c.l.bf16 %v3420_v4  ;;  %v7895_v63 = vld [vmem:[#allocation5 + $0x100] sm:$0xff]   ;;  %v3451_v29 = vunpack.c.l.bf16 %v3419_v25  ;;  %v10929_v4 = vor.u32 %v9877_v23, %v9875_v16  ;;  %v7865_v25 = vunpack.c.h.bf16 %v9967_v38 }
 0x260   : > { %10927 = vst [vmem:[#allocation42_spill] sm:$0xff] %v9971_v44  ;;  %v7308_v9 = vld [vmem:[%s8740_s21 + $0x2b0] sm:$0xff]  ;;  %v3340_v46 = vmul.f32 %v7801_v50, %v9973_v5  ;;  %v10932_v23 = vrot.slane %v9822_v18, 7  ;;  %v10002_v50 = vld [vmem:[#allocation4 + $0x168] sm:$0xf] }
 0x261   : > { %5118 = vmatpush.bf16.msrb.mxu2 %v7317_v21  ;;  %5069 = vmatpush.bf16.msrb.mxu1 %v7309_v41  ;;  %v10930_v21 = vor.u32 %v9892_v54, %v9890_v51  ;;  %v3339_v41 = vmul.f32 %v7800_v34, %v9971_v44  ;;  %v3484_v47 = vmul.f32 %v7833_v6, %v3452_v26  ;;  %v7324_v19 = vld [vmem:[%s8740_s21 + $0x330] sm:$0xff]  ;;  %v7896_v34 = vunpack.c.l.bf16 %v7895_v63  ;;  %v10007_v6 = vld [vmem:[#allocation5 + $0x48] sm:$0xff]  }
 0x262   : > { %5038 = vmatmul.bf16.vlgmr.msra.gmra.mxu1 %v10929_v4  ;;  %5058 = vmatmul.bf16.vlgmr.msra.gmra.mxu3 %v10931_v32  ;;  %v3483_v16 = vmul.f32 %v7832_v13, %v3451_v29  ;;  %v3562_v51 = vsel %vm958_vm2, %v10932_v23, %v3531_v56  ;;  %v3564_v54 = vpack.c.bf16 %v3561_v36, %v3561_v36  ;;  %v10004_v32 = vld [vmem:[#allocation4 + $0x188] sm:$0xf0]  ;;  %v7864_v13 = vunpack.c.l.bf16 %v9967_v38  ;;  %v7315_v56 = vld [vmem:[%s8740_s21 + $0x2e8] sm:$0xff] }
 0x263   : > { %5048 = vmatmul.bf16.vlgmr.msra.gmra.mxu2 %v10930_v21  ;;  %5028 = vmatmul.bf16.vlgmr.msra.gmra.mxu0 %v6542_v10  ;;  %v3355_v27 = vpack.c.bf16 %v3339_v41, %v3339_v41  ;;  %v3356_v55 = vpack.c.bf16 %v3340_v46, %v3340_v46  ;;  %v7897_v10 = vunpack.c.h.bf16 %v7895_v63  ;;  %v3500_v26 = vpack.c.bf16 %v3484_v47, %v3484_v47  ;;  %v7323_v4 = vld [vmem:[%s8740_s21 + $0x328] sm:$0xff]  ;;  %v7314_v46 = vld [vmem:[%s8740_s21 + $0x2e0] sm:$0xff] }
 0x264   : > { %5167 = vmatpush.bf16.msrb.mxu3 %v7325_v37  ;;  %5216 = vmatpush.bf16.msrb.mxu0 %v7333_v49  ;;  %v7307_v37 = vld [vmem:[%s8740_s21 + $0x2a8] sm:$0xff]  ;;  %v3499_v49 = vpack.c.bf16 %v3483_v16, %v3483_v16  ;;  %v3563_v29 = vpack.c.bf16 %v3562_v51, %v3562_v51  ;;  %v10011_v36 = vunpack.c.l.bf16 %v3564_v54  ;;  %v3707_v41 = vmul.f32 %v7896_v34, %v9831_v57  ;;  %v7927_v54 = vld [vmem:[#allocation5 + $0x140] sm:$0xff]   ;;  %v10045_v16 = vld [vmem:[#allocation5 + $0x88] sm:$0xff]  }
 0x265   : > { %5119 = vmatpush.bf16.msrb.mxu2 %v7316_v17  ;;  %5070 = vmatpush.bf16.msrb.mxu1 %v7308_v9  ;;  %v7331_v21 = vld [vmem:[%s8740_s21 + $0x368] sm:$0xff]  ;;  %3371 = vst [vmem:[#allocation4 + $0x4] sm:$0xf] %v3355_v27  ;;  %v3708_v63 = vmul.f32 %v7897_v10, %v9918_v31  ;;  %v3245_v38 = vrot.slane %v9888_v43, 1  ;;  %v7306_v9 = vld [vmem:[%s8740_s21 + $0x2a0] sm:$0xff]  ;;  %v7804_v51 = vunpack.c.l.bf16 %v10007_v6  ;;  %v10935_v57 = vrot.slane %v9771_v52, 1 }
 0x266   : > { %10933 = vst [vmem:[#allocation43_spill] sm:$0xff] %v10011_v36  ;;  %v10023_v47 = vunpack.c.l.bf16 %v3563_v29  ;;  %v3628_v23 = vmul.f32 %v7865_v25, %v10011_v36  ;;  %v10027_v34 = vld [vmem:[#allocation4 + $0x1f8] sm:$0xf]  ;;  %v10029_v27 = vld [vmem:[#allocation4 + $0x218] sm:$0xf0]  ;;  %v3723_v10 = vpack.c.bf16 %v3707_v41, %v3707_v41 }
 0x267   : > { %3372 = vst [vmem:[#allocation4 + $0x28] sm:$0xf] %v3356_v55  ;;  %v3724_v17 = vpack.c.bf16 %v3708_v63, %v3708_v63  ;;  %v3271_v55 = vsel %vm666_vm0, %v3245_v38, %v10935_v57  ;;  %v10035_v25 = vld [vmem:[#allocation4 + $0x48] sm:$0xf]  ;;  %v10037_v29 = vld [vmem:[#allocation4 + $0x68] sm:$0xf0] }
 0x268   : > { %10934 = vst [vmem:[#allocation44_spill] sm:$0xff] %v10023_v47  ;;  %5168 = vmatpush.bf16.msrb.mxu3 %v7324_v19  ;;  %5217 = vmatpush.bf16.msrb.mxu0 %v7332_v28  ;;  %v3627_v28 = vmul.f32 %v7864_v13, %v10023_v47  ;;  %v3644_v19 = vpack.c.bf16 %v3628_v23, %v3628_v23  ;;  %v3389_v23 = vrot.slane %v9888_v43, 2  ;;  %v10806_v47 = vrot.slane %v9771_v52, 2 }
 0x269   : > { %3515 = vst [vmem:[#allocation4 + $0x8] sm:$0xf] %v3499_v49  ;;  %5120 = vmatpush.bf16.msrb.mxu2 %v7315_v56  ;;  %5071 = vmatpush.bf16.msrb.mxu1 %v7307_v37  ;;  %v10936_v49 = vrot.slane %v9885_v58, 1  ;;  %v3278_v57 = vpack.c.bf16 %v3271_v55, %v3271_v55  ;;  %v7805_v56 = vunpack.c.h.bf16 %v10007_v6  ;;  %v7929_v37 = vunpack.c.h.bf16 %v7927_v54 }
 0x26a   : > { %3516 = vst [vmem:[#allocation4 + $0x2c] sm:$0xf] %v3500_v26  ;;  %v6794_v26 = vor.u32 %v10029_v27, %v10027_v34  ;;  %v3643_v13 = vpack.c.bf16 %v3627_v28, %v3627_v28  ;;  %v6578_v6 = vor.u32 %v10037_v29, %v10035_v25  ;;  %v3533_v34 = vrot.slane %v9888_v43, 7  ;;  %v7313_v27 = vld [vmem:[%s8740_s21 + $0x2d8] sm:$0xff] }
 0x26b   : > { %v3272_v41 = vsel %vm666_vm0, %v10936_v49, %v3245_v38  ;;  %3739 = vst [vmem:[#allocation4 + $0x10] sm:$0xf] %v3723_v10  ;;  %v7322_v38 = vld [vmem:[%s8740_s21 + $0x320] sm:$0xff]  ;;  %v10055_v55 = vunpack.c.l.bf16 %v3278_v57  ;;  %v7305_v28 = vld [vmem:[%s8740_s21 + $0x298] sm:$0xff]  ;;  %v7836_v25 = vunpack.c.l.bf16 %v10045_v16 }
 0x26c   : > { %v3277_v63 = vpack.c.bf16 %v3272_v41, %v3272_v41  ;;  %3660 = vst [vmem:[#allocation4 + $0x30] sm:$0xf] %v3644_v19  ;;  %5169 = vmatpush.bf16.msrb.mxu3 %v7323_v4  ;;  %5218 = vmatpush.bf16.msrb.mxu0 %v7331_v21  ;;  %v7330_v10 = vld [vmem:[%s8740_s21 + $0x360] sm:$0xff]  ;;  %v3415_v4 = vsel %vm812_vm1, %v3389_v23, %v10806_v47  ;;  %v10938_v21 = vrot.slane %v9885_v58, 2 }
 0x26d   : > { %3740 = vst [vmem:[#allocation4 + $0x34] sm:$0xf] %v3724_v17  ;;  %5121 = vmatpush.bf16.msrb.mxu2 %v7314_v46  ;;  %5072 = vmatpush.bf16.msrb.mxu1 %v7306_v9  ;;  %v10809_v46 = vrot.slane %v9771_v52, 7  ;;  %v3342_v29 = vmul.f32 %v7805_v56, %v10055_v55  ;;  %v8145_v41 = vld [vmem:[#allocation5 + $0xc8] sm:$0xff]   ;;  %v3422_v57 = vpack.c.bf16 %v3415_v4, %v3415_v4 }
 0x26e   : > { %v3309_v54 = vunpack.c.l.bf16 %v3277_v63  ;;  %10937 = vst [vmem:[#allocation45_spill] sm:$0xff] %v10055_v55  ;;  %v3416_v17 = vsel %vm812_vm1, %v10938_v21, %v3389_v23  ;;  %v7321_v63 = vld [vmem:[%s8740_s21 + $0x318] sm:$0xff]  ;;  %v10939_v21 = vrot.slane %v9885_v58, 7 }
 0x26f   : > { %3659 = vst [vmem:[#allocation4 + $0xc] sm:$0xf] %v3643_v13  ;;  %v3421_v49 = vpack.c.bf16 %v3416_v17, %v3416_v17  ;;  %v7837_v13 = vunpack.c.h.bf16 %v10045_v16  ;;  %v3559_v23 = vsel %vm958_vm2, %v3533_v34, %v10809_v46  ;;  %v7329_v56 = vld [vmem:[%s8740_s21 + $0x358] sm:$0xff]  ;;  %v3358_v4 = vpack.c.bf16 %v3342_v29, %v3342_v29 }
 0x270   : > { %v3341_v9 = vmul.f32 %v7804_v51, %v3309_v54  ;;  %v3788_v19 = vmul.f32 %v7929_v37, %v3309_v54  ;;  %v3560_v47 = vsel %vm958_vm2, %v10939_v21, %v3533_v34  ;;  %v8152_v51 = vld [vmem:[#allocation5 + $0x108] sm:$0xff]   ;;  %5170 = vmatpush.bf16.msrb.mxu3 %v7322_v38  ;;  %5219 = vmatpush.bf16.msrb.mxu0 %v7330_v10  ;;  %v7312_v37 = vld [vmem:[%s8740_s21 + $0x2d0] sm:$0xff]  ;;  %v10084_v55 = vld [vmem:[#allocation4 + $0x4] sm:$0xf]  ;;  %v3454_v34 = vunpack.c.l.bf16 %v3422_v57 }
 0x271   : > { %v7304_v54 = vld [vmem:[%s8740_s21 + $0x290] sm:$0xff]  ;;  %v3453_v16 = vunpack.c.l.bf16 %v3421_v49  ;;  %5122 = vmatpush.bf16.msrb.mxu2 %v7313_v27  ;;  %5073 = vmatpush.bf16.msrb.mxu1 %v7305_v28  ;;  %v10086_v46 = vld [vmem:[#allocation4 + $0x24] sm:$0xf0]  ;;  %v3565_v38 = vpack.c.bf16 %v3560_v47, %v3560_v47  ;;  %v3566_v10 = vpack.c.bf16 %v3559_v23, %v3559_v23  ;;  %v7868_v21 = vunpack.c.l.bf16 %v8145_v41  ;;  %v10096_v28 = vld [vmem:[#allocation4 + $0x28] sm:$0xf0] }
 0x272   : > { %v3357_v17 = vpack.c.bf16 %v3341_v9, %v3341_v9  ;;  %v3804_v44 = vpack.c.bf16 %v3788_v19, %v3788_v19  ;;  %v10088_v31 = vld [vmem:[#allocation4 + $0x8] sm:$0xf]  ;;  %v10940_v9 = vor.u32 %v9958_v1, %v9956_v59  ;;  %v10941_v27 = vor.u32 %v10004_v32, %v10002_v50  ;;  %v7991_v49 = vld [vmem:[#allocation5 + $0x1c0] sm:$0xff]   ;;  %5063 = vmatmul.bf16.gmra.mxu3 %v6794_v26 }
 0x273   : > { %v3485_v29 = vmul.f32 %v7836_v25, %v3453_v16  ;;  %v7869_v19 = vunpack.c.h.bf16 %v8145_v41  ;;  %v7900_v36 = vunpack.c.l.bf16 %v8152_v51  ;;  %v7901_v57 = vunpack.c.h.bf16 %v8152_v51  ;;  %5033 = vmatmul.bf16.gmra.mxu0 %v6578_v6  ;;  %v7320_v47 = vld [vmem:[%s8740_s21 + $0x310] sm:$0xff]  ;;  %3374 = vst [vmem:[#allocation4 + $0x70] sm:$0xf] %v3358_v4  ;;  %v10104_v25 = vld [vmem:[#allocation4 + $0x10] sm:$0xf] }
 0x274   : > { %5043 = vmatmul.bf16.gmra.mxu1 %v10940_v9  ;;  %5053 = vmatmul.bf16.gmra.mxu2 %v10941_v27  ;;  %3373 = vst [vmem:[#allocation4 + $0x4c] sm:$0xf] %v3357_v17  ;;  %v7328_v23 = vld [vmem:[%s8740_s21 + $0x350] sm:$0xff]  ;;  %v3486_v59 = vmul.f32 %v7837_v13, %v3454_v34  ;;  %v3597_v1 = vunpack.c.l.bf16 %v3565_v38  ;;  %v10100_v9 = vunpack.c.l.bf16 %v3566_v10  ;;  %v7993_v50 = vunpack.c.h.bf16 %v7991_v49  ;;  %v10106_v41 = vld [vmem:[#allocation4 + $0x30] sm:$0xf0] }
 0x275   : > { %5171 = vmatpush.bf16.msrb.mxu3 %v7321_v63  ;;  %5220 = vmatpush.bf16.msrb.mxu0 %v7329_v56  ;;  %3820 = vst [vmem:[#allocation4 + $0x38] sm:$0xf] %v3804_v44  ;;  %v3501_v26 = vpack.c.bf16 %v3485_v29, %v3485_v29  ;;  %v3709_v6 = vmul.f32 %v7900_v36, %v9920_v40  ;;  %v7311_v13 = vld [vmem:[%s8740_s21 + $0x2c8] sm:$0xff]  ;;  %v3247_v4 = vrot.slane %v9774_v48, 1  ;;  %v10812_v10 = vrot.slane %v9836_v39, 1 }
 0x276   : > { %10942 = vst [vmem:[#allocation46_spill] sm:$0xff] %v10100_v9  ;;  %5123 = vmatpush.bf16.msrb.mxu2 %v7312_v37  ;;  %5074 = vmatpush.bf16.msrb.mxu1 %v7304_v54  ;;  %v7303_v51 = vld [vmem:[%s8740_s21 + $0x288] sm:$0xff]  ;;  %v3502_v63 = vpack.c.bf16 %v3486_v59, %v3486_v59  ;;  %v3629_v56 = vmul.f32 %v7868_v21, %v3597_v1  ;;  %v10943_v21 = vrot.slane %v9771_v52, 1  ;;  %v7367_v54 = vld [vmem:[#allocation4 + $0xc] sm:$0xf]  ;;  %v3536_v32 = vrot.slane %v9836_v39, 7 }
 0x277   : > { %3517 = vst [vmem:[#allocation4 + $0x50] sm:$0xf] %v3501_v26  ;;  %v3630_v16 = vmul.f32 %v7869_v19, %v10100_v9  ;;  %v4012_v44 = vmul.f32 %v7993_v50, %v3597_v1  ;;  %v3710_v34 = vmul.f32 %v7901_v57, %v9802_v2  ;;  %v3725_v36 = vpack.c.bf16 %v3709_v6, %v3709_v6  ;;  %v8132_v37 = vld [vmem:[#allocation5 + $0x50] sm:$0xff]  }
 0x278   : > { %3518 = vst [vmem:[#allocation4 + $0x74] sm:$0xf] %v3502_v63  ;;  %v3645_v38 = vpack.c.bf16 %v3629_v56, %v3629_v56  ;;  %v3270_v27 = vsel %vm666_vm0, %v10943_v21, %v3247_v4  ;;  %v10123_v29 = vld [vmem:[#allocation5 + $0x90] sm:$0xff]   ;;  %v7808_v6 = vunpack.c.l.bf16 %v8132_v37  ;;  %v3391_v63 = vrot.slane %v9774_v48, 2  ;;  %v7349_v56 = vld [vmem:[%s8740_s21 + $0x3f8] sm:$0xff] }
 0x279   : > { %5172 = vmatpush.bf16.msrb.mxu3 %v7320_v47  ;;  %5221 = vmatpush.bf16.msrb.mxu0 %v7328_v23  ;;  %v7319_v19 = vld [vmem:[%s8740_s21 + $0x308] sm:$0xff]  ;;  %v3646_v57 = vpack.c.bf16 %v3630_v16, %v3630_v16  ;;  %v4028_v59 = vpack.c.bf16 %v4012_v44, %v4012_v44  ;;  %v3726_v1 = vpack.c.bf16 %v3710_v34, %v3710_v34  ;;  %v7310_v50 = vld [vmem:[%s8740_s21 + $0x2c0] sm:$0xff]  ;;  %v7341_v16 = vld [vmem:[%s8740_s21 + $0x3b8] sm:$0xff]  ;;  %v7840_v34 = vunpack.c.l.bf16 %v10123_v29 }
 0x27a   : > { %v7327_v49 = vld [vmem:[%s8740_s21 + $0x348] sm:$0xff]  ;;  %3741 = vst [vmem:[#allocation4 + $0x58] sm:$0xf] %v3725_v36  ;;  %5124 = vmatpush.bf16.msrb.mxu2 %v7311_v13  ;;  %5075 = vmatpush.bf16.msrb.mxu1 %v7303_v51  ;;  %v7302_v26 = vld [vmem:[%s8740_s21 + $0x280] sm:$0xff]  ;;  %v3269_v47 = vsel %vm666_vm0, %v3247_v4, %v10812_v10  ;;  %v3279_v23 = vpack.c.bf16 %v3270_v27, %v3270_v27  ;;  %v7809_v13 = vunpack.c.h.bf16 %v8132_v37  ;;  %v10814_v51 = vrot.slane %v9836_v39, 2 }
 0x27b   : > { %3661 = vst [vmem:[#allocation4 + $0x54] sm:$0xf] %v3645_v38  ;;  %v3280_v44 = vpack.c.bf16 %v3269_v47, %v3269_v47  ;;  %v10138_v36 = vld [vmem:[#allocation5 + $0xd0] sm:$0xff]   ;;  %v10945_v27 = vrot.slane %v9771_v52, 2  ;;  %v7841_v37 = vunpack.c.h.bf16 %v10123_v29  ;;  %v3535_v47 = vrot.slane %v9774_v48, 7  ;;  %v7357_v29 = vld [vmem:[%s8740_s21 + $0x438] sm:$0xff] }
 0x27c   : > { %3662 = vst [vmem:[#allocation4 + $0x78] sm:$0xf] %v3646_v57  ;;  %v7318_v38 = vld [vmem:[%s8740_s21 + $0x300] sm:$0xff]  ;;  %v10141_v4 = vunpack.c.l.bf16 %v3279_v23  ;;  %v7872_v2 = vunpack.c.l.bf16 %v10138_v36 }
 0x27d   : > { %v6551_v21 = vld [vmem:[#allocation4 + $0x2c] sm:$0xf0]  ;;  %4044 = vst [vmem:[#allocation4 + $0x40] sm:$0xf] %v4028_v59  ;;  %v3414_v57 = vsel %vm812_vm1, %v10945_v27, %v3391_v63  ;;  %5173 = vmatpush.bf16.msrb.mxu3 %v7319_v19  ;;  %5222 = vmatpush.bf16.msrb.mxu0 %v7327_v49  ;;  %v10150_v17 = vunpack.c.l.bf16 %v3280_v44  ;;  %v3413_v59 = vsel %vm812_vm1, %v3391_v63, %v10814_v51  ;;  %v7365_v27 = vld [vmem:[%s8740_s21 + $0x478] sm:$0xff] }
 0x27e   : > { %10944 = vst [vmem:[#allocation47_spill] sm:$0xff] %v10141_v4  ;;  %v7326_v10 = vld [vmem:[%s8740_s21 + $0x340] sm:$0xff]  ;;  %v3423_v23 = vpack.c.bf16 %v3414_v57, %v3414_v57  ;;  %5125 = vmatpush.bf16.msrb.mxu2 %v7310_v50  ;;  %5076 = vmatpush.bf16.msrb.mxu1 %v7302_v26  ;;  %v3343_v19 = vmul.f32 %v7808_v6, %v10141_v4 }
 0x27f   : > { %3742 = vst [vmem:[#allocation4 + $0x7c] sm:$0xf] %v3726_v1  ;;  %v3424_v49 = vpack.c.bf16 %v3413_v59, %v3413_v59  ;;  %v10947_v1 = vrot.slane %v9771_v52, 7  ;;  %v3344_v50 = vmul.f32 %v7809_v13, %v10150_v17  ;;  %v3557_v6 = vsel %vm958_vm2, %v3535_v47, %v3536_v32  ;;  %v8153_v57 = vld [vmem:[#allocation5 + $0x110] sm:$0xff]   ;;  %v10170_v51 = vld [vmem:[#allocation4 + $0x4c] sm:$0xf] }
 0x280   : > { %10946 = vst [vmem:[#allocation48_spill] sm:$0xff] %v10150_v17  ;;  %v3455_v26 = vunpack.c.l.bf16 %v3423_v23  ;;  %v6554_v59 = vor.u32 %v7367_v54, %v6551_v21  ;;  %v3359_v9 = vpack.c.bf16 %v3343_v19, %v3343_v19  ;;  %v3568_v4 = vpack.c.bf16 %v3557_v6, %v3557_v6  ;;  %v7356_v13 = vld [vmem:[%s8740_s21 + $0x430] sm:$0xff]  ;;  %v10181_v54 = vld [vmem:[#allocation4 + $0x50] sm:$0xf]  ;;  %v10183_v21 = vld [vmem:[#allocation4 + $0x70] sm:$0xf0] }
 0x281   : > { %v3558_v44 = vsel %vm958_vm2, %v10947_v1, %v3535_v47  ;;  %v10172_v1 = vld [vmem:[#allocation4 + $0x6c] sm:$0xf0]  ;;  %5174 = vmatpush.bf16.msrb.mxu3 %v7318_v38  ;;  %5223 = vmatpush.bf16.msrb.mxu0 %v7326_v10  ;;  %v7340_v23 = vld [vmem:[%s8740_s21 + $0x3b0] sm:$0xff]  ;;  %v3360_v48 = vpack.c.bf16 %v3344_v50, %v3344_v50  ;;  %v7873_v47 = vunpack.c.h.bf16 %v10138_v36  ;;  %v7904_v10 = vunpack.c.l.bf16 %v8153_v57 }
 0x282   : > { %5314 = vmatpush.bf16.msra.mxu2 %v7349_v56  ;;  %5265 = vmatpush.bf16.msra.mxu1 %v7341_v16  ;;  %v3567_v63 = vpack.c.bf16 %v3558_v44, %v3558_v44  ;;  %v7348_v56 = vld [vmem:[%s8740_s21 + $0x3f0] sm:$0xff]  ;;  %v3456_v16 = vunpack.c.l.bf16 %v3424_v49  ;;  %v3487_v52 = vmul.f32 %v7840_v34, %v3455_v26  ;;  %3375 = vst [vmem:[#allocation4 + $0x94] sm:$0xf] %v3359_v9  ;;  %v10185_v49 = vunpack.c.l.bf16 %v3568_v4  ;;  %v7355_v6 = vld [vmem:[%s8740_s21 + $0x428] sm:$0xff] }
 0x283   : > { %v7364_v17 = vld [vmem:[%s8740_s21 + $0x470] sm:$0xff]  ;;  %v7905_v38 = vunpack.c.h.bf16 %v8153_v57  ;;  %v10948_v50 = vor.u32 %v10084_v55, %v10086_v46  ;;  %v10949_v34 = vor.u32 %v10096_v28, %v10088_v31  ;;  %3376 = vst [vmem:[#allocation4 + $0xb8] sm:$0xf] %v3360_v48  ;;  %v10950_v4 = vor.u32 %v10106_v41, %v10104_v25  ;;  %v7339_v41 = vld [vmem:[%s8740_s21 + $0x3a8] sm:$0xff] }
 0x284   : > { %v10179_v44 = vunpack.c.l.bf16 %v3567_v63  ;;  %v3488_v19 = vmul.f32 %v7841_v37, %v3456_v16  ;;  %5175 = vmatmul.bf16.vlgmr.msrb.gmra.mxu3 %v6554_v59  ;;  %v3632_v46 = vmul.f32 %v7873_v47, %v10185_v49  ;;  %v3711_v31 = vmul.f32 %v7904_v10, %v9804_v30  ;;  %v8133_v37 = vld [vmem:[#allocation5 + $0x58] sm:$0xff]  }
 0x285   : > { %5363 = vmatpush.bf16.msra.mxu3 %v7357_v29  ;;  %5412 = vmatpush.bf16.msra.mxu0 %v7365_v27  ;;  %v3503_v29 = vpack.c.bf16 %v3487_v52, %v3487_v52  ;;  %v3249_v28 = vrot.slane %v9839_v7, 1  ;;  %v3712_v25 = vmul.f32 %v7905_v38, %v9856_v42  ;;  %v7363_v63 = vld [vmem:[%s8740_s21 + $0x468] sm:$0xff]  ;;  %v10822_v57 = vrot.slane %v9777_v22, 1 }
 0x286   : > { %5077 = vmatmul.bf16.vlgmr.msrb.gmra.mxu1 %v10948_v50  ;;  %5126 = vmatmul.bf16.vlgmr.msrb.gmra.mxu2 %v10949_v34  ;;  %v3631_v9 = vmul.f32 %v7872_v2, %v10179_v44  ;;  %v3504_v55 = vpack.c.bf16 %v3488_v19, %v3488_v19  ;;  %v7347_v2 = vld [vmem:[%s8740_s21 + $0x3e8] sm:$0xff]  ;;  %v3648_v27 = vpack.c.bf16 %v3632_v46, %v3632_v46  ;;  %v7812_v47 = vunpack.c.l.bf16 %v8133_v37 }
 0x287   : > { %5224 = vmatmul.bf16.vlgmr.msrb.gmra.mxu0 %v10950_v4  ;;  %5315 = vmatpush.bf16.msra.mxu2 %v7348_v56  ;;  %3519 = vst [vmem:[#allocation4 + $0x98] sm:$0xf] %v3503_v29  ;;  %v3727_v26 = vpack.c.bf16 %v3711_v31, %v3711_v31  ;;  %v8140_v59 = vld [vmem:[#allocation5 + $0x98] sm:$0xff]   ;;  %v3728_v16 = vpack.c.bf16 %v3712_v25, %v3712_v25  ;;  %v10951_v56 = vrot.slane %v9836_v39, 1  ;;  %v3393_v19 = vrot.slane %v9839_v7, 2 }
 0x288   : > { %5266 = vmatpush.bf16.msra.mxu1 %v7340_v23  ;;  %v3647_v48 = vpack.c.bf16 %v3631_v9, %v3631_v9  ;;  %3520 = vst [vmem:[#allocation4 + $0xbc] sm:$0xf] %v3504_v55  ;;  %v7813_v10 = vunpack.c.h.bf16 %v8133_v37  ;;  %v10821_v38 = vrot.slane %v9777_v22, 2  ;;  %v10952_v34 = vrot.slane %v9836_v39, 2  ;;  %v8147_v37 = vld [vmem:[#allocation5 + $0xd8] sm:$0xff]  }
 0x289   : > { %5364 = vmatpush.bf16.msra.mxu3 %v7356_v13  ;;  %5413 = vmatpush.bf16.msra.mxu0 %v7364_v17  ;;  %v3268_v23 = vsel %vm666_vm0, %v10951_v56, %v3249_v28  ;;  %3664 = vst [vmem:[#allocation4 + $0xc0] sm:$0xf] %v3648_v27  ;;  %v3267_v17 = vsel %vm666_vm0, %v3249_v28, %v10822_v57  ;;  %v7844_v9 = vunpack.c.l.bf16 %v8140_v59  ;;  %v3537_v4 = vrot.slane %v9839_v7, 7 }
 0x28a   : > { %3663 = vst [vmem:[#allocation4 + $0x9c] sm:$0xf] %v3647_v48  ;;  %v3281_v13 = vpack.c.bf16 %v3268_v23, %v3268_v23  ;;  %v3282_v50 = vpack.c.bf16 %v3267_v17, %v3267_v17  ;;  %v3412_v29 = vsel %vm812_vm1, %v10952_v34, %v3393_v19  ;;  %v3411_v46 = vsel %vm812_vm1, %v3393_v19, %v10821_v38  ;;  %v7376_v48 = vld [vmem:[#allocation4 + $0x54] sm:$0xf]  ;;  %v6593_v23 = vld [vmem:[#allocation4 + $0x58] sm:$0xf] }
 0x28b   : > { %5316 = vmatpush.bf16.msra.mxu2 %v7347_v2  ;;  %3743 = vst [vmem:[#allocation4 + $0xa0] sm:$0xf] %v3727_v26  ;;  %v3425_v31 = vpack.c.bf16 %v3412_v29, %v3412_v29  ;;  %v10823_v28 = vrot.slane %v9777_v22, 7  ;;  %v6587_v2 = vld [vmem:[#allocation4 + $0x74] sm:$0xf0]  ;;  %v7845_v27 = vunpack.c.h.bf16 %v8140_v59  ;;  %v3556_v26 = vsel %vm958_vm2, %v3536_v32, %v3537_v4 }
 0x28c   : > { %5267 = vmatpush.bf16.msra.mxu1 %v7339_v41  ;;  %3744 = vst [vmem:[#allocation4 + $0xc4] sm:$0xf] %v3728_v16  ;;  %v10225_v55 = vunpack.c.l.bf16 %v3281_v13  ;;  %v10232_v25 = vunpack.c.l.bf16 %v3282_v50  ;;  %v3426_v41 = vpack.c.bf16 %v3411_v46, %v3411_v46  ;;  %v3569_v56 = vpack.c.bf16 %v3556_v26, %v3556_v26  ;;  %v7381_v19 = vld [vmem:[#allocation4 + $0x78] sm:$0xf0] }
 0x28d   : > { %5365 = vmatpush.bf16.msra.mxu3 %v7355_v6  ;;  %5414 = vmatpush.bf16.msra.mxu0 %v7363_v63  ;;  %v3457_v63 = vunpack.c.l.bf16 %v3425_v31  ;;  %v3555_v16 = vsel %vm958_vm2, %v3537_v4, %v10823_v28  ;;  %v7876_v50 = vunpack.c.l.bf16 %v8147_v37  ;;  %v8154_v34 = vld [vmem:[#allocation5 + $0x118] sm:$0xff]   ;;  %v6590_v29 = vor.u32 %v7376_v48, %v6587_v2 }
 0x28e   : > { %v3345_v6 = vmul.f32 %v7812_v47, %v10225_v55  ;;  %v3346_v17 = vmul.f32 %v7813_v10, %v10232_v25  ;;  %v3458_v13 = vunpack.c.l.bf16 %v3426_v41  ;;  %v3570_v59 = vpack.c.bf16 %v3555_v16, %v3555_v16 }
 0x28f   : > { %v3489_v32 = vmul.f32 %v7844_v9, %v3457_v63  ;;  %v7877_v38 = vunpack.c.h.bf16 %v8147_v37  ;;  %v10244_v57 = vunpack.c.l.bf16 %v3569_v56  ;;  %v6594_v4 = vor.u32 %v7381_v19, %v6593_v23  ;;  %v7346_v23 = vld [vmem:[%s8740_s21 + $0x3e0] sm:$0xff] }
 0x290   : > { %v3361_v46 = vpack.c.bf16 %v3345_v6, %v3345_v6  ;;  %v3362_v47 = vpack.c.bf16 %v3346_v17, %v3346_v17  ;;  %v3490_v31 = vmul.f32 %v7845_v27, %v3458_v13  ;;  %v10246_v52 = vunpack.c.l.bf16 %v3570_v59  ;;  %v7338_v17 = vld [vmem:[%s8740_s21 + $0x3a0] sm:$0xff]  ;;  %5317 = vmatpush.bf16.msra.mxu2 %v7346_v23  ;;  %v8155_v23 = vld [vmem:[#allocation5 + $0x120] sm:$0xff]  }
 0x291   : > { %v3505_v26 = vpack.c.bf16 %v3489_v32, %v3489_v32  ;;  %v7908_v28 = vunpack.c.l.bf16 %v8154_v34  ;;  %v7909_v36 = vunpack.c.h.bf16 %v8154_v34  ;;  %v3633_v41 = vmul.f32 %v7876_v50, %v10244_v57  ;;  %v7362_v13 = vld [vmem:[%s8740_s21 + $0x460] sm:$0xff]  ;;  %5268 = vmatpush.bf16.msra.mxu1 %v7338_v17 }
 0x292   : > { %10953 = vst [vmem:[#allocation49_spill] sm:$0xff] %v10246_v52  ;;  %v3506_v10 = vpack.c.bf16 %v3490_v31, %v3490_v31  ;;  %v3634_v48 = vmul.f32 %v7877_v38, %v10246_v52  ;;  %v3251_v9 = vrot.slane %v9780_v60, 1  ;;  %v10825_v27 = vrot.slane %v9843_v20, 1  ;;  %5415 = vmatpush.bf16.msra.mxu0 %v7362_v13 }
 0x293   : > { %3377 = vst [vmem:[#allocation4 + $0xdc] sm:$0xf] %v3361_v46  ;;  %v3713_v37 = vmul.f32 %v7908_v28, %v9858_v53  ;;  %v3714_v2 = vmul.f32 %v7909_v36, %v9806_v11  ;;  %v10954_v6 = vor.u32 %v10170_v51, %v10172_v1  ;;  %v10955_v63 = vor.u32 %v10183_v21, %v10181_v54  ;;  %v8134_v36 = vld [vmem:[#allocation5 + $0x60] sm:$0xff]   ;;  %v7354_v1 = vld [vmem:[%s8740_s21 + $0x420] sm:$0xff] }
 0x294   : > { %3378 = vst [vmem:[#allocation4 + $0x100] sm:$0xf] %v3362_v47  ;;  %v3649_v38 = vpack.c.bf16 %v3633_v41, %v3633_v41  ;;  %v3650_v16 = vpack.c.bf16 %v3634_v48, %v3634_v48  ;;  %v10956_v56 = vrot.slane %v9777_v22, 1  ;;  %5180 = vmatmul.bf16.gmra.mxu3 %v6590_v29  ;;  %v3265_v54 = vsel %vm666_vm0, %v3251_v9, %v10825_v27  ;;  %v8141_v29 = vld [vmem:[#allocation5 + $0xa0] sm:$0xff]  }
 0x295   : > { %3521 = vst [vmem:[#allocation4 + $0xe0] sm:$0xf] %v3505_v26  ;;  %v3729_v19 = vpack.c.bf16 %v3713_v37, %v3713_v37  ;;  %v3730_v51 = vpack.c.bf16 %v3714_v2, %v3714_v2  ;;  %v7816_v21 = vunpack.c.l.bf16 %v8134_v36  ;;  %v3284_v50 = vpack.c.bf16 %v3265_v54, %v3265_v54  ;;  %5366 = vmatpush.bf16.msra.mxu3 %v7354_v1  ;;  %v8148_v48 = vld [vmem:[#allocation5 + $0xe0] sm:$0xff]   ;;  %v7389_v1 = vld [vmem:[#allocation4 + $0xb8] sm:$0xf0] }
 0x296   : > { %5082 = vmatmul.bf16.gmra.mxu1 %v10954_v6  ;;  %5131 = vmatmul.bf16.gmra.mxu2 %v10955_v63  ;;  %3522 = vst [vmem:[#allocation4 + $0x104] sm:$0xf] %v3506_v10  ;;  %v3266_v28 = vsel %vm666_vm0, %v10956_v56, %v3251_v9  ;;  %v7817_v34 = vunpack.c.h.bf16 %v8134_v36  ;;  %v3395_v46 = vrot.slane %v9780_v60, 2  ;;  %v10824_v32 = vrot.slane %v9843_v20, 2  ;;  %v7390_v11 = vld [vmem:[#allocation4 + $0xc0] sm:$0xf0] }
 0x297   : > { %5229 = vmatmul.bf16.gmra.mxu0 %v6594_v4  ;;  %3665 = vst [vmem:[#allocation4 + $0xe4] sm:$0xf] %v3649_v38  ;;  %v3283_v59 = vpack.c.bf16 %v3266_v28, %v3266_v28  ;;  %v3539_v47 = vrot.slane %v9780_v60, 7  ;;  %v10277_v4 = vunpack.c.l.bf16 %v3284_v50  ;;  %v10959_v26 = vrot.slane %v9777_v22, 2  ;;  %v7384_v38 = vld [vmem:[#allocation4 + $0x94] sm:$0xf] }
 0x298   : > { %3666 = vst [vmem:[#allocation4 + $0x108] sm:$0xf] %v3650_v16  ;;  %v10829_v41 = vrot.slane %v9843_v20, 7  ;;  %v3409_v9 = vsel %vm812_vm1, %v3395_v46, %v10824_v32  ;;  %v7848_v2 = vunpack.c.l.bf16 %v8141_v29  ;;  %v10960_v6 = vrot.slane %v9777_v22, 7  ;;  %v7385_v50 = vld [vmem:[#allocation4 + $0x9c] sm:$0xf] }
 0x299   : > { %3745 = vst [vmem:[#allocation4 + $0xe8] sm:$0xf] %v3729_v19  ;;  %v10275_v31 = vunpack.c.l.bf16 %v3283_v59  ;;  %v3410_v10 = vsel %vm812_vm1, %v10959_v26, %v3395_v46  ;;  %v3348_v56 = vmul.f32 %v7817_v34, %v10277_v4  ;;  %v3428_v28 = vpack.c.bf16 %v3409_v9, %v3409_v9  ;;  %v6615_v19 = vld [vmem:[#allocation4 + $0xb4] sm:$0xf0]  ;;  %v6623_v46 = vld [vmem:[#allocation4 + $0xbc] sm:$0xf0] }
 0x29a   : > { %10958 = vst [vmem:[#allocation51_spill] sm:$0xff] %v10277_v4  ;;  %v3427_v37 = vpack.c.bf16 %v3410_v10, %v3410_v10  ;;  %v3554_v63 = vsel %vm958_vm2, %v10960_v6, %v3539_v47  ;;  %v7849_v36 = vunpack.c.h.bf16 %v8141_v29  ;;  %v3553_v54 = vsel %vm958_vm2, %v3539_v47, %v10829_v41  ;;  %v6629_v4 = vld [vmem:[#allocation4 + $0xa0] sm:$0xf] }
 0x29b   : > { %10957 = vst [vmem:[#allocation50_spill] sm:$0xff] %v10275_v31  ;;  %v3347_v16 = vmul.f32 %v7816_v21, %v10275_v31  ;;  %v3571_v13 = vpack.c.bf16 %v3554_v63, %v3554_v63  ;;  %v7880_v59 = vunpack.c.l.bf16 %v8148_v48  ;;  %v3364_v21 = vpack.c.bf16 %v3348_v56, %v3348_v56 }
 0x29c   : > { %3746 = vst [vmem:[#allocation4 + $0x10c] sm:$0xf] %v3730_v51  ;;  %v6621_v51 = vld [vmem:[#allocation4 + $0x98] sm:$0xf]  ;;  %v3459_v17 = vunpack.c.l.bf16 %v3427_v37  ;;  %v3460_v10 = vunpack.c.l.bf16 %v3428_v28  ;;  %v7881_v34 = vunpack.c.h.bf16 %v8148_v48  ;;  %v3572_v29 = vpack.c.bf16 %v3553_v54, %v3553_v54 }
 0x29d   : > { %v3363_v26 = vpack.c.bf16 %v3347_v16, %v3347_v16  ;;  %v10298_v6 = vunpack.c.l.bf16 %v3571_v13  ;;  %v7912_v32 = vunpack.c.l.bf16 %v8155_v23  ;;  %v6618_v27 = vor.u32 %v7384_v38, %v6615_v19  ;;  %3380 = vst [vmem:[#allocation4 + $0x148] sm:$0xf] %v3364_v21 }
 0x29e   : > { %v3491_v9 = vmul.f32 %v7848_v2, %v3459_v17  ;;  %v6622_v37 = vor.u32 %v7389_v1, %v6621_v51  ;;  %v3492_v52 = vmul.f32 %v7849_v36, %v3460_v10  ;;  %v7913_v47 = vunpack.c.h.bf16 %v8155_v23 }
 0x29f   : > { %3379 = vst [vmem:[#allocation4 + $0x124] sm:$0xf] %v3363_v26  ;;  %v6626_v63 = vor.u32 %v7385_v50, %v6623_v46  ;;  %v10300_v31 = vunpack.c.l.bf16 %v3572_v29  ;;  %v3635_v16 = vmul.f32 %v7880_v59, %v10298_v6  ;;  %v3715_v2 = vmul.f32 %v7912_v32, %v9808_v12  ;;  %v8135_v59 = vld [vmem:[#allocation5 + $0x68] sm:$0xff]  }
 0x2a0   : > { %v3507_v41 = vpack.c.bf16 %v3491_v9, %v3491_v9  ;;  %v3508_v48 = vpack.c.bf16 %v3492_v52, %v3492_v52  ;;  %v3716_v56 = vmul.f32 %v7913_v47, %v9862_v15  ;;  %v3253_v38 = vrot.slane %v9851_v0, 1  ;;  %v8142_v26 = vld [vmem:[#allocation5 + $0xa8] sm:$0xff]  }
 0x2a1   : > { %v6630_v28 = vor.u32 %v7390_v11, %v6629_v4  ;;  %v3636_v19 = vmul.f32 %v7881_v34, %v10300_v31  ;;  %v3651_v36 = vpack.c.bf16 %v3635_v16, %v3635_v16  ;;  %v3254_v23 = vrot.slane %v9783_v45, 1  ;;  %v7353_v34 = vld [vmem:[%s8740_s21 + $0x418] sm:$0xff] }
 0x2a2   : > { %3523 = vst [vmem:[#allocation4 + $0x128] sm:$0xf] %v3507_v41  ;;  %v3731_v51 = vpack.c.bf16 %v3715_v2, %v3715_v2  ;;  %v3732_v1 = vpack.c.bf16 %v3716_v56, %v3716_v56  ;;  %v10961_v17 = vrot.slane %v9843_v20, 1  ;;  %v3397_v32 = vrot.slane %v9851_v0, 2  ;;  %v7337_v16 = vld [vmem:[%s8740_s21 + $0x398] sm:$0xff]  ;;  %5367 = vmatpush.bf16.msra.mxu3 %v7353_v34 }
 0x2a3   : > { %3524 = vst [vmem:[#allocation4 + $0x14c] sm:$0xf] %v3508_v48  ;;  %v3652_v54 = vpack.c.bf16 %v3636_v19, %v3636_v19  ;;  %v3263_v11 = vsel %vm666_vm0, %v3253_v38, %v3254_v23  ;;  %v3398_v41 = vrot.slane %v9783_v45, 2  ;;  %v10962_v50 = vrot.slane %v9843_v20, 2  ;;  %v7361_v48 = vld [vmem:[%s8740_s21 + $0x458] sm:$0xff]  ;;  %5269 = vmatpush.bf16.msra.mxu1 %v7337_v16 }
 0x2a4   : > { %v3264_v52 = vsel %vm666_vm0, %v10961_v17, %v3253_v38  ;;  %3667 = vst [vmem:[#allocation4 + $0x12c] sm:$0xf] %v3651_v36  ;;  %v3286_v13 = vpack.c.bf16 %v3263_v11, %v3263_v11  ;;  %v3541_v21 = vrot.slane %v9851_v0, 7  ;;  %v10831_v10 = vrot.slane %v9783_v45, 7  ;;  %5185 = vmatmul.bf16.gmra.mxu3 %v6626_v63  ;;  %5416 = vmatpush.bf16.msra.mxu0 %v7361_v48  ;;  %v8156_v11 = vld [vmem:[#allocation5 + $0x128] sm:$0xff]  }
 0x2a5   : > { %v3285_v4 = vpack.c.bf16 %v3264_v52, %v3264_v52  ;;  %3747 = vst [vmem:[#allocation4 + $0x130] sm:$0xf] %v3731_v51  ;;  %v3408_v46 = vsel %vm812_vm1, %v10962_v50, %v3397_v32  ;;  %v7820_v9 = vunpack.c.l.bf16 %v8135_v59  ;;  %v7821_v29 = vunpack.c.h.bf16 %v8135_v59  ;;  %v8149_v51 = vld [vmem:[#allocation5 + $0xe8] sm:$0xff]   ;;  %v7398_v16 = vld [vmem:[#allocation4 + $0x100] sm:$0xf0] }
 0x2a6   : > { %5087 = vmatmul.bf16.gmra.mxu1 %v6618_v27  ;;  %5136 = vmatmul.bf16.gmra.mxu2 %v6622_v37  ;;  %3668 = vst [vmem:[#allocation4 + $0x150] sm:$0xf] %v3652_v54  ;;  %v7345_v27 = vld [vmem:[%s8740_s21 + $0x3d8] sm:$0xff]  ;;  %v3407_v47 = vsel %vm812_vm1, %v3397_v32, %v3398_v41  ;;  %v10334_v2 = vunpack.c.l.bf16 %v3286_v13  ;;  %v3429_v56 = vpack.c.bf16 %v3408_v46, %v3408_v46  ;;  %v7852_v38 = vunpack.c.l.bf16 %v8142_v26  ;;  %v7393_v46 = vld [vmem:[#allocation4 + $0xdc] sm:$0xf] }
 0x2a7   : > { %5234 = vmatmul.bf16.gmra.mxu0 %v6630_v28  ;;  %v10326_v37 = vunpack.c.l.bf16 %v3285_v4  ;;  %3748 = vst [vmem:[#allocation4 + $0x154] sm:$0xf] %v3732_v1  ;;  %v3430_v63 = vpack.c.bf16 %v3407_v47, %v3407_v47  ;;  %5318 = vmatpush.bf16.msra.mxu2 %v7345_v27  ;;  %v7853_v19 = vunpack.c.h.bf16 %v8142_v26  ;;  %v3551_v36 = vsel %vm958_vm2, %v3541_v21, %v10831_v10  ;;  %v6651_v26 = vld [vmem:[#allocation4 + $0xfc] sm:$0xf0] }
 0x2a8   : > { %v3350_v1 = vmul.f32 %v7821_v29, %v10334_v2  ;;  %v3461_v17 = vunpack.c.l.bf16 %v3429_v56  ;;  %v10963_v32 = vrot.slane %v9843_v20, 7  ;;  %v3574_v59 = vpack.c.bf16 %v3551_v36, %v3551_v36  ;;  %v6657_v47 = vld [vmem:[#allocation4 + $0xe0] sm:$0xf] }
 0x2a9   : > { %v3349_v28 = vmul.f32 %v7820_v9, %v10326_v37  ;;  %v3462_v52 = vunpack.c.l.bf16 %v3430_v63  ;;  %v7884_v50 = vunpack.c.l.bf16 %v8149_v51  ;;  %v7885_v29 = vunpack.c.h.bf16 %v8149_v51  ;;  %v6665_v51 = vld [vmem:[#allocation4 + $0xe8] sm:$0xf] }
 0x2aa   : > { %v3552_v54 = vsel %vm958_vm2, %v10963_v32, %v3541_v21  ;;  %v3366_v27 = vpack.c.bf16 %v3350_v1, %v3350_v1  ;;  %v3493_v34 = vmul.f32 %v7852_v38, %v3461_v17  ;;  %v10348_v56 = vunpack.c.l.bf16 %v3574_v59  ;;  %v7394_v21 = vld [vmem:[#allocation4 + $0xe4] sm:$0xf]  ;;  %v6659_v32 = vld [vmem:[#allocation4 + $0x104] sm:$0xf0] }
 0x2ab   : > { %v3365_v4 = vpack.c.bf16 %v3349_v28, %v3349_v28  ;;  %v3573_v13 = vpack.c.bf16 %v3552_v54, %v3552_v54  ;;  %v3494_v9 = vmul.f32 %v7853_v19, %v3462_v52  ;;  %v7916_v63 = vunpack.c.l.bf16 %v8156_v11  ;;  %v7399_v52 = vld [vmem:[#allocation4 + $0x108] sm:$0xf0] }
 0x2ac   : > { %3382 = vst [vmem:[#allocation4 + $0x190] sm:$0xf] %v3366_v27  ;;  %v3509_v28 = vpack.c.bf16 %v3493_v34, %v3493_v34  ;;  %v7917_v54 = vunpack.c.h.bf16 %v8156_v11  ;;  %v3638_v38 = vmul.f32 %v7885_v29, %v10348_v56  ;;  %v6654_v1 = vor.u32 %v7393_v46, %v6651_v26 }
 0x2ad   : > { %3381 = vst [vmem:[#allocation4 + $0x16c] sm:$0xf] %v3365_v4  ;;  %v10346_v48 = vunpack.c.l.bf16 %v3573_v13  ;;  %v3510_v36 = vpack.c.bf16 %v3494_v9, %v3494_v9  ;;  %v3717_v19 = vmul.f32 %v7916_v63, %v9873_v24  ;;  %v6658_v17 = vor.u32 %v7398_v16, %v6657_v47 }
 0x2ae   : > { %3525 = vst [vmem:[#allocation4 + $0x170] sm:$0xf] %v3509_v28  ;;  %v3718_v4 = vmul.f32 %v7917_v54, %v9815_v61  ;;  %v6662_v13 = vor.u32 %v7394_v21, %v6659_v32  ;;  %v3654_v27 = vpack.c.bf16 %v3638_v38, %v3638_v38  ;;  %v3255_v11 = vrot.slane %v9786_v3, 1 }
 0x2af   : > { %v3637_v10 = vmul.f32 %v7884_v50, %v10346_v48  ;;  %3526 = vst [vmem:[#allocation4 + $0x194] sm:$0xf] %v3510_v36  ;;  %v3733_v34 = vpack.c.bf16 %v3717_v19, %v3717_v19  ;;  %v10834_v50 = vrot.slane %v9865_v33, 1  ;;  %v3399_v29 = vrot.slane %v9786_v3, 2  ;;  %v8143_v19 = vld [vmem:[#allocation5 + $0xb0] sm:$0xff]  }
 0x2b0   : > { %v3734_v9 = vpack.c.bf16 %v3718_v4, %v3718_v4  ;;  %v6666_v63 = vor.u32 %v7399_v52, %v6665_v51  ;;  %v10833_v46 = vrot.slane %v9865_v33, 2  ;;  %v3543_v26 = vrot.slane %v9786_v3, 7  ;;  %3670 = vst [vmem:[#allocation4 + $0x198] sm:$0xf] %v3654_v27  ;;  %v8150_v51 = vld [vmem:[#allocation5 + $0xf0] sm:$0xff]   ;;  %v7344_v52 = vld [vmem:[%s8740_s21 + $0x3d0] sm:$0xff] }
 0x2b1   : > { %v3653_v59 = vpack.c.bf16 %v3637_v10, %v3637_v10  ;;  %v10832_v47 = vrot.slane %v9865_v33, 7  ;;  %v3261_v10 = vsel %vm666_vm0, %v3255_v11, %v10834_v50  ;;  %v3262_v16 = vsel %vm666_vm0, %v3254_v23, %v3255_v11  ;;  %3749 = vst [vmem:[#allocation4 + $0x178] sm:$0xf] %v3733_v34  ;;  %v8136_v23 = vld [vmem:[#allocation5 + $0x70] sm:$0xff]   ;;  %v7352_v4 = vld [vmem:[%s8740_s21 + $0x410] sm:$0xff]  ;;  %5319 = vmatpush.bf16.msra.mxu2 %v7344_v52 }
 0x2b2   : > { %v3406_v21 = vsel %vm812_vm1, %v3398_v41, %v3399_v29  ;;  %v3287_v32 = vpack.c.bf16 %v3262_v16, %v3262_v16  ;;  %v3288_v28 = vpack.c.bf16 %v3261_v10, %v3261_v10  ;;  %v3405_v36 = vsel %vm812_vm1, %v3399_v29, %v10833_v46  ;;  %3750 = vst [vmem:[#allocation4 + $0x19c] sm:$0xf] %v3734_v9  ;;  %v7336_v34 = vld [vmem:[%s8740_s21 + $0x390] sm:$0xff] }
 0x2b3   : > { %3669 = vst [vmem:[#allocation4 + $0x174] sm:$0xf] %v3653_v59  ;;  %v3431_v54 = vpack.c.bf16 %v3406_v21, %v3406_v21  ;;  %v3432_v38 = vpack.c.bf16 %v3405_v36, %v3405_v36  ;;  %v3549_v41 = vsel %vm958_vm2, %v3543_v26, %v10832_v47  ;;  %v7824_v59 = vunpack.c.l.bf16 %v8136_v23  ;;  %v7360_v9 = vld [vmem:[%s8740_s21 + $0x450] sm:$0xff]  ;;  %5368 = vmatpush.bf16.msra.mxu3 %v7352_v4  ;;  %v8157_v36 = vld [vmem:[#allocation5 + $0x130] sm:$0xff]  }
 0x2b4   : > { %5190 = vmatmul.bf16.gmra.mxu3 %v6662_v13  ;;  %v7825_v27 = vunpack.c.h.bf16 %v8136_v23  ;;  %v7856_v11 = vunpack.c.l.bf16 %v8143_v19  ;;  %v7857_v29 = vunpack.c.h.bf16 %v8143_v19  ;;  %5270 = vmatpush.bf16.msra.mxu1 %v7336_v34  ;;  %v7889_v19 = vunpack.c.h.bf16 %v8150_v51 }
 0x2b5   : > { %v3463_v10 = vunpack.c.l.bf16 %v3431_v54  ;;  %v3464_v16 = vunpack.c.l.bf16 %v3432_v38  ;;  %5417 = vmatpush.bf16.msra.mxu0 %v7360_v9  ;;  %v3576_v4 = vpack.c.bf16 %v3549_v41, %v3549_v41  ;;  %v7920_v50 = vunpack.c.l.bf16 %v8157_v36 }
 0x2b6   : > { %5092 = vmatmul.bf16.gmra.mxu1 %v6654_v1  ;;  %5141 = vmatmul.bf16.gmra.mxu2 %v6658_v17  ;;  %v10382_v1 = vunpack.c.l.bf16 %v3287_v32  ;;  %v10384_v17 = vunpack.c.l.bf16 %v3288_v28  ;;  %v10965_v28 = vrot.slane %v9783_v45, 7 }
 0x2b7   : > { %5239 = vmatmul.bf16.gmra.mxu0 %v6666_v63  ;;  %v7888_v63 = vunpack.c.l.bf16 %v8150_v51  ;;  %v3495_v32 = vmul.f32 %v7856_v11, %v3463_v10  ;;  %v3496_v23 = vmul.f32 %v7857_v29, %v3464_v16  ;;  %v10396_v9 = vunpack.c.l.bf16 %v3576_v4  ;;  %v6693_v29 = vld [vmem:[#allocation4 + $0x128] sm:$0xf]  ;;  %v7407_v10 = vld [vmem:[#allocation4 + $0x148] sm:$0xf0]  ;;  %v6701_v16 = vld [vmem:[#allocation4 + $0x130] sm:$0xf] }
 0x2b8   : > { %10964 = vst [vmem:[#allocation52_spill] sm:$0xff] %v10384_v17  ;;  %v3351_v21 = vmul.f32 %v7824_v59, %v10382_v1  ;;  %v3352_v13 = vmul.f32 %v7825_v27, %v10384_v17  ;;  %v3550_v47 = vsel %vm958_vm2, %v10965_v28, %v3543_v26  ;;  %v7402_v27 = vld [vmem:[#allocation4 + $0x124] sm:$0xf]  ;;  %v6687_v17 = vld [vmem:[#allocation4 + $0x144] sm:$0xf0]  ;;  %v7921_v11 = vunpack.c.h.bf16 %v8157_v36 }
 0x2b9   : > { %v3575_v52 = vpack.c.bf16 %v3550_v47, %v3550_v47  ;;  %v3511_v46 = vpack.c.bf16 %v3495_v32, %v3495_v32  ;;  %v3512_v59 = vpack.c.bf16 %v3496_v23, %v3496_v23  ;;  %10966 = vst [vmem:[#allocation53_spill] sm:$0xff] %v10396_v9  ;;  %v3719_v26 = vmul.f32 %v7920_v50, %v9819_v14  ;;  %v7403_v51 = vld [vmem:[#allocation4 + $0x12c] sm:$0xf]  ;;  %v7408_v32 = vld [vmem:[#allocation4 + $0x150] sm:$0xf0] }
 0x2ba   : > { %v3367_v54 = vpack.c.bf16 %v3351_v21, %v3351_v21  ;;  %v3368_v38 = vpack.c.bf16 %v3352_v13, %v3352_v13  ;;  %v3640_v41 = vmul.f32 %v7889_v19, %v10396_v9  ;;  %v3720_v21 = vmul.f32 %v7921_v11, %v9895_v35  ;;  %v6695_v13 = vld [vmem:[#allocation4 + $0x14c] sm:$0xf0] }
 0x2bb   : > { %v10394_v34 = vunpack.c.l.bf16 %v3575_v52  ;;  %3527 = vst [vmem:[#allocation4 + $0x1b8] sm:$0xf] %v3511_v46  ;;  %v3735_v23 = vpack.c.bf16 %v3719_v26, %v3719_v26  ;;  %v6690_v28 = vor.u32 %v7402_v27, %v6687_v17  ;;  %v3257_v50 = vrot.slane %v9868_v62, 1 }
 0x2bc   : > { %3383 = vst [vmem:[#allocation4 + $0x1b4] sm:$0xf] %v3367_v54  ;;  %v3656_v54 = vpack.c.bf16 %v3640_v41, %v3640_v41  ;;  %v3736_v52 = vpack.c.bf16 %v3720_v21, %v3720_v21  ;;  %v3401_v46 = vrot.slane %v9868_v62, 2  ;;  %v6698_v4 = vor.u32 %v7403_v51, %v6695_v13  ;;  %v8137_v13 = vld [vmem:[#allocation5 + $0x78] sm:$0xff]  }
 0x2bd   : > { %3384 = vst [vmem:[#allocation4 + $0x1d8] sm:$0xf] %v3368_v38  ;;  %v3639_v47 = vmul.f32 %v7888_v63, %v10394_v34  ;;  %v6694_v38 = vor.u32 %v7407_v10, %v6693_v29  ;;  %v3545_v63 = vrot.slane %v9868_v62, 7  ;;  %v6702_v19 = vor.u32 %v7408_v32, %v6701_v16  ;;  %v8144_v32 = vld [vmem:[#allocation5 + $0xb8] sm:$0xff]  }
 0x2be   : > { %3528 = vst [vmem:[#allocation4 + $0x1dc] sm:$0xf] %v3512_v59  ;;  %v10967_v11 = vrot.slane %v9822_v18, 1  ;;  %v10968_v59 = vrot.slane %v9865_v33, 1  ;;  %v10969_v29 = vrot.slane %v9822_v18, 2  ;;  %v10970_v26 = vrot.slane %v9865_v33, 2 }
 0x2bf   : > { %v3655_v36 = vpack.c.bf16 %v3639_v47, %v3639_v47  ;;  %3751 = vst [vmem:[#allocation4 + $0x1c0] sm:$0xf] %v3735_v23  ;;  %v10971_v23 = vrot.slane %v9822_v18, 7 }
 0x2c0   : > { %3672 = vst [vmem:[#allocation4 + $0x1e0] sm:$0xf] %v3656_v54  ;;  %v3259_v17 = vsel %vm666_vm0, %v3257_v50, %v10967_v11  ;;  %v3260_v27 = vsel %vm666_vm0, %v10968_v59, %v3257_v50  ;;  %v3403_v10 = vsel %vm812_vm1, %v3401_v46, %v10969_v29  ;;  %v3404_v51 = vsel %vm812_vm1, %v10970_v26, %v3401_v46  ;;  %v7351_v46 = vld [vmem:[%s8740_s21 + $0x408] sm:$0xff] }
 0x2c1   : > { %3671 = vst [vmem:[#allocation4 + $0x1bc] sm:$0xf] %v3655_v36  ;;  %v3289_v16 = vpack.c.bf16 %v3260_v27, %v3260_v27  ;;  %v3290_v47 = vpack.c.bf16 %v3259_v17, %v3259_v17  ;;  %v3433_v41 = vpack.c.bf16 %v3404_v51, %v3404_v51  ;;  %v3434_v21 = vpack.c.bf16 %v3403_v10, %v3403_v10  ;;  %v8151_v10 = vld [vmem:[#allocation5 + $0xf8] sm:$0xff]  }
 0x2c2   : > { %3752 = vst [vmem:[#allocation4 + $0x1e4] sm:$0xf] %v3736_v52  ;;  %v3547_v36 = vsel %vm958_vm2, %v3545_v63, %v10971_v23  ;;  %v10972_v54 = vrot.slane %v9865_v33, 7  ;;  %v7343_v52 = vld [vmem:[%s8740_s21 + $0x3c8] sm:$0xff]  ;;  %v7828_v11 = vunpack.c.l.bf16 %v8137_v13  ;;  %v7829_v17 = vunpack.c.h.bf16 %v8137_v13  ;;  %5369 = vmatpush.bf16.msra.mxu3 %v7351_v46 }
 0x2c3   : > { %v7860_v59 = vunpack.c.l.bf16 %v8144_v32  ;;  %v7861_v27 = vunpack.c.h.bf16 %v8144_v32  ;;  %v3465_v29 = vunpack.c.l.bf16 %v3433_v41  ;;  %5320 = vmatpush.bf16.msra.mxu2 %v7343_v52  ;;  %v8158_v51 = vld [vmem:[#allocation5 + $0x138] sm:$0xff]   ;;  %v7892_v23 = vunpack.c.l.bf16 %v8151_v10  ;;  %v7411_v52 = vld [vmem:[#allocation4 + $0x16c] sm:$0xf] }
 0x2c4   : > { %v3548_v50 = vsel %vm958_vm2, %v10972_v54, %v3545_v63  ;;  %5195 = vmatmul.bf16.gmra.mxu3 %v6698_v4  ;;  %v3466_v4 = vunpack.c.l.bf16 %v3434_v21  ;;  %v7335_v54 = vld [vmem:[%s8740_s21 + $0x388] sm:$0xff] }
 0x2c5   : > { %v3497_v13 = vmul.f32 %v7860_v59, %v3465_v29  ;;  %5271 = vmatpush.bf16.msra.mxu1 %v7335_v54  ;;  %v7359_v21 = vld [vmem:[%s8740_s21 + $0x448] sm:$0xff]  ;;  %v7925_v59 = vunpack.c.h.bf16 %v8158_v51 }
 0x2c6   : > { %5097 = vmatmul.bf16.gmra.mxu1 %v6690_v28  ;;  %5146 = vmatmul.bf16.gmra.mxu2 %v6694_v38  ;;  %v10431_v28 = vunpack.c.l.bf16 %v3289_v16  ;;  %v10433_v38 = vunpack.c.l.bf16 %v3290_v47  ;;  %v3578_v16 = vpack.c.bf16 %v3547_v36, %v3547_v36  ;;  %v7893_v47 = vunpack.c.h.bf16 %v8151_v10  ;;  %v6729_v29 = vld [vmem:[#allocation4 + $0x170] sm:$0xf]  ;;  %v7416_v10 = vld [vmem:[#allocation4 + $0x190] sm:$0xf0] }
 0x2c7   : > { %5244 = vmatmul.bf16.gmra.mxu0 %v6702_v19  ;;  %v3577_v19 = vpack.c.bf16 %v3548_v50, %v3548_v50  ;;  %v3498_v32 = vmul.f32 %v7861_v27, %v3466_v4  ;;  %v3513_v46 = vpack.c.bf16 %v3497_v13, %v3497_v13  ;;  %v7412_v4 = vld [vmem:[#allocation4 + $0x174] sm:$0xf] }
 0x2c8   : > { %10973 = vst [vmem:[#allocation54_spill] sm:$0xff] %v10433_v38  ;;  %v3353_v26 = vmul.f32 %v7828_v11, %v10431_v28  ;;  %v3354_v63 = vmul.f32 %v7829_v17, %v10433_v38  ;;  %v10440_v9 = vunpack.c.l.bf16 %v3578_v16  ;;  %v7924_v11 = vunpack.c.l.bf16 %v8158_v51  ;;  %v6723_v17 = vld [vmem:[#allocation4 + $0x18c] sm:$0xf0]  ;;  %5418 = vmatpush.bf16.msra.mxu0 %v7359_v21  ;;  %v6737_v38 = vld [vmem:[#allocation4 + $0x178] sm:$0xf] }
 0x2c9   : > { %v10438_v41 = vunpack.c.l.bf16 %v3577_v19  ;;  %v3514_v50 = vpack.c.bf16 %v3498_v32, %v3498_v32  ;;  %v6731_v19 = vld [vmem:[#allocation4 + $0x194] sm:$0xf0]  ;;  %3529 = vst [vmem:[#allocation4 + $0x200] sm:$0xf] %v3513_v46  ;;  %v6726_v51 = vor.u32 %v7411_v52, %v6723_v17  ;;  %v3837_v46 = vrot.slane %v9888_v43, 6 }
 0x2ca   : > { %v3369_v18 = vpack.c.bf16 %v3353_v26, %v3353_v26  ;;  %v3370_v35 = vpack.c.bf16 %v3354_v63, %v3354_v63  ;;  %10975 = vst [vmem:[#allocation56_spill] sm:$0xff] %v10440_v9  ;;  %v3642_v27 = vmul.f32 %v7893_v47, %v10440_v9  ;;  %v10976_v26 = vld [vmem:[#allocation40_spill] sm:$0xff]  ;;  %v10977_v16 = vld [vmem:[#allocation38_spill] sm:$0xff]  ;;  %v10978_v47 = vld [vmem:[#allocation33_spill] sm:$0xff]  ;;  %v6734_v21 = vor.u32 %v7412_v4, %v6731_v19 }
 0x2cb   : > { %10974 = vst [vmem:[#allocation55_spill] sm:$0xff] %v10438_v41  ;;  %v3641_v36 = vmul.f32 %v7892_v23, %v10438_v41  ;;  %v3721_v63 = vmul.f32 %v7924_v11, %v10976_v26  ;;  %v3722_v54 = vmul.f32 %v7925_v59, %v10977_v16  ;;  %v10842_v9 = vrot.slane %v10978_v47, 6 }
 0x2cc   : > { %3385 = vst [vmem:[#allocation4 + $0x1fc] sm:$0xf] %v3369_v18  ;;  %v7417_v18 = vld [vmem:[#allocation4 + $0x198] sm:$0xf0]  ;;  %v3658_v32 = vpack.c.bf16 %v3642_v27, %v3642_v27  ;;  %v3836_v11 = vrot.slane %v9885_v58, 6  ;;  %v7959_v58 = vld [vmem:[#allocation5 + $0x180] sm:$0xff]  }
 0x2cd   : > { %3386 = vst [vmem:[#allocation4 + $0x220] sm:$0xf] %v3370_v35  ;;  %v3657_v13 = vpack.c.bf16 %v3641_v36, %v3641_v36  ;;  %v3737_v23 = vpack.c.bf16 %v3721_v63, %v3721_v63  ;;  %v3738_v41 = vpack.c.bf16 %v3722_v54, %v3722_v54  ;;  %v6730_v35 = vor.u32 %v7416_v10, %v6729_v29  ;;  %v7350_v29 = vld [vmem:[%s8740_s21 + $0x400] sm:$0xff] }
 0x2ce   : > { %3530 = vst [vmem:[#allocation4 + $0x224] sm:$0xf] %v3514_v50  ;;  %v6738_v36 = vor.u32 %v7417_v18, %v6737_v38  ;;  %v3864_v52 = vsel %vm1266_vm3, %v3836_v11, %v3837_v46  ;;  %v3865_v17 = vsel %vm1266_vm3, %v10842_v9, %v3836_v11  ;;  %v7342_v38 = vld [vmem:[%s8740_s21 + $0x3c0] sm:$0xff]  ;;  %v7960_v27 = vunpack.c.l.bf16 %v7959_v58  ;;  %v8023_v18 = vld [vmem:[#allocation5 + $0x200] sm:$0xff]   ;;  %5370 = vmatpush.bf16.msra.mxu3 %v7350_v29  ;;  %v6759_v29 = vld [vmem:[#allocation4 + $0x1d4] sm:$0xf0] }
 0x2cf   : > { %3673 = vst [vmem:[#allocation4 + $0x204] sm:$0xf] %v3657_v13  ;;  %v3867_v50 = vpack.c.bf16 %v3865_v17, %v3865_v17  ;;  %v3868_v59 = vpack.c.bf16 %v3864_v52, %v3864_v52  ;;  %v7961_v63 = vunpack.c.h.bf16 %v7959_v58  ;;  %v8375_v13 = vld [vmem:[#allocation5 + $0x1c0] sm:$0xff]   ;;  %5321 = vmatpush.bf16.msra.mxu2 %v7342_v38  ;;  %v7334_v52 = vld [vmem:[%s8740_s21 + $0x380] sm:$0xff]  ;;  %v7420_v38 = vld [vmem:[#allocation4 + $0x1b4] sm:$0xf] }
 0x2d0   : > { %3674 = vst [vmem:[#allocation4 + $0x228] sm:$0xf] %v3658_v32  ;;  %v7992_v54 = vunpack.c.l.bf16 %v8375_v13  ;;  %v10980_v58 = vld [vmem:[#allocation41_spill] sm:$0xff]  ;;  %5272 = vmatpush.bf16.msra.mxu1 %v7334_v52 }
 0x2d1   : > { %3753 = vst [vmem:[#allocation4 + $0x208] sm:$0xf] %v3737_v23  ;;  %v3899_v4 = vunpack.c.l.bf16 %v3867_v50  ;;  %v3900_v19 = vunpack.c.l.bf16 %v3868_v59 }
 0x2d2   : > { %3754 = vst [vmem:[#allocation4 + $0x22c] sm:$0xf] %v3738_v41  ;;  %v8374_v41 = vld [vmem:[#allocation5 + $0x140] sm:$0xff]  }
 0x2d3   : > { %v7928_v10 = vunpack.c.l.bf16 %v8374_v41  ;;  %v3931_v23 = vmul.f32 %v7960_v27, %v3899_v4  ;;  %v3932_v11 = vmul.f32 %v7961_v63, %v3900_v19  ;;  %v6765_v27 = vld [vmem:[#allocation4 + $0x1b8] sm:$0xf]  ;;  %v7425_v4 = vld [vmem:[#allocation4 + $0x1d8] sm:$0xf0] }
 0x2d4   : > { %5200 = vmatmul.bf16.gmra.mxu3 %v6734_v21  ;;  %v10979_v21 = vld [vmem:[#allocation43_spill] sm:$0xff] }
 0x2d5   : > { %v3787_v32 = vmul.f32 %v7928_v10, %v9973_v5  ;;  %v3947_v41 = vpack.c.bf16 %v3931_v23, %v3931_v23  ;;  %v3948_v13 = vpack.c.bf16 %v3932_v11, %v3932_v11  ;;  %v7358_v5 = vld [vmem:[%s8740_s21 + $0x440] sm:$0xff]  ;;  %v7421_v19 = vld [vmem:[#allocation4 + $0x1bc] sm:$0xf]  ;;  %v6766_v23 = vor.u32 %v7425_v4, %v6765_v27  ;;  %v10982_v11 = vld [vmem:[#allocation32_spill] sm:$0xff] }
 0x2d6   : > { %5102 = vmatmul.bf16.gmra.mxu1 %v6726_v51  ;;  %5151 = vmatmul.bf16.gmra.mxu2 %v6730_v35  ;;  %v8024_v51 = vunpack.c.l.bf16 %v8023_v18  ;;  %v8025_v35 = vunpack.c.h.bf16 %v8023_v18  ;;  %v6767_v18 = vld [vmem:[#allocation4 + $0x1dc] sm:$0xf0]  ;;  %v8173_v27 = vld [vmem:[#allocation5 + $0x1c8] sm:$0xff]  }
 0x2d7   : > { %5249 = vmatmul.bf16.gmra.mxu0 %v6738_v36  ;;  %v4011_v36 = vmul.f32 %v7992_v54, %v10979_v21  ;;  %v3803_v17 = vpack.c.bf16 %v3787_v32, %v3787_v32  ;;  %3963 = vst [vmem:[#allocation4 + $0x18] sm:$0xf] %v3947_v41  ;;  %v6773_v54 = vld [vmem:[#allocation4 + $0x1c0] sm:$0xf]  ;;  %v7426_v32 = vld [vmem:[#allocation4 + $0x1e0] sm:$0xf0]  ;;  %v6770_v52 = vor.u32 %v7421_v19, %v6767_v18 }
 0x2d8   : > { %v4091_v50 = vmul.f32 %v8024_v51, %v10980_v58  ;;  %v4092_v59 = vmul.f32 %v8025_v35, %v9920_v40  ;;  %5419 = vmatpush.bf16.msra.mxu0 %v7358_v5  ;;  %3964 = vst [vmem:[#allocation4 + $0x3c] sm:$0xf] %v3948_v13  ;;  %v6762_v40 = vor.u32 %v7420_v38, %v6759_v29  ;;  %v10981_v51 = vld [vmem:[#allocation31_spill] sm:$0xff]  ;;  %v10843_v21 = vrot.slane %v10982_v11, 6  ;;  %v8159_v13 = vld [vmem:[#allocation5 + $0x148] sm:$0xff]  }
 0x2d9   : > { %v4027_v9 = vpack.c.bf16 %v4011_v36, %v4011_v36  ;;  %3819 = vst [vmem:[#allocation4 + $0x14] sm:$0xf] %v3803_v17  ;;  %v3838_v35 = vrot.slane %v10981_v51, 6  ;;  %v6774_v17 = vor.u32 %v7426_v32, %v6773_v54  ;;  %v8166_v38 = vld [vmem:[#allocation5 + $0x188] sm:$0xff]   ;;  %v7932_v29 = vunpack.c.l.bf16 %v8159_v13  ;;  %v10481_v4 = vld [vmem:[%s8904_s18 + $0x1] ss:$0 sm:$0xff] }
 0x2da   : > { %v4107_v10 = vpack.c.bf16 %v4091_v50, %v4091_v50  ;;  %v4108_v63 = vpack.c.bf16 %v4092_v59, %v4092_v59  ;;  %v7933_v5 = vunpack.c.h.bf16 %v8159_v13  ;;  %v10983_v18 = vld [vmem:[#allocation45_spill] sm:$0xff]  ;;  %v10984_v32 = vld [vmem:[#allocation47_spill] sm:$0xff] }
 0x2db   : > { %4043 = vst [vmem:[#allocation4 + $0x1c] sm:$0xf] %v4027_v9  ;;  %v3862_v9 = vsel %vm1266_vm3, %v3838_v35, %v10843_v21  ;;  %v3863_v58 = vsel %vm1266_vm3, %v3837_v46, %v3838_v35  ;;  %v3789_v46 = vmul.f32 %v7932_v29, %v10983_v18  ;;  %v10986_v21 = vld [vmem:[#allocation46_spill] sm:$0xff]  ;;  %v6795_v16 = vld [vmem:[#allocation4 + $0x21c] sm:$0xf0] }
 0x2dc   : > { %4123 = vst [vmem:[#allocation4 + $0x20] sm:$0xf] %v4107_v10  ;;  %v3869_v50 = vpack.c.bf16 %v3863_v58, %v3863_v58  ;;  %v3870_v59 = vpack.c.bf16 %v3862_v9, %v3862_v9  ;;  %v7964_v10 = vunpack.c.l.bf16 %v8166_v38  ;;  %v3790_v51 = vmul.f32 %v7933_v5, %v10984_v32  ;;  %v8180_v58 = vld [vmem:[#allocation5 + $0x208] sm:$0xff]   ;;  %v7429_v32 = vld [vmem:[#allocation4 + $0x1fc] sm:$0xf] }
 0x2dd   : > { %4124 = vst [vmem:[#allocation4 + $0x44] sm:$0xf] %v4108_v63  ;;  %v7965_v63 = vunpack.c.h.bf16 %v8166_v38  ;;  %v7435_v47 = vld [vmem:[#allocation4 + $0x228] sm:$0xf0] }
 0x2de   : > { %v3901_v19 = vunpack.c.l.bf16 %v3869_v50  ;;  %v3902_v43 = vunpack.c.l.bf16 %v3870_v59  ;;  %v3805_v50 = vpack.c.bf16 %v3789_v46, %v3789_v46  ;;  %v3806_v59 = vpack.c.bf16 %v3790_v51, %v3790_v51  ;;  %v7430_v46 = vld [vmem:[#allocation4 + $0x204] sm:$0xf]  ;;  %v6803_v51 = vld [vmem:[#allocation4 + $0x224] sm:$0xf0] }
 0x2df   : > { %v10468_v36 = vpop.f32.mrf.mxu1 }
 0x2e0   : > { %v10470_v41 = vpop.f32.mrf.mxu0  ;;  %v3934_v9 = vmul.f32 %v7965_v63, %v3902_v43  ;;  %3821 = vst [vmem:[#allocation4 + $0x5c] sm:$0xf] %v3805_v50  ;;  %v8028_v63 = vunpack.c.l.bf16 %v8180_v58  ;;  %v6801_v43 = vld [vmem:[#allocation4 + $0x200] sm:$0xf] }
 0x2e1   : > { %3822 = vst [vmem:[#allocation4 + $0x80] sm:$0xf] %v3806_v59 }
 0x2e4   : > { %5205 = vmatmul.bf16.gmra.mxu3 %v6770_v52 }
 0x2e5   : > { %v5059_v52 = vpop.f32.mrf.mxu3 }
 0x2e6   : > { %5107 = vmatmul.bf16.gmra.mxu1 %v6762_v40  ;;  %5156 = vmatmul.bf16.gmra.mxu2 %v6766_v23  ;;  %v5049_v54 = vpop.f32.mrf.mxu2  ;;  %v7996_v40 = vunpack.c.l.bf16 %v8173_v27  ;;  %v7997_v23 = vunpack.c.h.bf16 %v8173_v27  ;;  %v10489_v13 = vadd.f32 %v10481_v4, %v5059_v52  ;;  %v3950_v27 = vpack.c.bf16 %v3934_v9, %v3934_v9  ;;  %v7434_v52 = vld [vmem:[#allocation4 + $0x220] sm:$0xf0]  ;;  %v6809_v9 = vld [vmem:[#allocation4 + $0x208] sm:$0xf] }
 0x2e7   : > { %5254 = vmatmul.bf16.gmra.mxu0 %v6774_v17  ;;  %v10486_v35 = vadd.f32 %v10481_v4, %v5049_v54  ;;  %v3933_v17 = vmul.f32 %v7964_v10, %v3901_v19  ;;  %v10491_v38 = vpop.f32.mrf.mxu1  ;;  %v8029_v19 = vunpack.c.h.bf16 %v8180_v58 }
 0x2e8   : > { %10985 = vst [vmem:[#allocation40_spill] sm:$0xff] %v10489_v13  ;;  %v4013_v29 = vmul.f32 %v7996_v40, %v10986_v21  ;;  %v10494_v18 = vpop.f32.mrf.mxu0  ;;  %v4014_v54 = vmul.f32 %v7997_v23, %v10179_v44  ;;  %v10987_v21 = vld [vmem:[#allocation34_spill] sm:$0xff]  ;;  %v6798_v23 = vor.u32 %v7429_v32, %v6795_v16  ;;  %v6810_v16 = vor.u32 %v7435_v47, %v6809_v9 }
 0x2e9   : > { %v3949_v5 = vpack.c.bf16 %v3933_v17, %v3933_v17  ;;  %v4093_v40 = vmul.f32 %v8028_v63, %v10987_v21  ;;  %v4094_v17 = vmul.f32 %v8029_v19, %v9804_v30  ;;  %3966 = vst [vmem:[#allocation4 + $0x84] sm:$0xf] %v3950_v27  ;;  %v10845_v63 = vrot.slane %v9839_v7, 6  ;;  %v8167_v47 = vld [vmem:[#allocation5 + $0x190] sm:$0xff]  }
 0x2ea   : > { %v4029_v10 = vpack.c.bf16 %v4013_v29, %v4013_v29  ;;  %v4030_v13 = vpack.c.bf16 %v4014_v54, %v4014_v54  ;;  %v6802_v54 = vor.u32 %v7434_v52, %v6801_v43  ;;  %v6806_v27 = vor.u32 %v7430_v46, %v6803_v51  ;;  %v8160_v46 = vld [vmem:[#allocation5 + $0x150] sm:$0xff]  }
 0x2eb   : > { %3965 = vst [vmem:[#allocation4 + $0x60] sm:$0xf] %v3949_v5  ;;  %v4109_v50 = vpack.c.bf16 %v4093_v40, %v4093_v40  ;;  %v4110_v29 = vpack.c.bf16 %v4094_v17, %v4094_v17  ;;  %v3840_v5 = vrot.slane %v9836_v39, 6  ;;  %v10990_v39 = vrot.slane %v10982_v11, 6  ;;  %v8174_v9 = vld [vmem:[#allocation5 + $0x1d0] sm:$0xff]  }
 0x2ec   : > { %4045 = vst [vmem:[#allocation4 + $0x64] sm:$0xf] %v4029_v10  ;;  %v7936_v51 = vunpack.c.l.bf16 %v8160_v46  ;;  %v7937_v21 = vunpack.c.h.bf16 %v8160_v46  ;;  %v7968_v40 = vunpack.c.l.bf16 %v8167_v47  ;;  %v7969_v17 = vunpack.c.h.bf16 %v8167_v47  ;;  %v8181_v11 = vld [vmem:[#allocation5 + $0x210] sm:$0xff]  }
 0x2ed   : > { %v5061_v59 = vpop.f32.mrf.mxu3  ;;  %4046 = vst [vmem:[#allocation4 + $0x88] sm:$0xf] %v4030_v13  ;;  %v3860_v13 = vsel %vm1266_vm3, %v3840_v5, %v10845_v63  ;;  %v3861_v10 = vsel %vm1266_vm3, %v10990_v39, %v3840_v5  ;;  %v10991_v63 = vld [vmem:[#allocation48_spill] sm:$0xff] }
 0x2ee   : > { %v5051_v44 = vpop.f32.mrf.mxu2  ;;  %v10505_v30 = vadd.f32 %v10481_v4, %v5061_v59  ;;  %4125 = vst [vmem:[#allocation4 + $0x68] sm:$0xf] %v4109_v50  ;;  %v3871_v43 = vpack.c.bf16 %v3861_v10, %v3861_v10  ;;  %v3872_v52 = vpack.c.bf16 %v3860_v13, %v3860_v13  ;;  %v3791_v5 = vmul.f32 %v7936_v51, %v10991_v63 }
 0x2ef   : > { %v10500_v58 = vadd.f32 %v10481_v4, %v5051_v44  ;;  %4126 = vst [vmem:[#allocation4 + $0x8c] sm:$0xf] %v4110_v29  ;;  %v8000_v29 = vunpack.c.l.bf16 %v8174_v9  ;;  %v3792_v13 = vmul.f32 %v7937_v21, %v10225_v55  ;;  %v8032_v10 = vunpack.c.l.bf16 %v8181_v11  ;;  %v7368_v21 = vld [vmem:[#allocation4 + $0x14] sm:$0xf] }
 0x2f0   : > { %10989 = vst [vmem:[#allocation41_spill] sm:$0xff] %v10505_v30  ;;  %v10509_v32 = vpop.f32.mrf.mxu0  ;;  %v3903_v44 = vunpack.c.l.bf16 %v3871_v43  ;;  %v3904_v50 = vunpack.c.l.bf16 %v3872_v52  ;;  %v3807_v52 = vpack.c.bf16 %v3791_v5, %v3791_v5  ;;  %v7373_v5 = vld [vmem:[#allocation4 + $0x38] sm:$0xf0] }
 0x2f1   : > { %10988 = vst [vmem:[#allocation43_spill] sm:$0xff] %v10500_v58  ;;  %v10507_v19 = vpop.f32.mrf.mxu1  ;;  %v3808_v47 = vpack.c.bf16 %v3792_v13, %v3792_v13  ;;  %v4015_v30 = vmul.f32 %v8000_v29, %v10185_v49  ;;  %v7369_v13 = vld [vmem:[#allocation4 + $0x1c] sm:$0xf] }
 0x2f2   : > { %v3936_v39 = vmul.f32 %v7969_v17, %v3904_v50  ;;  %3823 = vst [vmem:[#allocation4 + $0xa4] sm:$0xf] %v3807_v52  ;;  %v6565_v50 = vld [vmem:[#allocation4 + $0x18] sm:$0xf] }
 0x2f3   : > { %v4031_v17 = vpack.c.bf16 %v4015_v30, %v4015_v30  ;;  %3824 = vst [vmem:[#allocation4 + $0xc8] sm:$0xf] %v3808_v47  ;;  %v3842_v47 = vrot.slane %v9777_v22, 6 }
 0x2f4   : > { %5210 = vmatmul.bf16.gmra.mxu3 %v6806_v27  ;;  %v3952_v51 = vpack.c.bf16 %v3936_v39, %v3936_v39  ;;  %v7374_v39 = vld [vmem:[#allocation4 + $0x40] sm:$0xf0] }
 0x2f5   : > { %v5064_v27 = vpop.f32.mrf.mxu3  ;;  %4047 = vst [vmem:[#allocation4 + $0xac] sm:$0xf] %v4031_v17 }
 0x2f6   : > { %5112 = vmatmul.bf16.gmra.mxu1 %v6798_v23  ;;  %5161 = vmatmul.bf16.gmra.mxu2 %v6802_v54  ;;  %v8001_v23 = vunpack.c.h.bf16 %v8174_v9  ;;  %v10525_v46 = vadd.f32 %v10481_v4, %v5064_v27  ;;  %v6559_v9 = vld [vmem:[#allocation4 + $0x34] sm:$0xf0]  ;;  %v4095_v27 = vmul.f32 %v8032_v10, %v9856_v42  ;;  %3968 = vst [vmem:[#allocation4 + $0xcc] sm:$0xf] %v3952_v51 }
 0x2f7   : > { %5259 = vmatmul.bf16.gmra.mxu0 %v6810_v16  ;;  %v5054_v59 = vpop.f32.mrf.mxu2  ;;  %v3935_v16 = vmul.f32 %v7968_v40, %v3903_v44  ;;  %v8033_v44 = vunpack.c.h.bf16 %v8181_v11  ;;  %v6562_v11 = vor.u32 %v7368_v21, %v6559_v9  ;;  %v6566_v10 = vor.u32 %v7373_v5, %v6565_v50  ;;  %v8168_v5 = vld [vmem:[#allocation5 + $0x198] sm:$0xff]  }
 0x2f8   : > { %v10522_v54 = vadd.f32 %v10481_v4, %v5054_v59  ;;  %10993 = vst [vmem:[#allocation32_spill] sm:$0xff] %v10525_v46  ;;  %v10530_v63 = vpop.f32.mrf.mxu0  ;;  %v4016_v40 = vmul.f32 %v8001_v23, %v10244_v57  ;;  %v6567_v59 = vld [vmem:[#allocation4 + $0x3c] sm:$0xf0]  ;;  %v4111_v46 = vpack.c.bf16 %v4095_v27, %v4095_v27  ;;  %v5030_v57 = vadd.f32 %v10481_v4, %v10470_v41 }
 0x2f9   : > { %v10527_v43 = vpop.f32.mrf.mxu1  ;;  %v3951_v55 = vpack.c.bf16 %v3935_v16, %v3935_v16  ;;  %v4096_v29 = vmul.f32 %v8033_v44, %v9858_v53  ;;  %v6573_v16 = vld [vmem:[#allocation4 + $0x20] sm:$0xf]  ;;  %v10846_v53 = vrot.slane %v9780_v60, 6  ;;  %v10996_v44 = vrot.slane %v9839_v7, 6  ;;  %v8182_v7 = vld [vmem:[#allocation5 + $0x218] sm:$0xff]  }
 0x2fa   : > { %10992 = vst [vmem:[#allocation31_spill] sm:$0xff] %v10522_v54  ;;  %v4032_v49 = vpack.c.bf16 %v4016_v40, %v4016_v40  ;;  %v6570_v40 = vor.u32 %v7369_v13, %v6567_v59  ;;  %v6574_v41 = vor.u32 %v7374_v39, %v6573_v16  ;;  %v8161_v59 = vld [vmem:[#allocation5 + $0x158] sm:$0xff]  }
 0x2fb   : > { %3967 = vst [vmem:[#allocation4 + $0xa8] sm:$0xf] %v3951_v55  ;;  %v4112_v23 = vpack.c.bf16 %v4096_v29, %v4096_v29  ;;  %v3858_v17 = vsel %vm1266_vm3, %v3842_v47, %v10846_v53  ;;  %v3859_v22 = vsel %vm1266_vm3, %v10996_v44, %v3842_v47  ;;  %v7941_v13 = vunpack.c.h.bf16 %v8161_v59  ;;  %v8175_v16 = vld [vmem:[#allocation5 + $0x1d8] sm:$0xff]  }
 0x2fc   : > { %4048 = vst [vmem:[#allocation4 + $0xd0] sm:$0xf] %v4032_v49  ;;  %v3873_v50 = vpack.c.bf16 %v3859_v22, %v3859_v22  ;;  %v3874_v27 = vpack.c.bf16 %v3858_v17, %v3858_v17  ;;  %v7972_v49 = vunpack.c.l.bf16 %v8168_v5  ;;  %v7973_v29 = vunpack.c.h.bf16 %v8168_v5 }
 0x2fd   : > { %v5066_v42 = vpop.f32.mrf.mxu3  ;;  %4127 = vst [vmem:[#allocation4 + $0xb0] sm:$0xf] %v4111_v46  ;;  %v7940_v46 = vunpack.c.l.bf16 %v8161_v59  ;;  %v8036_v22 = vunpack.c.l.bf16 %v8182_v7 }
 0x2fe   : > { %v10543_v55 = vadd.f32 %v10481_v4, %v5066_v42  ;;  %4128 = vst [vmem:[#allocation4 + $0xd4] sm:$0xf] %v4112_v23  ;;  %v3905_v39 = vunpack.c.l.bf16 %v3873_v50  ;;  %v5032_v23 = vadd.f32 %v10481_v4, %v10494_v18 }
 0x2ff   : > { %v5056_v30 = vpop.f32.mrf.mxu2 }
 0x300   : > { %v10538_v52 = vadd.f32 %v10481_v4, %v5056_v30  ;;  %10995 = vst [vmem:[#allocation47_spill] sm:$0xff] %v10543_v55  ;;  %v8004_v30 = vunpack.c.l.bf16 %v8175_v16  ;;  %v3937_v17 = vmul.f32 %v7972_v49, %v3905_v39  ;;  %v6601_v49 = vld [vmem:[#allocation4 + $0x60] sm:$0xf] }
 0x302   : > { %10994 = vst [vmem:[#allocation45_spill] sm:$0xff] %v10538_v52  ;;  %v3953_v58 = vpack.c.bf16 %v3937_v17, %v3937_v17 }
 0x303   : > { %v5078_v51 = vpop.f32.mrf.mxu1 }
 0x304   : > { %v5079_v21 = vadd.f32 %v5078_v51, %v5030_v57  ;;  %v5225_v9 = vpop.f32.mrf.mxu0  ;;  %5371 = vmatmul.bf16.vlgmr.msra.gmra.mxu3 %v6570_v40  ;;  %v3906_v57 = vunpack.c.l.bf16 %v3874_v27  ;;  %v8005_v51 = vunpack.c.h.bf16 %v8175_v16  ;;  %v10998_v27 = vld [vmem:[#allocation49_spill] sm:$0xff]  ;;  %v8037_v16 = vunpack.c.h.bf16 %v8182_v7  ;;  %3969 = vst [vmem:[#allocation4 + $0xf0] sm:$0xf] %v3953_v58 }
 0x305   : > { %v4017_v53 = vmul.f32 %v8004_v30, %v10998_v27  ;;  %v7378_v30 = vld [vmem:[#allocation4 + $0x64] sm:$0xf]  ;;  %v3845_v58 = vrot.slane %v9851_v0, 6  ;;  %v11000_v27 = vrot.slane %v9780_v60, 6 }
 0x306   : > { %5273 = vmatmul.bf16.vlgmr.msra.gmra.mxu1 %v6562_v11  ;;  %5322 = vmatmul.bf16.vlgmr.msra.gmra.mxu2 %v6566_v10  ;;  %v3793_v11 = vmul.f32 %v7940_v46, %v10232_v25  ;;  %v10997_v10 = vld [vmem:[#allocation50_spill] sm:$0xff]  ;;  %v3938_v44 = vmul.f32 %v7973_v29, %v3906_v57  ;;  %v4018_v55 = vmul.f32 %v8005_v51, %v10298_v6  ;;  %v7377_v25 = vld [vmem:[#allocation4 + $0x5c] sm:$0xf]  ;;  %v6595_v46 = vld [vmem:[#allocation4 + $0x7c] sm:$0xf0] }
 0x307   : > { %5420 = vmatmul.bf16.vlgmr.msra.gmra.mxu0 %v6574_v41  ;;  %v3794_v47 = vmul.f32 %v7941_v13, %v10997_v10  ;;  %v5176_v41 = vpop.f32.mrf.mxu3  ;;  %v7382_v29 = vld [vmem:[#allocation4 + $0x80] sm:$0xf0]  ;;  %v10999_v57 = vld [vmem:[#allocation35_spill] sm:$0xff]  ;;  %v6603_v6 = vld [vmem:[#allocation4 + $0x84] sm:$0xf0] }
 0x308   : > { %v3809_v5 = vpack.c.bf16 %v3793_v11, %v3793_v11  ;;  %v3954_v13 = vpack.c.bf16 %v3938_v44, %v3938_v44  ;;  %v4034_v39 = vpack.c.bf16 %v4018_v55, %v4018_v55  ;;  %v6609_v10 = vld [vmem:[#allocation4 + $0x68] sm:$0xf]  ;;  %v6606_v44 = vor.u32 %v7378_v30, %v6603_v6  ;;  %v8183_v6 = vld [vmem:[#allocation5 + $0x220] sm:$0xff]  }
 0x309   : > { %v5127_v42 = vpop.f32.mrf.mxu2  ;;  %v3810_v50 = vpack.c.bf16 %v3794_v47, %v3794_v47  ;;  %v7383_v47 = vld [vmem:[#allocation4 + $0x88] sm:$0xf0] }
 0x30a   : > { %v5128_v40 = vadd.f32 %v5127_v42, %v5079_v21  ;;  %3825 = vst [vmem:[#allocation4 + $0xec] sm:$0xf] %v3809_v5  ;;  %v4033_v21 = vpack.c.bf16 %v4017_v53, %v4017_v53  ;;  %v4097_v42 = vmul.f32 %v8036_v22, %v10999_v57  ;;  %v5035_v53 = vadd.f32 %v10481_v4, %v10509_v32  ;;  %v8176_v57 = vld [vmem:[#allocation5 + $0x1e0] sm:$0xff]  }
 0x30b   : > { %v5080_v59 = vpop.f32.mrf.mxu1  ;;  %3826 = vst [vmem:[#allocation4 + $0x110] sm:$0xf] %v3810_v50  ;;  %v6610_v22 = vor.u32 %v7383_v47, %v6609_v10  ;;  %v8008_v30 = vunpack.c.l.bf16 %v8176_v57  ;;  %v11001_v47 = vld [vmem:[#allocation51_spill] sm:$0xff] }
 0x30c   : > { %v5177_v52 = vadd.f32 %v5176_v41, %v5128_v40  ;;  %v5081_v18 = vadd.f32 %v5080_v59, %v5032_v23  ;;  %v5227_v54 = vpop.f32.mrf.mxu0  ;;  %v4098_v23 = vmul.f32 %v8037_v16, %v9808_v12  ;;  %3970 = vst [vmem:[#allocation4 + $0x114] sm:$0xf] %v3954_v13  ;;  %v4113_v51 = vpack.c.bf16 %v4097_v42, %v4097_v42  ;;  %v8169_v13 = vld [vmem:[#allocation5 + $0x1a0] sm:$0xff]  }
 0x30d   : > { %v6598_v40 = vor.u32 %v7377_v25, %v6595_v46  ;;  %4049 = vst [vmem:[#allocation4 + $0xf4] sm:$0xf] %v4033_v21  ;;  %v8162_v46 = vld [vmem:[#allocation5 + $0x160] sm:$0xff]  }
 0x30e   : > { %v10560_v11 = vadd.f32 %v5225_v9, %v5177_v52  ;;  %v4114_v55 = vpack.c.bf16 %v4098_v23, %v4098_v23  ;;  %v6602_v52 = vor.u32 %v7382_v29, %v6601_v49  ;;  %4050 = vst [vmem:[#allocation4 + $0x118] sm:$0xf] %v4034_v39  ;;  %v3844_v9 = vrot.slane %v9843_v20, 6 }
 0x30f   : > { %v5178_v17 = vpop.f32.mrf.mxu3  ;;  %4129 = vst [vmem:[#allocation4 + $0xf8] sm:$0xf] %v4113_v51  ;;  %v7944_v16 = vunpack.c.l.bf16 %v8162_v46  ;;  %v7945_v49 = vunpack.c.h.bf16 %v8162_v46  ;;  %v7976_v29 = vunpack.c.l.bf16 %v8169_v13  ;;  %v7977_v39 = vunpack.c.h.bf16 %v8169_v13  ;;  %v6637_v46 = vld [vmem:[#allocation4 + $0xa8] sm:$0xf]  ;;  %v7391_v13 = vld [vmem:[#allocation4 + $0xc8] sm:$0xf0] }
 0x310   : > { %4130 = vst [vmem:[#allocation4 + $0x11c] sm:$0xf] %v4114_v55  ;;  %v3856_v32 = vsel %vm1266_vm3, %v3844_v9, %v3845_v58  ;;  %v3857_v20 = vsel %vm1266_vm3, %v11000_v27, %v3844_v9  ;;  %v5037_v23 = vadd.f32 %v10481_v4, %v10530_v63 }
 0x311   : > { %v5129_v7 = vpop.f32.mrf.mxu2  ;;  %v3876_v25 = vpack.c.bf16 %v3856_v32, %v3856_v32  ;;  %v3795_v51 = vmul.f32 %v7944_v16, %v11001_v47 }
 0x312   : > { %v5130_v41 = vadd.f32 %v5129_v7, %v5081_v18  ;;  %v3875_v18 = vpack.c.bf16 %v3857_v20, %v3857_v20  ;;  %v7386_v20 = vld [vmem:[#allocation4 + $0xa4] sm:$0xf] }
 0x313   : > { %v5083_v12 = vpop.f32.mrf.mxu1  ;;  %v3908_v60 = vunpack.c.l.bf16 %v3876_v25  ;;  %v3811_v9 = vpack.c.bf16 %v3795_v51, %v3795_v51  ;;  %v8041_v25 = vunpack.c.h.bf16 %v8183_v6  ;;  %v3846_v51 = vrot.slane %v9783_v45, 6 }
 0x314   : > { %v5179_v59 = vadd.f32 %v5178_v17, %v5130_v41  ;;  %v5084_v5 = vadd.f32 %v5083_v12, %v5035_v53  ;;  %v5230_v50 = vpop.f32.mrf.mxu0  ;;  %5376 = vmatmul.bf16.gmra.mxu3 %v6606_v44  ;;  %v3907_v42 = vunpack.c.l.bf16 %v3875_v18  ;;  %v8009_v53 = vunpack.c.h.bf16 %v8176_v57  ;;  %v6631_v18 = vld [vmem:[#allocation4 + $0xc4] sm:$0xf0]  ;;  %v6645_v57 = vld [vmem:[#allocation4 + $0xb0] sm:$0xf] }
 0x315   : > { %v3940_v41 = vmul.f32 %v7977_v39, %v3908_v60  ;;  %v8040_v17 = vunpack.c.l.bf16 %v8183_v6  ;;  %v4019_v44 = vmul.f32 %v8008_v30, %v10300_v31  ;;  %3827 = vst [vmem:[#allocation4 + $0x134] sm:$0xf] %v3811_v9  ;;  %v7387_v31 = vld [vmem:[#allocation4 + $0xac] sm:$0xf]  ;;  %v4100_v39 = vmul.f32 %v8041_v25, %v9873_v24 }
 0x316   : > { %5278 = vmatmul.bf16.gmra.mxu1 %v6598_v40  ;;  %5327 = vmatmul.bf16.gmra.mxu2 %v6602_v52  ;;  %v10575_v21 = vadd.f32 %v5227_v54, %v5179_v59  ;;  %v3796_v54 = vmul.f32 %v7945_v49, %v10326_v37  ;;  %v3939_v55 = vmul.f32 %v7976_v29, %v3907_v42  ;;  %v7392_v42 = vld [vmem:[#allocation4 + $0xd0] sm:$0xf0]  ;;  %v8163_v9 = vld [vmem:[#allocation5 + $0x168] sm:$0xff]  }
 0x317   : > { %5425 = vmatmul.bf16.gmra.mxu0 %v6610_v22  ;;  %v5181_v40 = vpop.f32.mrf.mxu3  ;;  %v4020_v22 = vmul.f32 %v8009_v53, %v10346_v48  ;;  %v3956_v37 = vpack.c.bf16 %v3940_v41, %v3940_v41  ;;  %v4099_v49 = vmul.f32 %v8040_v17, %v9862_v15  ;;  %v6639_v48 = vld [vmem:[#allocation4 + $0xcc] sm:$0xf0]  ;;  %v5040_v30 = vadd.f32 %v10481_v4, %v10468_v36 }
 0x318   : > { %v3812_v12 = vpack.c.bf16 %v3796_v54, %v3796_v54  ;;  %v3955_v27 = vpack.c.bf16 %v3939_v55, %v3939_v55  ;;  %v3847_v54 = vrot.slane %v9786_v3, 6  ;;  %v6642_v53 = vor.u32 %v7387_v31, %v6639_v48 }
 0x319   : > { %v5132_v10 = vpop.f32.mrf.mxu2  ;;  %v4036_v16 = vpack.c.bf16 %v4020_v22, %v4020_v22  ;;  %3972 = vst [vmem:[#allocation4 + $0x15c] sm:$0xf] %v3956_v37  ;;  %v4115_v60 = vpack.c.bf16 %v4099_v49, %v4099_v49  ;;  %v3855_v45 = vsel %vm1266_vm3, %v3845_v58, %v3846_v51  ;;  %v7948_v22 = vunpack.c.l.bf16 %v8163_v9 }
 0x31a   : > { %v5133_v7 = vadd.f32 %v5132_v10, %v5084_v5  ;;  %v4035_v5 = vpack.c.bf16 %v4019_v44, %v4019_v44  ;;  %3828 = vst [vmem:[#allocation4 + $0x158] sm:$0xf] %v3812_v12  ;;  %v4116_v10 = vpack.c.bf16 %v4100_v39, %v4100_v39  ;;  %v3854_v36 = vsel %vm1266_vm3, %v3846_v51, %v3847_v54  ;;  %v8170_v12 = vld [vmem:[#allocation5 + $0x1a8] sm:$0xff]  }
 0x31b   : > { %v5085_v52 = vpop.f32.mrf.mxu1  ;;  %3971 = vst [vmem:[#allocation4 + $0x138] sm:$0xf] %v3955_v27  ;;  %v3877_v17 = vpack.c.bf16 %v3855_v45, %v3855_v45  ;;  %v7981_v27 = vunpack.c.h.bf16 %v8170_v12  ;;  %v5042_v58 = vadd.f32 %v10481_v4, %v10491_v38  ;;  %v6681_v45 = vld [vmem:[#allocation4 + $0xf8] sm:$0xf] }
 0x31c   : > { %v5182_v59 = vadd.f32 %v5181_v40, %v5133_v7  ;;  %v5086_v63 = vadd.f32 %v5085_v52, %v5037_v23  ;;  %v5232_v32 = vpop.f32.mrf.mxu0  ;;  %v6634_v23 = vor.u32 %v7386_v20, %v6631_v18  ;;  %4051 = vst [vmem:[#allocation4 + $0x13c] sm:$0xf] %v4035_v5  ;;  %v6646_v7 = vor.u32 %v7392_v42, %v6645_v57  ;;  %v8177_v20 = vld [vmem:[#allocation5 + $0x1e8] sm:$0xff]  }
 0x31d   : > { %4052 = vst [vmem:[#allocation4 + $0x160] sm:$0xf] %v4036_v16  ;;  %v3878_v52 = vpack.c.bf16 %v3854_v36, %v3854_v36  ;;  %v3909_v18 = vunpack.c.l.bf16 %v3877_v17  ;;  %v8012_v37 = vunpack.c.l.bf16 %v8177_v20  ;;  %v8184_v5 = vld [vmem:[#allocation5 + $0x228] sm:$0xff]   ;;  %v7401_v17 = vld [vmem:[#allocation4 + $0x118] sm:$0xf0] }
 0x31e   : > { %v10584_v29 = vadd.f32 %v5230_v50, %v5182_v59  ;;  %v6638_v50 = vor.u32 %v7391_v13, %v6637_v46  ;;  %4131 = vst [vmem:[#allocation4 + $0x140] sm:$0xf] %v4115_v60  ;;  %v7949_v59 = vunpack.c.h.bf16 %v8163_v9  ;;  %v3797_v46 = vmul.f32 %v7948_v22, %v10334_v2  ;;  %v7395_v2 = vld [vmem:[#allocation4 + $0xec] sm:$0xf] }
 0x31f   : > { %v5183_v15 = vpop.f32.mrf.mxu3  ;;  %4132 = vst [vmem:[#allocation4 + $0x164] sm:$0xf] %v4116_v10  ;;  %v3910_v0 = vunpack.c.l.bf16 %v3878_v52  ;;  %v8013_v13 = vunpack.c.h.bf16 %v8177_v20  ;;  %v8044_v39 = vunpack.c.l.bf16 %v8184_v5  ;;  %v8045_v51 = vunpack.c.h.bf16 %v8184_v5 }
 0x320   : > { %v3813_v42 = vpack.c.bf16 %v3797_v46, %v3797_v46  ;;  %v5045_v9 = vadd.f32 %v10481_v4, %v10507_v19  ;;  %v3849_v20 = vrot.slane %v9868_v62, 6 }
 0x321   : > { %v5134_v6 = vpop.f32.mrf.mxu2  ;;  %v3942_v48 = vmul.f32 %v7981_v27, %v3910_v0  ;;  %v4102_v36 = vmul.f32 %v8045_v51, %v9819_v14  ;;  %v3848_v27 = vrot.slane %v9865_v33, 6  ;;  %v6682_v0 = vor.u32 %v7401_v17, %v6681_v45 }
 0x322   : > { %v5135_v47 = vadd.f32 %v5134_v6, %v5086_v63  ;;  %v7980_v63 = vunpack.c.l.bf16 %v8170_v12  ;;  %v4022_v6 = vmul.f32 %v8013_v13, %v10394_v34  ;;  %3829 = vst [vmem:[#allocation4 + $0x17c] sm:$0xf] %v3813_v42  ;;  %v6675_v34 = vld [vmem:[#allocation4 + $0x114] sm:$0xf0]  ;;  %v8171_v13 = vld [vmem:[#allocation5 + $0x1b0] sm:$0xff]  }
 0x323   : > { %v5088_v24 = vpop.f32.mrf.mxu1  ;;  %v3852_v19 = vsel %vm1266_vm3, %v3848_v27, %v3849_v20  ;;  %v3853_v33 = vsel %vm1266_vm3, %v3847_v54, %v3848_v27  ;;  %v5047_v54 = vadd.f32 %v10481_v4, %v10527_v43 }
 0x324   : > { %v5184_v40 = vadd.f32 %v5183_v15, %v5135_v47  ;;  %v5089_v55 = vadd.f32 %v5088_v24, %v5040_v30  ;;  %v5235_v41 = vpop.f32.mrf.mxu0  ;;  %5381 = vmatmul.bf16.gmra.mxu3 %v6642_v53  ;;  %v3941_v31 = vmul.f32 %v7980_v63, %v3909_v18  ;;  %v4021_v30 = vmul.f32 %v8012_v37, %v10348_v56  ;;  %v6667_v15 = vld [vmem:[#allocation4 + $0x10c] sm:$0xf0]  ;;  %v7400_v53 = vld [vmem:[#allocation4 + $0x110] sm:$0xf0] }
 0x325   : > { %v6673_v24 = vld [vmem:[#allocation4 + $0xf0] sm:$0xf]  ;;  %v7396_v56 = vld [vmem:[#allocation4 + $0xf4] sm:$0xf]  ;;  %v6670_v22 = vor.u32 %v7395_v2, %v6667_v15  ;;  %v3880_v46 = vpack.c.bf16 %v3852_v19, %v3852_v19 }
 0x326   : > { %5283 = vmatmul.bf16.gmra.mxu1 %v6634_v23  ;;  %5332 = vmatmul.bf16.gmra.mxu2 %v6638_v50  ;;  %v10599_v44 = vadd.f32 %v5232_v32, %v5184_v40  ;;  %v3798_v32 = vmul.f32 %v7949_v59, %v10382_v1  ;;  %v3957_v47 = vpack.c.bf16 %v3941_v31, %v3941_v31  ;;  %v7410_v19 = vld [vmem:[#allocation4 + $0x160] sm:$0xf0] }
 0x327   : > { %5430 = vmatmul.bf16.gmra.mxu0 %v6646_v7  ;;  %v5186_v49 = vpop.f32.mrf.mxu3  ;;  %v3958_v1 = vpack.c.bf16 %v3942_v48, %v3942_v48  ;;  %v4037_v50 = vpack.c.bf16 %v4021_v30, %v4021_v30  ;;  %v4038_v7 = vpack.c.bf16 %v4022_v6, %v4022_v6  ;;  %v4101_v40 = vmul.f32 %v8044_v39, %v9815_v61  ;;  %v8185_v30 = vld [vmem:[#allocation5 + $0x230] sm:$0xff]  }
 0x328   : > { %v3814_v60 = vpack.c.bf16 %v3798_v32, %v3798_v32  ;;  %3973 = vst [vmem:[#allocation4 + $0x180] sm:$0xf] %v3957_v47  ;;  %v4118_v59 = vpack.c.bf16 %v4102_v36, %v4102_v36  ;;  %v6678_v18 = vor.u32 %v7396_v56, %v6675_v34  ;;  %v8164_v32 = vld [vmem:[#allocation5 + $0x170] sm:$0xff]   ;;  %v7984_v48 = vunpack.c.l.bf16 %v8171_v13  ;;  %v11004_v34 = vld [vmem:[#allocation55_spill] sm:$0xff] }
 0x329   : > { %v5137_v25 = vpop.f32.mrf.mxu2  ;;  %3974 = vst [vmem:[#allocation4 + $0x1a4] sm:$0xf] %v3958_v1  ;;  %v4117_v52 = vpack.c.bf16 %v4101_v40, %v4101_v40  ;;  %v7953_v31 = vunpack.c.h.bf16 %v8164_v32  ;;  %v7985_v39 = vunpack.c.h.bf16 %v8171_v13  ;;  %v3912_v3 = vunpack.c.l.bf16 %v3880_v46  ;;  %v11003_v40 = vld [vmem:[#allocation53_spill] sm:$0xff] }
 0x32a   : > { %v5138_v16 = vadd.f32 %v5137_v25, %v5089_v55  ;;  %3830 = vst [vmem:[#allocation4 + $0x1a0] sm:$0xf] %v3814_v60  ;;  %v3879_v25 = vpack.c.bf16 %v3853_v33, %v3853_v33  ;;  %v8048_v51 = vunpack.c.l.bf16 %v8185_v30 }
 0x32b   : > { %v5090_v57 = vpop.f32.mrf.mxu1  ;;  %4053 = vst [vmem:[#allocation4 + $0x184] sm:$0xf] %v4037_v50  ;;  %v3944_v50 = vmul.f32 %v7985_v39, %v3912_v3 }
 0x32c   : > { %v5187_v23 = vadd.f32 %v5186_v49, %v5138_v16  ;;  %v5091_v38 = vadd.f32 %v5090_v57, %v5042_v58  ;;  %v5237_v10 = vpop.f32.mrf.mxu0  ;;  %4054 = vst [vmem:[#allocation4 + $0x1a8] sm:$0xf] %v4038_v7  ;;  %v7952_v49 = vunpack.c.l.bf16 %v8164_v32  ;;  %v8178_v57 = vld [vmem:[#allocation5 + $0x1f0] sm:$0xff]   ;;  %v3911_v42 = vunpack.c.l.bf16 %v3879_v25 }
 0x32d   : > { %4133 = vst [vmem:[#allocation4 + $0x188] sm:$0xf] %v4117_v52  ;;  %v8016_v60 = vunpack.c.l.bf16 %v8178_v57  ;;  %v8017_v47 = vunpack.c.h.bf16 %v8178_v57  ;;  %v7404_v52 = vld [vmem:[#allocation4 + $0x134] sm:$0xf] }
 0x32e   : > { %v10608_v55 = vadd.f32 %v5235_v41, %v5187_v23  ;;  %v6674_v41 = vor.u32 %v7400_v53, %v6673_v24  ;;  %4134 = vst [vmem:[#allocation4 + $0x1ac] sm:$0xf] %v4118_v59  ;;  %v11002_v23 = vld [vmem:[#allocation52_spill] sm:$0xff]  ;;  %v3943_v1 = vmul.f32 %v7984_v48, %v3911_v42  ;;  %v6709_v59 = vld [vmem:[#allocation4 + $0x138] sm:$0xf] }
 0x32f   : > { %v5188_v61 = vpop.f32.mrf.mxu3  ;;  %v4023_v56 = vmul.f32 %v8016_v60, %v11003_v40  ;;  %v4024_v36 = vmul.f32 %v8017_v47, %v11004_v34  ;;  %v11006_v48 = vld [vmem:[#allocation36_spill] sm:$0xff]  ;;  %v8165_v47 = vld [vmem:[#allocation5 + $0x178] sm:$0xff]  }
 0x330   : > { %v3959_v17 = vpack.c.bf16 %v3943_v1, %v3943_v1  ;;  %v7957_v62 = vunpack.c.h.bf16 %v8165_v47  ;;  %v11009_v40 = vld [vmem:[#allocation54_spill] sm:$0xff] }
 0x331   : > { %v5139_v12 = vpop.f32.mrf.mxu2  ;;  %v11010_v34 = vld [vmem:[#allocation42_spill] sm:$0xff] }
 0x332   : > { %v5140_v63 = vadd.f32 %v5139_v12, %v5091_v38  ;;  %v3799_v38 = vmul.f32 %v7952_v49, %v11002_v23  ;;  %v4039_v12 = vpack.c.bf16 %v4023_v56, %v4023_v56  ;;  %3975 = vst [vmem:[#allocation4 + $0x1c8] sm:$0xf] %v3959_v17 }
 0x333   : > { %v5093_v14 = vpop.f32.mrf.mxu1 }
 0x334   : > { %v5189_v37 = vadd.f32 %v5188_v61, %v5140_v63  ;;  %v5094_v5 = vadd.f32 %v5093_v14, %v5045_v9  ;;  %v5240_v58 = vpop.f32.mrf.mxu0  ;;  %5386 = vmatmul.bf16.gmra.mxu3 %v6678_v18  ;;  %v3815_v53 = vpack.c.bf16 %v3799_v38, %v3799_v38  ;;  %v6703_v9 = vld [vmem:[#allocation4 + $0x154] sm:$0xf0]  ;;  %v7409_v63 = vld [vmem:[#allocation4 + $0x158] sm:$0xf0]  ;;  %v4040_v61 = vpack.c.bf16 %v4024_v36, %v4024_v36 }
 0x335   : > { %v7405_v18 = vld [vmem:[#allocation4 + $0x13c] sm:$0xf]  ;;  %4055 = vst [vmem:[#allocation4 + $0x1cc] sm:$0xf] %v4039_v12  ;;  %v6706_v49 = vor.u32 %v7404_v52, %v6703_v9  ;;  %v3802_v36 = vmul.f32 %v7957_v62, %v11010_v34  ;;  %v8052_v9 = vunpack.c.l.bf16 %v8186_v8 }
 0x336   : > { %5288 = vmatmul.bf16.gmra.mxu1 %v6670_v22  ;;  %5337 = vmatmul.bf16.gmra.mxu2 %v6674_v41  ;;  %v10623_v16 = vadd.f32 %v5237_v10, %v5189_v37  ;;  %v3800_v10 = vmul.f32 %v7953_v31, %v10431_v28  ;;  %3831 = vst [vmem:[#allocation4 + $0x1c4] sm:$0xf] %v3815_v53  ;;  %v8049_v22 = vunpack.c.h.bf16 %v8185_v30  ;;  %v11005_v41 = vld [vmem:[#allocation39_spill] sm:$0xff] }
 0x337   : > { %5435 = vmatmul.bf16.gmra.mxu0 %v6682_v0  ;;  %v5191_v15 = vpop.f32.mrf.mxu3  ;;  %v3960_v28 = vpack.c.bf16 %v3944_v50, %v3944_v50  ;;  %v4103_v27 = vmul.f32 %v8048_v51, %v11005_v41  ;;  %v6711_v0 = vld [vmem:[#allocation4 + $0x15c] sm:$0xf0]  ;;  %v6710_v31 = vor.u32 %v7409_v63, %v6709_v59  ;;  %4056 = vst [vmem:[#allocation4 + $0x1f0] sm:$0xf] %v4040_v61 }
 0x338   : > { %v3816_v7 = vpack.c.bf16 %v3800_v10, %v3800_v10  ;;  %v4104_v37 = vmul.f32 %v8049_v22, %v10976_v26  ;;  %v6714_v57 = vor.u32 %v7405_v18, %v6711_v0  ;;  %v3818_v22 = vpack.c.bf16 %v3802_v36, %v3802_v36  ;;  %v11011_v59 = vld [vmem:[#allocation56_spill] sm:$0xff]  ;;  %v11013_v18 = vld [vmem:[#allocation43_spill] sm:$0xff]  ;;  %v11017_v36 = vld [vmem:[#allocation45_spill] sm:$0xff] }
 0x339   : > { %v5142_v6 = vpop.f32.mrf.mxu2  ;;  %3976 = vst [vmem:[#allocation4 + $0x1ec] sm:$0xf] %v3960_v28  ;;  %v4119_v33 = vpack.c.bf16 %v4103_v27, %v4103_v27  ;;  %v11012_v61 = vld [vmem:[#allocation44_spill] sm:$0xff] }
 0x33a   : > { %v5143_v2 = vadd.f32 %v5142_v6, %v5094_v5  ;;  %3832 = vst [vmem:[#allocation4 + $0x1e8] sm:$0xf] %v3816_v7  ;;  %v6717_v5 = vld [vmem:[#allocation4 + $0x140] sm:$0xf]  ;;  %v4120_v46 = vpack.c.bf16 %v4104_v37, %v4104_v37 }
 0x33b   : > { %v5095_v24 = vpop.f32.mrf.mxu1  ;;  %v6718_v42 = vor.u32 %v7410_v19, %v6717_v5  ;;  %4135 = vst [vmem:[#allocation4 + $0x1d0] sm:$0xf] %v4119_v33  ;;  %v7413_v19 = vld [vmem:[#allocation4 + $0x17c] sm:$0xf]  ;;  %v6739_v33 = vld [vmem:[#allocation4 + $0x19c] sm:$0xf0] }
 0x33c   : > { %v5192_v45 = vadd.f32 %v5191_v15, %v5143_v2  ;;  %v5096_v4 = vadd.f32 %v5095_v24, %v5047_v54  ;;  %v5242_v43 = vpop.f32.mrf.mxu0  ;;  %4136 = vst [vmem:[#allocation4 + $0x1f4] sm:$0xf] %v4120_v46  ;;  %v11007_v54 = vld [vmem:[#allocation33_spill] sm:$0xff]  ;;  %v8172_v2 = vld [vmem:[#allocation5 + $0x1b8] sm:$0xff]  }
 0x33d   : > { %v11008_v6 = vrot.slane %v11007_v54, 6  ;;  %v7988_v1 = vunpack.c.l.bf16 %v8172_v2  ;;  %v7989_v50 = vunpack.c.h.bf16 %v8172_v2  ;;  %3834 = vst [vmem:[#allocation4 + $0x230] sm:$0xf] %v3818_v22  ;;  %v7419_v54 = vld [vmem:[#allocation4 + $0x1a8] sm:$0xf0]  ;;  %v6742_v2 = vor.u32 %v7413_v19, %v6739_v33 }
 0x33e   : > { %v10632_v14 = vadd.f32 %v5240_v58, %v5192_v45  ;;  %v3850_v58 = vrot.slane %v11006_v48, 6  ;;  %v11014_v48 = vld [vmem:[#allocation38_spill] sm:$0xff] }
 0x33f   : > { %v5193_v13 = vpop.f32.mrf.mxu3  ;;  %v6783_v22 = vld [vmem:[#allocation4 + $0x1ec] sm:$0xf0] }
 0x340   : > { %v3851_v30 = vsel %vm1266_vm3, %v3849_v20, %v3850_v58  ;;  %v3866_v23 = vsel %vm1266_vm3, %v3850_v58, %v11008_v6  ;;  %v8179_v20 = vld [vmem:[#allocation5 + $0x1f8] sm:$0xff]   ;;  %v4105_v58 = vmul.f32 %v8052_v9, %v11014_v48  ;;  %v6781_v9 = vld [vmem:[#allocation4 + $0x1c8] sm:$0xf] }
 0x341   : > { %v5144_v25 = vpop.f32.mrf.mxu2  ;;  %v3881_v38 = vpack.c.bf16 %v3851_v30, %v3851_v30  ;;  %v3882_v10 = vpack.c.bf16 %v3866_v23, %v3866_v23  ;;  %v8020_v53 = vunpack.c.l.bf16 %v8179_v20  ;;  %v8021_v45 = vunpack.c.h.bf16 %v8179_v20  ;;  %v6753_v30 = vld [vmem:[#allocation4 + $0x188] sm:$0xf]  ;;  %v11016_v20 = vld [vmem:[#allocation31_spill] sm:$0xff] }
 0x342   : > { %v5145_v32 = vadd.f32 %v5144_v25, %v5096_v4  ;;  %v4121_v6 = vpack.c.bf16 %v4105_v58, %v4105_v58 }
 0x343   : > { %v5098_v39 = vpop.f32.mrf.mxu1  ;;  %v3913_v51 = vunpack.c.l.bf16 %v3881_v38  ;;  %v3914_v24 = vunpack.c.l.bf16 %v3882_v10  ;;  %v4025_v63 = vmul.f32 %v8020_v53, %v11011_v59  ;;  %v4026_v41 = vmul.f32 %v8021_v45, %v11012_v61  ;;  %v6789_v59 = vld [vmem:[#allocation4 + $0x1d0] sm:$0xf] }
 0x344   : > { %v5194_v3 = vadd.f32 %v5193_v13, %v5145_v32  ;;  %v5099_v26 = vadd.f32 %v5098_v39, %v10486_v35  ;;  %v5245_v60 = vpop.f32.mrf.mxu0  ;;  %5391 = vmatmul.bf16.gmra.mxu3 %v6714_v57  ;;  %v7956_v35 = vunpack.c.l.bf16 %v8165_v47  ;;  %v8053_v32 = vunpack.c.h.bf16 %v8186_v8  ;;  %v6745_v13 = vld [vmem:[#allocation4 + $0x180] sm:$0xf]  ;;  %v7414_v57 = vld [vmem:[#allocation4 + $0x184] sm:$0xf]  ;;  %4137 = vst [vmem:[#allocation4 + $0x218] sm:$0xf] %v4121_v6 }
 0x345   : > { %v3945_v17 = vmul.f32 %v7988_v1, %v3913_v51  ;;  %v3946_v52 = vmul.f32 %v7989_v50, %v3914_v24  ;;  %v4041_v46 = vpack.c.bf16 %v4025_v63, %v4025_v63  ;;  %v6754_v1 = vor.u32 %v7419_v54, %v6753_v30  ;;  %v7428_v63 = vld [vmem:[#allocation4 + $0x1f0] sm:$0xf0]  ;;  %v6811_v54 = vld [vmem:[#allocation4 + $0x22c] sm:$0xf0] }
 0x346   : > { %5293 = vmatmul.bf16.gmra.mxu1 %v6706_v49  ;;  %5342 = vmatmul.bf16.gmra.mxu2 %v6710_v31  ;;  %v10645_v15 = vadd.f32 %v5242_v43, %v5194_v3  ;;  %v3801_v56 = vmul.f32 %v7956_v35, %v11009_v40  ;;  %v7418_v49 = vld [vmem:[#allocation4 + $0x1a0] sm:$0xf0]  ;;  %v4042_v31 = vpack.c.bf16 %v4026_v41, %v4026_v41  ;;  %v11015_v3 = vld [vmem:[#allocation37_spill] sm:$0xff] }
 0x347   : > { %5440 = vmatmul.bf16.gmra.mxu0 %v6718_v42  ;;  %v5196_v43 = vpop.f32.mrf.mxu3  ;;  %v3961_v5 = vpack.c.bf16 %v3945_v17, %v3945_v17  ;;  %v3962_v25 = vpack.c.bf16 %v3946_v52, %v3946_v52  ;;  %v6747_v42 = vld [vmem:[#allocation4 + $0x1a4] sm:$0xf0]  ;;  %4057 = vst [vmem:[#allocation4 + $0x214] sm:$0xf] %v4041_v46  ;;  %v6746_v35 = vor.u32 %v7418_v49, %v6745_v13 }
 0x348   : > { %v3817_v12 = vpack.c.bf16 %v3801_v56, %v3801_v56  ;;  %4058 = vst [vmem:[#allocation4 + $0x238] sm:$0xf] %v4042_v31  ;;  %v6775_v17 = vld [vmem:[#allocation4 + $0x1e4] sm:$0xf0]  ;;  %v6790_v19 = vor.u32 %v7428_v63, %v6789_v59 }
 0x349   : > { %v5147_v7 = vpop.f32.mrf.mxu2  ;;  %3977 = vst [vmem:[#allocation4 + $0x210] sm:$0xf] %v3961_v5 }
 0x34a   : > { %v5148_v4 = vadd.f32 %v5147_v7, %v5099_v26  ;;  %3833 = vst [vmem:[#allocation4 + $0x20c] sm:$0xf] %v3817_v12  ;;  %v4106_v26 = vmul.f32 %v8053_v32, %v11015_v3  ;;  %v7423_v12 = vld [vmem:[#allocation4 + $0x1cc] sm:$0xf] }
 0x34b   : > { %v5100_v28 = vpop.f32.mrf.mxu1  ;;  %3978 = vst [vmem:[#allocation4 + $0x234] sm:$0xf] %v3962_v25  ;;  %v6786_v5 = vor.u32 %v7423_v12, %v6783_v22  ;;  %v11018_v25 = vld [vmem:[#allocation40_spill] sm:$0xff] }
 0x34c   : > { %v5197_v27 = vadd.f32 %v5196_v43, %v5148_v4  ;;  %v5101_v0 = vadd.f32 %v5100_v28, %v11013_v18  ;;  %v5247_v37 = vpop.f32.mrf.mxu0  ;;  %v4122_v38 = vpack.c.bf16 %v4106_v26, %v4106_v26  ;;  %v7422_v43 = vld [vmem:[#allocation4 + $0x1c4] sm:$0xf]  ;;  %v7427_v28 = vld [vmem:[#allocation4 + $0x1e8] sm:$0xf0] }
 0x34d   : > { %v6778_v18 = vor.u32 %v7422_v43, %v6775_v17 }
 0x34e   : > { %v10653_v39 = vadd.f32 %v5245_v60, %v5197_v27  ;;  %v6750_v60 = vor.u32 %v7414_v57, %v6747_v42  ;;  %4138 = vst [vmem:[#allocation4 + $0x23c] sm:$0xf] %v4122_v38  ;;  %v11019_v42 = vld [vmem:[#allocation41_spill] sm:$0xff] }
 0x34f   : > { %v5198_v47 = vpop.f32.mrf.mxu3 }
 0x351   : > { %v5149_v23 = vpop.f32.mrf.mxu2  ;;  %v7431_v30 = vld [vmem:[#allocation4 + $0x20c] sm:$0xf] }
 0x352   : > { %v5150_v10 = vadd.f32 %v5149_v23, %v5101_v0  ;;  %v6782_v0 = vor.u32 %v7427_v28, %v6781_v9  ;;  %v6817_v23 = vld [vmem:[#allocation4 + $0x210] sm:$0xf]  ;;  %v7436_v38 = vld [vmem:[#allocation4 + $0x230] sm:$0xf0]  ;;  %v11021_v28 = vld [vmem:[#allocation47_spill] sm:$0xff] }
 0x353   : > { %v5103_v62 = vpop.f32.mrf.mxu1 }
 0x354   : > { %v5199_v50 = vadd.f32 %v5198_v47, %v5150_v10  ;;  %v5104_v51 = vadd.f32 %v5103_v62, %v11016_v20  ;;  %v5250_v24 = vpop.f32.mrf.mxu0  ;;  %5396 = vmatmul.bf16.gmra.mxu3 %v6750_v60  ;;  %v7432_v10 = vld [vmem:[#allocation4 + $0x214] sm:$0xf]  ;;  %v6819_v47 = vld [vmem:[#allocation4 + $0x234] sm:$0xf0]  ;;  %v6818_v20 = vor.u32 %v7436_v38, %v6817_v23 }
 0x356   : > { %5298 = vmatmul.bf16.gmra.mxu1 %v6742_v2  ;;  %5347 = vmatmul.bf16.gmra.mxu2 %v6746_v35  ;;  %v10657_v53 = vadd.f32 %v5247_v37, %v5199_v50  ;;  %v6825_v2 = vld [vmem:[#allocation4 + $0x218] sm:$0xf]  ;;  %v7437_v35 = vld [vmem:[#allocation4 + $0x238] sm:$0xf0]  ;;  %v6814_v50 = vor.u32 %v7431_v30, %v6811_v54 }
 0x357   : > { %5445 = vmatmul.bf16.gmra.mxu0 %v6754_v1  ;;  %v5201_v40 = vpop.f32.mrf.mxu3 }
 0x359   : > { %v5152_v8 = vpop.f32.mrf.mxu2 }
 0x35a   : > { %v5153_v7 = vadd.f32 %v5152_v8, %v5104_v51  ;;  %v6826_v8 = vor.u32 %v7437_v35, %v6825_v2 }
 0x35b   : > { %v5105_v56 = vpop.f32.mrf.mxu1 }
 0x35c   : > { %v5202_v34 = vadd.f32 %v5201_v40, %v5153_v7  ;;  %v5106_v45 = vadd.f32 %v5105_v56, %v11017_v36  ;;  %v5252_v4 = vpop.f32.mrf.mxu0  ;;  %v11020_v40 = vld [vmem:[#allocation32_spill] sm:$0xff] }
 0x35e   : > { %v10660_v52 = vadd.f32 %v5250_v24, %v5202_v34  ;;  %v6822_v24 = vor.u32 %v7432_v10, %v6819_v47 }
 0x35f   : > { %v5203_v27 = vpop.f32.mrf.mxu3 }
 0x361   : > { %v5154_v61 = vpop.f32.mrf.mxu2 }
 0x362   : > { %v5155_v41 = vadd.f32 %v5154_v61, %v5106_v45 }
 0x363   : > { %v5108_v37 = vpop.f32.mrf.mxu1 }
 0x364   : > { %v5204_v33 = vadd.f32 %v5203_v27, %v5155_v41  ;;  %v5109_v46 = vadd.f32 %v5108_v37, %v11018_v25  ;;  %v5255_v32 = vpop.f32.mrf.mxu0  ;;  %5401 = vmatmul.bf16.gmra.mxu3 %v6786_v5 }
 0x366   : > { %5303 = vmatmul.bf16.gmra.mxu1 %v6778_v18  ;;  %5352 = vmatmul.bf16.gmra.mxu2 %v6782_v0  ;;  %v10663_v13 = vadd.f32 %v5252_v4, %v5204_v33 }
 0x367   : > { %5450 = vmatmul.bf16.gmra.mxu0 %v6790_v19  ;;  %v5206_v48 = vpop.f32.mrf.mxu3 }
 0x369   : > { %v5157_v49 = vpop.f32.mrf.mxu2 }
 0x36a   : > { %v5158_v31 = vadd.f32 %v5157_v49, %v5109_v46 }
 0x36b   : > { %v5110_v58 = vpop.f32.mrf.mxu1 }
 0x36c   : > { %v5207_v57 = vadd.f32 %v5206_v48, %v5158_v31  ;;  %v5111_v3 = vadd.f32 %v5110_v58, %v11019_v42  ;;  %v5257_v26 = vpop.f32.mrf.mxu0  ;;  %v5461_v31 = vld [vmem:[#allocation3 + $0x28] sm:$0xff] }
 0x36e   : > { %v10666_v6 = vadd.f32 %v5255_v32, %v5207_v57 }
 0x36f   : > { %v5208_v1 = vpop.f32.mrf.mxu3 }
 0x371   : > { %v5159_v62 = vpop.f32.mrf.mxu2 }
 0x372   : > { %v5160_v60 = vadd.f32 %v5159_v62, %v5111_v3 }
 0x373   : > { %v5113_v51 = vpop.f32.mrf.mxu1 }
 0x374   : > { %v5209_v7 = vadd.f32 %v5208_v1, %v5160_v60  ;;  %v5114_v56 = vadd.f32 %v5113_v51, %v11020_v40  ;;  %v5260_v34 = vpop.f32.mrf.mxu0  ;;  %5406 = vmatmul.bf16.gmra.mxu3 %v6822_v24  ;;  %v5463_v51 = vld [vmem:[#allocation3 + $0x10] sm:$0xff] }
 0x376   : > { %5308 = vmatmul.bf16.gmra.mxu1 %v6814_v50  ;;  %5357 = vmatmul.bf16.gmra.mxu2 %v6818_v20  ;;  %v10669_v36 = vadd.f32 %v5257_v26, %v5209_v7 }
 0x377   : > { %5455 = vmatmul.bf16.gmra.mxu0 %v6826_v8  ;;  %v5211_v43 = vpop.f32.mrf.mxu3 }
 0x379   : > { %v5162_v45 = vpop.f32.mrf.mxu2 }
 0x37a   : > { %v5163_v4 = vadd.f32 %v5162_v45, %v5114_v56 }
 0x37b   : > { %v5115_v17 = vpop.f32.mrf.mxu1 }
 0x37c   : > { %v5212_v9 = vadd.f32 %v5211_v43, %v5163_v4  ;;  %v5116_v12 = vadd.f32 %v5115_v17, %v11021_v28  ;;  %v5262_v22 = vpop.f32.mrf.mxu0  ;;  %v5464_v17 = vld [vmem:[#allocation3 + $0x40] sm:$0xff] }
 0x37e   : > { %v10672_v59 = vadd.f32 %v5260_v34, %v5212_v9 }
 0x37f   : > { %v5213_v41 = vpop.f32.mrf.mxu3 }
 0x381   : > { %v5164_v63 = vpop.f32.mrf.mxu2 }
 0x382   : > { %v5165_v61 = vadd.f32 %v5164_v63, %v5116_v12 }
 0x383   : > { %v5274_v27 = vpop.f32.mrf.mxu1 }
 0x384   : > { %v5214_v18 = vadd.f32 %v5213_v41, %v5165_v61  ;;  %v5421_v0 = vpop.f32.mrf.mxu0  ;;  %v5275_v5 = vadd.f32 %v5274_v27, %v10560_v11  ;;  %v5462_v11 = vld [vmem:[#allocation3 + $0x68] sm:$0xff] }
 0x386   : > { %v10674_v37 = vadd.f32 %v5262_v22, %v5214_v18 }
 0x387   : > { %v5372_v25 = vpop.f32.mrf.mxu3 }
 0x389   : > { %v5323_v19 = vpop.f32.mrf.mxu2 }
 0x38a   : > { %v5324_v33 = vadd.f32 %v5323_v19, %v5275_v5 }
 0x38b   : > { %v5276_v46 = vpop.f32.mrf.mxu1 }
 0x38c   : > { %v5373_v32 = vadd.f32 %v5372_v25, %v5324_v33  ;;  %v5423_v49 = vpop.f32.mrf.mxu0  ;;  %v5277_v57 = vadd.f32 %v5276_v46, %v10575_v21 }
 0x38e   : > { %v5422_v48 = vadd.f32 %v5421_v0, %v5373_v32  ;;  %v5465_v0 = vld [vmem:[#allocation3 + $0x48] sm:$0xff] }
 0x38f   : > { %v5374_v30 = vpop.f32.mrf.mxu3 }
 0x390   : > { %v5477_v58 = vadd.f32 %v5461_v31, %v5422_v48 }
 0x391   : > { %v5325_v42 = vpop.f32.mrf.mxu2 }
 0x392   : > { %v5493_v3 = vmax.f32 %v5477_v58, 0.0  ;;  %v5326_v26 = vadd.f32 %v5325_v42, %v5277_v57  ;;  %v5466_v58 = vld [vmem:[#allocation3 + $0x30] sm:$0xff] }
 0x393   : > { %v5279_v54 = vpop.f32.mrf.mxu1 }
 0x394   : > { %5509 = vst [vmem:[#allocation2 + $0x30] sm:$0xff] %v5493_v3  ;;  %v5375_v23 = vadd.f32 %v5374_v30, %v5326_v26  ;;  %v5426_v38 = vpop.f32.mrf.mxu0  ;;  %v5280_v2 = vadd.f32 %v5279_v54, %v10584_v29 }
 0x395   : > { %5525 = vst [vmem:[#allocation3 + $0x28] sm:$0xff] %v5493_v3 }
 0x396   : > { %v5424_v10 = vadd.f32 %v5423_v49, %v5375_v23 }
 0x397   : > { %v5377_v1 = vpop.f32.mrf.mxu3 }
 0x398   : > { %v5478_v47 = vadd.f32 %v5462_v11, %v5424_v10  ;;  %v5467_v10 = vld [vmem:[#allocation3 + $0x70] sm:$0xff] }
 0x399   : > { %v5328_v35 = vpop.f32.mrf.mxu2 }
 0x39a   : > { %v5494_v62 = vmax.f32 %v5478_v47, 0.0  ;;  %v5329_v60 = vadd.f32 %v5328_v35, %v5280_v2 }
 0x39b   : > { %v5281_v50 = vpop.f32.mrf.mxu1 }
 0x39c   : > { %5510 = vst [vmem:[#allocation2] sm:$0xff] %v5494_v62  ;;  %v5378_v21 = vadd.f32 %v5377_v1, %v5329_v60  ;;  %v5428_v20 = vpop.f32.mrf.mxu0  ;;  %v5282_v7 = vadd.f32 %v5281_v50, %v10599_v44 }
 0x39d   : > { %5526 = vst [vmem:[#allocation3 + $0x68] sm:$0xff] %v5494_v62 }
 0x39e   : > { %v5427_v24 = vadd.f32 %v5426_v38, %v5378_v21 }
 0x39f   : > { %v5379_v45 = vpop.f32.mrf.mxu3 }
 0x3a0   : > { %v5479_v8 = vadd.f32 %v5463_v51, %v5427_v24  ;;  %v5468_v51 = vld [vmem:[#allocation3 + $0x38] sm:$0xff] }
 0x3a1   : > { %v5330_v40 = vpop.f32.mrf.mxu2 }
 0x3a2   : > { %v5495_v56 = vmax.f32 %v5479_v8, 0.0  ;;  %v5331_v34 = vadd.f32 %v5330_v40, %v5282_v7 }
 0x3a3   : > { %v5284_v4 = vpop.f32.mrf.mxu1 }
 0x3a4   : > { %5511 = vst [vmem:[#allocation2 + $0x58] sm:$0xff] %v5495_v56  ;;  %v5380_v29 = vadd.f32 %v5379_v45, %v5331_v34  ;;  %v5431_v43 = vpop.f32.mrf.mxu0  ;;  %v5285_v12 = vadd.f32 %v5284_v4, %v10608_v55 }
 0x3a5   : > { %5527 = vst [vmem:[#allocation3 + $0x10] sm:$0xff] %v5495_v56 }
 0x3a6   : > { %v5429_v9 = vadd.f32 %v5428_v20, %v5380_v29 }
 0x3a7   : > { %v5382_v41 = vpop.f32.mrf.mxu3 }
 0x3a8   : > { %v5480_v28 = vadd.f32 %v5464_v17, %v5429_v9 }
 0x3a9   : > { %v5333_v22 = vpop.f32.mrf.mxu2 }
 0x3aa   : > { %v5496_v63 = vmax.f32 %v5480_v28, 0.0  ;;  %v5334_v61 = vadd.f32 %v5333_v22, %v5285_v12 }
 0x3ab   : > { %v5286_v27 = vpop.f32.mrf.mxu1 }
 0x3ac   : > { %5512 = vst [vmem:[#allocation2 + $0x18] sm:$0xff] %v5496_v63  ;;  %v5383_v44 = vadd.f32 %v5382_v41, %v5334_v61  ;;  %v5433_v18 = vpop.f32.mrf.mxu0  ;;  %v5287_v33 = vadd.f32 %v5286_v27, %v10623_v16 }
 0x3ad   : > { %5528 = vst [vmem:[#allocation3 + $0x40] sm:$0xff] %v5496_v63 }
 0x3ae   : > { %v5432_v5 = vadd.f32 %v5431_v43, %v5383_v44  ;;  %v5469_v43 = vld [vmem:[#allocation3 + $0x20] sm:$0xff]  ;;  %v5470_v44 = vld [vmem:[#allocation3 + $0x78] sm:$0xff] }
 0x3af   : > { %v5384_v49 = vpop.f32.mrf.mxu3 }
 0x3b0   : > { %v5481_v19 = vadd.f32 %v5465_v0, %v5432_v5 }
 0x3b1   : > { %v5335_v25 = vpop.f32.mrf.mxu2 }
 0x3b2   : > { %v5497_v46 = vmax.f32 %v5481_v19, 0.0  ;;  %v5336_v32 = vadd.f32 %v5335_v25, %v5287_v33 }
 0x3b3   : > { %v5289_v31 = vpop.f32.mrf.mxu1 }
 0x3b4   : > { %5513 = vst [vmem:[#allocation2 + $0x50] sm:$0xff] %v5497_v46  ;;  %v5385_v55 = vadd.f32 %v5384_v49, %v5336_v32  ;;  %v5436_v48 = vpop.f32.mrf.mxu0  ;;  %v5290_v3 = vadd.f32 %v5289_v31, %v10632_v14  ;;  %v5471_v49 = vld [vmem:[#allocation3 + $0x18] sm:$0xff] }
 0x3b5   : > { %5529 = vst [vmem:[#allocation3 + $0x48] sm:$0xff] %v5497_v46 }
 0x3b6   : > { %v5434_v57 = vadd.f32 %v5433_v18, %v5385_v55 }
 0x3b7   : > { %v5387_v23 = vpop.f32.mrf.mxu3 }
 0x3b8   : > { %v5482_v42 = vadd.f32 %v5466_v58, %v5434_v57 }
 0x3b9   : > { %v5338_v26 = vpop.f32.mrf.mxu2 }
 0x3ba   : > { %v5498_v30 = vmax.f32 %v5482_v42, 0.0  ;;  %v5339_v54 = vadd.f32 %v5338_v26, %v5290_v3 }
 0x3bb   : > { %v5291_v38 = vpop.f32.mrf.mxu1 }
 0x3bc   : > { %5514 = vst [vmem:[#allocation2 + $0x68] sm:$0xff] %v5498_v30  ;;  %v5388_v16 = vadd.f32 %v5387_v23, %v5339_v54  ;;  %v5438_v11 = vpop.f32.mrf.mxu0  ;;  %v5292_v35 = vadd.f32 %v5291_v38, %v10645_v15  ;;  %v5472_v54 = vld [vmem:[#allocation3 + $0x58] sm:$0xff] }
 0x3bd   : > { %5530 = vst [vmem:[#allocation3 + $0x30] sm:$0xff] %v5498_v30 }
 0x3be   : > { %v5437_v47 = vadd.f32 %v5436_v48, %v5388_v16 }
 0x3bf   : > { %v5389_v50 = vpop.f32.mrf.mxu3 }
 0x3c0   : > { %v5483_v2 = vadd.f32 %v5467_v10, %v5437_v47 }
 0x3c1   : > { %v5340_v62 = vpop.f32.mrf.mxu2 }
 0x3c2   : > { %v5499_v60 = vmax.f32 %v5483_v2, 0.0  ;;  %v5341_v1 = vadd.f32 %v5340_v62, %v5292_v35 }
 0x3c3   : > { %v5294_v21 = vpop.f32.mrf.mxu1 }
 0x3c4   : > { %5515 = vst [vmem:[#allocation2 + $0x8] sm:$0xff] %v5499_v60  ;;  %v5390_v14 = vadd.f32 %v5389_v50, %v5341_v1  ;;  %v5441_v20 = vpop.f32.mrf.mxu0  ;;  %v5295_v7 = vadd.f32 %v5294_v21, %v10653_v39 }
 0x3c5   : > { %5531 = vst [vmem:[#allocation3 + $0x70] sm:$0xff] %v5499_v60  ;;  %v5473_v60 = vld [vmem:[#allocation3] sm:$0xff] }
 0x3c6   : > { %v5439_v24 = vadd.f32 %v5438_v11, %v5390_v14 }
 0x3c7   : > { %v5392_v45 = vpop.f32.mrf.mxu3 }
 0x3c8   : > { %v5484_v8 = vadd.f32 %v5468_v51, %v5439_v24 }
 0x3c9   : > { %v5343_v40 = vpop.f32.mrf.mxu2 }
 0x3ca   : > { %v5500_v56 = vmax.f32 %v5484_v8, 0.0  ;;  %v5344_v34 = vadd.f32 %v5343_v40, %v5295_v7  ;;  %v5474_v40 = vld [vmem:[#allocation3 + $0x8] sm:$0xff] }
 0x3cb   : > { %v5296_v4 = vpop.f32.mrf.mxu1 }
 0x3cc   : > { %5516 = vst [vmem:[#allocation2 + $0x48] sm:$0xff] %v5500_v56  ;;  %v5393_v15 = vadd.f32 %v5392_v45, %v5344_v34  ;;  %v5443_v29 = vpop.f32.mrf.mxu0  ;;  %v5297_v28 = vadd.f32 %v5296_v4, %v10657_v53 }
 0x3cd   : > { %5532 = vst [vmem:[#allocation3 + $0x38] sm:$0xff] %v5500_v56 }
 0x3ce   : > { %v5442_v17 = vadd.f32 %v5441_v20, %v5393_v15 }
 0x3cf   : > { %v5394_v61 = vpop.f32.mrf.mxu3 }
 0x3d0   : > { %v5485_v9 = vadd.f32 %v5469_v43, %v5442_v17 }
 0x3d1   : > { %v5345_v12 = vpop.f32.mrf.mxu2 }
 0x3d2   : > { %v5501_v22 = vmax.f32 %v5485_v9, 0.0  ;;  %v5346_v63 = vadd.f32 %v5345_v12, %v5297_v28  ;;  %v5475_v9 = vld [vmem:[#allocation3 + $0x60] sm:$0xff] }
 0x3d3   : > { %v5299_v41 = vpop.f32.mrf.mxu1 }
 0x3d4   : > { %5517 = vst [vmem:[#allocation2 + $0x40] sm:$0xff] %v5501_v22  ;;  %v5395_v39 = vadd.f32 %v5394_v61, %v5346_v63  ;;  %v5446_v27 = vpop.f32.mrf.mxu0  ;;  %v5300_v5 = vadd.f32 %v5299_v41, %v10660_v52 }
 0x3d5   : > { %5533 = vst [vmem:[#allocation3 + $0x20] sm:$0xff] %v5501_v22 }
 0x3d6   : > { %v5444_v18 = vadd.f32 %v5443_v29, %v5395_v39 }
 0x3d7   : > { %v5397_v46 = vpop.f32.mrf.mxu3 }
 0x3d8   : > { %v5486_v0 = vadd.f32 %v5470_v44, %v5444_v18  ;;  %v5476_v18 = vld [vmem:[#allocation3 + $0x50] sm:$0xff] }
 0x3d9   : > { %v5348_v19 = vpop.f32.mrf.mxu2 }
 0x3da   : > { %v5502_v33 = vmax.f32 %v5486_v0, 0.0  ;;  %v5349_v25 = vadd.f32 %v5348_v19, %v5300_v5 }
 0x3db   : > { %v5301_v32 = vpop.f32.mrf.mxu1 }
 0x3dc   : > { %5518 = vst [vmem:[#allocation2 + $0x20] sm:$0xff] %v5502_v33  ;;  %v5398_v53 = vadd.f32 %v5397_v46, %v5349_v25  ;;  %v5448_v31 = vpop.f32.mrf.mxu0  ;;  %v5302_v58 = vadd.f32 %v5301_v32, %v10663_v13 }
 0x3dd   : > { %5534 = vst [vmem:[#allocation3 + $0x78] sm:$0xff] %v5502_v33 }
 0x3de   : > { %v5447_v55 = vadd.f32 %v5446_v27, %v5398_v53 }
 0x3df   : > { %v5399_v26 = vpop.f32.mrf.mxu3 }
 0x3e0   : > { %v5487_v48 = vadd.f32 %v5471_v49, %v5447_v55 }
 0x3e1   : > { %v5350_v57 = vpop.f32.mrf.mxu2 }
 0x3e2   : > { %v5503_v42 = vmax.f32 %v5487_v48, 0.0  ;;  %v5351_v3 = vadd.f32 %v5350_v57, %v5302_v58 }
 0x3e3   : > { %v5304_v30 = vpop.f32.mrf.mxu1 }
 0x3e4   : > { %5519 = vst [vmem:[#allocation2 + $0x10] sm:$0xff] %v5503_v42  ;;  %v5400_v52 = vadd.f32 %v5399_v26, %v5351_v3  ;;  %v5451_v38 = vpop.f32.mrf.mxu0  ;;  %v5305_v11 = vadd.f32 %v5304_v30, %v10666_v6 }
 0x3e5   : > { %5535 = vst [vmem:[#allocation3 + $0x18] sm:$0xff] %v5503_v42 }
 0x3e6   : > { %v5449_v23 = vadd.f32 %v5448_v31, %v5400_v52 }
 0x3e7   : > { %v5402_v35 = vpop.f32.mrf.mxu3 }
 0x3e8   : > { %v5488_v16 = vadd.f32 %v5472_v54, %v5449_v23 }
 0x3e9   : > { %v5353_v10 = vpop.f32.mrf.mxu2 }
 0x3ea   : > { %v5504_v47 = vmax.f32 %v5488_v16, 0.0  ;;  %v5354_v2 = vadd.f32 %v5353_v10, %v5305_v11 }
 0x3eb   : > { %v5306_v62 = vpop.f32.mrf.mxu1 }
 0x3ec   : > { %5520 = vst [vmem:[#allocation2 + $0x38] sm:$0xff] %v5504_v47  ;;  %v5403_v13 = vadd.f32 %v5402_v35, %v5354_v2  ;;  %v5307_v21 = vadd.f32 %v5306_v62, %v10669_v36  ;;  %v5453_v14 = vpop.f32.mrf.mxu0 }
 0x3ed   : > { %5536 = vst [vmem:[#allocation3 + $0x58] sm:$0xff] %v5504_v47 }
 0x3ee   : > { %v5452_v1 = vadd.f32 %v5451_v38, %v5403_v13 }
 0x3ef   : > { %v5404_v8 = vpop.f32.mrf.mxu3 }
 0x3f0   : > { %v5489_v50 = vadd.f32 %v5473_v60, %v5452_v1 }
 0x3f1   : > { %v5355_v20 = vpop.f32.mrf.mxu2 }
 0x3f2   : > { %v5505_v51 = vmax.f32 %v5489_v50, 0.0  ;;  %v5356_v24 = vadd.f32 %v5355_v20, %v5307_v21 }
 0x3f3   : > { %v5309_v7 = vpop.f32.mrf.mxu1 }
 0x3f4   : > { %5521 = vst [vmem:[#allocation2 + $0x60] sm:$0xff] %v5505_v51  ;;  %v5405_v6 = vadd.f32 %v5404_v8, %v5356_v24  ;;  %v5310_v45 = vadd.f32 %v5309_v7, %v10672_v59  ;;  %v5456_v17 = vpop.f32.mrf.mxu0 }
 0x3f5   : > { %5537 = vst [vmem:[#allocation3] sm:$0xff] %v5505_v51 }
 0x3f6   : > { %v5454_v56 = vadd.f32 %v5453_v14, %v5405_v6 }
 0x3f7   : > { %v5407_v43 = vpop.f32.mrf.mxu3 }
 0x3f8   : > { %v5490_v34 = vadd.f32 %v5474_v40, %v5454_v56 }
 0x3f9   : > { %v5358_v4 = vpop.f32.mrf.mxu2 }
 0x3fa   : > { %v5506_v15 = vmax.f32 %v5490_v34, 0.0  ;;  %v5359_v29 = vadd.f32 %v5358_v4, %v5310_v45 }
 0x3fb   : > { %v5311_v28 = vpop.f32.mrf.mxu1 }
 0x3fc   : > { %5522 = vst [vmem:[#allocation2 + $0x70] sm:$0xff] %v5506_v15  ;;  %v5408_v36 = vadd.f32 %v5407_v43, %v5359_v29  ;;  %v5312_v63 = vadd.f32 %v5311_v28, %v10674_v37  ;;  %v5458_v44 = vpop.f32.mrf.mxu0 }
 0x3fd   : > { %5538 = vst [vmem:[#allocation3 + $0x8] sm:$0xff] %v5506_v15 }
 0x3fe   : > { %v5457_v12 = vadd.f32 %v5456_v17, %v5408_v36 }
 0x3ff   : > { %v5409_v27 = vpop.f32.mrf.mxu3 }
 0x400   : > { %v5491_v22 = vadd.f32 %v5475_v9, %v5457_v12 }
 0x401   : > { %v5360_v61 = vpop.f32.mrf.mxu2 }
 0x402   : > { %v5507_v41 = vmax.f32 %v5491_v22, 0.0  ;;  %v5361_v39 = vadd.f32 %v5360_v61, %v5312_v63 }
 0x404   : > { %5523 = vst [vmem:[#allocation2 + $0x78] sm:$0xff] %v5507_v41  ;;  %v5410_v59 = vadd.f32 %v5409_v27, %v5361_v39 }
 0x405   : > { %5539 = vst [vmem:[#allocation3 + $0x60] sm:$0xff] %v5507_v41 }
 0x406   : > { %v5459_v0 = vadd.f32 %v5458_v44, %v5410_v59 }
 0x408   : > { %v5492_v5 = vadd.f32 %v5476_v18, %v5459_v0 }
 0x40a   : > { %v5508_v19 = vmax.f32 %v5492_v5, 0.0 }
 0x40c   : > { %5524 = vst [vmem:[#allocation2 + $0x28] sm:$0xff] %v5508_v19 }
 0x40d   : > { %5540 = vst [vmem:[#allocation3 + $0x50] sm:$0xff] %v5508_v19 }
 0x40e PF: > { %p7115_p4 = scmp.ne.s32.totalorder %s8637_s25, 19 }
 0x410   : > { %5544 = sbr.rel (%p7115_p4) target bundleno = 1240 (0x4d8), region = 80 }
 0x415   : > { %v7445_v33 = vld [vmem:[#allocation9 + $0x38] sm:$0xff]  ;;  %v7444_v37 = vld [vmem:[#allocation9 + $0x30] sm:$0xff]  ;;  %v7443_v25 = vld [vmem:[#allocation9 + $0x28] sm:$0xff] }
 0x416   : > { %5637 = vmatpush.bf16.msra.mxu0 %v7445_v33  ;;  %8235 = vmatpush.bf16.msra.mxu1 %v7445_v33  ;;  %v7442_v46 = vld [vmem:[#allocation9 + $0x20] sm:$0xff]  ;;  %v7441_v32 = vld [vmem:[#allocation9 + $0x18] sm:$0xff]  ;;  %v7440_v53 = vld [vmem:[#allocation9 + $0x10] sm:$0xff] }
 0x417   : > { %8236 = vmatpush.bf16.msra.mxu2 %v7445_v33  ;;  %8237 = vmatpush.bf16.msra.mxu3 %v7445_v33  ;;  %v7439_v49 = vld [vmem:[#allocation9 + $0x8] sm:$0xff]  ;;  %v7438_v31 = vld [vmem:[#allocation9] sm:$0xff]  ;;  %v5546_v48 = vld [vmem:[#allocation2] sm:$0xff] }
 0x418   : > { %v5545_v55 = vld [vmem:[#allocation2 + $0x30] sm:$0xff]  ;;  %v5550_v57 = vld [vmem:[#allocation2 + $0x68] sm:$0xff]  ;;  %v5553_v42 = vld [vmem:[#allocation2 + $0x40] sm:$0xff] }
 0x419   : > { %v5549_v58 = vld [vmem:[#allocation2 + $0x50] sm:$0xff]  ;;  %v5554_v3 = vld [vmem:[#allocation2 + $0x20] sm:$0xff]  ;;  %v5561_v52 = vpack.c.bf16 %v5546_v48, %v5545_v55  ;;  %v5547_v16 = vld [vmem:[#allocation2 + $0x58] sm:$0xff] }
 0x41a   : > { %5638 = vmatpush.bf16.msra.mxu0 %v7444_v37  ;;  %8238 = vmatpush.bf16.msra.mxu1 %v7444_v37  ;;  %v5557_v26 = vld [vmem:[#allocation2 + $0x60] sm:$0xff]  ;;  %v5558_v30 = vld [vmem:[#allocation2 + $0x70] sm:$0xff]  ;;  %v5563_v54 = vpack.c.bf16 %v5550_v57, %v5549_v58  ;;  %v5565_v23 = vpack.c.bf16 %v5554_v3, %v5553_v42  ;;  %v5548_v11 = vld [vmem:[#allocation2 + $0x18] sm:$0xff] }
 0x41b   : > { %8239 = vmatpush.bf16.msra.mxu2 %v7444_v37  ;;  %8240 = vmatpush.bf16.msra.mxu3 %v7444_v37  ;;  %v5567_v38 = vpack.c.bf16 %v5558_v30, %v5557_v26  ;;  %v5551_v10 = vld [vmem:[#allocation2 + $0x8] sm:$0xff]  ;;  %v5555_v2 = vld [vmem:[#allocation2 + $0x10] sm:$0xff]  ;;  %v5556_v35 = vld [vmem:[#allocation2 + $0x38] sm:$0xff]  ;;  %v5562_v60 = vpack.c.bf16 %v5548_v11, %v5547_v16 }
 0x41c   : > { %v5552_v47 = vld [vmem:[#allocation2 + $0x48] sm:$0xff]  ;;  %v5559_v62 = vld [vmem:[#allocation2 + $0x78] sm:$0xff]  ;;  %v5566_v50 = vpack.c.bf16 %v5556_v35, %v5555_v2 }
 0x41d   : > { %v5560_v13 = vld [vmem:[#allocation2 + $0x28] sm:$0xff]  ;;  %v5564_v1 = vpack.c.bf16 %v5552_v47, %v5551_v10 }
 0x41e   : > { %5639 = vmatpush.bf16.msra.mxu0 %v7443_v25  ;;  %8241 = vmatpush.bf16.msra.mxu1 %v7443_v25  ;;  %v5568_v21 = vpack.c.bf16 %v5560_v13, %v5559_v62  ;;  %v8376_v14 = vld [vmem:[#allocation10] ss:$0 sm:$0xff] }
 0x41f   : > { %8242 = vmatpush.bf16.msra.mxu2 %v7443_v25  ;;  %8243 = vmatpush.bf16.msra.mxu3 %v7443_v25 }
 0x422   : > { %5640 = vmatpush.bf16.msra.mxu0 %v7442_v46  ;;  %8244 = vmatpush.bf16.msra.mxu1 %v7442_v46 }
 0x423   : > { %8245 = vmatpush.bf16.msra.mxu2 %v7442_v46  ;;  %8246 = vmatpush.bf16.msra.mxu3 %v7442_v46 }
 0x426   : > { %5641 = vmatpush.bf16.msra.mxu0 %v7441_v32  ;;  %8247 = vmatpush.bf16.msra.mxu1 %v7441_v32 }
 0x427   : > { %8248 = vmatpush.bf16.msra.mxu2 %v7441_v32  ;;  %8249 = vmatpush.bf16.msra.mxu3 %v7441_v32 }
 0x42a   : > { %5642 = vmatpush.bf16.msra.mxu0 %v7440_v53  ;;  %8250 = vmatpush.bf16.msra.mxu1 %v7440_v53 }
 0x42b   : > { %8251 = vmatpush.bf16.msra.mxu2 %v7440_v53  ;;  %8252 = vmatpush.bf16.msra.mxu3 %v7440_v53 }
 0x42e   : > { %5643 = vmatpush.bf16.msra.mxu0 %v7439_v49  ;;  %8253 = vmatpush.bf16.msra.mxu1 %v7439_v49 }
 0x42f   : > { %8254 = vmatpush.bf16.msra.mxu2 %v7439_v49  ;;  %8255 = vmatpush.bf16.msra.mxu3 %v7439_v49 }
 0x432   : > { %5644 = vmatpush.bf16.msra.mxu0 %v7438_v31  ;;  %8256 = vmatpush.bf16.msra.mxu1 %v7438_v31 }
 0x433   : > { %8257 = vmatpush.bf16.msra.mxu2 %v7438_v31  ;;  %8258 = vmatpush.bf16.msra.mxu3 %v7438_v31 }
 0x435   : > { %5645 = vmatmul.bf16.vlgmr.msra.gmra.mxu0 %v5561_v52  ;;  %5655 = vmatmul.bf16.vlgmr.msra.gmra.mxu1 %v5563_v54 }
 0x436   : > { %5665 = vmatmul.bf16.vlgmr.msra.gmra.mxu2 %v5565_v23  ;;  %5675 = vmatmul.bf16.vlgmr.msra.gmra.mxu3 %v5567_v38 }
 0x445   : > { %5650 = vmatmul.bf16.gmra.mxu0 %v5562_v60  ;;  %5660 = vmatmul.bf16.gmra.mxu1 %v5564_v1 }
 0x446   : > { %5670 = vmatmul.bf16.gmra.mxu2 %v5566_v50  ;;  %5680 = vmatmul.bf16.gmra.mxu3 %v5568_v21 }
 0x4b2   : > { %v5646_v20 = vpop.f32.mrf.mxu0  ;;  %v5656_v51 = vpop.f32.mrf.mxu1 }
 0x4b3   : > { %v5647_v24 = vadd.f32 %v8376_v14, %v5646_v20  ;;  %v5657_v8 = vadd.f32 %v8376_v14, %v5656_v51 }
 0x4b5   : > { %v5686_v7 = vmax.f32 %v5647_v24, 0.0  ;;  %v5690_v6 = vmax.f32 %v5657_v8, 0.0 }
 0x4b7   : > { %5702 = vst [vmem:[%s10760_s6] sm:$0xff] %v5686_v7 }
 0x4b8   : > { %5706 = vst [vmem:[%s10760_s6 + $0x20] sm:$0xff] %v5690_v6 }
 0x4b9   : > { %v5666_v40 = vpop.f32.mrf.mxu2  ;;  %v5676_v56 = vpop.f32.mrf.mxu3 }
 0x4ba   : > { %v5667_v34 = vadd.f32 %v8376_v14, %v5666_v40  ;;  %v5677_v45 = vadd.f32 %v8376_v14, %v5676_v56  ;;  %v5648_v4 = vpop.f32.mrf.mxu0  ;;  %v5658_v15 = vpop.f32.mrf.mxu1 }
 0x4bb   : > { %v5649_v29 = vadd.f32 %v8376_v14, %v5648_v4  ;;  %v5659_v43 = vadd.f32 %v8376_v14, %v5658_v15 }
 0x4bc   : > { %v5694_v17 = vmax.f32 %v5667_v34, 0.0  ;;  %v5698_v36 = vmax.f32 %v5677_v45, 0.0 }
 0x4bd   : > { %v5687_v9 = vmax.f32 %v5649_v29, 0.0  ;;  %v5691_v28 = vmax.f32 %v5659_v43, 0.0 }
 0x4be   : > { %5710 = vst [vmem:[%s10760_s6 + $0x40] sm:$0xff] %v5694_v17 }
 0x4bf   : > { %5714 = vst [vmem:[%s10760_s6 + $0x60] sm:$0xff] %v5698_v36 }
 0x4c0   : > { %5703 = vst [vmem:[%s10760_s6 + $0x8] sm:$0xff] %v5687_v9 }
 0x4c1   : > { %5707 = vst [vmem:[%s10760_s6 + $0x28] sm:$0xff] %v5691_v28  ;;  %v5668_v12 = vpop.f32.mrf.mxu2  ;;  %v5678_v22 = vpop.f32.mrf.mxu3 }
 0x4c2   : > { %v5669_v63 = vadd.f32 %v8376_v14, %v5668_v12  ;;  %v5679_v61 = vadd.f32 %v8376_v14, %v5678_v22  ;;  %v5651_v41 = vpop.f32.mrf.mxu0  ;;  %v5661_v39 = vpop.f32.mrf.mxu1 }
 0x4c3   : > { %v5652_v27 = vadd.f32 %v8376_v14, %v5651_v41  ;;  %v5662_v59 = vadd.f32 %v8376_v14, %v5661_v39 }
 0x4c4   : > { %v5695_v44 = vmax.f32 %v5669_v63, 0.0  ;;  %v5699_v18 = vmax.f32 %v5679_v61, 0.0 }
 0x4c5   : > { %v5688_v0 = vmax.f32 %v5652_v27, 0.0  ;;  %v5692_v5 = vmax.f32 %v5662_v59, 0.0 }
 0x4c6   : > { %5711 = vst [vmem:[%s10760_s6 + $0x48] sm:$0xff] %v5695_v44 }
 0x4c7   : > { %5715 = vst [vmem:[%s10760_s6 + $0x68] sm:$0xff] %v5699_v18 }
 0x4c8   : > { %5704 = vst [vmem:[%s10760_s6 + $0x10] sm:$0xff] %v5688_v0 }
 0x4c9   : > { %5708 = vst [vmem:[%s10760_s6 + $0x30] sm:$0xff] %v5692_v5  ;;  %v5671_v19 = vpop.f32.mrf.mxu2  ;;  %v5681_v33 = vpop.f32.mrf.mxu3 }
 0x4ca   : > { %v5672_v37 = vadd.f32 %v8376_v14, %v5671_v19  ;;  %v5682_v25 = vadd.f32 %v8376_v14, %v5681_v33  ;;  %v5653_v46 = vpop.f32.mrf.mxu0  ;;  %v5663_v32 = vpop.f32.mrf.mxu1 }
 0x4cb   : > { %v5654_v53 = vadd.f32 %v8376_v14, %v5653_v46  ;;  %v5664_v49 = vadd.f32 %v8376_v14, %v5663_v32 }
 0x4cc   : > { %v5696_v31 = vmax.f32 %v5672_v37, 0.0  ;;  %v5700_v55 = vmax.f32 %v5682_v25, 0.0 }
 0x4cd   : > { %v5689_v48 = vmax.f32 %v5654_v53, 0.0  ;;  %v5693_v58 = vmax.f32 %v5664_v49, 0.0 }
 0x4ce   : > { %5712 = vst [vmem:[%s10760_s6 + $0x50] sm:$0xff] %v5696_v31 }
 0x4cf   : > { %5716 = vst [vmem:[%s10760_s6 + $0x70] sm:$0xff] %v5700_v55 }
 0x4d0   : > { %5705 = vst [vmem:[%s10760_s6 + $0x18] sm:$0xff] %v5689_v48 }
 0x4d1   : > { %5709 = vst [vmem:[%s10760_s6 + $0x38] sm:$0xff] %v5693_v58  ;;  %v5673_v57 = vpop.f32.mrf.mxu2  ;;  %v5683_v42 = vpop.f32.mrf.mxu3 }
 0x4d2   : > { %v5674_v3 = vadd.f32 %v8376_v14, %v5673_v57  ;;  %v5684_v26 = vadd.f32 %v8376_v14, %v5683_v42 }
 0x4d4   : > { %v5697_v30 = vmax.f32 %v5674_v3, 0.0  ;;  %v5701_v52 = vmax.f32 %v5684_v26, 0.0 }
 0x4d6   : > { %5713 = vst [vmem:[%s10760_s6 + $0x58] sm:$0xff] %v5697_v30 }
 0x4d7   : > { %5717 = vst [vmem:[%s10760_s6 + $0x78] sm:$0xff] %v5701_v52 }
 0x4d8 PF: > { %p16_p5 = scmp.ge.s32.totalorder %s8689_s12, 22   ;;  %s11022_s21 = smov %s8565_s22 }
 0x4d9   : > { %s11023_s22 = smov %s8569_s23  ;;  %s11024_s23 = smov %s8699_s17 }
 0x4da   : > { %s11025_s24 = smov %s8689_s12  ;;  %18 = sbr.rel (!%p16_p5) target bundleno = 4 (0x4), region = 122 }
 0x4df   :  { %5729 = vsyncpa [#allocation6], 1 }
 0x4e0   :  { %5731 = vsyncpa [#allocation6 + $0x1], 1 }
 0x4e1   :  { %5732 = vsyncpa [#allocation8], 1 }
 0x4e2   :  { %5733 = vsyncpa [#allocation11], 1 }

</bundles_post_ra>
